<compile_context>
chip_gen: v5e
topology: v5e:2x2
jax: 0.10.0
libtpu: 0.0.40
codegen_flags: <defaults>
</compile_context>

<pallas_src>
import jax
import jax.numpy as jnp
from jax.experimental import pallas as pl
from jax.experimental.pallas import tpu as pltpu


# ----------------------------------------------------------------------------
# Kernel: whole network for one batch tile.
# ----------------------------------------------------------------------------
def _net_kernel(xw_ref, w1_ref, b1_ref, w2_ref, b2_ref,
                fw1_ref, fb1_ref, fw2_ref, fb2_ref, o_ref):
    """xw_ref : (12, bt, 256) bf16  row-windowed pixels, [win, batch, dy6*28+c] (pad=0)
       w1_ref : (256, 512)   bf16   banded conv1 weights, N = (2p+q)*128 + j*10 + co
       b1_ref : (1, 128)     f32    conv1 bias tiled over j (pad lanes = 0)
       w2_ref : (768, 512)   bf16   banded conv2 weights, K = dy6*128 + j*10 + ci
       b2_ref : (1, 128)     f32    conv2 bias tiled over j2 (pad lanes = 0)
       fw1_ref: (512, 128)   bf16   fc1 weights (NCHW flatten folded in, pads = 0)
       fb1_ref: (1, 128) f32,  fw2_ref: (128, 128) bf16,  fb2_ref: (1, 128) f32
       o_ref  : (bt, 128)    f32    log-softmax output (cols 0..9 valid)
    """
    f32 = jnp.float32
    bf16 = jnp.bfloat16

    b1 = b1_ref[...]
    b2 = b2_ref[...]

    def pool_max(s):
        # s: (bt, 512) f32; the 4 lane groups are the (pool-row p, pool-col q)
        # parities of the 2x2 max-pool window.  All slices are 128-lane aligned.
        return jnp.maximum(jnp.maximum(s[:, 0:128], s[:, 128:256]),
                           jnp.maximum(s[:, 256:384], s[:, 384:512]))

    # ---- Stage 1: conv1 + maxpool2 + relu  (28x28 -> 12x12x10), 12 dots ----
    # y1[i][b, j*10+co] = relu(maxpool(conv1))[b, co, i, j]; pad lanes = 0.
    y1 = []
    for i in range(12):
        s = jnp.dot(xw_ref[i], w1_ref[...], preferred_element_type=f32)   # (bt,512)
        y1.append(jnp.maximum(pool_max(s) + b1, 0.0).astype(bf16))        # (bt,128)

    # ---- Stage 2: Dropout2d (eval: identity) -> conv2 + maxpool2 + relu, 4 dots ----
    # y2[i2][b, j2*20+co] = relu(maxpool(conv2))[b, co, i2, j2]; pad lanes = 0.
    y2 = []
    for i2 in range(4):
        # 6-row window of lane-aligned 128-wide blocks -> pure vreg placement.
        lhs = jnp.concatenate([y1[2 * i2 + d] for d in range(6)], axis=-1)  # (bt,768)
        s = jnp.dot(lhs, w2_ref[...], preferred_element_type=f32)           # (bt,512)
        y2.append(jnp.maximum(pool_max(s) + b2, 0.0).astype(bf16))          # (bt,128)

    # ---- fc1 + relu: single GEMM (torch NCHW flatten folded into fw1 rows) ----
    hcat = jnp.concatenate(y2, axis=-1)                                     # (bt,512)
    h = jnp.maximum(jnp.dot(hcat, fw1_ref[...], preferred_element_type=f32)
                    + fb1_ref[...], 0.0).astype(bf16)                       # (bt,128)

    # ---- fc2 + log_softmax over lane-dense 128 cols (pad classes bias=-1e30) ----
    logits = jnp.dot(h, fw2_ref[...], preferred_element_type=f32) + fb2_ref[...]
    mx = jnp.max(logits, axis=-1, keepdims=True)
    lse = jnp.log(jnp.sum(jnp.exp(logits - mx), axis=-1, keepdims=True)) + mx
    o_ref[...] = logits - lse


# ----------------------------------------------------------------------------
# Host-side weight preparation (pure XLA, one-time, tiny).
# ----------------------------------------------------------------------------
def _conv1_weights(w1):
    """w1: (10,1,5,5) OIHW -> (256, 512) bf16 banded weight.
       [dy6*28 + c, (2p+q)*128 + j*10 + co] = w1[co,0,dy6-p, c-2j-q] if valid else 0."""
    w = w1[:, 0]                                             # (10, 5, 5) [co, dy, dx]
    dy6 = jnp.arange(6).reshape(6, 1, 1, 1)
    c = jnp.arange(28).reshape(1, 28, 1, 1)
    g = jnp.arange(4).reshape(1, 1, 4, 1)                    # g = 2*p + q
    j = jnp.arange(12).reshape(1, 1, 1, 12)
    p, q = g // 2, g % 2
    dy = dy6 - p
    dx = c - 2 * j - q
    valid = (dy >= 0) & (dy <= 4) & (dx >= 0) & (dx <= 4)    # (6,28,4,12)
    dyb = jnp.broadcast_to(jnp.clip(dy, 0, 4), valid.shape)
    dxb = jnp.broadcast_to(jnp.clip(dx, 0, 4), valid.shape)
    t = jnp.where(valid[None], w[:, dyb, dxb], 0.0)          # (10,6,28,4,12)
    t = jnp.transpose(t, (1, 2, 3, 4, 0)).reshape(6, 28, 4, 120)   # [dy6,c,g,j*10+co]
    t = jnp.pad(t, ((0, 0), (0, 0), (0, 0), (0, 8)))         # -> (6,28,4,128)
    t = t.reshape(168, 512)
    t = jnp.pad(t, ((0, 88), (0, 0)))                        # K padded to one MXU pass
    return t.astype(jnp.bfloat16)                            # (256, 512)


def _conv2_weights(w2):
    """w2: (20,10,5,5) OIHW -> (768, 512) bf16 banded weight.
       [dy6*128 + j*10 + ci, (2p+q)*128 + j2*20 + co] = w2[co,ci,dy6-p, j-2j2-q]."""
    dy6 = jnp.arange(6).reshape(6, 1, 1, 1)
    j = jnp.arange(12).reshape(1, 12, 1, 1)
    g = jnp.arange(4).reshape(1, 1, 4, 1)
    j2 = jnp.arange(4).reshape(1, 1, 1, 4)
    p, q = g // 2, g % 2
    dy = dy6 - p
    dx = j - 2 * j2 - q
    valid = (dy >= 0) & (dy <= 4) & (dx >= 0) & (dx <= 4)    # (6,12,4,4)
    dyb = jnp.broadcast_to(jnp.clip(dy, 0, 4), valid.shape)
    dxb = jnp.broadcast_to(jnp.clip(dx, 0, 4), valid.shape)
    t = jnp.where(valid[None, None], w2[:, :, dyb, dxb], 0.0)        # (20,10,6,12,4,4)
    t = jnp.transpose(t, (2, 3, 1, 4, 5, 0)).reshape(6, 120, 4, 80)  # [dy6,j*10+ci,g,j2*20+co]
    t = jnp.pad(t, ((0, 0), (0, 8), (0, 0), (0, 48)))                # (6,128,4,128)
    return t.reshape(768, 512).astype(jnp.bfloat16)


def _fc_weights(fw1, fb1, fw2, fb2):
    """fc1 rows permuted from torch NCHW flatten (c*16+h*4+w) to the kernel's
       (h, w*20+c) 128-row blocks; both fc layers padded to lane-dense 128 cols."""
    fw1r = jnp.transpose(fw1.reshape(20, 4, 4, 50), (1, 2, 0, 3)).reshape(4, 80, 50)
    fw1r = jnp.pad(fw1r, ((0, 0), (0, 48), (0, 0))).reshape(512, 50)
    fw1b = jnp.pad(fw1r, ((0, 0), (0, 78))).astype(jnp.bfloat16)           # (512,128)
    fb1p = jnp.pad(fb1, (0, 78)).reshape(1, 128).astype(jnp.float32)
    fw2b = jnp.pad(fw2, ((0, 78), (0, 118))).astype(jnp.bfloat16)          # (128,128)
    fb2p = jnp.concatenate([fb2.astype(jnp.float32),
                            jnp.full((118,), -1e30, jnp.float32)]).reshape(1, 128)
    return fw1b, fb1p, fw2b, fb2p


# ----------------------------------------------------------------------------
# Full forward (Pallas) and pure-JAX reference.
# ----------------------------------------------------------------------------
def net_forward(x_nchw, params, block_n=256):
    w1, b1, w2, b2, fw1, fb1, fw2, fb2 = params
    n = x_nchw.shape[0]

    # Batch tile (multiple of 8).  For n < 2*block_n, split the batch into ~2
    # grid steps so both v7x TensorCores get work (harmless on v5e/v6e).
    if n >= 2 * block_n:
        bt = block_n
    else:
        bt = max(8, min(block_n, ((-(-n // 2) + 7) // 8) * 8))
    n_pad = pl.cdiv(n, bt) * bt

    # Row-windowed input: xw[i, b, dy6*28 + c] = x[b, 0, 2*i + dy6, c], lane-padded.
    x3 = x_nchw.reshape(n, 28, 28).astype(jnp.bfloat16)
    if n_pad != n:
        x3 = jnp.concatenate([x3, jnp.zeros((n_pad - n, 28, 28), x3.dtype)], 0)
    rows = 2 * jnp.arange(12)[:, None] + jnp.arange(6)[None, :]      # (12, 6)
    xw = x3[:, rows, :]                                              # (n_pad,12,6,28)
    xw = jnp.transpose(xw, (1, 0, 2, 3)).reshape(12, n_pad, 168)
    xw = jnp.pad(xw, ((0, 0), (0, 0), (0, 88)))                      # (12, n_pad, 256)

    # Banded conv weights, tiled biases, permuted/padded fc weights.
    w1b = _conv1_weights(w1)                                         # (256, 512)
    w2b = _conv2_weights(w2)                                         # (768, 512)
    b1t = jnp.pad(jnp.tile(b1, 12), (0, 8)).reshape(1, 128).astype(jnp.float32)
    b2t = jnp.pad(jnp.tile(b2, 4), (0, 48)).reshape(1, 128).astype(jnp.float32)
    fw1b, fb1p, fw2b, fb2p = _fc_weights(fw1, fb1, fw2, fb2)

    grid = (n_pad // bt,)
    out = pl.pallas_call(
        _net_kernel,
        out_shape=jax.ShapeDtypeStruct((n_pad, 128), jnp.float32),
        grid=grid,
        in_specs=[
            pl.BlockSpec((12, bt, 256), lambda i: (0, i, 0)),
            pl.BlockSpec((256, 512), lambda i: (0, 0)),
            pl.BlockSpec((1, 128), lambda i: (0, 0)),
            pl.BlockSpec((768, 512), lambda i: (0, 0)),
            pl.BlockSpec((1, 128), lambda i: (0, 0)),
            pl.BlockSpec((512, 128), lambda i: (0, 0)),
            pl.BlockSpec((1, 128), lambda i: (0, 0)),
            pl.BlockSpec((128, 128), lambda i: (0, 0)),
            pl.BlockSpec((1, 128), lambda i: (0, 0)),
        ],
        out_specs=pl.BlockSpec((bt, 128), lambda i: (i, 0)),
        compiler_params=pltpu.CompilerParams(dimension_semantics=("parallel",)),
    )(xw, w1b, b1t, w2b, b2t, fw1b, fb1p, fw2b, fb2p)
    return out[:n, :10]


def reference_forward(x, params):
    w1, b1, w2, b2, fw1, fb1, fw2, fb2 = params
    dn = ("NCHW", "OIHW", "NCHW")
    hi = jax.lax.Precision.HIGHEST

    y = jax.lax.conv_general_dilated(x, w1, (1, 1), "VALID",
                                     dimension_numbers=dn, precision=hi)
    y = y + b1[None, :, None, None]
    y = jax.lax.reduce_window(y, -jnp.inf, jax.lax.max, (1, 1, 2, 2), (1, 1, 2, 2), "VALID")
    y = jnp.maximum(y, 0.0)

    y = jax.lax.conv_general_dilated(y, w2, (1, 1), "VALID",
                                     dimension_numbers=dn, precision=hi)
    y = y + b2[None, :, None, None]
    y = jax.lax.reduce_window(y, -jnp.inf, jax.lax.max, (1, 1, 2, 2), (1, 1, 2, 2), "VALID")
    y = jnp.maximum(y, 0.0)

    y = y.reshape(x.shape[0], -1)                                    # (N, 320) torch order
    h = jnp.maximum(jnp.dot(y, fw1, precision=hi) + fb1, 0.0)
    logits = jnp.dot(h, fw2, precision=hi) + fb2
    return jax.nn.log_softmax(logits, axis=1)


# ----------------------------------------------------------------------------
if __name__ == "__main__":
    key = jax.random.PRNGKey(0)
    ks = jax.random.split(key, 9)

    params = (
        jax.random.normal(ks[0], (10, 1, 5, 5), jnp.float32) * 0.10,   # conv1.weight
        jax.random.normal(ks[1], (10,), jnp.float32) * 0.10,           # conv1.bias
        jax.random.normal(ks[2], (20, 10, 5, 5), jnp.float32) * 0.05,  # conv2.weight
        jax.random.normal(ks[3], (20,), jnp.float32) * 0.05,           # conv2.bias
        jax.random.normal(ks[4], (320, 50), jnp.float32) * 0.05,       # fc1.weight (in, out)
        jax.random.normal(ks[5], (50,), jnp.float32) * 0.05,           # fc1.bias
        jax.random.normal(ks[6], (50, 10), jnp.float32) * 0.10,        # fc2.weight (in, out)
        jax.random.normal(ks[7], (10,), jnp.float32) * 0.10,           # fc2.bias
    )

    # MNIST-style input (28x28 is required by fc1's 320 = 20*4*4 input size).
    x = jax.random.normal(ks[8], (2, 1, 28, 28), jnp.float32)

    out = jax.block_until_ready(jax.jit(net_forward)(x, params))
    ref = reference_forward(x, params)

    assert out.shape == (2, 10), out.shape
    max_err = float(jnp.max(jnp.abs(out - ref)))
    # bf16 activations/weights with f32 accumulation vs an f32-HIGHEST reference.
    assert max_err < 3e-2, max_err
    print("KERNEL_OK")
</pallas_src>

<mosaic_0001>
module attributes {stable_mosaic.version = 11 : i64} {
  func.func @_net_kernel(%arg0: i32, %arg1: memref<12x8x256xbf16, #tpu.memory_space<vmem>>, %arg2: memref<256x512xbf16, #tpu.memory_space<vmem>>, %arg3: memref<1x128xf32, #tpu.memory_space<vmem>>, %arg4: memref<768x512xbf16, #tpu.memory_space<vmem>>, %arg5: memref<1x128xf32, #tpu.memory_space<vmem>>, %arg6: memref<512x128xbf16, #tpu.memory_space<vmem>>, %arg7: memref<1x128xf32, #tpu.memory_space<vmem>>, %arg8: memref<128x128xbf16, #tpu.memory_space<vmem>>, %arg9: memref<1x128xf32, #tpu.memory_space<vmem>>, %arg10: memref<8x128xf32, #tpu.memory_space<vmem>>) attributes {dimension_semantics = [#tpu.dimension_semantics<parallel>], iteration_bounds = array<i64: 1>, scalar_prefetch = 0 : i64, scratch_operands = 0 : i64, tpu.core_type = #tpu.core_type<tc>, window_params = [{transform_indices = @transform_0, window_bounds = array<i64: 12, 8, 256>}, {pipeline_mode = #tpu.pipeline_mode<synchronous>, transform_indices = @transform_1, window_bounds = array<i64: 256, 512>}, {pipeline_mode = #tpu.pipeline_mode<synchronous>, transform_indices = @transform_2, window_bounds = array<i64: 1, 128>}, {pipeline_mode = #tpu.pipeline_mode<synchronous>, transform_indices = @transform_3, window_bounds = array<i64: 768, 512>}, {pipeline_mode = #tpu.pipeline_mode<synchronous>, transform_indices = @transform_4, window_bounds = array<i64: 1, 128>}, {pipeline_mode = #tpu.pipeline_mode<synchronous>, transform_indices = @transform_5, window_bounds = array<i64: 512, 128>}, {pipeline_mode = #tpu.pipeline_mode<synchronous>, transform_indices = @transform_6, window_bounds = array<i64: 1, 128>}, {pipeline_mode = #tpu.pipeline_mode<synchronous>, transform_indices = @transform_7, window_bounds = array<i64: 128, 128>}, {pipeline_mode = #tpu.pipeline_mode<synchronous>, transform_indices = @transform_8, window_bounds = array<i64: 1, 128>}, {transform_indices = @transform_9, window_bounds = array<i64: 8, 128>}]} {
    %c0 = arith.constant 0 : index
    %c0_0 = arith.constant 0 : index
    %0 = vector.load %arg3[%c0, %c0_0] : memref<1x128xf32, #tpu.memory_space<vmem>>, vector<1x128xf32>
    %c0_1 = arith.constant 0 : index
    %c0_2 = arith.constant 0 : index
    %1 = vector.load %arg5[%c0_1, %c0_2] : memref<1x128xf32, #tpu.memory_space<vmem>>, vector<1x128xf32>
    %c0_3 = arith.constant 0 : index
    %c0_4 = arith.constant 0 : index
    %c0_5 = arith.constant 0 : index
    %2 = vector.load %arg1[%c0_3, %c0_4, %c0_5] : memref<12x8x256xbf16, #tpu.memory_space<vmem>>, vector<1x8x256xbf16>
    %3 = vector.shape_cast %2 : vector<1x8x256xbf16> to vector<8x256xbf16>
    %c0_6 = arith.constant 0 : index
    %c0_7 = arith.constant 0 : index
    %4 = vector.load %arg2[%c0_6, %c0_7] : memref<256x512xbf16, #tpu.memory_space<vmem>>, vector<256x512xbf16>
    %cst = arith.constant dense<0.000000e+00> : vector<8x512xf32>
    %5 = tpu.matmul %3, %4, %cst {dimension_numbers = #tpu.dot_dimension_numbers<[1], [0], [0], [1], [0, 0, 1, 1], [], []>} : vector<8x256xbf16>, vector<256x512xbf16>, vector<8x512xf32> -> vector<8x512xf32>
    %6 = vector.extract_strided_slice %5 {offsets = [0, 0], sizes = [8, 128], strides = [1, 1]} : vector<8x512xf32> to vector<8x128xf32>
    %7 = vector.extract_strided_slice %5 {offsets = [0, 128], sizes = [8, 128], strides = [1, 1]} : vector<8x512xf32> to vector<8x128xf32>
    %8 = arith.maximumf %6, %7 : vector<8x128xf32>
    %9 = vector.extract_strided_slice %5 {offsets = [0, 256], sizes = [8, 128], strides = [1, 1]} : vector<8x512xf32> to vector<8x128xf32>
    %10 = vector.extract_strided_slice %5 {offsets = [0, 384], sizes = [8, 128], strides = [1, 1]} : vector<8x512xf32> to vector<8x128xf32>
    %11 = arith.maximumf %9, %10 : vector<8x128xf32>
    %12 = arith.maximumf %8, %11 : vector<8x128xf32>
    %13 = vector.broadcast %0 : vector<1x128xf32> to vector<8x128xf32>
    %14 = arith.addf %12, %13 : vector<8x128xf32>
    %cst_8 = arith.constant 0.000000e+00 : f32
    %15 = vector.broadcast %cst_8 : f32 to vector<8x128xf32>
    %16 = arith.maximumf %14, %15 : vector<8x128xf32>
    %17 = arith.truncf %16 : vector<8x128xf32> to vector<8x128xbf16>
    %c1 = arith.constant 1 : index
    %c0_9 = arith.constant 0 : index
    %c0_10 = arith.constant 0 : index
    %18 = vector.load %arg1[%c1, %c0_9, %c0_10] : memref<12x8x256xbf16, #tpu.memory_space<vmem>>, vector<1x8x256xbf16>
    %19 = vector.shape_cast %18 : vector<1x8x256xbf16> to vector<8x256xbf16>
    %c0_11 = arith.constant 0 : index
    %c0_12 = arith.constant 0 : index
    %20 = vector.load %arg2[%c0_11, %c0_12] : memref<256x512xbf16, #tpu.memory_space<vmem>>, vector<256x512xbf16>
    %cst_13 = arith.constant dense<0.000000e+00> : vector<8x512xf32>
    %21 = tpu.matmul %19, %20, %cst_13 {dimension_numbers = #tpu.dot_dimension_numbers<[1], [0], [0], [1], [0, 0, 1, 1], [], []>} : vector<8x256xbf16>, vector<256x512xbf16>, vector<8x512xf32> -> vector<8x512xf32>
    %22 = vector.extract_strided_slice %21 {offsets = [0, 0], sizes = [8, 128], strides = [1, 1]} : vector<8x512xf32> to vector<8x128xf32>
    %23 = vector.extract_strided_slice %21 {offsets = [0, 128], sizes = [8, 128], strides = [1, 1]} : vector<8x512xf32> to vector<8x128xf32>
    %24 = arith.maximumf %22, %23 : vector<8x128xf32>
    %25 = vector.extract_strided_slice %21 {offsets = [0, 256], sizes = [8, 128], strides = [1, 1]} : vector<8x512xf32> to vector<8x128xf32>
    %26 = vector.extract_strided_slice %21 {offsets = [0, 384], sizes = [8, 128], strides = [1, 1]} : vector<8x512xf32> to vector<8x128xf32>
    %27 = arith.maximumf %25, %26 : vector<8x128xf32>
    %28 = arith.maximumf %24, %27 : vector<8x128xf32>
    %29 = vector.broadcast %0 : vector<1x128xf32> to vector<8x128xf32>
    %30 = arith.addf %28, %29 : vector<8x128xf32>
    %cst_14 = arith.constant 0.000000e+00 : f32
    %31 = vector.broadcast %cst_14 : f32 to vector<8x128xf32>
    %32 = arith.maximumf %30, %31 : vector<8x128xf32>
    %33 = arith.truncf %32 : vector<8x128xf32> to vector<8x128xbf16>
    %c2 = arith.constant 2 : index
    %c0_15 = arith.constant 0 : index
    %c0_16 = arith.constant 0 : index
    %34 = vector.load %arg1[%c2, %c0_15, %c0_16] : memref<12x8x256xbf16, #tpu.memory_space<vmem>>, vector<1x8x256xbf16>
    %35 = vector.shape_cast %34 : vector<1x8x256xbf16> to vector<8x256xbf16>
    %c0_17 = arith.constant 0 : index
    %c0_18 = arith.constant 0 : index
    %36 = vector.load %arg2[%c0_17, %c0_18] : memref<256x512xbf16, #tpu.memory_space<vmem>>, vector<256x512xbf16>
    %cst_19 = arith.constant dense<0.000000e+00> : vector<8x512xf32>
    %37 = tpu.matmul %35, %36, %cst_19 {dimension_numbers = #tpu.dot_dimension_numbers<[1], [0], [0], [1], [0, 0, 1, 1], [], []>} : vector<8x256xbf16>, vector<256x512xbf16>, vector<8x512xf32> -> vector<8x512xf32>
    %38 = vector.extract_strided_slice %37 {offsets = [0, 0], sizes = [8, 128], strides = [1, 1]} : vector<8x512xf32> to vector<8x128xf32>
    %39 = vector.extract_strided_slice %37 {offsets = [0, 128], sizes = [8, 128], strides = [1, 1]} : vector<8x512xf32> to vector<8x128xf32>
    %40 = arith.maximumf %38, %39 : vector<8x128xf32>
    %41 = vector.extract_strided_slice %37 {offsets = [0, 256], sizes = [8, 128], strides = [1, 1]} : vector<8x512xf32> to vector<8x128xf32>
    %42 = vector.extract_strided_slice %37 {offsets = [0, 384], sizes = [8, 128], strides = [1, 1]} : vector<8x512xf32> to vector<8x128xf32>
    %43 = arith.maximumf %41, %42 : vector<8x128xf32>
    %44 = arith.maximumf %40, %43 : vector<8x128xf32>
    %45 = vector.broadcast %0 : vector<1x128xf32> to vector<8x128xf32>
    %46 = arith.addf %44, %45 : vector<8x128xf32>
    %cst_20 = arith.constant 0.000000e+00 : f32
    %47 = vector.broadcast %cst_20 : f32 to vector<8x128xf32>
    %48 = arith.maximumf %46, %47 : vector<8x128xf32>
    %49 = arith.truncf %48 : vector<8x128xf32> to vector<8x128xbf16>
    %c3 = arith.constant 3 : index
    %c0_21 = arith.constant 0 : index
    %c0_22 = arith.constant 0 : index
    %50 = vector.load %arg1[%c3, %c0_21, %c0_22] : memref<12x8x256xbf16, #tpu.memory_space<vmem>>, vector<1x8x256xbf16>
    %51 = vector.shape_cast %50 : vector<1x8x256xbf16> to vector<8x256xbf16>
    %c0_23 = arith.constant 0 : index
    %c0_24 = arith.constant 0 : index
    %52 = vector.load %arg2[%c0_23, %c0_24] : memref<256x512xbf16, #tpu.memory_space<vmem>>, vector<256x512xbf16>
    %cst_25 = arith.constant dense<0.000000e+00> : vector<8x512xf32>
    %53 = tpu.matmul %51, %52, %cst_25 {dimension_numbers = #tpu.dot_dimension_numbers<[1], [0], [0], [1], [0, 0, 1, 1], [], []>} : vector<8x256xbf16>, vector<256x512xbf16>, vector<8x512xf32> -> vector<8x512xf32>
    %54 = vector.extract_strided_slice %53 {offsets = [0, 0], sizes = [8, 128], strides = [1, 1]} : vector<8x512xf32> to vector<8x128xf32>
    %55 = vector.extract_strided_slice %53 {offsets = [0, 128], sizes = [8, 128], strides = [1, 1]} : vector<8x512xf32> to vector<8x128xf32>
    %56 = arith.maximumf %54, %55 : vector<8x128xf32>
    %57 = vector.extract_strided_slice %53 {offsets = [0, 256], sizes = [8, 128], strides = [1, 1]} : vector<8x512xf32> to vector<8x128xf32>
    %58 = vector.extract_strided_slice %53 {offsets = [0, 384], sizes = [8, 128], strides = [1, 1]} : vector<8x512xf32> to vector<8x128xf32>
    %59 = arith.maximumf %57, %58 : vector<8x128xf32>
    %60 = arith.maximumf %56, %59 : vector<8x128xf32>
    %61 = vector.broadcast %0 : vector<1x128xf32> to vector<8x128xf32>
    %62 = arith.addf %60, %61 : vector<8x128xf32>
    %cst_26 = arith.constant 0.000000e+00 : f32
    %63 = vector.broadcast %cst_26 : f32 to vector<8x128xf32>
    %64 = arith.maximumf %62, %63 : vector<8x128xf32>
    %65 = arith.truncf %64 : vector<8x128xf32> to vector<8x128xbf16>
    %c4 = arith.constant 4 : index
    %c0_27 = arith.constant 0 : index
    %c0_28 = arith.constant 0 : index
    %66 = vector.load %arg1[%c4, %c0_27, %c0_28] : memref<12x8x256xbf16, #tpu.memory_space<vmem>>, vector<1x8x256xbf16>
    %67 = vector.shape_cast %66 : vector<1x8x256xbf16> to vector<8x256xbf16>
    %c0_29 = arith.constant 0 : index
    %c0_30 = arith.constant 0 : index
    %68 = vector.load %arg2[%c0_29, %c0_30] : memref<256x512xbf16, #tpu.memory_space<vmem>>, vector<256x512xbf16>
    %cst_31 = arith.constant dense<0.000000e+00> : vector<8x512xf32>
    %69 = tpu.matmul %67, %68, %cst_31 {dimension_numbers = #tpu.dot_dimension_numbers<[1], [0], [0], [1], [0, 0, 1, 1], [], []>} : vector<8x256xbf16>, vector<256x512xbf16>, vector<8x512xf32> -> vector<8x512xf32>
    %70 = vector.extract_strided_slice %69 {offsets = [0, 0], sizes = [8, 128], strides = [1, 1]} : vector<8x512xf32> to vector<8x128xf32>
    %71 = vector.extract_strided_slice %69 {offsets = [0, 128], sizes = [8, 128], strides = [1, 1]} : vector<8x512xf32> to vector<8x128xf32>
    %72 = arith.maximumf %70, %71 : vector<8x128xf32>
    %73 = vector.extract_strided_slice %69 {offsets = [0, 256], sizes = [8, 128], strides = [1, 1]} : vector<8x512xf32> to vector<8x128xf32>
    %74 = vector.extract_strided_slice %69 {offsets = [0, 384], sizes = [8, 128], strides = [1, 1]} : vector<8x512xf32> to vector<8x128xf32>
    %75 = arith.maximumf %73, %74 : vector<8x128xf32>
    %76 = arith.maximumf %72, %75 : vector<8x128xf32>
    %77 = vector.broadcast %0 : vector<1x128xf32> to vector<8x128xf32>
    %78 = arith.addf %76, %77 : vector<8x128xf32>
    %cst_32 = arith.constant 0.000000e+00 : f32
    %79 = vector.broadcast %cst_32 : f32 to vector<8x128xf32>
    %80 = arith.maximumf %78, %79 : vector<8x128xf32>
    %81 = arith.truncf %80 : vector<8x128xf32> to vector<8x128xbf16>
    %c5 = arith.constant 5 : index
    %c0_33 = arith.constant 0 : index
    %c0_34 = arith.constant 0 : index
    %82 = vector.load %arg1[%c5, %c0_33, %c0_34] : memref<12x8x256xbf16, #tpu.memory_space<vmem>>, vector<1x8x256xbf16>
    %83 = vector.shape_cast %82 : vector<1x8x256xbf16> to vector<8x256xbf16>
    %c0_35 = arith.constant 0 : index
    %c0_36 = arith.constant 0 : index
    %84 = vector.load %arg2[%c0_35, %c0_36] : memref<256x512xbf16, #tpu.memory_space<vmem>>, vector<256x512xbf16>
    %cst_37 = arith.constant dense<0.000000e+00> : vector<8x512xf32>
    %85 = tpu.matmul %83, %84, %cst_37 {dimension_numbers = #tpu.dot_dimension_numbers<[1], [0], [0], [1], [0, 0, 1, 1], [], []>} : vector<8x256xbf16>, vector<256x512xbf16>, vector<8x512xf32> -> vector<8x512xf32>
    %86 = vector.extract_strided_slice %85 {offsets = [0, 0], sizes = [8, 128], strides = [1, 1]} : vector<8x512xf32> to vector<8x128xf32>
    %87 = vector.extract_strided_slice %85 {offsets = [0, 128], sizes = [8, 128], strides = [1, 1]} : vector<8x512xf32> to vector<8x128xf32>
    %88 = arith.maximumf %86, %87 : vector<8x128xf32>
    %89 = vector.extract_strided_slice %85 {offsets = [0, 256], sizes = [8, 128], strides = [1, 1]} : vector<8x512xf32> to vector<8x128xf32>
    %90 = vector.extract_strided_slice %85 {offsets = [0, 384], sizes = [8, 128], strides = [1, 1]} : vector<8x512xf32> to vector<8x128xf32>
    %91 = arith.maximumf %89, %90 : vector<8x128xf32>
    %92 = arith.maximumf %88, %91 : vector<8x128xf32>
    %93 = vector.broadcast %0 : vector<1x128xf32> to vector<8x128xf32>
    %94 = arith.addf %92, %93 : vector<8x128xf32>
    %cst_38 = arith.constant 0.000000e+00 : f32
    %95 = vector.broadcast %cst_38 : f32 to vector<8x128xf32>
    %96 = arith.maximumf %94, %95 : vector<8x128xf32>
    %97 = arith.truncf %96 : vector<8x128xf32> to vector<8x128xbf16>
    %c6 = arith.constant 6 : index
    %c0_39 = arith.constant 0 : index
    %c0_40 = arith.constant 0 : index
    %98 = vector.load %arg1[%c6, %c0_39, %c0_40] : memref<12x8x256xbf16, #tpu.memory_space<vmem>>, vector<1x8x256xbf16>
    %99 = vector.shape_cast %98 : vector<1x8x256xbf16> to vector<8x256xbf16>
    %c0_41 = arith.constant 0 : index
    %c0_42 = arith.constant 0 : index
    %100 = vector.load %arg2[%c0_41, %c0_42] : memref<256x512xbf16, #tpu.memory_space<vmem>>, vector<256x512xbf16>
    %cst_43 = arith.constant dense<0.000000e+00> : vector<8x512xf32>
    %101 = tpu.matmul %99, %100, %cst_43 {dimension_numbers = #tpu.dot_dimension_numbers<[1], [0], [0], [1], [0, 0, 1, 1], [], []>} : vector<8x256xbf16>, vector<256x512xbf16>, vector<8x512xf32> -> vector<8x512xf32>
    %102 = vector.extract_strided_slice %101 {offsets = [0, 0], sizes = [8, 128], strides = [1, 1]} : vector<8x512xf32> to vector<8x128xf32>
    %103 = vector.extract_strided_slice %101 {offsets = [0, 128], sizes = [8, 128], strides = [1, 1]} : vector<8x512xf32> to vector<8x128xf32>
    %104 = arith.maximumf %102, %103 : vector<8x128xf32>
    %105 = vector.extract_strided_slice %101 {offsets = [0, 256], sizes = [8, 128], strides = [1, 1]} : vector<8x512xf32> to vector<8x128xf32>
    %106 = vector.extract_strided_slice %101 {offsets = [0, 384], sizes = [8, 128], strides = [1, 1]} : vector<8x512xf32> to vector<8x128xf32>
    %107 = arith.maximumf %105, %106 : vector<8x128xf32>
    %108 = arith.maximumf %104, %107 : vector<8x128xf32>
    %109 = vector.broadcast %0 : vector<1x128xf32> to vector<8x128xf32>
    %110 = arith.addf %108, %109 : vector<8x128xf32>
    %cst_44 = arith.constant 0.000000e+00 : f32
    %111 = vector.broadcast %cst_44 : f32 to vector<8x128xf32>
    %112 = arith.maximumf %110, %111 : vector<8x128xf32>
    %113 = arith.truncf %112 : vector<8x128xf32> to vector<8x128xbf16>
    %c7 = arith.constant 7 : index
    %c0_45 = arith.constant 0 : index
    %c0_46 = arith.constant 0 : index
    %114 = vector.load %arg1[%c7, %c0_45, %c0_46] : memref<12x8x256xbf16, #tpu.memory_space<vmem>>, vector<1x8x256xbf16>
    %115 = vector.shape_cast %114 : vector<1x8x256xbf16> to vector<8x256xbf16>
    %c0_47 = arith.constant 0 : index
    %c0_48 = arith.constant 0 : index
    %116 = vector.load %arg2[%c0_47, %c0_48] : memref<256x512xbf16, #tpu.memory_space<vmem>>, vector<256x512xbf16>
    %cst_49 = arith.constant dense<0.000000e+00> : vector<8x512xf32>
    %117 = tpu.matmul %115, %116, %cst_49 {dimension_numbers = #tpu.dot_dimension_numbers<[1], [0], [0], [1], [0, 0, 1, 1], [], []>} : vector<8x256xbf16>, vector<256x512xbf16>, vector<8x512xf32> -> vector<8x512xf32>
    %118 = vector.extract_strided_slice %117 {offsets = [0, 0], sizes = [8, 128], strides = [1, 1]} : vector<8x512xf32> to vector<8x128xf32>
    %119 = vector.extract_strided_slice %117 {offsets = [0, 128], sizes = [8, 128], strides = [1, 1]} : vector<8x512xf32> to vector<8x128xf32>
    %120 = arith.maximumf %118, %119 : vector<8x128xf32>
    %121 = vector.extract_strided_slice %117 {offsets = [0, 256], sizes = [8, 128], strides = [1, 1]} : vector<8x512xf32> to vector<8x128xf32>
    %122 = vector.extract_strided_slice %117 {offsets = [0, 384], sizes = [8, 128], strides = [1, 1]} : vector<8x512xf32> to vector<8x128xf32>
    %123 = arith.maximumf %121, %122 : vector<8x128xf32>
    %124 = arith.maximumf %120, %123 : vector<8x128xf32>
    %125 = vector.broadcast %0 : vector<1x128xf32> to vector<8x128xf32>
    %126 = arith.addf %124, %125 : vector<8x128xf32>
    %cst_50 = arith.constant 0.000000e+00 : f32
    %127 = vector.broadcast %cst_50 : f32 to vector<8x128xf32>
    %128 = arith.maximumf %126, %127 : vector<8x128xf32>
    %129 = arith.truncf %128 : vector<8x128xf32> to vector<8x128xbf16>
    %c8 = arith.constant 8 : index
    %c0_51 = arith.constant 0 : index
    %c0_52 = arith.constant 0 : index
    %130 = vector.load %arg1[%c8, %c0_51, %c0_52] : memref<12x8x256xbf16, #tpu.memory_space<vmem>>, vector<1x8x256xbf16>
    %131 = vector.shape_cast %130 : vector<1x8x256xbf16> to vector<8x256xbf16>
    %c0_53 = arith.constant 0 : index
    %c0_54 = arith.constant 0 : index
    %132 = vector.load %arg2[%c0_53, %c0_54] : memref<256x512xbf16, #tpu.memory_space<vmem>>, vector<256x512xbf16>
    %cst_55 = arith.constant dense<0.000000e+00> : vector<8x512xf32>
    %133 = tpu.matmul %131, %132, %cst_55 {dimension_numbers = #tpu.dot_dimension_numbers<[1], [0], [0], [1], [0, 0, 1, 1], [], []>} : vector<8x256xbf16>, vector<256x512xbf16>, vector<8x512xf32> -> vector<8x512xf32>
    %134 = vector.extract_strided_slice %133 {offsets = [0, 0], sizes = [8, 128], strides = [1, 1]} : vector<8x512xf32> to vector<8x128xf32>
    %135 = vector.extract_strided_slice %133 {offsets = [0, 128], sizes = [8, 128], strides = [1, 1]} : vector<8x512xf32> to vector<8x128xf32>
    %136 = arith.maximumf %134, %135 : vector<8x128xf32>
    %137 = vector.extract_strided_slice %133 {offsets = [0, 256], sizes = [8, 128], strides = [1, 1]} : vector<8x512xf32> to vector<8x128xf32>
    %138 = vector.extract_strided_slice %133 {offsets = [0, 384], sizes = [8, 128], strides = [1, 1]} : vector<8x512xf32> to vector<8x128xf32>
    %139 = arith.maximumf %137, %138 : vector<8x128xf32>
    %140 = arith.maximumf %136, %139 : vector<8x128xf32>
    %141 = vector.broadcast %0 : vector<1x128xf32> to vector<8x128xf32>
    %142 = arith.addf %140, %141 : vector<8x128xf32>
    %cst_56 = arith.constant 0.000000e+00 : f32
    %143 = vector.broadcast %cst_56 : f32 to vector<8x128xf32>
    %144 = arith.maximumf %142, %143 : vector<8x128xf32>
    %145 = arith.truncf %144 : vector<8x128xf32> to vector<8x128xbf16>
    %c9 = arith.constant 9 : index
    %c0_57 = arith.constant 0 : index
    %c0_58 = arith.constant 0 : index
    %146 = vector.load %arg1[%c9, %c0_57, %c0_58] : memref<12x8x256xbf16, #tpu.memory_space<vmem>>, vector<1x8x256xbf16>
    %147 = vector.shape_cast %146 : vector<1x8x256xbf16> to vector<8x256xbf16>
    %c0_59 = arith.constant 0 : index
    %c0_60 = arith.constant 0 : index
    %148 = vector.load %arg2[%c0_59, %c0_60] : memref<256x512xbf16, #tpu.memory_space<vmem>>, vector<256x512xbf16>
    %cst_61 = arith.constant dense<0.000000e+00> : vector<8x512xf32>
    %149 = tpu.matmul %147, %148, %cst_61 {dimension_numbers = #tpu.dot_dimension_numbers<[1], [0], [0], [1], [0, 0, 1, 1], [], []>} : vector<8x256xbf16>, vector<256x512xbf16>, vector<8x512xf32> -> vector<8x512xf32>
    %150 = vector.extract_strided_slice %149 {offsets = [0, 0], sizes = [8, 128], strides = [1, 1]} : vector<8x512xf32> to vector<8x128xf32>
    %151 = vector.extract_strided_slice %149 {offsets = [0, 128], sizes = [8, 128], strides = [1, 1]} : vector<8x512xf32> to vector<8x128xf32>
    %152 = arith.maximumf %150, %151 : vector<8x128xf32>
    %153 = vector.extract_strided_slice %149 {offsets = [0, 256], sizes = [8, 128], strides = [1, 1]} : vector<8x512xf32> to vector<8x128xf32>
    %154 = vector.extract_strided_slice %149 {offsets = [0, 384], sizes = [8, 128], strides = [1, 1]} : vector<8x512xf32> to vector<8x128xf32>
    %155 = arith.maximumf %153, %154 : vector<8x128xf32>
    %156 = arith.maximumf %152, %155 : vector<8x128xf32>
    %157 = vector.broadcast %0 : vector<1x128xf32> to vector<8x128xf32>
    %158 = arith.addf %156, %157 : vector<8x128xf32>
    %cst_62 = arith.constant 0.000000e+00 : f32
    %159 = vector.broadcast %cst_62 : f32 to vector<8x128xf32>
    %160 = arith.maximumf %158, %159 : vector<8x128xf32>
    %161 = arith.truncf %160 : vector<8x128xf32> to vector<8x128xbf16>
    %c10 = arith.constant 10 : index
    %c0_63 = arith.constant 0 : index
    %c0_64 = arith.constant 0 : index
    %162 = vector.load %arg1[%c10, %c0_63, %c0_64] : memref<12x8x256xbf16, #tpu.memory_space<vmem>>, vector<1x8x256xbf16>
    %163 = vector.shape_cast %162 : vector<1x8x256xbf16> to vector<8x256xbf16>
    %c0_65 = arith.constant 0 : index
    %c0_66 = arith.constant 0 : index
    %164 = vector.load %arg2[%c0_65, %c0_66] : memref<256x512xbf16, #tpu.memory_space<vmem>>, vector<256x512xbf16>
    %cst_67 = arith.constant dense<0.000000e+00> : vector<8x512xf32>
    %165 = tpu.matmul %163, %164, %cst_67 {dimension_numbers = #tpu.dot_dimension_numbers<[1], [0], [0], [1], [0, 0, 1, 1], [], []>} : vector<8x256xbf16>, vector<256x512xbf16>, vector<8x512xf32> -> vector<8x512xf32>
    %166 = vector.extract_strided_slice %165 {offsets = [0, 0], sizes = [8, 128], strides = [1, 1]} : vector<8x512xf32> to vector<8x128xf32>
    %167 = vector.extract_strided_slice %165 {offsets = [0, 128], sizes = [8, 128], strides = [1, 1]} : vector<8x512xf32> to vector<8x128xf32>
    %168 = arith.maximumf %166, %167 : vector<8x128xf32>
    %169 = vector.extract_strided_slice %165 {offsets = [0, 256], sizes = [8, 128], strides = [1, 1]} : vector<8x512xf32> to vector<8x128xf32>
    %170 = vector.extract_strided_slice %165 {offsets = [0, 384], sizes = [8, 128], strides = [1, 1]} : vector<8x512xf32> to vector<8x128xf32>
    %171 = arith.maximumf %169, %170 : vector<8x128xf32>
    %172 = arith.maximumf %168, %171 : vector<8x128xf32>
    %173 = vector.broadcast %0 : vector<1x128xf32> to vector<8x128xf32>
    %174 = arith.addf %172, %173 : vector<8x128xf32>
    %cst_68 = arith.constant 0.000000e+00 : f32
    %175 = vector.broadcast %cst_68 : f32 to vector<8x128xf32>
    %176 = arith.maximumf %174, %175 : vector<8x128xf32>
    %177 = arith.truncf %176 : vector<8x128xf32> to vector<8x128xbf16>
    %c11 = arith.constant 11 : index
    %c0_69 = arith.constant 0 : index
    %c0_70 = arith.constant 0 : index
    %178 = vector.load %arg1[%c11, %c0_69, %c0_70] : memref<12x8x256xbf16, #tpu.memory_space<vmem>>, vector<1x8x256xbf16>
    %179 = vector.shape_cast %178 : vector<1x8x256xbf16> to vector<8x256xbf16>
    %c0_71 = arith.constant 0 : index
    %c0_72 = arith.constant 0 : index
    %180 = vector.load %arg2[%c0_71, %c0_72] : memref<256x512xbf16, #tpu.memory_space<vmem>>, vector<256x512xbf16>
    %cst_73 = arith.constant dense<0.000000e+00> : vector<8x512xf32>
    %181 = tpu.matmul %179, %180, %cst_73 {dimension_numbers = #tpu.dot_dimension_numbers<[1], [0], [0], [1], [0, 0, 1, 1], [], []>} : vector<8x256xbf16>, vector<256x512xbf16>, vector<8x512xf32> -> vector<8x512xf32>
    %182 = vector.extract_strided_slice %181 {offsets = [0, 0], sizes = [8, 128], strides = [1, 1]} : vector<8x512xf32> to vector<8x128xf32>
    %183 = vector.extract_strided_slice %181 {offsets = [0, 128], sizes = [8, 128], strides = [1, 1]} : vector<8x512xf32> to vector<8x128xf32>
    %184 = arith.maximumf %182, %183 : vector<8x128xf32>
    %185 = vector.extract_strided_slice %181 {offsets = [0, 256], sizes = [8, 128], strides = [1, 1]} : vector<8x512xf32> to vector<8x128xf32>
    %186 = vector.extract_strided_slice %181 {offsets = [0, 384], sizes = [8, 128], strides = [1, 1]} : vector<8x512xf32> to vector<8x128xf32>
    %187 = arith.maximumf %185, %186 : vector<8x128xf32>
    %188 = arith.maximumf %184, %187 : vector<8x128xf32>
    %189 = vector.broadcast %0 : vector<1x128xf32> to vector<8x128xf32>
    %190 = arith.addf %188, %189 : vector<8x128xf32>
    %cst_74 = arith.constant 0.000000e+00 : f32
    %191 = vector.broadcast %cst_74 : f32 to vector<8x128xf32>
    %192 = arith.maximumf %190, %191 : vector<8x128xf32>
    %193 = arith.truncf %192 : vector<8x128xf32> to vector<8x128xbf16>
    %194 = tpu.concatenate %17, %33, %49, %65, %81, %97 in 1 : vector<8x128xbf16>, vector<8x128xbf16>, vector<8x128xbf16>, vector<8x128xbf16>, vector<8x128xbf16>, vector<8x128xbf16> -> vector<8x768xbf16>
    %c0_75 = arith.constant 0 : index
    %c0_76 = arith.constant 0 : index
    %195 = vector.load %arg4[%c0_75, %c0_76] : memref<768x512xbf16, #tpu.memory_space<vmem>>, vector<768x512xbf16>
    %cst_77 = arith.constant dense<0.000000e+00> : vector<8x512xf32>
    %196 = tpu.matmul %194, %195, %cst_77 {dimension_numbers = #tpu.dot_dimension_numbers<[1], [0], [0], [1], [0, 0, 1, 1], [], []>} : vector<8x768xbf16>, vector<768x512xbf16>, vector<8x512xf32> -> vector<8x512xf32>
    %197 = vector.extract_strided_slice %196 {offsets = [0, 0], sizes = [8, 128], strides = [1, 1]} : vector<8x512xf32> to vector<8x128xf32>
    %198 = vector.extract_strided_slice %196 {offsets = [0, 128], sizes = [8, 128], strides = [1, 1]} : vector<8x512xf32> to vector<8x128xf32>
    %199 = arith.maximumf %197, %198 : vector<8x128xf32>
    %200 = vector.extract_strided_slice %196 {offsets = [0, 256], sizes = [8, 128], strides = [1, 1]} : vector<8x512xf32> to vector<8x128xf32>
    %201 = vector.extract_strided_slice %196 {offsets = [0, 384], sizes = [8, 128], strides = [1, 1]} : vector<8x512xf32> to vector<8x128xf32>
    %202 = arith.maximumf %200, %201 : vector<8x128xf32>
    %203 = arith.maximumf %199, %202 : vector<8x128xf32>
    %204 = vector.broadcast %1 : vector<1x128xf32> to vector<8x128xf32>
    %205 = arith.addf %203, %204 : vector<8x128xf32>
    %cst_78 = arith.constant 0.000000e+00 : f32
    %206 = vector.broadcast %cst_78 : f32 to vector<8x128xf32>
    %207 = arith.maximumf %205, %206 : vector<8x128xf32>
    %208 = arith.truncf %207 : vector<8x128xf32> to vector<8x128xbf16>
    %209 = tpu.concatenate %49, %65, %81, %97, %113, %129 in 1 : vector<8x128xbf16>, vector<8x128xbf16>, vector<8x128xbf16>, vector<8x128xbf16>, vector<8x128xbf16>, vector<8x128xbf16> -> vector<8x768xbf16>
    %c0_79 = arith.constant 0 : index
    %c0_80 = arith.constant 0 : index
    %210 = vector.load %arg4[%c0_79, %c0_80] : memref<768x512xbf16, #tpu.memory_space<vmem>>, vector<768x512xbf16>
    %cst_81 = arith.constant dense<0.000000e+00> : vector<8x512xf32>
    %211 = tpu.matmul %209, %210, %cst_81 {dimension_numbers = #tpu.dot_dimension_numbers<[1], [0], [0], [1], [0, 0, 1, 1], [], []>} : vector<8x768xbf16>, vector<768x512xbf16>, vector<8x512xf32> -> vector<8x512xf32>
    %212 = vector.extract_strided_slice %211 {offsets = [0, 0], sizes = [8, 128], strides = [1, 1]} : vector<8x512xf32> to vector<8x128xf32>
    %213 = vector.extract_strided_slice %211 {offsets = [0, 128], sizes = [8, 128], strides = [1, 1]} : vector<8x512xf32> to vector<8x128xf32>
    %214 = arith.maximumf %212, %213 : vector<8x128xf32>
    %215 = vector.extract_strided_slice %211 {offsets = [0, 256], sizes = [8, 128], strides = [1, 1]} : vector<8x512xf32> to vector<8x128xf32>
    %216 = vector.extract_strided_slice %211 {offsets = [0, 384], sizes = [8, 128], strides = [1, 1]} : vector<8x512xf32> to vector<8x128xf32>
    %217 = arith.maximumf %215, %216 : vector<8x128xf32>
    %218 = arith.maximumf %214, %217 : vector<8x128xf32>
    %219 = vector.broadcast %1 : vector<1x128xf32> to vector<8x128xf32>
    %220 = arith.addf %218, %219 : vector<8x128xf32>
    %cst_82 = arith.constant 0.000000e+00 : f32
    %221 = vector.broadcast %cst_82 : f32 to vector<8x128xf32>
    %222 = arith.maximumf %220, %221 : vector<8x128xf32>
    %223 = arith.truncf %222 : vector<8x128xf32> to vector<8x128xbf16>
    %224 = tpu.concatenate %81, %97, %113, %129, %145, %161 in 1 : vector<8x128xbf16>, vector<8x128xbf16>, vector<8x128xbf16>, vector<8x128xbf16>, vector<8x128xbf16>, vector<8x128xbf16> -> vector<8x768xbf16>
    %c0_83 = arith.constant 0 : index
    %c0_84 = arith.constant 0 : index
    %225 = vector.load %arg4[%c0_83, %c0_84] : memref<768x512xbf16, #tpu.memory_space<vmem>>, vector<768x512xbf16>
    %cst_85 = arith.constant dense<0.000000e+00> : vector<8x512xf32>
    %226 = tpu.matmul %224, %225, %cst_85 {dimension_numbers = #tpu.dot_dimension_numbers<[1], [0], [0], [1], [0, 0, 1, 1], [], []>} : vector<8x768xbf16>, vector<768x512xbf16>, vector<8x512xf32> -> vector<8x512xf32>
    %227 = vector.extract_strided_slice %226 {offsets = [0, 0], sizes = [8, 128], strides = [1, 1]} : vector<8x512xf32> to vector<8x128xf32>
    %228 = vector.extract_strided_slice %226 {offsets = [0, 128], sizes = [8, 128], strides = [1, 1]} : vector<8x512xf32> to vector<8x128xf32>
    %229 = arith.maximumf %227, %228 : vector<8x128xf32>
    %230 = vector.extract_strided_slice %226 {offsets = [0, 256], sizes = [8, 128], strides = [1, 1]} : vector<8x512xf32> to vector<8x128xf32>
    %231 = vector.extract_strided_slice %226 {offsets = [0, 384], sizes = [8, 128], strides = [1, 1]} : vector<8x512xf32> to vector<8x128xf32>
    %232 = arith.maximumf %230, %231 : vector<8x128xf32>
    %233 = arith.maximumf %229, %232 : vector<8x128xf32>
    %234 = vector.broadcast %1 : vector<1x128xf32> to vector<8x128xf32>
    %235 = arith.addf %233, %234 : vector<8x128xf32>
    %cst_86 = arith.constant 0.000000e+00 : f32
    %236 = vector.broadcast %cst_86 : f32 to vector<8x128xf32>
    %237 = arith.maximumf %235, %236 : vector<8x128xf32>
    %238 = arith.truncf %237 : vector<8x128xf32> to vector<8x128xbf16>
    %239 = tpu.concatenate %113, %129, %145, %161, %177, %193 in 1 : vector<8x128xbf16>, vector<8x128xbf16>, vector<8x128xbf16>, vector<8x128xbf16>, vector<8x128xbf16>, vector<8x128xbf16> -> vector<8x768xbf16>
    %c0_87 = arith.constant 0 : index
    %c0_88 = arith.constant 0 : index
    %240 = vector.load %arg4[%c0_87, %c0_88] : memref<768x512xbf16, #tpu.memory_space<vmem>>, vector<768x512xbf16>
    %cst_89 = arith.constant dense<0.000000e+00> : vector<8x512xf32>
    %241 = tpu.matmul %239, %240, %cst_89 {dimension_numbers = #tpu.dot_dimension_numbers<[1], [0], [0], [1], [0, 0, 1, 1], [], []>} : vector<8x768xbf16>, vector<768x512xbf16>, vector<8x512xf32> -> vector<8x512xf32>
    %242 = vector.extract_strided_slice %241 {offsets = [0, 0], sizes = [8, 128], strides = [1, 1]} : vector<8x512xf32> to vector<8x128xf32>
    %243 = vector.extract_strided_slice %241 {offsets = [0, 128], sizes = [8, 128], strides = [1, 1]} : vector<8x512xf32> to vector<8x128xf32>
    %244 = arith.maximumf %242, %243 : vector<8x128xf32>
    %245 = vector.extract_strided_slice %241 {offsets = [0, 256], sizes = [8, 128], strides = [1, 1]} : vector<8x512xf32> to vector<8x128xf32>
    %246 = vector.extract_strided_slice %241 {offsets = [0, 384], sizes = [8, 128], strides = [1, 1]} : vector<8x512xf32> to vector<8x128xf32>
    %247 = arith.maximumf %245, %246 : vector<8x128xf32>
    %248 = arith.maximumf %244, %247 : vector<8x128xf32>
    %249 = vector.broadcast %1 : vector<1x128xf32> to vector<8x128xf32>
    %250 = arith.addf %248, %249 : vector<8x128xf32>
    %cst_90 = arith.constant 0.000000e+00 : f32
    %251 = vector.broadcast %cst_90 : f32 to vector<8x128xf32>
    %252 = arith.maximumf %250, %251 : vector<8x128xf32>
    %253 = arith.truncf %252 : vector<8x128xf32> to vector<8x128xbf16>
    %254 = tpu.concatenate %208, %223, %238, %253 in 1 : vector<8x128xbf16>, vector<8x128xbf16>, vector<8x128xbf16>, vector<8x128xbf16> -> vector<8x512xbf16>
    %c0_91 = arith.constant 0 : index
    %c0_92 = arith.constant 0 : index
    %255 = vector.load %arg6[%c0_91, %c0_92] : memref<512x128xbf16, #tpu.memory_space<vmem>>, vector<512x128xbf16>
    %cst_93 = arith.constant dense<0.000000e+00> : vector<8x128xf32>
    %256 = tpu.matmul %254, %255, %cst_93 {dimension_numbers = #tpu.dot_dimension_numbers<[1], [0], [0], [1], [0, 0, 1, 1], [], []>} : vector<8x512xbf16>, vector<512x128xbf16>, vector<8x128xf32> -> vector<8x128xf32>
    %c0_94 = arith.constant 0 : index
    %c0_95 = arith.constant 0 : index
    %257 = vector.load %arg7[%c0_94, %c0_95] : memref<1x128xf32, #tpu.memory_space<vmem>>, vector<1x128xf32>
    %258 = vector.broadcast %257 : vector<1x128xf32> to vector<8x128xf32>
    %259 = arith.addf %256, %258 : vector<8x128xf32>
    %cst_96 = arith.constant 0.000000e+00 : f32
    %260 = vector.broadcast %cst_96 : f32 to vector<8x128xf32>
    %261 = arith.maximumf %259, %260 : vector<8x128xf32>
    %262 = arith.truncf %261 : vector<8x128xf32> to vector<8x128xbf16>
    %c0_97 = arith.constant 0 : index
    %c0_98 = arith.constant 0 : index
    %263 = vector.load %arg8[%c0_97, %c0_98] : memref<128x128xbf16, #tpu.memory_space<vmem>>, vector<128x128xbf16>
    %cst_99 = arith.constant dense<0.000000e+00> : vector<8x128xf32>
    %264 = tpu.matmul %262, %263, %cst_99 {dimension_numbers = #tpu.dot_dimension_numbers<[1], [0], [0], [1], [0, 0, 1, 1], [], []>} : vector<8x128xbf16>, vector<128x128xbf16>, vector<8x128xf32> -> vector<8x128xf32>
    %c0_100 = arith.constant 0 : index
    %c0_101 = arith.constant 0 : index
    %265 = vector.load %arg9[%c0_100, %c0_101] : memref<1x128xf32, #tpu.memory_space<vmem>>, vector<1x128xf32>
    %266 = vector.broadcast %265 : vector<1x128xf32> to vector<8x128xf32>
    %267 = arith.addf %264, %266 : vector<8x128xf32>
    %cst_102 = arith.constant dense<0xFF800000> : vector<8xf32>
    %268 = vector.multi_reduction <maximumf>, %267, %cst_102 [1] : vector<8x128xf32> to vector<8xf32>
    %269 = vector.shape_cast %268 : vector<8xf32> to vector<8x1xf32>
    %270 = vector.broadcast %269 : vector<8x1xf32> to vector<8x128xf32>
    %271 = arith.subf %267, %270 : vector<8x128xf32>
    %272 = math.exp %271 : vector<8x128xf32>
    %cst_103 = arith.constant dense<0.000000e+00> : vector<8xf32>
    %273 = vector.multi_reduction <add>, %272, %cst_103 [1] : vector<8x128xf32> to vector<8xf32>
    %274 = vector.shape_cast %273 : vector<8xf32> to vector<8x1xf32>
    %275 = math.log %274 : vector<8x1xf32>
    %276 = arith.addf %275, %269 : vector<8x1xf32>
    %277 = vector.broadcast %276 : vector<8x1xf32> to vector<8x128xf32>
    %278 = arith.subf %267, %277 : vector<8x128xf32>
    %c0_104 = arith.constant 0 : index
    %c0_105 = arith.constant 0 : index
    %279 = vector.load %arg10[%c0_104, %c0_105] : memref<8x128xf32, #tpu.memory_space<vmem>>, vector<8x128xf32>
    tpu.vector_store %arg10[%c0_104, %c0_105], %278 {strides = array<i32>} : memref<8x128xf32, #tpu.memory_space<vmem>>, vector<8x128xf32>,
    return
  }
  func.func @transform_0(%arg0: i32) -> (i32, i32, i32) {
    %c0_i32 = arith.constant 0 : i32
    %c0_i32_0 = arith.constant 0 : i32
    %c0_i32_1 = arith.constant 0 : i32
    return %c0_i32, %arg0, %c0_i32_0 : i32, i32, i32
  }
  func.func @transform_1(%arg0: i32) -> (i32, i32) {
    %c0_i32 = arith.constant 0 : i32
    %c0_i32_0 = arith.constant 0 : i32
    %c0_i32_1 = arith.constant 0 : i32
    return %c0_i32, %c0_i32_0 : i32, i32
  }
  func.func @transform_2(%arg0: i32) -> (i32, i32) {
    %c0_i32 = arith.constant 0 : i32
    %c0_i32_0 = arith.constant 0 : i32
    %c0_i32_1 = arith.constant 0 : i32
    return %c0_i32, %c0_i32_0 : i32, i32
  }
  func.func @transform_3(%arg0: i32) -> (i32, i32) {
    %c0_i32 = arith.constant 0 : i32
    %c0_i32_0 = arith.constant 0 : i32
    %c0_i32_1 = arith.constant 0 : i32
    return %c0_i32, %c0_i32_0 : i32, i32
  }
  func.func @transform_4(%arg0: i32) -> (i32, i32) {
    %c0_i32 = arith.constant 0 : i32
    %c0_i32_0 = arith.constant 0 : i32
    %c0_i32_1 = arith.constant 0 : i32
    return %c0_i32, %c0_i32_0 : i32, i32
  }
  func.func @transform_5(%arg0: i32) -> (i32, i32) {
    %c0_i32 = arith.constant 0 : i32
    %c0_i32_0 = arith.constant 0 : i32
    %c0_i32_1 = arith.constant 0 : i32
    return %c0_i32, %c0_i32_0 : i32, i32
  }
  func.func @transform_6(%arg0: i32) -> (i32, i32) {
    %c0_i32 = arith.constant 0 : i32
    %c0_i32_0 = arith.constant 0 : i32
    %c0_i32_1 = arith.constant 0 : i32
    return %c0_i32, %c0_i32_0 : i32, i32
  }
  func.func @transform_7(%arg0: i32) -> (i32, i32) {
    %c0_i32 = arith.constant 0 : i32
    %c0_i32_0 = arith.constant 0 : i32
    %c0_i32_1 = arith.constant 0 : i32
    return %c0_i32, %c0_i32_0 : i32, i32
  }
  func.func @transform_8(%arg0: i32) -> (i32, i32) {
    %c0_i32 = arith.constant 0 : i32
    %c0_i32_0 = arith.constant 0 : i32
    %c0_i32_1 = arith.constant 0 : i32
    return %c0_i32, %c0_i32_0 : i32, i32
  }
  func.func @transform_9(%arg0: i32) -> (i32, i32) {
    %c0_i32 = arith.constant 0 : i32
    %c0_i32_0 = arith.constant 0 : i32
    return %arg0, %c0_i32 : i32, i32
  }
}

</mosaic_0001>

<bundles_post_ra>
// kernel: tile.13
= control target key start
LH: loop header
LB: loop body
LE: loop exit
PB: predicated region body
PF: predicated region fallthrough
CT: control target
= control target key end

     0   :  { %s28_s0 = inlined_call_operand.vmem [shape: f32[10], index: 0, kind: input, shape index: {}]   ;;  %s29_s1 = inlined_call_operand.vmem [shape: f32[12,10], index: 1, kind: output, shape index: {}]  }
   0x1   :  { %v4_v0 = vld [vmem:[%s28_s0] ss:$0 sm:$0xff] }
   0x2   :  { %5 = vst [vmem:[%s29_s1] sm:$0xff] %v4_v0 }
   0x3   :  { %8 = vst [vmem:[%s29_s1 + $0x8] sm:$0xff] %v4_v0 }

// kernel: tile.14
= control target key start
LH: loop header
LB: loop body
LE: loop exit
PB: predicated region body
PF: predicated region fallthrough
CT: control target
= control target key end

     0   :  { %s99_s10 = smov 110   ;;  %s100_s11 = smov 90   ;;  %vm3_vm0 = vcmask 80896   ;;  %vm9_vm1 = vcmask 982896   ;;  %vm15_vm2 = vcmask 900896   ;;  %vm21_vm3 = vcmask 818896   ;;  %s159_s0 = inlined_call_operand.vmem [shape: f32[12,10], index: 0, kind: input, shape index: {}]   ;;  %s160_s1 = inlined_call_operand.vmem [shape: f32[120], index: 1, kind: output, shape index: {}]  }
   0x1   :  { %v77_v0 = vld [vmem:[%s159_s0 + $0xb] sm:$0x1]   ;;  %v79_v1 = vld [vmem:[%s159_s0 + $0x9] sm:$0x1]   ;;  %v81_v2 = vld [vmem:[%s159_s0 + $0x7] sm:$0x1]  }
   0x2   :  { %7 = vrot.lane.b32.xlu0 %v77_v0, %s99_s10  ;;  %19 = vrot.lane.b32.xlu1 %v79_v1, %s100_s11  ;;  %s101_s14 = smov 70   ;;  %v78_v3 = vld [vmem:[%s159_s0 + $0xa] sm:$0x1]   ;;  %v80_v4 = vld [vmem:[%s159_s0 + $0x8] sm:$0x1]   ;;  %s102_s19 = smov 100  }
   0x3   :  { %31 = vrot.lane.b32.xlu2 %v81_v2, %s101_s14  ;;  %s103_s20 = smov 80   ;;  %v82_v5 = vld [vmem:[%s159_s0 + $0x6] sm:$0x1]   ;;  %s104_s23 = smov 60   ;;  %v83_v6 = vld [vmem:[%s159_s0 + $0x5] sm:$0x1]  }
   0x4   :  { %v84_v7 = vld [vmem:[%s159_s0 + $0x4] sm:$0x1]   ;;  %s105_s28 = smov 50   ;;  %s106_s29 = smov 40   ;;  %v85_v8 = vld [vmem:[%s159_s0 + $0x3] sm:$0x1]  }
   0x5   :  { %s107_s3 = smov 30   ;;  %v86_v9 = vld [vmem:[%s159_s0 + $0x2] sm:$0x1]   ;;  %v87_v10 = vld [vmem:[%s159_s0 + $0x1] sm:$0x1]   ;;  %s108_s8 = smov 20  }
   0x6   :  { %s109_s9 = smov 10   ;;  %v2_v11 = vld [vmem:[%s159_s0] sm:$0x1]   ;;  %vm27_vm4 = vcmask 736896   ;;  %vm33_vm5 = vcmask 654896   ;;  %vm39_vm6 = vcmask 572896  }
   0x7   :  { %4 = vst.msk [vmem:[#allocation0] sm:$0x1] %vm3_vm0, %v2_v11   ;;  %vm45_vm7 = vcmask 490896   ;;  %vm51_vm8 = vcmask 408896   ;;  %vm57_vm9 = vcmask 326896   ;;  %vm63_vm10 = vcmask 244896  }
   0x8   :  { %vm69_vm11 = vcmask 162896  }
   0xa   :  { %13 = vrot.lane.b32.xlu0 %v78_v3, %s102_s19  ;;  %25 = vrot.lane.b32.xlu1 %v80_v4, %s103_s20 }
   0xb   :  { %37 = vrot.lane.b32.xlu2 %v82_v5, %s104_s23 }
  0x12   :  { %43 = vrot.lane.b32.xlu0 %v83_v6, %s105_s28  ;;  %49 = vrot.lane.b32.xlu1 %v84_v7, %s106_s29 }
  0x13   :  { %55 = vrot.lane.b32.xlu2 %v85_v8, %s107_s3 }
  0x1a   :  { %61 = vrot.lane.b32.xlu0 %v86_v9, %s108_s8  ;;  %67 = vrot.lane.b32.xlu1 %v87_v10, %s109_s9 }
  0x5d   :  { %v32_v12 = vpop.permute.xlu2 %31  }
  0x65   :  { %v38_v13 = vpop.permute.xlu2 %37  }
  0x6d   :  { %v56_v14 = vpop.permute.xlu2 %55  }
  0x74   :  { %v8_v15 = vpop.permute.xlu0 %7   ;;  %v20_v16 = vpop.permute.xlu1 %19  }
  0x75   :  { %10 = vst.msk [vmem:[#allocation0] sm:$0x1] %vm9_vm1, %v8_v15  }
  0x7c   :  { %v14_v17 = vpop.permute.xlu0 %13   ;;  %v26_v18 = vpop.permute.xlu1 %25  }
  0x7d   :  { %16 = vst.msk [vmem:[#allocation0] sm:$0x1] %vm15_vm2, %v14_v17  }
  0x7e   :  { %22 = vst.msk [vmem:[#allocation0] sm:$0x1] %vm21_vm3, %v20_v16  }
  0x7f   :  { %28 = vst.msk [vmem:[#allocation0] sm:$0x1] %vm27_vm4, %v26_v18  }
  0x80   :  { %34 = vst.msk [vmem:[#allocation0] sm:$0x1] %vm33_vm5, %v32_v12  }
  0x81   :  { %40 = vst.msk [vmem:[#allocation0] sm:$0x1] %vm39_vm6, %v38_v13  }
  0x84   :  { %v44_v19 = vpop.permute.xlu0 %43   ;;  %v50_v20 = vpop.permute.xlu1 %49  }
  0x85   :  { %46 = vst.msk [vmem:[#allocation0] sm:$0x1] %vm45_vm7, %v44_v19  }
  0x86   :  { %52 = vst.msk [vmem:[#allocation0] sm:$0x1] %vm51_vm8, %v50_v20  }
  0x87   :  { %58 = vst.msk [vmem:[#allocation0] sm:$0x1] %vm57_vm9, %v56_v14  }
  0x8c   :  { %v62_v21 = vpop.permute.xlu0 %61   ;;  %v68_v22 = vpop.permute.xlu1 %67  }
  0x8d   :  { %64 = vst.msk [vmem:[#allocation0] sm:$0x1] %vm63_vm10, %v62_v21  }
  0x8e   :  { %70 = vst.msk [vmem:[#allocation0] sm:$0x1] %vm69_vm11, %v68_v22  }
  0x95   :  { %v73_v23 = vld [vmem:[#allocation0] sm:$0x1] }
  0x96   :  { %76 = vst [vmem:[%s160_s1] sm:$0x1] %v73_v23 }

// kernel: tile.18
= control target key start
LH: loop header
LB: loop body
LE: loop exit
PB: predicated region body
PF: predicated region fallthrough
CT: control target
= control target key end

     0   :  { %s22_s0 = inlined_call_operand.vmem [shape: f32[20], index: 0, kind: input, shape index: {}]   ;;  %s23_s1 = inlined_call_operand.vmem [shape: f32[4,20], index: 1, kind: output, shape index: {}]  }
   0x1   :  { %v4_v0 = vld [vmem:[%s22_s0] ss:$0 sm:$0xff] }
   0x2   :  { %5 = vst [vmem:[%s23_s1] sm:$0xf] %v4_v0 }

// kernel: tile.19
= control target key start
LH: loop header
LB: loop body
LE: loop exit
PB: predicated region body
PF: predicated region fallthrough
CT: control target
= control target key end

     0   :  { %s37_s8 = smov 20   ;;  %s38_s9 = smov 40   ;;  %vm7_vm0 = vcmask 162816   ;;  %vm13_vm1 = vcmask 654816   ;;  %vm19_vm2 = vcmask 490816   ;;  %vm25_vm3 = vcmask 326816   ;;  %s55_s0 = inlined_call_operand.vmem [shape: f32[4,20], index: 0, kind: input, shape index: {}]   ;;  %s56_s1 = inlined_call_operand.vmem [shape: f32[80], index: 1, kind: output, shape index: {}]  }
   0x1   :  { %v4_v0 = vld [vmem:[%s55_s0] sm:$0xf]  ;;  %s36_s0 = smov 60  }
   0x2   :  { %5 = vst [vmem:[#allocation1] sm:$0xf] %v4_v0 }
   0x9   :  { %v10_v1 = vld [vmem:[#allocation1 + $0x3] sm:$0x1]   ;;  %v22_v2 = vld [vmem:[#allocation1 + $0x1] sm:$0x1]   ;;  %v16_v3 = vld [vmem:[#allocation1 + $0x2] sm:$0x1]  }
   0xa   :  { %11 = vrot.lane.b32.xlu0 %v10_v1, %s36_s0  ;;  %23 = vrot.lane.b32.xlu1 %v22_v2, %s37_s8  ;;  %v6_v4 = vld [vmem:[#allocation1] sm:$0x1]  }
   0xb   :  { %8 = vst.msk [vmem:[#allocation0] sm:$0x1] %vm7_vm0, %v6_v4  }
  0x12   :  { %17 = vrot.lane.b32.xlu0 %v16_v3, %s38_s9 }
  0x7c   :  { %v12_v5 = vpop.permute.xlu0 %11   ;;  %v24_v6 = vpop.permute.xlu1 %23  }
  0x7d   :  { %14 = vst.msk [vmem:[#allocation0] sm:$0x1] %vm13_vm1, %v12_v5  }
  0x84   :  { %v18_v7 = vpop.permute.xlu0 %17  }
  0x85   :  { %20 = vst.msk [vmem:[#allocation0] sm:$0x1] %vm19_vm2, %v18_v7  }
  0x86   :  { %26 = vst.msk [vmem:[#allocation0] sm:$0x1] %vm25_vm3, %v24_v6  }
  0x8d   :  { %v29_v8 = vld [vmem:[#allocation0] sm:$0x1] }
  0x8e   :  { %32 = vst [vmem:[%s56_s1] sm:$0x1] %v29_v8 }

// kernel: net_forward.1
= control target key start
LH: loop header
LB: loop body
LE: loop exit
PB: predicated region body
PF: predicated region fallthrough
CT: control target
= control target key end

     0   :  { %s10297_s1 = inlined_call_operand.vmem [shape: bf16[256,512], index: 1, kind: input, shape index: {}]   ;;  %s10298_s0 = inlined_call_operand.vmem [shape: bf16[12,8,256], index: 0, kind: input, shape index: {}]   ;;  %s10299_s2 = inlined_call_operand.vmem [shape: f32[1,128], index: 2, kind: input, shape index: {}]   ;;  %s10300_s3 = inlined_call_operand.vmem [shape: bf16[768,512], index: 3, kind: input, shape index: {}]   ;;  %s10301_s4 = inlined_call_operand.vmem [shape: f32[1,128], index: 4, kind: input, shape index: {}]   ;;  %s10302_s5 = inlined_call_operand.vmem [shape: bf16[512,128], index: 5, kind: input, shape index: {}]   ;;  %s10303_s6 = inlined_call_operand.vmem [shape: f32[1,128], index: 6, kind: input, shape index: {}]   ;;  %s10304_s7 = inlined_call_operand.vmem [shape: bf16[128,128], index: 7, kind: input, shape index: {}]   ;;  %s10305_s8 = inlined_call_operand.vmem [shape: f32[1,128], index: 8, kind: input, shape index: {}]   ;;  %s10306_s9 = inlined_call_operand.vmem [shape: f32[8,128], index: 9, kind: output, shape index: {}]  }
   0x1   :  { %v4800_v0 = vld [vmem:[%s10297_s1 + $0xe0] sm:$0xf]  ;;  %v5911_v1 = vld [vmem:[%s10297_s1 + $0xec] sm:$0xf0]  ;;  %v5909_v5 = vld [vmem:[%s10297_s1 + $0xe4] sm:$0xf] }
   0x2   :  { %v4928_v2 = vld [vmem:[%s10297_s1 + $0x1e0] sm:$0xf]  ;;  %v6246_v3 = vor.u32 %v5911_v1, %v4800_v0  ;;  %v5943_v4 = vld [vmem:[%s10297_s1 + $0x1ec] sm:$0xf0]  ;;  %v4802_v6 = vld [vmem:[%s10297_s1 + $0xf0] sm:$0xf0] }
   0x3   :  { %v6257_v7 = vor.u32 %v5943_v4, %v4928_v2  ;;  %v6259_v8 = vor.u32 %v5909_v5, %v4802_v6  ;;  %v5941_v9 = vld [vmem:[%s10297_s1 + $0x1e4] sm:$0xf]  ;;  %v4930_v10 = vld [vmem:[%s10297_s1 + $0x1f0] sm:$0xf0]  ;;  %v4784_v11 = vld [vmem:[%s10297_s1 + $0xc0] sm:$0xf] }
   0x4   :  { %426 = vmatpush.bf16.msra.mxu0 %v6246_v3  ;;  %v6271_v12 = vor.u32 %v5941_v9, %v4930_v10  ;;  %v5907_v13 = vld [vmem:[%s10297_s1 + $0xcc] sm:$0xf0]  ;;  %v4912_v14 = vld [vmem:[%s10297_s1 + $0x1c0] sm:$0xf]  ;;  %v5905_v18 = vld [vmem:[%s10297_s1 + $0xc4] sm:$0xf] }
   0x5   :  { %v5939_v15 = vld [vmem:[%s10297_s1 + $0x1cc] sm:$0xf0]  ;;  %439 = vmatpush.bf16.msra.mxu1 %v6257_v7  ;;  %452 = vmatpush.bf16.msra.mxu2 %v6259_v8  ;;  %v6284_v16 = vor.u32 %v5907_v13, %v4784_v11  ;;  %v4786_v19 = vld [vmem:[%s10297_s1 + $0xd0] sm:$0xf0]  ;;  %v5937_v20 = vld [vmem:[%s10297_s1 + $0x1c4] sm:$0xf] }
   0x6   :  { %v6286_v17 = vor.u32 %v5939_v15, %v4912_v14  ;;  %465 = vmatpush.bf16.msra.mxu3 %v6271_v12  ;;  %v6298_v21 = vor.u32 %v5905_v18, %v4786_v19  ;;  %v4914_v22 = vld [vmem:[%s10297_s1 + $0x1d0] sm:$0xf0]  ;;  %v4768_v23 = vld [vmem:[%s10297_s1 + $0xa0] sm:$0xf]  ;;  %v5903_v24 = vld [vmem:[%s10297_s1 + $0xac] sm:$0xf0] }
   0x7   :  { %v6309_v25 = vor.u32 %v5937_v20, %v4914_v22  ;;  %v4896_v26 = vld [vmem:[%s10297_s1 + $0x1a0] sm:$0xf]  ;;  %v5935_v27 = vld [vmem:[%s10297_s1 + $0x1ac] sm:$0xf0]  ;;  %v5901_v28 = vld [vmem:[%s10297_s1 + $0xa4] sm:$0xf]  ;;  %v6321_v29 = vor.u32 %v5903_v24, %v4768_v23 }
   0x8   :  { %427 = vmatpush.bf16.msra.mxu0 %v6284_v16  ;;  %v4770_v30 = vld [vmem:[%s10297_s1 + $0xb0] sm:$0xf0]  ;;  %v5933_v31 = vld [vmem:[%s10297_s1 + $0x1a4] sm:$0xf]  ;;  %v6334_v33 = vor.u32 %v5935_v27, %v4896_v26  ;;  %v4752_v35 = vld [vmem:[%s10297_s1 + $0x80] sm:$0xf] }
   0x9   :  { %v4898_v32 = vld [vmem:[%s10297_s1 + $0x1b0] sm:$0xf0]  ;;  %440 = vmatpush.bf16.msra.mxu1 %v6286_v17  ;;  %453 = vmatpush.bf16.msra.mxu2 %v6298_v21  ;;  %v6336_v34 = vor.u32 %v5901_v28, %v4770_v30  ;;  %v5899_v36 = vld [vmem:[%s10297_s1 + $0x8c] sm:$0xf0]  ;;  %v4880_v37 = vld [vmem:[%s10297_s1 + $0x180] sm:$0xf] }
   0xa   :  { %466 = vmatpush.bf16.msra.mxu3 %v6309_v25  ;;  %v6348_v38 = vor.u32 %v5933_v31, %v4898_v32  ;;  %v5931_v39 = vld [vmem:[%s10297_s1 + $0x18c] sm:$0xf0]  ;;  %v5897_v40 = vld [vmem:[%s10297_s1 + $0x84] sm:$0xf]  ;;  %v4754_v41 = vld [vmem:[%s10297_s1 + $0x90] sm:$0xf0]  ;;  %v6366_v44 = vor.u32 %v5899_v36, %v4752_v35 }
   0xb   :  { %v5929_v42 = vld [vmem:[%s10297_s1 + $0x184] sm:$0xf]  ;;  %v4882_v43 = vld [vmem:[%s10297_s1 + $0x190] sm:$0xf0]  ;;  %v6370_v45 = vor.u32 %v5931_v39, %v4880_v37  ;;  %v6372_v46 = vor.u32 %v5897_v40, %v4754_v41  ;;  %v4736_v47 = vld [vmem:[%s10297_s1 + $0x60] sm:$0xf] }
   0xc   :  { %10700 = vst [vmem:[#allocation2_spill] sm:$0xff] %v6348_v38  ;;  %428 = vmatpush.bf16.msra.mxu0 %v6321_v29  ;;  %v5895_v48 = vld [vmem:[%s10297_s1 + $0x6c] sm:$0xf0]  ;;  %v4864_v49 = vld [vmem:[%s10297_s1 + $0x160] sm:$0xf]  ;;  %v6384_v50 = vor.u32 %v5929_v42, %v4882_v43 }
   0xd   :  { %441 = vmatpush.bf16.msra.mxu1 %v6334_v33  ;;  %454 = vmatpush.bf16.msra.mxu2 %v6336_v34  ;;  %10701 = vst [vmem:[#allocation3_spill] sm:$0xff] %v6372_v46  ;;  %v5927_v51 = vld [vmem:[%s10297_s1 + $0x16c] sm:$0xf0]  ;;  %v5893_v52 = vld [vmem:[%s10297_s1 + $0x64] sm:$0xf]  ;;  %v6402_v56 = vor.u32 %v5895_v48, %v4736_v47 }
   0xe   :  { %467 = vmatpush.bf16.msra.mxu3 %v6348_v38  ;;  %10702 = vst [vmem:[#allocation4_spill] sm:$0xff] %v6384_v50  ;;  %v4738_v53 = vld [vmem:[%s10297_s1 + $0x70] sm:$0xf0]  ;;  %v5925_v54 = vld [vmem:[%s10297_s1 + $0x164] sm:$0xf]  ;;  %v6406_v57 = vor.u32 %v5927_v51, %v4864_v49 }
   0xf   :  { %v4866_v55 = vld [vmem:[%s10297_s1 + $0x170] sm:$0xf0]  ;;  %v6408_v58 = vor.u32 %v5893_v52, %v4738_v53  ;;  %v4720_v59 = vld [vmem:[%s10297_s1 + $0x40] sm:$0xf]  ;;  %v5891_v60 = vld [vmem:[%s10297_s1 + $0x4c] sm:$0xf0] }
  0x10   :  { %429 = vmatpush.bf16.msra.mxu0 %v6366_v44  ;;  %v4848_v61 = vld [vmem:[%s10297_s1 + $0x140] sm:$0xf]  ;;  %v6420_v62 = vor.u32 %v5925_v54, %v4866_v55  ;;  %v5923_v63 = vld [vmem:[%s10297_s1 + $0x14c] sm:$0xf0]  ;;  %v5889_v0 = vld [vmem:[%s10297_s1 + $0x44] sm:$0xf]  ;;  %v6438_v5 = vor.u32 %v5891_v60, %v4720_v59 }
  0x11   :  { %442 = vmatpush.bf16.msra.mxu1 %v6370_v45  ;;  %455 = vmatpush.bf16.msra.mxu2 %v6372_v46  ;;  %v4722_v1 = vld [vmem:[%s10297_s1 + $0x50] sm:$0xf0]  ;;  %v5921_v2 = vld [vmem:[%s10297_s1 + $0x144] sm:$0xf]  ;;  %v6442_v6 = vor.u32 %v5923_v63, %v4848_v61  ;;  %v4704_v10 = vld [vmem:[%s10297_s1 + $0x20] sm:$0xf] }
  0x12   :  { %468 = vmatpush.bf16.msra.mxu3 %v6384_v50  ;;  %10703 = vst [vmem:[#allocation5_spill] sm:$0xff] %v6420_v62  ;;  %v4850_v4 = vld [vmem:[%s10297_s1 + $0x150] sm:$0xf0]  ;;  %v6444_v9 = vor.u32 %v5889_v0, %v4722_v1  ;;  %v5887_v11 = vld [vmem:[%s10297_s1 + $0x2c] sm:$0xf0] }
  0x13   :  { %10704 = vst [vmem:[#allocation6_spill] sm:$0xff] %v6442_v6  ;;  %v4832_v13 = vld [vmem:[%s10297_s1 + $0x120] sm:$0xf]  ;;  %v6456_v14 = vor.u32 %v5921_v2, %v4850_v4  ;;  %v5919_v15 = vld [vmem:[%s10297_s1 + $0x12c] sm:$0xf0]  ;;  %v6474_v23 = vor.u32 %v5887_v11, %v4704_v10 }
  0x14   :  { %430 = vmatpush.bf16.msra.mxu0 %v6402_v56  ;;  %10705 = vst [vmem:[#allocation7_spill] sm:$0xff] %v6444_v9  ;;  %v5885_v18 = vld [vmem:[%s10297_s1 + $0x24] sm:$0xf]  ;;  %v4706_v19 = vld [vmem:[%s10297_s1 + $0x30] sm:$0xf0]  ;;  %v6484_v27 = vor.u32 %v5919_v15, %v4832_v13 }
  0x15   :  { %443 = vmatpush.bf16.msra.mxu1 %v6406_v57  ;;  %456 = vmatpush.bf16.msra.mxu2 %v6408_v58  ;;  %v5917_v20 = vld [vmem:[%s10297_s1 + $0x124] sm:$0xf]  ;;  %v4834_v22 = vld [vmem:[%s10297_s1 + $0x130] sm:$0xf0]  ;;  %v4688_v24 = vld [vmem:[%s10297_s1] sm:$0xf]  ;;  %v6486_v28 = vor.u32 %v5885_v18, %v4706_v19 }
  0x16   :  { %469 = vmatpush.bf16.msra.mxu3 %v6420_v62  ;;  %v5883_v26 = vld [vmem:[%s10297_s1 + $0xc] sm:$0xf0]  ;;  %v4816_v30 = vld [vmem:[%s10297_s1 + $0x100] sm:$0xf]  ;;  %v5881_v32 = vld [vmem:[%s10297_s1 + $0x4] sm:$0xf]  ;;  %v6498_v35 = vor.u32 %v5917_v20, %v4834_v22 }
  0x17   :  { %v5915_v31 = vld [vmem:[%s10297_s1 + $0x10c] sm:$0xf0]  ;;  %v4690_v36 = vld [vmem:[%s10297_s1 + $0x10] sm:$0xf0]  ;;  %v5913_v37 = vld [vmem:[%s10297_s1 + $0x104] sm:$0xf]  ;;  %v6519_v43 = vor.u32 %v5883_v26, %v4688_v24 }
  0x18   :  { %431 = vmatpush.bf16.msra.mxu0 %v6438_v5  ;;  %v4818_v39 = vld [vmem:[%s10297_s1 + $0x110] sm:$0xf0]  ;;  %v4808_v40 = vld [vmem:[%s10297_s1 + $0xe8] sm:$0xf]  ;;  %v5912_v41 = vld [vmem:[%s10297_s1 + $0xf4] sm:$0xf0]  ;;  %v6532_v51 = vor.u32 %v5915_v31, %v4816_v30  ;;  %v6534_v52 = vor.u32 %v5881_v32, %v4690_v36 }
  0x19   :  { %444 = vmatpush.bf16.msra.mxu1 %v6442_v6  ;;  %457 = vmatpush.bf16.msra.mxu2 %v6444_v9  ;;  %v4936_v42 = vld [vmem:[%s10297_s1 + $0x1e8] sm:$0xf]  ;;  %v5944_v47 = vld [vmem:[%s10297_s1 + $0x1f4] sm:$0xf0]  ;;  %v5910_v48 = vld [vmem:[%s10297_s1 + $0xec] sm:$0xf]  ;;  %v6543_v55 = vor.u32 %v5913_v37, %v4818_v39  ;;  %v6545_v59 = vor.u32 %v5912_v41, %v4808_v40 }
  0x1a   :  { %470 = vmatpush.bf16.msra.mxu3 %v6456_v14  ;;  %v4810_v49 = vld [vmem:[%s10297_s1 + $0xf8] sm:$0xf0]  ;;  %v5942_v53 = vld [vmem:[%s10297_s1 + $0x1ec] sm:$0xf]  ;;  %v6547_v60 = vor.u32 %v5944_v47, %v4936_v42  ;;  %v4792_v63 = vld [vmem:[%s10297_s1 + $0xc8] sm:$0xf] }
  0x1b   :  { %v4938_v54 = vld [vmem:[%s10297_s1 + $0x1f8] sm:$0xf0]  ;;  %10706 = vst [vmem:[#allocation8_spill] sm:$0xff] %v6545_v59  ;;  %v6549_v61 = vor.u32 %v5910_v48, %v4810_v49  ;;  %v5908_v0 = vld [vmem:[%s10297_s1 + $0xd4] sm:$0xf0]  ;;  %v34_v18 = vld [vmem:[%s10298_s0] sm:$0xff] }
  0x1c   :  { %432 = vmatpush.bf16.msra.mxu0 %v6474_v23  ;;  %10707 = vst [vmem:[#allocation9_spill] sm:$0xff] %v6547_v60  ;;  %v4920_v1 = vld [vmem:[%s10297_s1 + $0x1c8] sm:$0xf]  ;;  %v6561_v2 = vor.u32 %v5942_v53, %v4938_v54  ;;  %v5940_v4 = vld [vmem:[%s10297_s1 + $0x1d4] sm:$0xf0]  ;;  %v6585_v19 = vor.u32 %v5908_v0, %v4792_v63  ;;  %v100_v20 = vunpack.c.l.b16 %v34_v18  ;;  %v101_v22 = vunpack.c.h.b16 %v34_v18 }
  0x1d   :  { %445 = vmatpush.bf16.msra.mxu1 %v6484_v27  ;;  %458 = vmatpush.bf16.msra.mxu2 %v6486_v28  ;;  %10708 = vst [vmem:[#allocation10_spill] sm:$0xff] %v6549_v61  ;;  %v5906_v10 = vld [vmem:[%s10297_s1 + $0xcc] sm:$0xf]  ;;  %v4794_v11 = vld [vmem:[%s10297_s1 + $0xd8] sm:$0xf0]  ;;  %v6589_v24 = vor.u32 %v5940_v4, %v4920_v1 }
  0x1e   :  { %471 = vmatpush.bf16.msra.mxu3 %v6498_v35  ;;  %10709 = vst [vmem:[#allocation11_spill] sm:$0xff] %v6561_v2  ;;  %v5938_v13 = vld [vmem:[%s10297_s1 + $0x1cc] sm:$0xf]  ;;  %v4922_v15 = vld [vmem:[%s10297_s1 + $0x1d8] sm:$0xf0]  ;;  %v6591_v26 = vor.u32 %v5906_v10, %v4794_v11  ;;  %v6614_v41 = vpack.c.b16 %v100_v20, %v100_v20  ;;  %v6622_v48 = vpack.c.b16 %v101_v22, %v101_v22 }
  0x1f   :  { %10710 = vst [vmem:[#allocation12_spill] sm:$0xff] %v6585_v19  ;;  %v4776_v30 = vld [vmem:[%s10297_s1 + $0xa8] sm:$0xf]  ;;  %v5904_v31 = vld [vmem:[%s10297_s1 + $0xb4] sm:$0xf0]  ;;  %v6603_v36 = vor.u32 %v5938_v13, %v4922_v15 }
  0x20   :  { %433 = vmatpush.bf16.msra.mxu0 %v6519_v43  ;;  %10711 = vst [vmem:[#allocation13_spill] sm:$0xff] %v6589_v24  ;;  %v4904_v32 = vld [vmem:[%s10297_s1 + $0x1a8] sm:$0xf]  ;;  %v5936_v37 = vld [vmem:[%s10297_s1 + $0x1b4] sm:$0xf0]  ;;  %v6625_v49 = vor.u32 %v5904_v31, %v4776_v30 }
  0x21   :  { %446 = vmatpush.bf16.msra.mxu1 %v6532_v51  ;;  %459 = vmatpush.bf16.msra.mxu2 %v6534_v52  ;;  %10712 = vst [vmem:[#allocation14_spill] sm:$0xff] %v6591_v26  ;;  %v5902_v39 = vld [vmem:[%s10297_s1 + $0xac] sm:$0xf]  ;;  %v4778_v40 = vld [vmem:[%s10297_s1 + $0xb8] sm:$0xf0]  ;;  %v6630_v53 = vor.u32 %v5936_v37, %v4904_v32 }
  0x22   :  { %472 = vmatpush.bf16.msra.mxu3 %v6543_v55  ;;  %10713 = vst [vmem:[#allocation15_spill] sm:$0xff] %v6603_v36  ;;  %v5934_v42 = vld [vmem:[%s10297_s1 + $0x1ac] sm:$0xf]  ;;  %v4906_v47 = vld [vmem:[%s10297_s1 + $0x1b8] sm:$0xf0]  ;;  %v6632_v54 = vor.u32 %v5902_v39, %v4778_v40 }
  0x23   :  { %10714 = vst [vmem:[#allocation16_spill] sm:$0xff] %v6625_v49  ;;  %v4760_v63 = vld [vmem:[%s10297_s1 + $0x88] sm:$0xf]  ;;  %v5900_v0 = vld [vmem:[%s10297_s1 + $0x94] sm:$0xf0]  ;;  %v6644_v4 = vor.u32 %v5934_v42, %v4906_v47  ;;  %434 = vmatmul.bf16.vlgmr.msra.gmra.mxu0 %v6614_v41 }
  0x24   :  { %478 = vmatpush.bf16.msrb.mxu0 %v6545_v59  ;;  %460 = vmatmul.bf16.vlgmr.msra.gmra.mxu2 %v6614_v41  ;;  %10715 = vst [vmem:[#allocation17_spill] sm:$0xff] %v6630_v53  ;;  %v4888_v1 = vld [vmem:[%s10297_s1 + $0x188] sm:$0xf]  ;;  %v5932_v10 = vld [vmem:[%s10297_s1 + $0x194] sm:$0xf0]  ;;  %v6665_v20 = vor.u32 %v5900_v0, %v4760_v63 }
  0x25   :  { %491 = vmatpush.bf16.msrb.mxu1 %v6547_v60  ;;  %504 = vmatpush.bf16.msrb.mxu2 %v6549_v61  ;;  %10716 = vst [vmem:[#allocation18_spill] sm:$0xff] %v6632_v54  ;;  %v5898_v11 = vld [vmem:[%s10297_s1 + $0x8c] sm:$0xf]  ;;  %v4762_v13 = vld [vmem:[%s10297_s1 + $0x98] sm:$0xf0]  ;;  %v6669_v22 = vor.u32 %v5932_v10, %v4888_v1 }
  0x26   :  { %517 = vmatpush.bf16.msrb.mxu3 %v6561_v2  ;;  %10717 = vst [vmem:[#allocation19_spill] sm:$0xff] %v6644_v4  ;;  %v5930_v15 = vld [vmem:[%s10297_s1 + $0x18c] sm:$0xf]  ;;  %v4890_v18 = vld [vmem:[%s10297_s1 + $0x198] sm:$0xf0]  ;;  %447 = vmatmul.bf16.vlgmr.msra.gmra.mxu1 %v6622_v48  ;;  %v6671_v30 = vor.u32 %v5898_v11, %v4762_v13 }
  0x27   :  { %473 = vmatmul.bf16.vlgmr.msra.gmra.mxu3 %v6622_v48  ;;  %10718 = vst [vmem:[#allocation20_spill] sm:$0xff] %v6665_v20  ;;  %v4744_v31 = vld [vmem:[%s10297_s1 + $0x68] sm:$0xf]  ;;  %v5896_v32 = vld [vmem:[%s10297_s1 + $0x74] sm:$0xf0]  ;;  %v6683_v39 = vor.u32 %v5930_v15, %v4890_v18 }
  0x28   :  { %479 = vmatpush.bf16.msrb.mxu0 %v6585_v19  ;;  %10719 = vst [vmem:[#allocation21_spill] sm:$0xff] %v6669_v22  ;;  %v4872_v37 = vld [vmem:[%s10297_s1 + $0x168] sm:$0xf]  ;;  %v5928_v40 = vld [vmem:[%s10297_s1 + $0x174] sm:$0xf0]  ;;  %v6701_v1 = vor.u32 %v5896_v32, %v4744_v31 }
  0x29   :  { %492 = vmatpush.bf16.msrb.mxu1 %v6589_v24  ;;  %505 = vmatpush.bf16.msrb.mxu2 %v6591_v26  ;;  %10720 = vst [vmem:[#allocation22_spill] sm:$0xff] %v6671_v30  ;;  %v5894_v42 = vld [vmem:[%s10297_s1 + $0x6c] sm:$0xf]  ;;  %v4746_v47 = vld [vmem:[%s10297_s1 + $0x78] sm:$0xf0]  ;;  %v6705_v10 = vor.u32 %v5928_v40, %v4872_v37 }
  0x2a   :  { %518 = vmatpush.bf16.msrb.mxu3 %v6603_v36  ;;  %10721 = vst [vmem:[#allocation23_spill] sm:$0xff] %v6683_v39  ;;  %v5926_v63 = vld [vmem:[%s10297_s1 + $0x16c] sm:$0xf]  ;;  %v4874_v0 = vld [vmem:[%s10297_s1 + $0x178] sm:$0xf0]  ;;  %v6707_v11 = vor.u32 %v5894_v42, %v4746_v47 }
  0x2b   :  { %10722 = vst [vmem:[#allocation24_spill] sm:$0xff] %v6701_v1  ;;  %v4728_v13 = vld [vmem:[%s10297_s1 + $0x48] sm:$0xf]  ;;  %v5892_v15 = vld [vmem:[%s10297_s1 + $0x54] sm:$0xf0]  ;;  %v6719_v31 = vor.u32 %v5926_v63, %v4874_v0 }
  0x2c   :  { %480 = vmatpush.bf16.msrb.mxu0 %v6625_v49  ;;  %10723 = vst [vmem:[#allocation25_spill] sm:$0xff] %v6705_v10  ;;  %v4856_v18 = vld [vmem:[%s10297_s1 + $0x148] sm:$0xf]  ;;  %v5924_v32 = vld [vmem:[%s10297_s1 + $0x154] sm:$0xf0]  ;;  %v6737_v63 = vor.u32 %v5892_v15, %v4728_v13 }
  0x2d   :  { %493 = vmatpush.bf16.msrb.mxu1 %v6630_v53  ;;  %506 = vmatpush.bf16.msrb.mxu2 %v6632_v54  ;;  %10724 = vst [vmem:[#allocation26_spill] sm:$0xff] %v6707_v11  ;;  %v5890_v37 = vld [vmem:[%s10297_s1 + $0x4c] sm:$0xf]  ;;  %v4730_v40 = vld [vmem:[%s10297_s1 + $0x58] sm:$0xf0]  ;;  %v6741_v0 = vor.u32 %v5924_v32, %v4856_v18 }
  0x2e   :  { %519 = vmatpush.bf16.msrb.mxu3 %v6644_v4  ;;  %10725 = vst [vmem:[#allocation27_spill] sm:$0xff] %v6719_v31  ;;  %v5922_v42 = vld [vmem:[%s10297_s1 + $0x14c] sm:$0xf]  ;;  %v4858_v47 = vld [vmem:[%s10297_s1 + $0x158] sm:$0xf0] }
  0x2f   :  { %10726 = vst [vmem:[#allocation28_spill] sm:$0xff] %v6741_v0  ;;  %v4840_v13 = vld [vmem:[%s10297_s1 + $0x128] sm:$0xf]  ;;  %v6755_v15 = vor.u32 %v5922_v42, %v4858_v47  ;;  %v5920_v18 = vld [vmem:[%s10297_s1 + $0x134] sm:$0xf0] }
  0x30   :  { %481 = vmatpush.bf16.msrb.mxu0 %v6665_v20  ;;  %v5886_v32 = vld [vmem:[%s10297_s1 + $0x2c] sm:$0xf]  ;;  %v4842_v42 = vld [vmem:[%s10297_s1 + $0x138] sm:$0xf0] }
  0x31   :  { %494 = vmatpush.bf16.msrb.mxu1 %v6669_v22  ;;  %507 = vmatpush.bf16.msrb.mxu2 %v6671_v30  ;;  %v4712_v30 = vld [vmem:[%s10297_s1 + $0x28] sm:$0xf]  ;;  %v5888_v22 = vld [vmem:[%s10297_s1 + $0x34] sm:$0xf0]  ;;  %10728 = vst [vmem:[#allocation30_spill] sm:$0xff] %v6755_v15 }
  0x32   :  { %520 = vmatpush.bf16.msrb.mxu3 %v6683_v39  ;;  %v6743_v39 = vor.u32 %v5890_v37, %v4730_v40  ;;  %v4714_v37 = vld [vmem:[%s10297_s1 + $0x38] sm:$0xf0]  ;;  %v5918_v40 = vld [vmem:[%s10297_s1 + $0x12c] sm:$0xf]  ;;  %v6773_v47 = vor.u32 %v5888_v22, %v4712_v30  ;;  %v4824_v22 = vld [vmem:[%s10297_s1 + $0x108] sm:$0xf] }
  0x33   :  { %v6791_v30 = vor.u32 %v5918_v40, %v4842_v42  ;;  %v4826_v40 = vld [vmem:[%s10297_s1 + $0x118] sm:$0xf0] }
  0x34   :  { %482 = vmatpush.bf16.msrb.mxu0 %v6701_v1  ;;  %10727 = vst [vmem:[#allocation29_spill] sm:$0xff] %v6743_v39  ;;  %v5884_v1 = vld [vmem:[%s10297_s1 + $0x14] sm:$0xf0] }
  0x35   :  { %495 = vmatpush.bf16.msrb.mxu1 %v6705_v10  ;;  %508 = vmatpush.bf16.msrb.mxu2 %v6707_v11  ;;  %v6779_v11 = vor.u32 %v5886_v32, %v4714_v37  ;;  %v4696_v10 = vld [vmem:[%s10297_s1 + $0x8] sm:$0xf]  ;;  %v4698_v32 = vld [vmem:[%s10297_s1 + $0x18] sm:$0xf0]  ;;  %v5914_v37 = vld [vmem:[%s10297_s1 + $0x10c] sm:$0xf] }
  0x36   :  { %521 = vmatpush.bf16.msrb.mxu3 %v6719_v31  ;;  %v6777_v31 = vor.u32 %v5920_v18, %v4840_v13  ;;  %v5916_v13 = vld [vmem:[%s10297_s1 + $0x114] sm:$0xf0]  ;;  %v5882_v18 = vld [vmem:[%s10297_s1 + $0xc] sm:$0xf]  ;;  %v6809_v42 = vor.u32 %v5884_v1, %v4696_v10 }
  0x38   :  { %483 = vmatpush.bf16.msrb.mxu0 %v6737_v63 }
  0x39   :  { %496 = vmatpush.bf16.msrb.mxu1 %v6741_v0  ;;  %509 = vmatpush.bf16.msrb.mxu2 %v6743_v39  ;;  %v6815_v39 = vor.u32 %v5882_v18, %v4698_v32  ;;  %v6818_v0 = vor.u32 %v5914_v37, %v4826_v40  ;;  %v10730_v18 = vld [vmem:[#allocation22_spill] sm:$0xff]  ;;  %v10731_v32 = vld [vmem:[#allocation23_spill] sm:$0xff]  ;;  %v10732_v37 = vld [vmem:[#allocation24_spill] sm:$0xff] }
  0x3a   :  { %522 = vmatpush.bf16.msrb.mxu3 %v6755_v15  ;;  %v6813_v15 = vor.u32 %v5916_v13, %v4824_v22  ;;  %v10729_v13 = vld [vmem:[#allocation21_spill] sm:$0xff] }
  0x3b   :  { %v10733_v40 = vld [vmem:[#allocation25_spill] sm:$0xff] }
  0x3c   :  { %484 = vmatpush.bf16.msrb.mxu0 %v6773_v47 }
  0x3d   :  { %497 = vmatpush.bf16.msrb.mxu1 %v6777_v31  ;;  %510 = vmatpush.bf16.msrb.mxu2 %v6779_v11 }
  0x3e   :  { %523 = vmatpush.bf16.msrb.mxu3 %v6791_v30 }
  0x40   :  { %485 = vmatpush.bf16.msrb.mxu0 %v6809_v42 }
  0x41   :  { %498 = vmatpush.bf16.msrb.mxu1 %v6813_v15  ;;  %511 = vmatpush.bf16.msrb.mxu2 %v6815_v39 }
  0x42   :  { %524 = vmatpush.bf16.msrb.mxu3 %v6818_v0 }
  0x43   :  { %486 = vmatmul.bf16.vlgmr.msrb.gmra.mxu0 %v6614_v41 }
  0x44   :  { %548 = vmatpush.bf16.msra.mxu0 %v6246_v3  ;;  %512 = vmatmul.bf16.vlgmr.msrb.gmra.mxu2 %v6614_v41  ;;  %v4942_v41 = vld [vmem:[%s10298_s0 + $0x8] sm:$0xff] }
  0x45   :  { %561 = vmatpush.bf16.msra.mxu1 %v6257_v7  ;;  %574 = vmatpush.bf16.msra.mxu2 %v6259_v8  ;;  %v543_v1 = vunpack.c.h.b16 %v4942_v41 }
  0x46   :  { %587 = vmatpush.bf16.msra.mxu3 %v6271_v12  ;;  %499 = vmatmul.bf16.vlgmr.msrb.gmra.mxu1 %v6622_v48 }
  0x47   :  { %525 = vmatmul.bf16.vlgmr.msrb.gmra.mxu3 %v6622_v48  ;;  %v542_v48 = vunpack.c.l.b16 %v4942_v41  ;;  %v545_v22 = vpack.c.b16 %v543_v1, %v543_v1  ;;  %v10734_v41 = vld [vmem:[#allocation26_spill] sm:$0xff]  ;;  %v10736_v1 = vld [vmem:[#allocation28_spill] sm:$0xff] }
  0x48   :  { %549 = vmatpush.bf16.msra.mxu0 %v6284_v16 }
  0x49   :  { %562 = vmatpush.bf16.msra.mxu1 %v6286_v17  ;;  %575 = vmatpush.bf16.msra.mxu2 %v6298_v21  ;;  %v544_v10 = vpack.c.b16 %v542_v48, %v542_v48  ;;  %v10735_v48 = vld [vmem:[#allocation27_spill] sm:$0xff] }
  0x4a   :  { %588 = vmatpush.bf16.msra.mxu3 %v6309_v25 }
  0x4c   :  { %550 = vmatpush.bf16.msra.mxu0 %v6321_v29 }
  0x4d   :  { %563 = vmatpush.bf16.msra.mxu1 %v6334_v33  ;;  %576 = vmatpush.bf16.msra.mxu2 %v6336_v34 }
  0x4e   :  { %589 = vmatpush.bf16.msra.mxu3 %v6348_v38 }
  0x50   :  { %551 = vmatpush.bf16.msra.mxu0 %v6366_v44 }
  0x51   :  { %564 = vmatpush.bf16.msra.mxu1 %v6370_v45  ;;  %577 = vmatpush.bf16.msra.mxu2 %v6372_v46 }
  0x52   :  { %590 = vmatpush.bf16.msra.mxu3 %v6384_v50 }
  0x54   :  { %552 = vmatpush.bf16.msra.mxu0 %v6402_v56 }
  0x55   :  { %565 = vmatpush.bf16.msra.mxu1 %v6406_v57  ;;  %578 = vmatpush.bf16.msra.mxu2 %v6408_v58 }
  0x56   :  { %591 = vmatpush.bf16.msra.mxu3 %v6420_v62 }
  0x58   :  { %553 = vmatpush.bf16.msra.mxu0 %v6438_v5 }
  0x59   :  { %566 = vmatpush.bf16.msra.mxu1 %v6442_v6  ;;  %579 = vmatpush.bf16.msra.mxu2 %v6444_v9 }
  0x5a   :  { %592 = vmatpush.bf16.msra.mxu3 %v6456_v14 }
  0x5c   :  { %554 = vmatpush.bf16.msra.mxu0 %v6474_v23 }
  0x5d   :  { %567 = vmatpush.bf16.msra.mxu1 %v6484_v27  ;;  %580 = vmatpush.bf16.msra.mxu2 %v6486_v28 }
  0x5e   :  { %593 = vmatpush.bf16.msra.mxu3 %v6498_v35 }
  0x60   :  { %555 = vmatpush.bf16.msra.mxu0 %v6519_v43 }
  0x61   :  { %568 = vmatpush.bf16.msra.mxu1 %v6532_v51  ;;  %581 = vmatpush.bf16.msra.mxu2 %v6534_v52 }
  0x62   :  { %594 = vmatpush.bf16.msra.mxu3 %v6543_v55 }
  0x63   :  { %556 = vmatmul.bf16.vlgmr.msra.gmra.mxu0 %v544_v10 }
  0x64   :  { %600 = vmatpush.bf16.msrb.mxu0 %v6545_v59  ;;  %582 = vmatmul.bf16.vlgmr.msra.gmra.mxu2 %v544_v10 }
  0x65   :  { %613 = vmatpush.bf16.msrb.mxu1 %v6547_v60  ;;  %626 = vmatpush.bf16.msrb.mxu2 %v6549_v61 }
  0x66   :  { %639 = vmatpush.bf16.msrb.mxu3 %v6561_v2  ;;  %569 = vmatmul.bf16.vlgmr.msra.gmra.mxu1 %v545_v22 }
  0x67   :  { %595 = vmatmul.bf16.vlgmr.msra.gmra.mxu3 %v545_v22 }
  0x68   :  { %601 = vmatpush.bf16.msrb.mxu0 %v6585_v19 }
  0x69   :  { %614 = vmatpush.bf16.msrb.mxu1 %v6589_v24  ;;  %627 = vmatpush.bf16.msrb.mxu2 %v6591_v26 }
  0x6a   :  { %640 = vmatpush.bf16.msrb.mxu3 %v6603_v36 }
  0x6c   :  { %602 = vmatpush.bf16.msrb.mxu0 %v6625_v49 }
  0x6d   :  { %615 = vmatpush.bf16.msrb.mxu1 %v6630_v53  ;;  %628 = vmatpush.bf16.msrb.mxu2 %v6632_v54 }
  0x6e   :  { %641 = vmatpush.bf16.msrb.mxu3 %v6644_v4  ;;  %v10737_v4 = vld [vmem:[#allocation29_spill] sm:$0xff] }
  0x70   :  { %603 = vmatpush.bf16.msrb.mxu0 %v6665_v20  ;;  %v10738_v20 = vld [vmem:[#allocation30_spill] sm:$0xff] }
  0x71   :  { %616 = vmatpush.bf16.msrb.mxu1 %v10729_v13  ;;  %629 = vmatpush.bf16.msrb.mxu2 %v10730_v18 }
  0x72   :  { %642 = vmatpush.bf16.msrb.mxu3 %v10731_v32 }
  0x74   :  { %604 = vmatpush.bf16.msrb.mxu0 %v10732_v37 }
  0x75   :  { %617 = vmatpush.bf16.msrb.mxu1 %v10733_v40  ;;  %630 = vmatpush.bf16.msrb.mxu2 %v10734_v41 }
  0x76   :  { %643 = vmatpush.bf16.msrb.mxu3 %v10735_v48 }
  0x78   :  { %605 = vmatpush.bf16.msrb.mxu0 %v6737_v63 }
  0x79   :  { %618 = vmatpush.bf16.msrb.mxu1 %v10736_v1  ;;  %631 = vmatpush.bf16.msrb.mxu2 %v10737_v4 }
  0x7a   :  { %644 = vmatpush.bf16.msrb.mxu3 %v10738_v20 }
  0x7c   :  { %606 = vmatpush.bf16.msrb.mxu0 %v6773_v47 }
  0x7d   :  { %619 = vmatpush.bf16.msrb.mxu1 %v6777_v31  ;;  %632 = vmatpush.bf16.msrb.mxu2 %v6779_v11 }
  0x7e   :  { %645 = vmatpush.bf16.msrb.mxu3 %v6791_v30 }
  0x80   :  { %607 = vmatpush.bf16.msrb.mxu0 %v6809_v42 }
  0x81   :  { %620 = vmatpush.bf16.msrb.mxu1 %v6813_v15  ;;  %633 = vmatpush.bf16.msrb.mxu2 %v6815_v39 }
  0x82   :  { %646 = vmatpush.bf16.msrb.mxu3 %v6818_v0 }
  0x83   :  { %608 = vmatmul.bf16.vlgmr.msrb.gmra.mxu0 %v544_v10 }
  0x84   :  { %667 = vmatpush.bf16.msra.mxu0 %v6246_v3  ;;  %634 = vmatmul.bf16.vlgmr.msrb.gmra.mxu2 %v544_v10  ;;  %v4943_v10 = vld [vmem:[%s10298_s0 + $0x10] sm:$0xff] }
  0x85   :  { %680 = vmatpush.bf16.msra.mxu1 %v6257_v7  ;;  %693 = vmatpush.bf16.msra.mxu2 %v6259_v8 }
  0x86   :  { %706 = vmatpush.bf16.msra.mxu3 %v6271_v12  ;;  %621 = vmatmul.bf16.vlgmr.msrb.gmra.mxu1 %v545_v22 }
  0x87   :  { %647 = vmatmul.bf16.vlgmr.msrb.gmra.mxu3 %v545_v22  ;;  %v661_v22 = vunpack.c.l.b16 %v4943_v10 }
  0x88   :  { %668 = vmatpush.bf16.msra.mxu0 %v6284_v16 }
  0x89   :  { %681 = vmatpush.bf16.msra.mxu1 %v6286_v17  ;;  %694 = vmatpush.bf16.msra.mxu2 %v6298_v21 }
  0x8a   :  { %707 = vmatpush.bf16.msra.mxu3 %v6309_v25 }
  0x8c   :  { %669 = vmatpush.bf16.msra.mxu0 %v6321_v29 }
  0x8d   :  { %682 = vmatpush.bf16.msra.mxu1 %v6334_v33  ;;  %695 = vmatpush.bf16.msra.mxu2 %v6336_v34 }
  0x8e   :  { %708 = vmatpush.bf16.msra.mxu3 %v6348_v38 }
  0x90   :  { %670 = vmatpush.bf16.msra.mxu0 %v6366_v44 }
  0x91   :  { %683 = vmatpush.bf16.msra.mxu1 %v6370_v45  ;;  %696 = vmatpush.bf16.msra.mxu2 %v6372_v46 }
  0x92   :  { %709 = vmatpush.bf16.msra.mxu3 %v6384_v50 }
  0x94   :  { %671 = vmatpush.bf16.msra.mxu0 %v6402_v56 }
  0x95   :  { %684 = vmatpush.bf16.msra.mxu1 %v6406_v57  ;;  %697 = vmatpush.bf16.msra.mxu2 %v6408_v58 }
  0x96   :  { %710 = vmatpush.bf16.msra.mxu3 %v6420_v62  ;;  %v662_v62 = vunpack.c.h.b16 %v4943_v10 }
  0x98   :  { %672 = vmatpush.bf16.msra.mxu0 %v6438_v5 }
  0x99   :  { %685 = vmatpush.bf16.msra.mxu1 %v6442_v6  ;;  %698 = vmatpush.bf16.msra.mxu2 %v6444_v9  ;;  %v663_v6 = vpack.c.b16 %v661_v22, %v661_v22  ;;  %v664_v9 = vpack.c.b16 %v662_v62, %v662_v62  ;;  %v10739_v62 = vld [vmem:[#allocation19_spill] sm:$0xff]  ;;  %v10740_v22 = vld [vmem:[#allocation20_spill] sm:$0xff] }
  0x9a   :  { %711 = vmatpush.bf16.msra.mxu3 %v6456_v14 }
  0x9c   :  { %673 = vmatpush.bf16.msra.mxu0 %v6474_v23 }
  0x9d   :  { %686 = vmatpush.bf16.msra.mxu1 %v6484_v27  ;;  %699 = vmatpush.bf16.msra.mxu2 %v6486_v28 }
  0x9e   :  { %712 = vmatpush.bf16.msra.mxu3 %v6498_v35 }
  0xa0   :  { %674 = vmatpush.bf16.msra.mxu0 %v6519_v43  ;;  %v435_v10 = vpop.f32.mrf.mxu0 }
  0xa1   :  { %687 = vmatpush.bf16.msra.mxu1 %v6532_v51  ;;  %700 = vmatpush.bf16.msra.mxu2 %v6534_v52 }
  0xa2   :  { %713 = vmatpush.bf16.msra.mxu3 %v6543_v55 }
  0xa3   :  { %675 = vmatmul.bf16.vlgmr.msra.gmra.mxu0 %v663_v6 }
  0xa4   :  { %719 = vmatpush.bf16.msrb.mxu0 %v6545_v59  ;;  %701 = vmatmul.bf16.vlgmr.msra.gmra.mxu2 %v663_v6 }
  0xa5   :  { %732 = vmatpush.bf16.msrb.mxu1 %v6547_v60  ;;  %745 = vmatpush.bf16.msrb.mxu2 %v6549_v61 }
  0xa6   :  { %758 = vmatpush.bf16.msrb.mxu3 %v6561_v2  ;;  %688 = vmatmul.bf16.vlgmr.msra.gmra.mxu1 %v664_v9  ;;  %v448_v2 = vpop.f32.mrf.mxu1 }
  0xa7   :  { %714 = vmatmul.bf16.vlgmr.msra.gmra.mxu3 %v664_v9 }
  0xa8   :  { %720 = vmatpush.bf16.msrb.mxu0 %v6585_v19 }
  0xa9   :  { %733 = vmatpush.bf16.msrb.mxu1 %v6589_v24  ;;  %746 = vmatpush.bf16.msrb.mxu2 %v6591_v26  ;;  %v449_v24 = vadd.f32 %v448_v2, %v435_v10 }
  0xaa   :  { %759 = vmatpush.bf16.msrb.mxu3 %v6603_v36  ;;  %v461_v36 = vpop.f32.mrf.mxu2 }
  0xac   :  { %721 = vmatpush.bf16.msrb.mxu0 %v6625_v49 }
  0xad   :  { %734 = vmatpush.bf16.msrb.mxu1 %v6630_v53  ;;  %747 = vmatpush.bf16.msrb.mxu2 %v6632_v54 }
  0xae   :  { %760 = vmatpush.bf16.msrb.mxu3 %v10739_v62  ;;  %v474_v62 = vpop.f32.mrf.mxu3 }
  0xaf   :  { %v475_v54 = vadd.f32 %v474_v62, %v461_v36 }
  0xb0   :  { %722 = vmatpush.bf16.msrb.mxu0 %v10740_v22  ;;  %v437_v22 = vpop.f32.mrf.mxu0 }
  0xb1   :  { %735 = vmatpush.bf16.msrb.mxu1 %v10729_v13  ;;  %748 = vmatpush.bf16.msrb.mxu2 %v10730_v18  ;;  %v450_v13 = vpop.f32.mrf.mxu1  ;;  %v530_v2 = vmax.f32 %v449_v24, %v475_v54 }
  0xb2   :  { %761 = vmatpush.bf16.msrb.mxu3 %v10731_v32  ;;  %v463_v10 = vpop.f32.mrf.mxu2 }
  0xb4   :  { %723 = vmatpush.bf16.msrb.mxu0 %v10732_v37 }
  0xb5   :  { %736 = vmatpush.bf16.msrb.mxu1 %v10733_v40  ;;  %749 = vmatpush.bf16.msrb.mxu2 %v10734_v41 }
  0xb6   :  { %762 = vmatpush.bf16.msrb.mxu3 %v10735_v48  ;;  %v476_v36 = vpop.f32.mrf.mxu3 }
  0xb8   :  { %724 = vmatpush.bf16.msrb.mxu0 %v6737_v63 }
  0xb9   :  { %737 = vmatpush.bf16.msrb.mxu1 %v10736_v1  ;;  %750 = vmatpush.bf16.msrb.mxu2 %v10737_v4 }
  0xba   :  { %763 = vmatpush.bf16.msrb.mxu3 %v10738_v20 }
  0xbc   :  { %725 = vmatpush.bf16.msrb.mxu0 %v6773_v47 }
  0xbd   :  { %738 = vmatpush.bf16.msrb.mxu1 %v6777_v31  ;;  %751 = vmatpush.bf16.msrb.mxu2 %v6779_v11 }
  0xbe   :  { %764 = vmatpush.bf16.msrb.mxu3 %v6791_v30 }
  0xc0   :  { %726 = vmatpush.bf16.msrb.mxu0 %v6809_v42  ;;  %v487_v24 = vpop.f32.mrf.mxu0 }
  0xc1   :  { %739 = vmatpush.bf16.msrb.mxu1 %v6813_v15  ;;  %752 = vmatpush.bf16.msrb.mxu2 %v6815_v39 }
  0xc2   :  { %765 = vmatpush.bf16.msrb.mxu3 %v6818_v0 }
  0xc3   :  { %727 = vmatmul.bf16.vlgmr.msrb.gmra.mxu0 %v663_v6  ;;  %v500_v54 = vpop.f32.mrf.mxu1 }
  0xc4   :  { %786 = vmatpush.bf16.msra.mxu0 %v6246_v3  ;;  %753 = vmatmul.bf16.vlgmr.msrb.gmra.mxu2 %v663_v6  ;;  %v501_v6 = vadd.f32 %v500_v54, %v487_v24  ;;  %v10741_v24 = vld [vmem:[#allocation5_spill] sm:$0xff] }
  0xc5   :  { %799 = vmatpush.bf16.msra.mxu1 %v6257_v7  ;;  %812 = vmatpush.bf16.msra.mxu2 %v6259_v8 }
  0xc6   :  { %825 = vmatpush.bf16.msra.mxu3 %v6271_v12  ;;  %740 = vmatmul.bf16.vlgmr.msrb.gmra.mxu1 %v664_v9 }
  0xc7   :  { %766 = vmatmul.bf16.vlgmr.msrb.gmra.mxu3 %v664_v9  ;;  %v513_v9 = vpop.f32.mrf.mxu2 }
  0xc8   :  { %787 = vmatpush.bf16.msra.mxu0 %v6284_v16  ;;  %v489_v22 = vpop.f32.mrf.mxu0 }
  0xc9   :  { %800 = vmatpush.bf16.msra.mxu1 %v6286_v17  ;;  %813 = vmatpush.bf16.msra.mxu2 %v6298_v21 }
  0xca   :  { %826 = vmatpush.bf16.msra.mxu3 %v6309_v25  ;;  %v526_v13 = vpop.f32.mrf.mxu3 }
  0xcb   :  { %v527_v62 = vadd.f32 %v526_v13, %v513_v9  ;;  %v502_v36 = vpop.f32.mrf.mxu1  ;;  %v4944_v13 = vld [vmem:[%s10298_s0 + $0x18] sm:$0xff] }
  0xcc   :  { %788 = vmatpush.bf16.msra.mxu0 %v6321_v29  ;;  %v10745_v36 = vld [vmem:[#allocation11_spill] sm:$0xff] }
  0xcd   :  { %801 = vmatpush.bf16.msra.mxu1 %v6334_v33  ;;  %814 = vmatpush.bf16.msra.mxu2 %v6336_v34  ;;  %v531_v10 = vmax.f32 %v501_v6, %v527_v62  ;;  %v780_v6 = vunpack.c.l.b16 %v4944_v13 }
  0xce   :  { %827 = vmatpush.bf16.msra.mxu3 %v6348_v38 }
  0xcf   :  { %v6982_v54 = vmax.f32 %v530_v2, %v531_v10  ;;  %v515_v9 = vpop.f32.mrf.mxu2  ;;  %v781_v2 = vunpack.c.h.b16 %v4944_v13  ;;  %v782_v62 = vpack.c.b16 %v780_v6, %v780_v6  ;;  %v10747_v13 = vld [vmem:[#allocation15_spill] sm:$0xff]  ;;  %v10748_v6 = vld [vmem:[#allocation18_spill] sm:$0xff] }
  0xd0   :  { %789 = vmatpush.bf16.msra.mxu0 %v6366_v44  ;;  %v10746_v9 = vld [vmem:[#allocation13_spill] sm:$0xff] }
  0xd1   :  { %802 = vmatpush.bf16.msra.mxu1 %v6370_v45  ;;  %815 = vmatpush.bf16.msra.mxu2 %v6372_v46  ;;  %10742 = vst [vmem:[#allocation22_spill] sm:$0xff] %v6982_v54  ;;  %v10743_v46 = vld [vmem:[#allocation6_spill] sm:$0xff]  ;;  %v783_v10 = vpack.c.b16 %v781_v2, %v781_v2  ;;  %v10749_v54 = vld [vmem:[#allocation19_spill] sm:$0xff] }
  0xd2   :  { %828 = vmatpush.bf16.msra.mxu3 %v6384_v50  ;;  %v10744_v50 = vld [vmem:[#allocation7_spill] sm:$0xff]  ;;  %v528_v22 = vpop.f32.mrf.mxu3 }
  0xd4   :  { %790 = vmatpush.bf16.msra.mxu0 %v6402_v56 }
  0xd5   :  { %803 = vmatpush.bf16.msra.mxu1 %v6406_v57  ;;  %816 = vmatpush.bf16.msra.mxu2 %v6408_v58 }
  0xd6   :  { %829 = vmatpush.bf16.msra.mxu3 %v10741_v24 }
  0xd8   :  { %791 = vmatpush.bf16.msra.mxu0 %v6438_v5 }
  0xd9   :  { %804 = vmatpush.bf16.msra.mxu1 %v10743_v46  ;;  %817 = vmatpush.bf16.msra.mxu2 %v10744_v50 }
  0xda   :  { %830 = vmatpush.bf16.msra.mxu3 %v6456_v14 }
  0xdc   :  { %792 = vmatpush.bf16.msra.mxu0 %v6474_v23 }
  0xdd   :  { %805 = vmatpush.bf16.msra.mxu1 %v6484_v27  ;;  %818 = vmatpush.bf16.msra.mxu2 %v6486_v28 }
  0xde   :  { %831 = vmatpush.bf16.msra.mxu3 %v6498_v35 }
  0xe0   :  { %793 = vmatpush.bf16.msra.mxu0 %v6519_v43  ;;  %v557_v22 = vpop.f32.mrf.mxu0 }
  0xe1   :  { %806 = vmatpush.bf16.msra.mxu1 %v6532_v51  ;;  %819 = vmatpush.bf16.msra.mxu2 %v6534_v52 }
  0xe2   :  { %832 = vmatpush.bf16.msra.mxu3 %v6543_v55 }
  0xe3   :  { %794 = vmatmul.bf16.vlgmr.msra.gmra.mxu0 %v782_v62  ;;  %v570_v2 = vpop.f32.mrf.mxu1 }
  0xe4   :  { %838 = vmatpush.bf16.msrb.mxu0 %v6545_v59  ;;  %820 = vmatmul.bf16.vlgmr.msra.gmra.mxu2 %v782_v62 }
  0xe5   :  { %851 = vmatpush.bf16.msrb.mxu1 %v6547_v60  ;;  %864 = vmatpush.bf16.msrb.mxu2 %v6549_v61  ;;  %v10751_v61 = vld [vmem:[#allocation21_spill] sm:$0xff] }
  0xe6   :  { %877 = vmatpush.bf16.msrb.mxu3 %v10745_v36  ;;  %807 = vmatmul.bf16.vlgmr.msra.gmra.mxu1 %v783_v10  ;;  %v7011_v36 = vadd.f32 %v570_v2, %v557_v22 }
  0xe7   :  { %833 = vmatmul.bf16.vlgmr.msra.gmra.mxu3 %v783_v10 }
  0xe8   :  { %839 = vmatpush.bf16.msrb.mxu0 %v6585_v19  ;;  %v10750_v19 = vld [vmem:[#allocation20_spill] sm:$0xff] }
  0xe9   :  { %852 = vmatpush.bf16.msrb.mxu1 %v10746_v9  ;;  %865 = vmatpush.bf16.msrb.mxu2 %v6591_v26  ;;  %v583_v26 = vpop.f32.mrf.mxu2 }
  0xea   :  { %878 = vmatpush.bf16.msrb.mxu3 %v10747_v13 }
  0xeb   :  { %v572_v2 = vpop.f32.mrf.mxu1 }
  0xec   :  { %840 = vmatpush.bf16.msrb.mxu0 %v6625_v49  ;;  %v596_v49 = vpop.f32.mrf.mxu3 }
  0xed   :  { %853 = vmatpush.bf16.msrb.mxu1 %v6630_v53  ;;  %866 = vmatpush.bf16.msrb.mxu2 %v10748_v6  ;;  %v597_v13 = vadd.f32 %v596_v49, %v583_v26  ;;  %v559_v53 = vpop.f32.mrf.mxu0 }
  0xee   :  { %879 = vmatpush.bf16.msrb.mxu3 %v10749_v54 }
  0xef   :  { %v652_v22 = vmax.f32 %v7011_v36, %v597_v13  ;;  %v10753_v36 = vld [vmem:[#allocation4_spill] sm:$0xff] }
  0xf0   :  { %841 = vmatpush.bf16.msrb.mxu0 %v10750_v19 }
  0xf1   :  { %854 = vmatpush.bf16.msrb.mxu1 %v10751_v61  ;;  %867 = vmatpush.bf16.msrb.mxu2 %v10730_v18 }
  0xf2   :  { %880 = vmatpush.bf16.msrb.mxu3 %v10731_v32  ;;  %v585_v32 = vpop.f32.mrf.mxu2 }
  0xf4   :  { %842 = vmatpush.bf16.msrb.mxu0 %v10732_v37  ;;  %v598_v26 = vpop.f32.mrf.mxu3 }
  0xf5   :  { %855 = vmatpush.bf16.msrb.mxu1 %v10733_v40  ;;  %868 = vmatpush.bf16.msrb.mxu2 %v10734_v41 }
  0xf6   :  { %881 = vmatpush.bf16.msrb.mxu3 %v10735_v48 }
  0xf8   :  { %843 = vmatpush.bf16.msrb.mxu0 %v6737_v63 }
  0xf9   :  { %856 = vmatpush.bf16.msrb.mxu1 %v10736_v1  ;;  %869 = vmatpush.bf16.msrb.mxu2 %v10737_v4 }
  0xfa   :  { %882 = vmatpush.bf16.msrb.mxu3 %v10738_v20 }
  0xfc   :  { %844 = vmatpush.bf16.msrb.mxu0 %v6773_v47 }
  0xfd   :  { %857 = vmatpush.bf16.msrb.mxu1 %v6777_v31  ;;  %870 = vmatpush.bf16.msrb.mxu2 %v6779_v11 }
  0xfe   :  { %883 = vmatpush.bf16.msrb.mxu3 %v6791_v30 }
 0x100   :  { %845 = vmatpush.bf16.msrb.mxu0 %v6809_v42  ;;  %v609_v49 = vpop.f32.mrf.mxu0 }
 0x101   :  { %858 = vmatpush.bf16.msrb.mxu1 %v6813_v15  ;;  %871 = vmatpush.bf16.msrb.mxu2 %v6815_v39 }
 0x102   :  { %884 = vmatpush.bf16.msrb.mxu3 %v6818_v0 }
 0x103   :  { %846 = vmatmul.bf16.vlgmr.msrb.gmra.mxu0 %v782_v62  ;;  %v622_v53 = vpop.f32.mrf.mxu1 }
 0x104   :  { %905 = vmatpush.bf16.msra.mxu0 %v6246_v3  ;;  %872 = vmatmul.bf16.vlgmr.msrb.gmra.mxu2 %v782_v62  ;;  %v623_v32 = vadd.f32 %v622_v53, %v609_v49  ;;  %v10752_v62 = vld [vmem:[#allocation3_spill] sm:$0xff] }
 0x105   :  { %918 = vmatpush.bf16.msra.mxu1 %v6257_v7  ;;  %931 = vmatpush.bf16.msra.mxu2 %v6259_v8 }
 0x106   :  { %944 = vmatpush.bf16.msra.mxu3 %v6271_v12  ;;  %859 = vmatmul.bf16.vlgmr.msrb.gmra.mxu1 %v783_v10 }
 0x107   :  { %885 = vmatmul.bf16.vlgmr.msrb.gmra.mxu3 %v783_v10  ;;  %v635_v10 = vpop.f32.mrf.mxu2 }
 0x108   :  { %906 = vmatpush.bf16.msra.mxu0 %v6284_v16  ;;  %v611_v26 = vpop.f32.mrf.mxu0 }
 0x109   :  { %919 = vmatpush.bf16.msra.mxu1 %v6286_v17  ;;  %932 = vmatpush.bf16.msra.mxu2 %v6298_v21 }
 0x10a   :  { %945 = vmatpush.bf16.msra.mxu3 %v6309_v25  ;;  %v648_v13 = vpop.f32.mrf.mxu3 }
 0x10b   :  { %v649_v2 = vadd.f32 %v648_v13, %v635_v10  ;;  %v624_v49 = vpop.f32.mrf.mxu1  ;;  %v4945_v13 = vld [vmem:[%s10298_s0 + $0x20] sm:$0xff] }
 0x10c   :  { %907 = vmatpush.bf16.msra.mxu0 %v6321_v29  ;;  %v10755_v49 = vld [vmem:[#allocation10_spill] sm:$0xff] }
 0x10d   :  { %920 = vmatpush.bf16.msra.mxu1 %v6334_v33  ;;  %933 = vmatpush.bf16.msra.mxu2 %v6336_v34 }
 0x10e   :  { %946 = vmatpush.bf16.msra.mxu3 %v6348_v38  ;;  %v653_v38 = vmax.f32 %v623_v32, %v649_v2  ;;  %v899_v32 = vunpack.c.l.b16 %v4945_v13 }
 0x10f   :  { %v637_v10 = vpop.f32.mrf.mxu2 }
 0x110   :  { %908 = vmatpush.bf16.msra.mxu0 %v6366_v44  ;;  %v7054_v53 = vmax.f32 %v652_v22, %v653_v38  ;;  %v900_v38 = vunpack.c.h.b16 %v4945_v13  ;;  %v901_v22 = vpack.c.b16 %v899_v32, %v899_v32  ;;  %v10756_v10 = vld [vmem:[#allocation11_spill] sm:$0xff]  ;;  %v10757_v13 = vld [vmem:[#allocation12_spill] sm:$0xff] }
 0x111   :  { %921 = vmatpush.bf16.msra.mxu1 %v6370_v45  ;;  %934 = vmatpush.bf16.msra.mxu2 %v10752_v62  ;;  %v10759_v32 = vld [vmem:[#allocation15_spill] sm:$0xff] }
 0x112   :  { %947 = vmatpush.bf16.msra.mxu3 %v10753_v36  ;;  %10754 = vst [vmem:[#allocation24_spill] sm:$0xff] %v7054_v53  ;;  %v650_v26 = vpop.f32.mrf.mxu3  ;;  %v902_v2 = vpack.c.b16 %v900_v38, %v900_v38  ;;  %v10760_v38 = vld [vmem:[#allocation16_spill] sm:$0xff] }
 0x113   :  { %v10758_v26 = vld [vmem:[#allocation14_spill] sm:$0xff] }
 0x114   :  { %909 = vmatpush.bf16.msra.mxu0 %v6402_v56 }
 0x115   :  { %922 = vmatpush.bf16.msra.mxu1 %v6406_v57  ;;  %935 = vmatpush.bf16.msra.mxu2 %v6408_v58 }
 0x116   :  { %948 = vmatpush.bf16.msra.mxu3 %v10741_v24 }
 0x118   :  { %910 = vmatpush.bf16.msra.mxu0 %v6438_v5 }
 0x119   :  { %923 = vmatpush.bf16.msra.mxu1 %v10743_v46  ;;  %936 = vmatpush.bf16.msra.mxu2 %v10744_v50 }
 0x11a   :  { %949 = vmatpush.bf16.msra.mxu3 %v6456_v14 }
 0x11c   :  { %911 = vmatpush.bf16.msra.mxu0 %v6474_v23 }
 0x11d   :  { %924 = vmatpush.bf16.msra.mxu1 %v6484_v27  ;;  %937 = vmatpush.bf16.msra.mxu2 %v6486_v28 }
 0x11e   :  { %950 = vmatpush.bf16.msra.mxu3 %v6498_v35 }
 0x120   :  { %912 = vmatpush.bf16.msra.mxu0 %v6519_v43  ;;  %v676_v53 = vpop.f32.mrf.mxu0 }
 0x121   :  { %925 = vmatpush.bf16.msra.mxu1 %v6532_v51  ;;  %938 = vmatpush.bf16.msra.mxu2 %v6534_v52 }
 0x122   :  { %951 = vmatpush.bf16.msra.mxu3 %v6543_v55 }
 0x123   :  { %913 = vmatmul.bf16.vlgmr.msra.gmra.mxu0 %v901_v22 }
 0x124   :  { %957 = vmatpush.bf16.msrb.mxu0 %v6545_v59  ;;  %939 = vmatmul.bf16.vlgmr.msra.gmra.mxu2 %v901_v22 }
 0x125   :  { %970 = vmatpush.bf16.msrb.mxu1 %v6547_v60  ;;  %983 = vmatpush.bf16.msrb.mxu2 %v10755_v49  ;;  %v10761_v60 = vld [vmem:[#allocation17_spill] sm:$0xff] }
 0x126   :  { %996 = vmatpush.bf16.msrb.mxu3 %v10756_v10  ;;  %926 = vmatmul.bf16.vlgmr.msra.gmra.mxu1 %v902_v2  ;;  %v689_v10 = vpop.f32.mrf.mxu1 }
 0x127   :  { %952 = vmatmul.bf16.vlgmr.msra.gmra.mxu3 %v902_v2  ;;  %v7083_v49 = vadd.f32 %v689_v10, %v676_v53 }
 0x128   :  { %958 = vmatpush.bf16.msrb.mxu0 %v10757_v13 }
 0x129   :  { %971 = vmatpush.bf16.msrb.mxu1 %v10746_v9  ;;  %984 = vmatpush.bf16.msrb.mxu2 %v10758_v26  ;;  %v702_v26 = vpop.f32.mrf.mxu2 }
 0x12a   :  { %997 = vmatpush.bf16.msrb.mxu3 %v10759_v32  ;;  %v10762_v32 = vld [vmem:[#allocation23_spill] sm:$0xff] }
 0x12c   :  { %959 = vmatpush.bf16.msrb.mxu0 %v10760_v38  ;;  %v715_v38 = vpop.f32.mrf.mxu3 }
 0x12d   :  { %972 = vmatpush.bf16.msrb.mxu1 %v10761_v60  ;;  %985 = vmatpush.bf16.msrb.mxu2 %v10748_v6  ;;  %v716_v9 = vadd.f32 %v715_v38, %v702_v26  ;;  %v678_v60 = vpop.f32.mrf.mxu0 }
 0x12e   :  { %998 = vmatpush.bf16.msrb.mxu3 %v10749_v54  ;;  %v691_v10 = vpop.f32.mrf.mxu1 }
 0x12f   :  { %v771_v53 = vmax.f32 %v7083_v49, %v716_v9  ;;  %v10763_v49 = vld [vmem:[#allocation2_spill] sm:$0xff] }
 0x130   :  { %960 = vmatpush.bf16.msrb.mxu0 %v10750_v19 }
 0x131   :  { %973 = vmatpush.bf16.msrb.mxu1 %v10751_v61  ;;  %986 = vmatpush.bf16.msrb.mxu2 %v10730_v18 }
 0x132   :  { %999 = vmatpush.bf16.msrb.mxu3 %v10762_v32  ;;  %v704_v32 = vpop.f32.mrf.mxu2 }
 0x134   :  { %961 = vmatpush.bf16.msrb.mxu0 %v10732_v37  ;;  %v717_v26 = vpop.f32.mrf.mxu3 }
 0x135   :  { %974 = vmatpush.bf16.msrb.mxu1 %v10733_v40  ;;  %987 = vmatpush.bf16.msrb.mxu2 %v10734_v41 }
 0x136   :  { %1000 = vmatpush.bf16.msrb.mxu3 %v10735_v48 }
 0x138   :  { %962 = vmatpush.bf16.msrb.mxu0 %v6737_v63 }
 0x139   :  { %975 = vmatpush.bf16.msrb.mxu1 %v10736_v1  ;;  %988 = vmatpush.bf16.msrb.mxu2 %v10737_v4 }
 0x13a   :  { %1001 = vmatpush.bf16.msrb.mxu3 %v10738_v20 }
 0x13c   :  { %963 = vmatpush.bf16.msrb.mxu0 %v6773_v47 }
 0x13d   :  { %976 = vmatpush.bf16.msrb.mxu1 %v6777_v31  ;;  %989 = vmatpush.bf16.msrb.mxu2 %v6779_v11 }
 0x13e   :  { %1002 = vmatpush.bf16.msrb.mxu3 %v6791_v30 }
 0x140   :  { %964 = vmatpush.bf16.msrb.mxu0 %v6809_v42  ;;  %v728_v60 = vpop.f32.mrf.mxu0 }
 0x141   :  { %977 = vmatpush.bf16.msrb.mxu1 %v6813_v15  ;;  %990 = vmatpush.bf16.msrb.mxu2 %v6815_v39 }
 0x142   :  { %1003 = vmatpush.bf16.msrb.mxu3 %v6818_v0 }
 0x143   :  { %965 = vmatmul.bf16.vlgmr.msrb.gmra.mxu0 %v901_v22  ;;  %v741_v9 = vpop.f32.mrf.mxu1 }
 0x144   :  { %1024 = vmatpush.bf16.msra.mxu0 %v6246_v3  ;;  %991 = vmatmul.bf16.vlgmr.msrb.gmra.mxu2 %v901_v22  ;;  %v742_v22 = vadd.f32 %v741_v9, %v728_v60 }
 0x145   :  { %1037 = vmatpush.bf16.msra.mxu1 %v6257_v7  ;;  %1050 = vmatpush.bf16.msra.mxu2 %v6259_v8 }
 0x146   :  { %1063 = vmatpush.bf16.msra.mxu3 %v6271_v12  ;;  %978 = vmatmul.bf16.vlgmr.msrb.gmra.mxu1 %v902_v2 }
 0x147   :  { %1004 = vmatmul.bf16.vlgmr.msrb.gmra.mxu3 %v902_v2  ;;  %v754_v2 = vpop.f32.mrf.mxu2 }
 0x148   :  { %1025 = vmatpush.bf16.msra.mxu0 %v6284_v16  ;;  %v730_v10 = vpop.f32.mrf.mxu0 }
 0x149   :  { %1038 = vmatpush.bf16.msra.mxu1 %v6286_v17  ;;  %1051 = vmatpush.bf16.msra.mxu2 %v6298_v21 }
 0x14a   :  { %1064 = vmatpush.bf16.msra.mxu3 %v6309_v25  ;;  %v767_v32 = vpop.f32.mrf.mxu3 }
 0x14b   :  { %v768_v38 = vadd.f32 %v767_v32, %v754_v2  ;;  %v743_v60 = vpop.f32.mrf.mxu1  ;;  %v4946_v32 = vld [vmem:[%s10298_s0 + $0x28] sm:$0xff] }
 0x14c   :  { %1026 = vmatpush.bf16.msra.mxu0 %v6321_v29  ;;  %v10765_v60 = vld [vmem:[#allocation9_spill] sm:$0xff] }
 0x14d   :  { %1039 = vmatpush.bf16.msra.mxu1 %v6334_v33  ;;  %1052 = vmatpush.bf16.msra.mxu2 %v6336_v34  ;;  %v772_v26 = vmax.f32 %v742_v22, %v768_v38  ;;  %v1018_v22 = vunpack.c.l.b16 %v4946_v32 }
 0x14e   :  { %1065 = vmatpush.bf16.msra.mxu3 %v10763_v49 }
 0x14f   :  { %v7126_v9 = vmax.f32 %v771_v53, %v772_v26  ;;  %v756_v2 = vpop.f32.mrf.mxu2  ;;  %v1019_v53 = vunpack.c.h.b16 %v4946_v32  ;;  %v1020_v38 = vpack.c.b16 %v1018_v22, %v1018_v22  ;;  %v10768_v32 = vld [vmem:[#allocation13_spill] sm:$0xff]  ;;  %v10769_v22 = vld [vmem:[#allocation14_spill] sm:$0xff] }
 0x150   :  { %1027 = vmatpush.bf16.msra.mxu0 %v6366_v44  ;;  %v10766_v2 = vld [vmem:[#allocation10_spill] sm:$0xff] }
 0x151   :  { %1040 = vmatpush.bf16.msra.mxu1 %v6370_v45  ;;  %1053 = vmatpush.bf16.msra.mxu2 %v10752_v62  ;;  %10764 = vst [vmem:[#allocation25_spill] sm:$0xff] %v7126_v9  ;;  %v1021_v26 = vpack.c.b16 %v1019_v53, %v1019_v53  ;;  %v10770_v53 = vld [vmem:[#allocation15_spill] sm:$0xff]  ;;  %v10771_v9 = vld [vmem:[#allocation16_spill] sm:$0xff] }
 0x152   :  { %1066 = vmatpush.bf16.msra.mxu3 %v10753_v36  ;;  %v769_v10 = vpop.f32.mrf.mxu3 }
 0x153   :  { %v10767_v10 = vld [vmem:[#allocation11_spill] sm:$0xff] }
 0x154   :  { %1028 = vmatpush.bf16.msra.mxu0 %v6402_v56 }
 0x155   :  { %1041 = vmatpush.bf16.msra.mxu1 %v6406_v57  ;;  %1054 = vmatpush.bf16.msra.mxu2 %v6408_v58 }
 0x156   :  { %1067 = vmatpush.bf16.msra.mxu3 %v10741_v24 }
 0x158   :  { %1029 = vmatpush.bf16.msra.mxu0 %v6438_v5 }
 0x159   :  { %1042 = vmatpush.bf16.msra.mxu1 %v10743_v46  ;;  %1055 = vmatpush.bf16.msra.mxu2 %v10744_v50 }
 0x15a   :  { %1068 = vmatpush.bf16.msra.mxu3 %v6456_v14 }
 0x15c   :  { %1030 = vmatpush.bf16.msra.mxu0 %v6474_v23 }
 0x15d   :  { %1043 = vmatpush.bf16.msra.mxu1 %v6484_v27  ;;  %1056 = vmatpush.bf16.msra.mxu2 %v6486_v28 }
 0x15e   :  { %1069 = vmatpush.bf16.msra.mxu3 %v6498_v35 }
 0x160   :  { %1031 = vmatpush.bf16.msra.mxu0 %v6519_v43 }
 0x161   :  { %1044 = vmatpush.bf16.msra.mxu1 %v6532_v51  ;;  %1057 = vmatpush.bf16.msra.mxu2 %v6534_v52 }
 0x162   :  { %1070 = vmatpush.bf16.msra.mxu3 %v6543_v55 }
 0x163   :  { %1032 = vmatmul.bf16.vlgmr.msra.gmra.mxu0 %v1020_v38 }
 0x164   :  { %1076 = vmatpush.bf16.msrb.mxu0 %v6545_v59  ;;  %1058 = vmatmul.bf16.vlgmr.msra.gmra.mxu2 %v1020_v38  ;;  %v795_v59 = vpop.f32.mrf.mxu0 }
 0x165   :  { %1089 = vmatpush.bf16.msrb.mxu1 %v10765_v60  ;;  %1102 = vmatpush.bf16.msrb.mxu2 %v10766_v2  ;;  %v10772_v60 = vld [vmem:[#allocation17_spill] sm:$0xff] }
 0x166   :  { %1115 = vmatpush.bf16.msrb.mxu3 %v10767_v10  ;;  %1045 = vmatmul.bf16.vlgmr.msra.gmra.mxu1 %v1021_v26  ;;  %v808_v10 = vpop.f32.mrf.mxu1 }
 0x167   :  { %1071 = vmatmul.bf16.vlgmr.msra.gmra.mxu3 %v1021_v26  ;;  %v7155_v2 = vadd.f32 %v808_v10, %v795_v59 }
 0x168   :  { %1077 = vmatpush.bf16.msrb.mxu0 %v10757_v13 }
 0x169   :  { %1090 = vmatpush.bf16.msrb.mxu1 %v10768_v32  ;;  %1103 = vmatpush.bf16.msrb.mxu2 %v10769_v22  ;;  %v821_v22 = vpop.f32.mrf.mxu2 }
 0x16a   :  { %1116 = vmatpush.bf16.msrb.mxu3 %v10770_v53  ;;  %v10773_v53 = vld [vmem:[#allocation23_spill] sm:$0xff] }
 0x16c   :  { %1078 = vmatpush.bf16.msrb.mxu0 %v10771_v9  ;;  %v834_v9 = vpop.f32.mrf.mxu3 }
 0x16d   :  { %1091 = vmatpush.bf16.msrb.mxu1 %v10772_v60  ;;  %1104 = vmatpush.bf16.msrb.mxu2 %v10748_v6  ;;  %v835_v32 = vadd.f32 %v834_v9, %v821_v22  ;;  %v797_v60 = vpop.f32.mrf.mxu0 }
 0x16e   :  { %1117 = vmatpush.bf16.msrb.mxu3 %v10749_v54  ;;  %v810_v10 = vpop.f32.mrf.mxu1 }
 0x16f   :  { %v890_v59 = vmax.f32 %v7155_v2, %v835_v32 }
 0x170   :  { %1079 = vmatpush.bf16.msrb.mxu0 %v10750_v19 }
 0x171   :  { %1092 = vmatpush.bf16.msrb.mxu1 %v10751_v61  ;;  %1105 = vmatpush.bf16.msrb.mxu2 %v10730_v18 }
 0x172   :  { %1118 = vmatpush.bf16.msrb.mxu3 %v10773_v53  ;;  %v823_v53 = vpop.f32.mrf.mxu2 }
 0x174   :  { %1080 = vmatpush.bf16.msrb.mxu0 %v10732_v37  ;;  %v836_v9 = vpop.f32.mrf.mxu3 }
 0x175   :  { %1093 = vmatpush.bf16.msrb.mxu1 %v10733_v40  ;;  %1106 = vmatpush.bf16.msrb.mxu2 %v10734_v41 }
 0x176   :  { %1119 = vmatpush.bf16.msrb.mxu3 %v10735_v48 }
 0x178   :  { %1081 = vmatpush.bf16.msrb.mxu0 %v6737_v63 }
 0x179   :  { %1094 = vmatpush.bf16.msrb.mxu1 %v10736_v1  ;;  %1107 = vmatpush.bf16.msrb.mxu2 %v10737_v4 }
 0x17a   :  { %1120 = vmatpush.bf16.msrb.mxu3 %v10738_v20 }
 0x17c   :  { %1082 = vmatpush.bf16.msrb.mxu0 %v6773_v47 }
 0x17d   :  { %1095 = vmatpush.bf16.msrb.mxu1 %v6777_v31  ;;  %1108 = vmatpush.bf16.msrb.mxu2 %v6779_v11 }
 0x17e   :  { %1121 = vmatpush.bf16.msrb.mxu3 %v6791_v30 }
 0x180   :  { %1083 = vmatpush.bf16.msrb.mxu0 %v6809_v42  ;;  %v847_v60 = vpop.f32.mrf.mxu0 }
 0x181   :  { %1096 = vmatpush.bf16.msrb.mxu1 %v6813_v15  ;;  %1109 = vmatpush.bf16.msrb.mxu2 %v6815_v39 }
 0x182   :  { %1122 = vmatpush.bf16.msrb.mxu3 %v6818_v0 }
 0x183   :  { %1084 = vmatmul.bf16.vlgmr.msrb.gmra.mxu0 %v1020_v38  ;;  %v860_v2 = vpop.f32.mrf.mxu1 }
 0x184   :  { %1143 = vmatpush.bf16.msra.mxu0 %v6246_v3  ;;  %1110 = vmatmul.bf16.vlgmr.msrb.gmra.mxu2 %v1020_v38  ;;  %v861_v38 = vadd.f32 %v860_v2, %v847_v60 }
 0x185   :  { %1156 = vmatpush.bf16.msra.mxu1 %v6257_v7  ;;  %1169 = vmatpush.bf16.msra.mxu2 %v6259_v8 }
 0x186   :  { %1182 = vmatpush.bf16.msra.mxu3 %v6271_v12  ;;  %1097 = vmatmul.bf16.vlgmr.msrb.gmra.mxu1 %v1021_v26 }
 0x187   :  { %1123 = vmatmul.bf16.vlgmr.msrb.gmra.mxu3 %v1021_v26  ;;  %v873_v26 = vpop.f32.mrf.mxu2 }
 0x188   :  { %1144 = vmatpush.bf16.msra.mxu0 %v6284_v16  ;;  %v849_v53 = vpop.f32.mrf.mxu0 }
 0x189   :  { %1157 = vmatpush.bf16.msra.mxu1 %v6286_v17  ;;  %1170 = vmatpush.bf16.msra.mxu2 %v6298_v21 }
 0x18a   :  { %1183 = vmatpush.bf16.msra.mxu3 %v6309_v25  ;;  %v886_v32 = vpop.f32.mrf.mxu3 }
 0x18b   :  { %v887_v22 = vadd.f32 %v886_v32, %v873_v26  ;;  %v862_v9 = vpop.f32.mrf.mxu1  ;;  %v4947_v26 = vld [vmem:[%s10298_s0 + $0x30] sm:$0xff] }
 0x18c   :  { %1145 = vmatpush.bf16.msra.mxu0 %v6321_v29  ;;  %v10776_v9 = vld [vmem:[#allocation9_spill] sm:$0xff] }
 0x18d   :  { %1158 = vmatpush.bf16.msra.mxu1 %v6334_v33  ;;  %1171 = vmatpush.bf16.msra.mxu2 %v6336_v34  ;;  %v891_v10 = vmax.f32 %v861_v38, %v887_v22  ;;  %v1137_v38 = vunpack.c.l.b16 %v4947_v26 }
 0x18e   :  { %1184 = vmatpush.bf16.msra.mxu3 %v10763_v49 }
 0x18f   :  { %v7198_v60 = vmax.f32 %v890_v59, %v891_v10  ;;  %v875_v2 = vpop.f32.mrf.mxu2  ;;  %v1138_v59 = vunpack.c.h.b16 %v4947_v26  ;;  %v1139_v22 = vpack.c.b16 %v1137_v38, %v1137_v38  ;;  %v10775_v10 = vld [vmem:[#allocation8_spill] sm:$0xff]  ;;  %v10779_v26 = vld [vmem:[#allocation13_spill] sm:$0xff]  ;;  %v10780_v38 = vld [vmem:[#allocation14_spill] sm:$0xff] }
 0x190   :  { %1146 = vmatpush.bf16.msra.mxu0 %v6366_v44  ;;  %v10777_v2 = vld [vmem:[#allocation10_spill] sm:$0xff] }
 0x191   :  { %1159 = vmatpush.bf16.msra.mxu1 %v6370_v45  ;;  %1172 = vmatpush.bf16.msra.mxu2 %v10752_v62  ;;  %10774 = vst [vmem:[#allocation26_spill] sm:$0xff] %v7198_v60  ;;  %v1140_v53 = vpack.c.b16 %v1138_v59, %v1138_v59  ;;  %v10781_v59 = vld [vmem:[#allocation15_spill] sm:$0xff]  ;;  %v10782_v60 = vld [vmem:[#allocation16_spill] sm:$0xff] }
 0x192   :  { %1185 = vmatpush.bf16.msra.mxu3 %v10753_v36  ;;  %v888_v32 = vpop.f32.mrf.mxu3 }
 0x193   :  { %v10778_v32 = vld [vmem:[#allocation11_spill] sm:$0xff] }
 0x194   :  { %1147 = vmatpush.bf16.msra.mxu0 %v6402_v56 }
 0x195   :  { %1160 = vmatpush.bf16.msra.mxu1 %v6406_v57  ;;  %1173 = vmatpush.bf16.msra.mxu2 %v6408_v58 }
 0x196   :  { %1186 = vmatpush.bf16.msra.mxu3 %v10741_v24 }
 0x198   :  { %1148 = vmatpush.bf16.msra.mxu0 %v6438_v5 }
 0x199   :  { %1161 = vmatpush.bf16.msra.mxu1 %v10743_v46  ;;  %1174 = vmatpush.bf16.msra.mxu2 %v10744_v50 }
 0x19a   :  { %1187 = vmatpush.bf16.msra.mxu3 %v6456_v14 }
 0x19c   :  { %1149 = vmatpush.bf16.msra.mxu0 %v6474_v23 }
 0x19d   :  { %1162 = vmatpush.bf16.msra.mxu1 %v6484_v27  ;;  %1175 = vmatpush.bf16.msra.mxu2 %v6486_v28 }
 0x19e   :  { %1188 = vmatpush.bf16.msra.mxu3 %v6498_v35 }
 0x1a0   :  { %1150 = vmatpush.bf16.msra.mxu0 %v6519_v43 }
 0x1a1   :  { %1163 = vmatpush.bf16.msra.mxu1 %v6532_v51  ;;  %1176 = vmatpush.bf16.msra.mxu2 %v6534_v52 }
 0x1a2   :  { %1189 = vmatpush.bf16.msra.mxu3 %v6543_v55 }
 0x1a3   :  { %1151 = vmatmul.bf16.vlgmr.msra.gmra.mxu0 %v1139_v22 }
 0x1a4   :  { %1195 = vmatpush.bf16.msrb.mxu0 %v10775_v10  ;;  %1177 = vmatmul.bf16.vlgmr.msra.gmra.mxu2 %v1139_v22  ;;  %v914_v10 = vpop.f32.mrf.mxu0 }
 0x1a5   :  { %1208 = vmatpush.bf16.msrb.mxu1 %v10776_v9  ;;  %1221 = vmatpush.bf16.msrb.mxu2 %v10777_v2  ;;  %v10783_v9 = vld [vmem:[#allocation17_spill] sm:$0xff] }
 0x1a6   :  { %1234 = vmatpush.bf16.msrb.mxu3 %v10778_v32  ;;  %1164 = vmatmul.bf16.vlgmr.msra.gmra.mxu1 %v1140_v53  ;;  %v927_v32 = vpop.f32.mrf.mxu1 }
 0x1a7   :  { %1190 = vmatmul.bf16.vlgmr.msra.gmra.mxu3 %v1140_v53  ;;  %v7227_v2 = vadd.f32 %v927_v32, %v914_v10 }
 0x1a8   :  { %1196 = vmatpush.bf16.msrb.mxu0 %v10757_v13 }
 0x1a9   :  { %1209 = vmatpush.bf16.msrb.mxu1 %v10779_v26  ;;  %1222 = vmatpush.bf16.msrb.mxu2 %v10780_v38  ;;  %v940_v38 = vpop.f32.mrf.mxu2 }
 0x1aa   :  { %1235 = vmatpush.bf16.msrb.mxu3 %v10781_v59  ;;  %v10784_v59 = vld [vmem:[#allocation23_spill] sm:$0xff] }
 0x1ac   :  { %1197 = vmatpush.bf16.msrb.mxu0 %v10782_v60  ;;  %v953_v60 = vpop.f32.mrf.mxu3 }
 0x1ad   :  { %1210 = vmatpush.bf16.msrb.mxu1 %v10783_v9  ;;  %1223 = vmatpush.bf16.msrb.mxu2 %v10748_v6  ;;  %v954_v26 = vadd.f32 %v953_v60, %v940_v38  ;;  %v916_v9 = vpop.f32.mrf.mxu0 }
 0x1ae   :  { %1236 = vmatpush.bf16.msrb.mxu3 %v10749_v54  ;;  %v929_v32 = vpop.f32.mrf.mxu1 }
 0x1af   :  { %v1009_v10 = vmax.f32 %v7227_v2, %v954_v26 }
 0x1b0   :  { %1198 = vmatpush.bf16.msrb.mxu0 %v10750_v19 }
 0x1b1   :  { %1211 = vmatpush.bf16.msrb.mxu1 %v10751_v61  ;;  %1224 = vmatpush.bf16.msrb.mxu2 %v10730_v18 }
 0x1b2   :  { %1237 = vmatpush.bf16.msrb.mxu3 %v10784_v59  ;;  %v942_v59 = vpop.f32.mrf.mxu2 }
 0x1b4   :  { %1199 = vmatpush.bf16.msrb.mxu0 %v10732_v37  ;;  %v955_v60 = vpop.f32.mrf.mxu3 }
 0x1b5   :  { %1212 = vmatpush.bf16.msrb.mxu1 %v10733_v40  ;;  %1225 = vmatpush.bf16.msrb.mxu2 %v10734_v41 }
 0x1b6   :  { %1238 = vmatpush.bf16.msrb.mxu3 %v10735_v48 }
 0x1b8   :  { %1200 = vmatpush.bf16.msrb.mxu0 %v6737_v63 }
 0x1b9   :  { %1213 = vmatpush.bf16.msrb.mxu1 %v10736_v1  ;;  %1226 = vmatpush.bf16.msrb.mxu2 %v10737_v4 }
 0x1ba   :  { %1239 = vmatpush.bf16.msrb.mxu3 %v10738_v20 }
 0x1bc   :  { %1201 = vmatpush.bf16.msrb.mxu0 %v6773_v47 }
 0x1bd   :  { %1214 = vmatpush.bf16.msrb.mxu1 %v6777_v31  ;;  %1227 = vmatpush.bf16.msrb.mxu2 %v6779_v11 }
 0x1be   :  { %1240 = vmatpush.bf16.msrb.mxu3 %v6791_v30 }
 0x1c0   :  { %1202 = vmatpush.bf16.msrb.mxu0 %v6809_v42  ;;  %v966_v9 = vpop.f32.mrf.mxu0 }
 0x1c1   :  { %1215 = vmatpush.bf16.msrb.mxu1 %v6813_v15  ;;  %1228 = vmatpush.bf16.msrb.mxu2 %v6815_v39 }
 0x1c2   :  { %1241 = vmatpush.bf16.msrb.mxu3 %v6818_v0 }
 0x1c3   :  { %1203 = vmatmul.bf16.vlgmr.msrb.gmra.mxu0 %v1139_v22  ;;  %v979_v2 = vpop.f32.mrf.mxu1 }
 0x1c4   :  { %1262 = vmatpush.bf16.msra.mxu0 %v6246_v3  ;;  %1229 = vmatmul.bf16.vlgmr.msrb.gmra.mxu2 %v1139_v22  ;;  %v980_v22 = vadd.f32 %v979_v2, %v966_v9 }
 0x1c5   :  { %1275 = vmatpush.bf16.msra.mxu1 %v6257_v7  ;;  %1288 = vmatpush.bf16.msra.mxu2 %v6259_v8 }
 0x1c6   :  { %1301 = vmatpush.bf16.msra.mxu3 %v6271_v12  ;;  %1216 = vmatmul.bf16.vlgmr.msrb.gmra.mxu1 %v1140_v53 }
 0x1c7   :  { %1242 = vmatmul.bf16.vlgmr.msrb.gmra.mxu3 %v1140_v53  ;;  %v992_v53 = vpop.f32.mrf.mxu2 }
 0x1c8   :  { %1263 = vmatpush.bf16.msra.mxu0 %v6284_v16  ;;  %v968_v59 = vpop.f32.mrf.mxu0 }
 0x1c9   :  { %1276 = vmatpush.bf16.msra.mxu1 %v6286_v17  ;;  %1289 = vmatpush.bf16.msra.mxu2 %v6298_v21 }
 0x1ca   :  { %1302 = vmatpush.bf16.msra.mxu3 %v6309_v25  ;;  %v1005_v26 = vpop.f32.mrf.mxu3 }
 0x1cb   :  { %v1006_v38 = vadd.f32 %v1005_v26, %v992_v53  ;;  %v981_v60 = vpop.f32.mrf.mxu1  ;;  %v4948_v53 = vld [vmem:[%s10298_s0 + $0x38] sm:$0xff] }
 0x1cc   :  { %1264 = vmatpush.bf16.msra.mxu0 %v6321_v29  ;;  %v10787_v60 = vld [vmem:[#allocation9_spill] sm:$0xff] }
 0x1cd   :  { %1277 = vmatpush.bf16.msra.mxu1 %v6334_v33  ;;  %1290 = vmatpush.bf16.msra.mxu2 %v6336_v34  ;;  %v1010_v32 = vmax.f32 %v980_v22, %v1006_v38  ;;  %v1256_v22 = vunpack.c.l.b16 %v4948_v53 }
 0x1ce   :  { %1303 = vmatpush.bf16.msra.mxu3 %v10763_v49 }
 0x1cf   :  { %v7270_v9 = vmax.f32 %v1009_v10, %v1010_v32  ;;  %v994_v2 = vpop.f32.mrf.mxu2  ;;  %v1257_v10 = vunpack.c.h.b16 %v4948_v53  ;;  %v1258_v38 = vpack.c.b16 %v1256_v22, %v1256_v22  ;;  %v10786_v32 = vld [vmem:[#allocation8_spill] sm:$0xff]  ;;  %v10790_v53 = vld [vmem:[#allocation13_spill] sm:$0xff]  ;;  %v10791_v22 = vld [vmem:[#allocation14_spill] sm:$0xff] }
 0x1d0   :  { %1265 = vmatpush.bf16.msra.mxu0 %v6366_v44  ;;  %v10788_v2 = vld [vmem:[#allocation10_spill] sm:$0xff] }
 0x1d1   :  { %1278 = vmatpush.bf16.msra.mxu1 %v6370_v45  ;;  %1291 = vmatpush.bf16.msra.mxu2 %v10752_v62  ;;  %10785 = vst [vmem:[#allocation27_spill] sm:$0xff] %v7270_v9  ;;  %v1259_v59 = vpack.c.b16 %v1257_v10, %v1257_v10  ;;  %v10792_v10 = vld [vmem:[#allocation15_spill] sm:$0xff]  ;;  %v10793_v9 = vld [vmem:[#allocation16_spill] sm:$0xff] }
 0x1d2   :  { %1304 = vmatpush.bf16.msra.mxu3 %v10753_v36  ;;  %v1007_v26 = vpop.f32.mrf.mxu3 }
 0x1d3   :  { %v10789_v26 = vld [vmem:[#allocation11_spill] sm:$0xff] }
 0x1d4   :  { %1266 = vmatpush.bf16.msra.mxu0 %v6402_v56 }
 0x1d5   :  { %1279 = vmatpush.bf16.msra.mxu1 %v6406_v57  ;;  %1292 = vmatpush.bf16.msra.mxu2 %v6408_v58 }
 0x1d6   :  { %1305 = vmatpush.bf16.msra.mxu3 %v10741_v24 }
 0x1d8   :  { %1267 = vmatpush.bf16.msra.mxu0 %v6438_v5 }
 0x1d9   :  { %1280 = vmatpush.bf16.msra.mxu1 %v10743_v46  ;;  %1293 = vmatpush.bf16.msra.mxu2 %v10744_v50 }
 0x1da   :  { %1306 = vmatpush.bf16.msra.mxu3 %v6456_v14 }
 0x1dc   :  { %1268 = vmatpush.bf16.msra.mxu0 %v6474_v23 }
 0x1dd   :  { %1281 = vmatpush.bf16.msra.mxu1 %v6484_v27  ;;  %1294 = vmatpush.bf16.msra.mxu2 %v6486_v28 }
 0x1de   :  { %1307 = vmatpush.bf16.msra.mxu3 %v6498_v35 }
 0x1e0   :  { %1269 = vmatpush.bf16.msra.mxu0 %v6519_v43 }
 0x1e1   :  { %1282 = vmatpush.bf16.msra.mxu1 %v6532_v51  ;;  %1295 = vmatpush.bf16.msra.mxu2 %v6534_v52 }
 0x1e2   :  { %1308 = vmatpush.bf16.msra.mxu3 %v6543_v55 }
 0x1e3   :  { %1270 = vmatmul.bf16.vlgmr.msra.gmra.mxu0 %v1258_v38 }
 0x1e4   :  { %1314 = vmatpush.bf16.msrb.mxu0 %v10786_v32  ;;  %1296 = vmatmul.bf16.vlgmr.msra.gmra.mxu2 %v1258_v38  ;;  %v1033_v32 = vpop.f32.mrf.mxu0 }
 0x1e5   :  { %1327 = vmatpush.bf16.msrb.mxu1 %v10787_v60  ;;  %1340 = vmatpush.bf16.msrb.mxu2 %v10788_v2  ;;  %v10794_v60 = vld [vmem:[#allocation17_spill] sm:$0xff] }
 0x1e6   :  { %1353 = vmatpush.bf16.msrb.mxu3 %v10789_v26  ;;  %1283 = vmatmul.bf16.vlgmr.msra.gmra.mxu1 %v1259_v59  ;;  %v1046_v26 = vpop.f32.mrf.mxu1 }
 0x1e7   :  { %1309 = vmatmul.bf16.vlgmr.msra.gmra.mxu3 %v1259_v59  ;;  %v7299_v2 = vadd.f32 %v1046_v26, %v1033_v32 }
 0x1e8   :  { %1315 = vmatpush.bf16.msrb.mxu0 %v10757_v13 }
 0x1e9   :  { %1328 = vmatpush.bf16.msrb.mxu1 %v10790_v53  ;;  %1341 = vmatpush.bf16.msrb.mxu2 %v10791_v22  ;;  %v1059_v22 = vpop.f32.mrf.mxu2 }
 0x1ea   :  { %1354 = vmatpush.bf16.msrb.mxu3 %v10792_v10  ;;  %v10795_v10 = vld [vmem:[#allocation23_spill] sm:$0xff] }
 0x1ec   :  { %1316 = vmatpush.bf16.msrb.mxu0 %v10793_v9  ;;  %v1072_v9 = vpop.f32.mrf.mxu3 }
 0x1ed   :  { %1329 = vmatpush.bf16.msrb.mxu1 %v10794_v60  ;;  %1342 = vmatpush.bf16.msrb.mxu2 %v10748_v6  ;;  %v1073_v53 = vadd.f32 %v1072_v9, %v1059_v22  ;;  %v1035_v60 = vpop.f32.mrf.mxu0 }
 0x1ee   :  { %1355 = vmatpush.bf16.msrb.mxu3 %v10749_v54  ;;  %v1048_v26 = vpop.f32.mrf.mxu1 }
 0x1ef   :  { %v1128_v32 = vmax.f32 %v7299_v2, %v1073_v53 }
 0x1f0   :  { %1317 = vmatpush.bf16.msrb.mxu0 %v10750_v19 }
 0x1f1   :  { %1330 = vmatpush.bf16.msrb.mxu1 %v10751_v61  ;;  %1343 = vmatpush.bf16.msrb.mxu2 %v10730_v18 }
 0x1f2   :  { %1356 = vmatpush.bf16.msrb.mxu3 %v10795_v10  ;;  %v1061_v10 = vpop.f32.mrf.mxu2 }
 0x1f4   :  { %1318 = vmatpush.bf16.msrb.mxu0 %v10732_v37  ;;  %v1074_v9 = vpop.f32.mrf.mxu3 }
 0x1f5   :  { %1331 = vmatpush.bf16.msrb.mxu1 %v10733_v40  ;;  %1344 = vmatpush.bf16.msrb.mxu2 %v10734_v41 }
 0x1f6   :  { %1357 = vmatpush.bf16.msrb.mxu3 %v10735_v48 }
 0x1f8   :  { %1319 = vmatpush.bf16.msrb.mxu0 %v6737_v63 }
 0x1f9   :  { %1332 = vmatpush.bf16.msrb.mxu1 %v10736_v1  ;;  %1345 = vmatpush.bf16.msrb.mxu2 %v10737_v4 }
 0x1fa   :  { %1358 = vmatpush.bf16.msrb.mxu3 %v10738_v20 }
 0x1fc   :  { %1320 = vmatpush.bf16.msrb.mxu0 %v6773_v47 }
 0x1fd   :  { %1333 = vmatpush.bf16.msrb.mxu1 %v6777_v31  ;;  %1346 = vmatpush.bf16.msrb.mxu2 %v6779_v11 }
 0x1fe   :  { %1359 = vmatpush.bf16.msrb.mxu3 %v6791_v30 }
 0x200   :  { %1321 = vmatpush.bf16.msrb.mxu0 %v6809_v42  ;;  %v1085_v60 = vpop.f32.mrf.mxu0 }
 0x201   :  { %1334 = vmatpush.bf16.msrb.mxu1 %v6813_v15  ;;  %1347 = vmatpush.bf16.msrb.mxu2 %v6815_v39 }
 0x202   :  { %1360 = vmatpush.bf16.msrb.mxu3 %v6818_v0 }
 0x203   :  { %1322 = vmatmul.bf16.vlgmr.msrb.gmra.mxu0 %v1258_v38  ;;  %v1098_v2 = vpop.f32.mrf.mxu1 }
 0x204   :  { %1381 = vmatpush.bf16.msra.mxu0 %v6246_v3  ;;  %1348 = vmatmul.bf16.vlgmr.msrb.gmra.mxu2 %v1258_v38  ;;  %v1099_v38 = vadd.f32 %v1098_v2, %v1085_v60 }
 0x205   :  { %1394 = vmatpush.bf16.msra.mxu1 %v6257_v7  ;;  %1407 = vmatpush.bf16.msra.mxu2 %v6259_v8 }
 0x206   :  { %1420 = vmatpush.bf16.msra.mxu3 %v6271_v12  ;;  %1335 = vmatmul.bf16.vlgmr.msrb.gmra.mxu1 %v1259_v59 }
 0x207   :  { %1361 = vmatmul.bf16.vlgmr.msrb.gmra.mxu3 %v1259_v59  ;;  %v1111_v59 = vpop.f32.mrf.mxu2 }
 0x208   :  { %1382 = vmatpush.bf16.msra.mxu0 %v6284_v16  ;;  %v1087_v10 = vpop.f32.mrf.mxu0 }
 0x209   :  { %1395 = vmatpush.bf16.msra.mxu1 %v6286_v17  ;;  %1408 = vmatpush.bf16.msra.mxu2 %v6298_v21 }
 0x20a   :  { %1421 = vmatpush.bf16.msra.mxu3 %v6309_v25  ;;  %v1124_v53 = vpop.f32.mrf.mxu3 }
 0x20b   :  { %v1125_v22 = vadd.f32 %v1124_v53, %v1111_v59  ;;  %v1100_v9 = vpop.f32.mrf.mxu1  ;;  %v4949_v59 = vld [vmem:[%s10298_s0 + $0x40] sm:$0xff] }
 0x20c   :  { %1383 = vmatpush.bf16.msra.mxu0 %v6321_v29  ;;  %v10798_v9 = vld [vmem:[#allocation9_spill] sm:$0xff] }
 0x20d   :  { %1396 = vmatpush.bf16.msra.mxu1 %v6334_v33  ;;  %1409 = vmatpush.bf16.msra.mxu2 %v6336_v34  ;;  %v1129_v26 = vmax.f32 %v1099_v38, %v1125_v22  ;;  %v1375_v38 = vunpack.c.l.b16 %v4949_v59 }
 0x20e   :  { %1422 = vmatpush.bf16.msra.mxu3 %v10763_v49 }
 0x20f   :  { %v7342_v60 = vmax.f32 %v1128_v32, %v1129_v26  ;;  %v1113_v2 = vpop.f32.mrf.mxu2  ;;  %v1376_v32 = vunpack.c.h.b16 %v4949_v59  ;;  %v1377_v22 = vpack.c.b16 %v1375_v38, %v1375_v38  ;;  %v10797_v26 = vld [vmem:[#allocation8_spill] sm:$0xff]  ;;  %v10801_v59 = vld [vmem:[#allocation13_spill] sm:$0xff]  ;;  %v10802_v38 = vld [vmem:[#allocation14_spill] sm:$0xff] }
 0x210   :  { %1384 = vmatpush.bf16.msra.mxu0 %v6366_v44  ;;  %v10799_v2 = vld [vmem:[#allocation10_spill] sm:$0xff] }
 0x211   :  { %1397 = vmatpush.bf16.msra.mxu1 %v6370_v45  ;;  %1410 = vmatpush.bf16.msra.mxu2 %v10752_v62  ;;  %10796 = vst [vmem:[#allocation28_spill] sm:$0xff] %v7342_v60  ;;  %v1378_v10 = vpack.c.b16 %v1376_v32, %v1376_v32  ;;  %v10803_v32 = vld [vmem:[#allocation15_spill] sm:$0xff]  ;;  %v10804_v60 = vld [vmem:[#allocation16_spill] sm:$0xff] }
 0x212   :  { %1423 = vmatpush.bf16.msra.mxu3 %v10753_v36  ;;  %v1126_v53 = vpop.f32.mrf.mxu3 }
 0x213   :  { %v10800_v53 = vld [vmem:[#allocation11_spill] sm:$0xff] }
 0x214   :  { %1385 = vmatpush.bf16.msra.mxu0 %v6402_v56 }
 0x215   :  { %1398 = vmatpush.bf16.msra.mxu1 %v6406_v57  ;;  %1411 = vmatpush.bf16.msra.mxu2 %v6408_v58 }
 0x216   :  { %1424 = vmatpush.bf16.msra.mxu3 %v10741_v24 }
 0x218   :  { %1386 = vmatpush.bf16.msra.mxu0 %v6438_v5 }
 0x219   :  { %1399 = vmatpush.bf16.msra.mxu1 %v10743_v46  ;;  %1412 = vmatpush.bf16.msra.mxu2 %v10744_v50 }
 0x21a   :  { %1425 = vmatpush.bf16.msra.mxu3 %v6456_v14 }
 0x21c   :  { %1387 = vmatpush.bf16.msra.mxu0 %v6474_v23 }
 0x21d   :  { %1400 = vmatpush.bf16.msra.mxu1 %v6484_v27  ;;  %1413 = vmatpush.bf16.msra.mxu2 %v6486_v28 }
 0x21e   :  { %1426 = vmatpush.bf16.msra.mxu3 %v6498_v35 }
 0x220   :  { %1388 = vmatpush.bf16.msra.mxu0 %v6519_v43 }
 0x221   :  { %1401 = vmatpush.bf16.msra.mxu1 %v6532_v51  ;;  %1414 = vmatpush.bf16.msra.mxu2 %v6534_v52 }
 0x222   :  { %1427 = vmatpush.bf16.msra.mxu3 %v6543_v55 }
 0x223   :  { %1389 = vmatmul.bf16.vlgmr.msra.gmra.mxu0 %v1377_v22 }
 0x224   :  { %1433 = vmatpush.bf16.msrb.mxu0 %v10797_v26  ;;  %1415 = vmatmul.bf16.vlgmr.msra.gmra.mxu2 %v1377_v22  ;;  %v1152_v26 = vpop.f32.mrf.mxu0 }
 0x225   :  { %1446 = vmatpush.bf16.msrb.mxu1 %v10798_v9  ;;  %1459 = vmatpush.bf16.msrb.mxu2 %v10799_v2  ;;  %v10805_v9 = vld [vmem:[#allocation17_spill] sm:$0xff] }
 0x226   :  { %1472 = vmatpush.bf16.msrb.mxu3 %v10800_v53  ;;  %1402 = vmatmul.bf16.vlgmr.msra.gmra.mxu1 %v1378_v10  ;;  %v1165_v53 = vpop.f32.mrf.mxu1 }
 0x227   :  { %1428 = vmatmul.bf16.vlgmr.msra.gmra.mxu3 %v1378_v10  ;;  %v7371_v2 = vadd.f32 %v1165_v53, %v1152_v26 }
 0x228   :  { %1434 = vmatpush.bf16.msrb.mxu0 %v10757_v13 }
 0x229   :  { %1447 = vmatpush.bf16.msrb.mxu1 %v10801_v59  ;;  %1460 = vmatpush.bf16.msrb.mxu2 %v10802_v38  ;;  %v1178_v38 = vpop.f32.mrf.mxu2 }
 0x22a   :  { %1473 = vmatpush.bf16.msrb.mxu3 %v10803_v32  ;;  %v10806_v32 = vld [vmem:[#allocation23_spill] sm:$0xff] }
 0x22c   :  { %1435 = vmatpush.bf16.msrb.mxu0 %v10804_v60  ;;  %v1191_v60 = vpop.f32.mrf.mxu3 }
 0x22d   :  { %1448 = vmatpush.bf16.msrb.mxu1 %v10805_v9  ;;  %1461 = vmatpush.bf16.msrb.mxu2 %v10748_v6  ;;  %v1192_v59 = vadd.f32 %v1191_v60, %v1178_v38  ;;  %v1154_v9 = vpop.f32.mrf.mxu0 }
 0x22e   :  { %1474 = vmatpush.bf16.msrb.mxu3 %v10749_v54  ;;  %v1167_v53 = vpop.f32.mrf.mxu1 }
 0x22f   :  { %v1247_v26 = vmax.f32 %v7371_v2, %v1192_v59 }
 0x230   :  { %1436 = vmatpush.bf16.msrb.mxu0 %v10750_v19 }
 0x231   :  { %1449 = vmatpush.bf16.msrb.mxu1 %v10751_v61  ;;  %1462 = vmatpush.bf16.msrb.mxu2 %v10730_v18 }
 0x232   :  { %1475 = vmatpush.bf16.msrb.mxu3 %v10806_v32  ;;  %v1180_v32 = vpop.f32.mrf.mxu2 }
 0x234   :  { %1437 = vmatpush.bf16.msrb.mxu0 %v10732_v37  ;;  %v1193_v60 = vpop.f32.mrf.mxu3 }
 0x235   :  { %1450 = vmatpush.bf16.msrb.mxu1 %v10733_v40  ;;  %1463 = vmatpush.bf16.msrb.mxu2 %v10734_v41 }
 0x236   :  { %1476 = vmatpush.bf16.msrb.mxu3 %v10735_v48 }
 0x238   :  { %1438 = vmatpush.bf16.msrb.mxu0 %v6737_v63 }
 0x239   :  { %1451 = vmatpush.bf16.msrb.mxu1 %v10736_v1  ;;  %1464 = vmatpush.bf16.msrb.mxu2 %v10737_v4 }
 0x23a   :  { %1477 = vmatpush.bf16.msrb.mxu3 %v10738_v20 }
 0x23c   :  { %1439 = vmatpush.bf16.msrb.mxu0 %v6773_v47 }
 0x23d   :  { %1452 = vmatpush.bf16.msrb.mxu1 %v6777_v31  ;;  %1465 = vmatpush.bf16.msrb.mxu2 %v6779_v11 }
 0x23e   :  { %1478 = vmatpush.bf16.msrb.mxu3 %v6791_v30 }
 0x240   :  { %1440 = vmatpush.bf16.msrb.mxu0 %v6809_v42  ;;  %v1204_v9 = vpop.f32.mrf.mxu0 }
 0x241   :  { %1453 = vmatpush.bf16.msrb.mxu1 %v6813_v15  ;;  %1466 = vmatpush.bf16.msrb.mxu2 %v6815_v39 }
 0x242   :  { %1479 = vmatpush.bf16.msrb.mxu3 %v6818_v0 }
 0x243   :  { %1441 = vmatmul.bf16.vlgmr.msrb.gmra.mxu0 %v1377_v22  ;;  %v1217_v2 = vpop.f32.mrf.mxu1 }
 0x244   :  { %1500 = vmatpush.bf16.msra.mxu0 %v6246_v3  ;;  %1467 = vmatmul.bf16.vlgmr.msrb.gmra.mxu2 %v1377_v22  ;;  %v1218_v22 = vadd.f32 %v1217_v2, %v1204_v9 }
 0x245   :  { %1513 = vmatpush.bf16.msra.mxu1 %v6257_v7  ;;  %1526 = vmatpush.bf16.msra.mxu2 %v6259_v8 }
 0x246   :  { %1539 = vmatpush.bf16.msra.mxu3 %v6271_v12  ;;  %1454 = vmatmul.bf16.vlgmr.msrb.gmra.mxu1 %v1378_v10 }
 0x247   :  { %1480 = vmatmul.bf16.vlgmr.msrb.gmra.mxu3 %v1378_v10  ;;  %v1230_v10 = vpop.f32.mrf.mxu2 }
 0x248   :  { %1501 = vmatpush.bf16.msra.mxu0 %v6284_v16  ;;  %v1206_v32 = vpop.f32.mrf.mxu0 }
 0x249   :  { %1514 = vmatpush.bf16.msra.mxu1 %v6286_v17  ;;  %1527 = vmatpush.bf16.msra.mxu2 %v6298_v21 }
 0x24a   :  { %1540 = vmatpush.bf16.msra.mxu3 %v6309_v25  ;;  %v1243_v59 = vpop.f32.mrf.mxu3 }
 0x24b   :  { %v1244_v38 = vadd.f32 %v1243_v59, %v1230_v10  ;;  %v1219_v60 = vpop.f32.mrf.mxu1  ;;  %v4950_v10 = vld [vmem:[%s10298_s0 + $0x48] sm:$0xff] }
 0x24c   :  { %1502 = vmatpush.bf16.msra.mxu0 %v6321_v29  ;;  %v10809_v60 = vld [vmem:[#allocation9_spill] sm:$0xff] }
 0x24d   :  { %1515 = vmatpush.bf16.msra.mxu1 %v6334_v33  ;;  %1528 = vmatpush.bf16.msra.mxu2 %v6336_v34  ;;  %v1248_v53 = vmax.f32 %v1218_v22, %v1244_v38  ;;  %v1494_v22 = vunpack.c.l.b16 %v4950_v10 }
 0x24e   :  { %1541 = vmatpush.bf16.msra.mxu3 %v10763_v49 }
 0x24f   :  { %v7414_v9 = vmax.f32 %v1247_v26, %v1248_v53  ;;  %v1232_v2 = vpop.f32.mrf.mxu2  ;;  %v1495_v26 = vunpack.c.h.b16 %v4950_v10  ;;  %v1496_v38 = vpack.c.b16 %v1494_v22, %v1494_v22  ;;  %v10808_v53 = vld [vmem:[#allocation8_spill] sm:$0xff]  ;;  %v10812_v10 = vld [vmem:[#allocation13_spill] sm:$0xff]  ;;  %v10813_v22 = vld [vmem:[#allocation14_spill] sm:$0xff] }
 0x250   :  { %1503 = vmatpush.bf16.msra.mxu0 %v6366_v44  ;;  %v10810_v2 = vld [vmem:[#allocation10_spill] sm:$0xff] }
 0x251   :  { %1516 = vmatpush.bf16.msra.mxu1 %v6370_v45  ;;  %1529 = vmatpush.bf16.msra.mxu2 %v10752_v62  ;;  %10807 = vst [vmem:[#allocation29_spill] sm:$0xff] %v7414_v9  ;;  %v1497_v32 = vpack.c.b16 %v1495_v26, %v1495_v26  ;;  %v10814_v26 = vld [vmem:[#allocation15_spill] sm:$0xff]  ;;  %v10815_v9 = vld [vmem:[#allocation16_spill] sm:$0xff] }
 0x252   :  { %1542 = vmatpush.bf16.msra.mxu3 %v10753_v36  ;;  %v1245_v59 = vpop.f32.mrf.mxu3 }
 0x253   :  { %v10811_v59 = vld [vmem:[#allocation11_spill] sm:$0xff] }
 0x254   :  { %1504 = vmatpush.bf16.msra.mxu0 %v6402_v56 }
 0x255   :  { %1517 = vmatpush.bf16.msra.mxu1 %v6406_v57  ;;  %1530 = vmatpush.bf16.msra.mxu2 %v6408_v58 }
 0x256   :  { %1543 = vmatpush.bf16.msra.mxu3 %v10741_v24 }
 0x258   :  { %1505 = vmatpush.bf16.msra.mxu0 %v6438_v5 }
 0x259   :  { %1518 = vmatpush.bf16.msra.mxu1 %v10743_v46  ;;  %1531 = vmatpush.bf16.msra.mxu2 %v10744_v50 }
 0x25a   :  { %1544 = vmatpush.bf16.msra.mxu3 %v6456_v14 }
 0x25c   :  { %1506 = vmatpush.bf16.msra.mxu0 %v6474_v23 }
 0x25d   :  { %1519 = vmatpush.bf16.msra.mxu1 %v6484_v27  ;;  %1532 = vmatpush.bf16.msra.mxu2 %v6486_v28 }
 0x25e   :  { %1545 = vmatpush.bf16.msra.mxu3 %v6498_v35 }
 0x260   :  { %1507 = vmatpush.bf16.msra.mxu0 %v6519_v43 }
 0x261   :  { %1520 = vmatpush.bf16.msra.mxu1 %v6532_v51  ;;  %1533 = vmatpush.bf16.msra.mxu2 %v6534_v52 }
 0x262   :  { %1546 = vmatpush.bf16.msra.mxu3 %v6543_v55 }
 0x263   :  { %1508 = vmatmul.bf16.vlgmr.msra.gmra.mxu0 %v1496_v38 }
 0x264   :  { %1552 = vmatpush.bf16.msrb.mxu0 %v10808_v53  ;;  %1534 = vmatmul.bf16.vlgmr.msra.gmra.mxu2 %v1496_v38  ;;  %v1271_v53 = vpop.f32.mrf.mxu0 }
 0x265   :  { %1565 = vmatpush.bf16.msrb.mxu1 %v10809_v60  ;;  %1578 = vmatpush.bf16.msrb.mxu2 %v10810_v2  ;;  %v10816_v60 = vld [vmem:[#allocation17_spill] sm:$0xff] }
 0x266   :  { %1591 = vmatpush.bf16.msrb.mxu3 %v10811_v59  ;;  %1521 = vmatmul.bf16.vlgmr.msra.gmra.mxu1 %v1497_v32  ;;  %v1284_v59 = vpop.f32.mrf.mxu1 }
 0x267   :  { %1547 = vmatmul.bf16.vlgmr.msra.gmra.mxu3 %v1497_v32  ;;  %v7443_v2 = vadd.f32 %v1284_v59, %v1271_v53 }
 0x268   :  { %1553 = vmatpush.bf16.msrb.mxu0 %v10757_v13 }
 0x269   :  { %1566 = vmatpush.bf16.msrb.mxu1 %v10812_v10  ;;  %1579 = vmatpush.bf16.msrb.mxu2 %v10813_v22  ;;  %v1297_v22 = vpop.f32.mrf.mxu2 }
 0x26a   :  { %1592 = vmatpush.bf16.msrb.mxu3 %v10814_v26  ;;  %v10817_v26 = vld [vmem:[#allocation23_spill] sm:$0xff] }
 0x26c   :  { %1554 = vmatpush.bf16.msrb.mxu0 %v10815_v9  ;;  %v1310_v9 = vpop.f32.mrf.mxu3 }
 0x26d   :  { %1567 = vmatpush.bf16.msrb.mxu1 %v10816_v60  ;;  %1580 = vmatpush.bf16.msrb.mxu2 %v10748_v6  ;;  %v1311_v10 = vadd.f32 %v1310_v9, %v1297_v22  ;;  %v1273_v60 = vpop.f32.mrf.mxu0 }
 0x26e   :  { %1593 = vmatpush.bf16.msrb.mxu3 %v10749_v54  ;;  %v1286_v59 = vpop.f32.mrf.mxu1 }
 0x26f   :  { %v1366_v53 = vmax.f32 %v7443_v2, %v1311_v10 }
 0x270   :  { %1555 = vmatpush.bf16.msrb.mxu0 %v10750_v19 }
 0x271   :  { %1568 = vmatpush.bf16.msrb.mxu1 %v10751_v61  ;;  %1581 = vmatpush.bf16.msrb.mxu2 %v10730_v18 }
 0x272   :  { %1594 = vmatpush.bf16.msrb.mxu3 %v10817_v26  ;;  %v1299_v26 = vpop.f32.mrf.mxu2 }
 0x274   :  { %1556 = vmatpush.bf16.msrb.mxu0 %v10732_v37  ;;  %v1312_v9 = vpop.f32.mrf.mxu3 }
 0x275   :  { %1569 = vmatpush.bf16.msrb.mxu1 %v10733_v40  ;;  %1582 = vmatpush.bf16.msrb.mxu2 %v10734_v41 }
 0x276   :  { %1595 = vmatpush.bf16.msrb.mxu3 %v10735_v48 }
 0x278   :  { %1557 = vmatpush.bf16.msrb.mxu0 %v6737_v63 }
 0x279   :  { %1570 = vmatpush.bf16.msrb.mxu1 %v10736_v1  ;;  %1583 = vmatpush.bf16.msrb.mxu2 %v10737_v4 }
 0x27a   :  { %1596 = vmatpush.bf16.msrb.mxu3 %v10738_v20 }
 0x27c   :  { %1558 = vmatpush.bf16.msrb.mxu0 %v6773_v47 }
 0x27d   :  { %1571 = vmatpush.bf16.msrb.mxu1 %v6777_v31  ;;  %1584 = vmatpush.bf16.msrb.mxu2 %v6779_v11 }
 0x27e   :  { %1597 = vmatpush.bf16.msrb.mxu3 %v6791_v30 }
 0x280   :  { %1559 = vmatpush.bf16.msrb.mxu0 %v6809_v42  ;;  %v1323_v60 = vpop.f32.mrf.mxu0 }
 0x281   :  { %1572 = vmatpush.bf16.msrb.mxu1 %v6813_v15  ;;  %1585 = vmatpush.bf16.msrb.mxu2 %v6815_v39 }
 0x282   :  { %1598 = vmatpush.bf16.msrb.mxu3 %v6818_v0 }
 0x283   :  { %1560 = vmatmul.bf16.vlgmr.msrb.gmra.mxu0 %v1496_v38  ;;  %v1336_v2 = vpop.f32.mrf.mxu1 }
 0x284   :  { %1619 = vmatpush.bf16.msra.mxu0 %v6246_v3  ;;  %1586 = vmatmul.bf16.vlgmr.msrb.gmra.mxu2 %v1496_v38  ;;  %v1337_v38 = vadd.f32 %v1336_v2, %v1323_v60 }
 0x285   :  { %1632 = vmatpush.bf16.msra.mxu1 %v6257_v7  ;;  %1645 = vmatpush.bf16.msra.mxu2 %v6259_v8 }
 0x286   :  { %1658 = vmatpush.bf16.msra.mxu3 %v6271_v12  ;;  %1573 = vmatmul.bf16.vlgmr.msrb.gmra.mxu1 %v1497_v32 }
 0x287   :  { %1599 = vmatmul.bf16.vlgmr.msrb.gmra.mxu3 %v1497_v32  ;;  %v1349_v32 = vpop.f32.mrf.mxu2 }
 0x288   :  { %1620 = vmatpush.bf16.msra.mxu0 %v6284_v16  ;;  %v1325_v26 = vpop.f32.mrf.mxu0 }
 0x289   :  { %1633 = vmatpush.bf16.msra.mxu1 %v6286_v17  ;;  %1646 = vmatpush.bf16.msra.mxu2 %v6298_v21 }
 0x28a   :  { %1659 = vmatpush.bf16.msra.mxu3 %v6309_v25  ;;  %v1362_v10 = vpop.f32.mrf.mxu3 }
 0x28b   :  { %v1363_v22 = vadd.f32 %v1362_v10, %v1349_v32  ;;  %v1338_v9 = vpop.f32.mrf.mxu1  ;;  %v4951_v32 = vld [vmem:[%s10298_s0 + $0x50] sm:$0xff] }
 0x28c   :  { %1621 = vmatpush.bf16.msra.mxu0 %v6321_v29  ;;  %v10820_v9 = vld [vmem:[#allocation9_spill] sm:$0xff] }
 0x28d   :  { %1634 = vmatpush.bf16.msra.mxu1 %v6334_v33  ;;  %1647 = vmatpush.bf16.msra.mxu2 %v6336_v34  ;;  %v1367_v59 = vmax.f32 %v1337_v38, %v1363_v22  ;;  %v1613_v38 = vunpack.c.l.b16 %v4951_v32 }
 0x28e   :  { %1660 = vmatpush.bf16.msra.mxu3 %v10763_v49 }
 0x28f   :  { %v7486_v60 = vmax.f32 %v1366_v53, %v1367_v59  ;;  %v1351_v2 = vpop.f32.mrf.mxu2  ;;  %v1614_v53 = vunpack.c.h.b16 %v4951_v32  ;;  %v1615_v22 = vpack.c.b16 %v1613_v38, %v1613_v38  ;;  %v10819_v59 = vld [vmem:[#allocation8_spill] sm:$0xff]  ;;  %v10823_v32 = vld [vmem:[#allocation13_spill] sm:$0xff]  ;;  %v10824_v38 = vld [vmem:[#allocation14_spill] sm:$0xff] }
 0x290   :  { %1622 = vmatpush.bf16.msra.mxu0 %v6366_v44  ;;  %v10821_v2 = vld [vmem:[#allocation10_spill] sm:$0xff] }
 0x291   :  { %1635 = vmatpush.bf16.msra.mxu1 %v6370_v45  ;;  %1648 = vmatpush.bf16.msra.mxu2 %v10752_v62  ;;  %10818 = vst [vmem:[#allocation30_spill] sm:$0xff] %v7486_v60  ;;  %v1616_v26 = vpack.c.b16 %v1614_v53, %v1614_v53  ;;  %v10825_v53 = vld [vmem:[#allocation15_spill] sm:$0xff]  ;;  %v10826_v60 = vld [vmem:[#allocation16_spill] sm:$0xff] }
 0x292   :  { %1661 = vmatpush.bf16.msra.mxu3 %v10753_v36  ;;  %v1364_v10 = vpop.f32.mrf.mxu3 }
 0x293   :  { %v10822_v10 = vld [vmem:[#allocation11_spill] sm:$0xff] }
 0x294   :  { %1623 = vmatpush.bf16.msra.mxu0 %v6402_v56 }
 0x295   :  { %1636 = vmatpush.bf16.msra.mxu1 %v6406_v57  ;;  %1649 = vmatpush.bf16.msra.mxu2 %v6408_v58 }
 0x296   :  { %1662 = vmatpush.bf16.msra.mxu3 %v10741_v24 }
 0x298   :  { %1624 = vmatpush.bf16.msra.mxu0 %v6438_v5 }
 0x299   :  { %1637 = vmatpush.bf16.msra.mxu1 %v10743_v46  ;;  %1650 = vmatpush.bf16.msra.mxu2 %v10744_v50 }
 0x29a   :  { %1663 = vmatpush.bf16.msra.mxu3 %v6456_v14 }
 0x29c   :  { %1625 = vmatpush.bf16.msra.mxu0 %v6474_v23 }
 0x29d   :  { %1638 = vmatpush.bf16.msra.mxu1 %v6484_v27  ;;  %1651 = vmatpush.bf16.msra.mxu2 %v6486_v28 }
 0x29e   :  { %1664 = vmatpush.bf16.msra.mxu3 %v6498_v35 }
 0x2a0   :  { %1626 = vmatpush.bf16.msra.mxu0 %v6519_v43 }
 0x2a1   :  { %1639 = vmatpush.bf16.msra.mxu1 %v6532_v51  ;;  %1652 = vmatpush.bf16.msra.mxu2 %v6534_v52 }
 0x2a2   :  { %1665 = vmatpush.bf16.msra.mxu3 %v6543_v55 }
 0x2a3   :  { %1627 = vmatmul.bf16.vlgmr.msra.gmra.mxu0 %v1615_v22 }
 0x2a4   :  { %1671 = vmatpush.bf16.msrb.mxu0 %v10819_v59  ;;  %1653 = vmatmul.bf16.vlgmr.msra.gmra.mxu2 %v1615_v22  ;;  %v1390_v59 = vpop.f32.mrf.mxu0 }
 0x2a5   :  { %1684 = vmatpush.bf16.msrb.mxu1 %v10820_v9  ;;  %1697 = vmatpush.bf16.msrb.mxu2 %v10821_v2  ;;  %v10827_v9 = vld [vmem:[#allocation17_spill] sm:$0xff] }
 0x2a6   :  { %1710 = vmatpush.bf16.msrb.mxu3 %v10822_v10  ;;  %1640 = vmatmul.bf16.vlgmr.msra.gmra.mxu1 %v1616_v26  ;;  %v1403_v10 = vpop.f32.mrf.mxu1 }
 0x2a7   :  { %1666 = vmatmul.bf16.vlgmr.msra.gmra.mxu3 %v1616_v26  ;;  %v7515_v2 = vadd.f32 %v1403_v10, %v1390_v59 }
 0x2a8   :  { %1672 = vmatpush.bf16.msrb.mxu0 %v10757_v13 }
 0x2a9   :  { %1685 = vmatpush.bf16.msrb.mxu1 %v10823_v32  ;;  %1698 = vmatpush.bf16.msrb.mxu2 %v10824_v38  ;;  %v1416_v38 = vpop.f32.mrf.mxu2 }
 0x2aa   :  { %1711 = vmatpush.bf16.msrb.mxu3 %v10825_v53  ;;  %v10828_v53 = vld [vmem:[#allocation23_spill] sm:$0xff] }
 0x2ac   :  { %1673 = vmatpush.bf16.msrb.mxu0 %v10826_v60  ;;  %v1429_v60 = vpop.f32.mrf.mxu3 }
 0x2ad   :  { %1686 = vmatpush.bf16.msrb.mxu1 %v10827_v9  ;;  %1699 = vmatpush.bf16.msrb.mxu2 %v10748_v6  ;;  %v1430_v32 = vadd.f32 %v1429_v60, %v1416_v38  ;;  %v1392_v9 = vpop.f32.mrf.mxu0  ;;  %v6035_v38 = vld [vmem:[%s10300_s3 + $0x2cc] sm:$0xf0] }
 0x2ae   :  { %1712 = vmatpush.bf16.msrb.mxu3 %v10749_v54  ;;  %v1405_v10 = vpop.f32.mrf.mxu1  ;;  %v5179_v9 = vld [vmem:[%s10300_s3 + $0x1c0] sm:$0xf] }
 0x2af   :  { %v1485_v59 = vmax.f32 %v7515_v2, %v1430_v32  ;;  %v6003_v2 = vld [vmem:[%s10300_s3 + $0x1cc] sm:$0xf0]  ;;  %v5307_v32 = vld [vmem:[%s10300_s3 + $0x2c0] sm:$0xf] }
 0x2b0   :  { %1674 = vmatpush.bf16.msrb.mxu0 %v10750_v19  ;;  %v5035_v10 = vld [vmem:[%s10300_s3 + $0xa0] sm:$0xf] }
 0x2b1   :  { %1687 = vmatpush.bf16.msrb.mxu1 %v10751_v61  ;;  %1700 = vmatpush.bf16.msrb.mxu2 %v10730_v18 }
 0x2b2   :  { %1713 = vmatpush.bf16.msrb.mxu3 %v10828_v53  ;;  %v1418_v53 = vpop.f32.mrf.mxu2 }
 0x2b3   :  { %v6067_v53 = vld [vmem:[%s10300_s3 + $0x3cc] sm:$0xf0] }
 0x2b4   :  { %1675 = vmatpush.bf16.msrb.mxu0 %v10732_v37  ;;  %v1431_v60 = vpop.f32.mrf.mxu3 }
 0x2b5   :  { %1688 = vmatpush.bf16.msrb.mxu1 %v10733_v40  ;;  %1701 = vmatpush.bf16.msrb.mxu2 %v10734_v41  ;;  %v5163_v60 = vld [vmem:[%s10300_s3 + $0x1a0] sm:$0xf] }
 0x2b6   :  { %1714 = vmatpush.bf16.msrb.mxu3 %v10735_v48 }
 0x2b8   :  { %1676 = vmatpush.bf16.msrb.mxu0 %v6737_v63 }
 0x2b9   :  { %1689 = vmatpush.bf16.msrb.mxu1 %v10736_v1  ;;  %1702 = vmatpush.bf16.msrb.mxu2 %v10737_v4 }
 0x2ba   :  { %1715 = vmatpush.bf16.msrb.mxu3 %v10738_v20 }
 0x2bc   :  { %1677 = vmatpush.bf16.msrb.mxu0 %v6773_v47 }
 0x2bd   :  { %1690 = vmatpush.bf16.msrb.mxu1 %v6777_v31  ;;  %1703 = vmatpush.bf16.msrb.mxu2 %v6779_v11 }
 0x2be   :  { %1716 = vmatpush.bf16.msrb.mxu3 %v6791_v30 }
 0x2c0   :  { %1678 = vmatpush.bf16.msrb.mxu0 %v6809_v42 }
 0x2c1   :  { %1691 = vmatpush.bf16.msrb.mxu1 %v6813_v15  ;;  %1704 = vmatpush.bf16.msrb.mxu2 %v6815_v39 }
 0x2c2   :  { %1717 = vmatpush.bf16.msrb.mxu3 %v6818_v0 }
 0x2c3   :  { %1679 = vmatmul.bf16.vlgmr.msrb.gmra.mxu0 %v1615_v22 }
 0x2c4   :  { %1738 = vmatpush.bf16.msra.mxu0 %v6246_v3  ;;  %1705 = vmatmul.bf16.vlgmr.msrb.gmra.mxu2 %v1615_v22  ;;  %v1442_v3 = vpop.f32.mrf.mxu0 }
 0x2c5   :  { %1751 = vmatpush.bf16.msra.mxu1 %v6257_v7  ;;  %1764 = vmatpush.bf16.msra.mxu2 %v6259_v8  ;;  %v1455_v7 = vpop.f32.mrf.mxu1 }
 0x2c6   :  { %1777 = vmatpush.bf16.msra.mxu3 %v6271_v12  ;;  %1692 = vmatmul.bf16.vlgmr.msrb.gmra.mxu1 %v1616_v26  ;;  %v1456_v8 = vadd.f32 %v1455_v7, %v1442_v3  ;;  %v5999_v7 = vld [vmem:[%s10300_s3 + $0x1ac] sm:$0xf0] }
 0x2c7   :  { %1718 = vmatmul.bf16.vlgmr.msrb.gmra.mxu3 %v1616_v26  ;;  %v1468_v12 = vpop.f32.mrf.mxu2 }
 0x2c8   :  { %1739 = vmatpush.bf16.msra.mxu0 %v6284_v16 }
 0x2c9   :  { %1752 = vmatpush.bf16.msra.mxu1 %v6286_v17  ;;  %1765 = vmatpush.bf16.msra.mxu2 %v6298_v21 }
 0x2ca   :  { %1778 = vmatpush.bf16.msra.mxu3 %v6309_v25  ;;  %v1481_v16 = vpop.f32.mrf.mxu3 }
 0x2cb   :  { %v1482_v17 = vadd.f32 %v1481_v16, %v1468_v12  ;;  %v6031_v12 = vld [vmem:[%s10300_s3 + $0x2ac] sm:$0xf0]  ;;  %v5419_v16 = vld [vmem:[%s10300_s3 + $0x3a0] sm:$0xf] }
 0x2cc   :  { %1740 = vmatpush.bf16.msra.mxu0 %v6321_v29  ;;  %v1444_v21 = vpop.f32.mrf.mxu0 }
 0x2cd   :  { %1753 = vmatpush.bf16.msra.mxu1 %v6334_v33  ;;  %1766 = vmatpush.bf16.msra.mxu2 %v6336_v34  ;;  %v1486_v25 = vmax.f32 %v1456_v8, %v1482_v17  ;;  %v1457_v29 = vpop.f32.mrf.mxu1  ;;  %v5291_v8 = vld [vmem:[%s10300_s3 + $0x2a0] sm:$0xf]  ;;  %v6063_v17 = vld [vmem:[%s10300_s3 + $0x3ac] sm:$0xf0] }
 0x2ce   :  { %1779 = vmatpush.bf16.msra.mxu3 %v10763_v49  ;;  %v7724_v29 = vor.u32 %v6031_v12, %v5291_v8  ;;  %v4971_v8 = vld [vmem:[%s10300_s3 + $0x20] sm:$0xf]  ;;  %v5951_v12 = vld [vmem:[%s10300_s3 + $0x2c] sm:$0xf0] }
 0x2cf   :  { %v7558_v33 = vmax.f32 %v1485_v59, %v1486_v25  ;;  %v1470_v34 = vpop.f32.mrf.mxu2  ;;  %v7722_v25 = vor.u32 %v5999_v7, %v5163_v60 }
 0x2d0   :  { %1741 = vmatpush.bf16.msra.mxu0 %v6366_v44  ;;  %v4952_v44 = vld [vmem:[%s10298_s0 + $0x58] sm:$0xff]  ;;  %v5019_v34 = vld [vmem:[%s10300_s3 + $0x80] sm:$0xf] }
 0x2d1   :  { %1754 = vmatpush.bf16.msra.mxu1 %v6370_v45  ;;  %1767 = vmatpush.bf16.msra.mxu2 %v10752_v62  ;;  %10829 = vst [vmem:[#allocation5_spill] sm:$0xff] %v7558_v33 }
 0x2d2   :  { %1780 = vmatpush.bf16.msra.mxu3 %v10753_v36  ;;  %v1483_v45 = vpop.f32.mrf.mxu3  ;;  %v10839_v36 = vld [vmem:[#allocation23_spill] sm:$0xff]  ;;  %10840 = vst [vmem:[#allocation6_spill] sm:$0xff] %v7722_v25 }
 0x2d3   :  { %v5147_v45 = vld [vmem:[%s10300_s3 + $0x180] sm:$0xf] }
 0x2d4   :  { %1742 = vmatpush.bf16.msra.mxu0 %v6402_v56  ;;  %v1732_v56 = vunpack.c.l.b16 %v4952_v44 }
 0x2d5   :  { %1755 = vmatpush.bf16.msra.mxu1 %v6406_v57  ;;  %1768 = vmatpush.bf16.msra.mxu2 %v6408_v58  ;;  %v1733_v57 = vunpack.c.h.b16 %v4952_v44  ;;  %v10830_v58 = vld [vmem:[#allocation8_spill] sm:$0xff] }
 0x2d6   :  { %1781 = vmatpush.bf16.msra.mxu3 %v10741_v24  ;;  %v5963_v44 = vld [vmem:[%s10300_s3 + $0x8c] sm:$0xf0] }
 0x2d8   :  { %1743 = vmatpush.bf16.msra.mxu0 %v6438_v5  ;;  %v10831_v5 = vld [vmem:[#allocation9_spill] sm:$0xff] }
 0x2d9   :  { %1756 = vmatpush.bf16.msra.mxu1 %v10743_v46  ;;  %1769 = vmatpush.bf16.msra.mxu2 %v10744_v50  ;;  %v7572_v46 = vpack.c.b16 %v1732_v56, %v1732_v56  ;;  %v7576_v50 = vpack.c.b16 %v1733_v57, %v1733_v57  ;;  %v7736_v56 = vor.u32 %v6063_v17, %v5419_v16  ;;  %v5995_v57 = vld [vmem:[%s10300_s3 + $0x18c] sm:$0xf0]  ;;  %v5099_v16 = vld [vmem:[%s10300_s3 + $0x120] sm:$0xf] }
 0x2da   :  { %1782 = vmatpush.bf16.msra.mxu3 %v6456_v14  ;;  %v10832_v14 = vld [vmem:[#allocation10_spill] sm:$0xff] }
 0x2db   :  { %10841 = vst [vmem:[#allocation7_spill] sm:$0xff] %v7736_v56 }
 0x2dc   :  { %1744 = vmatpush.bf16.msra.mxu0 %v6474_v23  ;;  %v10833_v23 = vld [vmem:[#allocation11_spill] sm:$0xff] }
 0x2dd   :  { %1757 = vmatpush.bf16.msra.mxu1 %v6484_v27  ;;  %1770 = vmatpush.bf16.msra.mxu2 %v6486_v28  ;;  %v10834_v27 = vld [vmem:[#allocation13_spill] sm:$0xff]  ;;  %v10835_v28 = vld [vmem:[#allocation14_spill] sm:$0xff] }
 0x2de   :  { %1783 = vmatpush.bf16.msra.mxu3 %v6498_v35  ;;  %v10836_v35 = vld [vmem:[#allocation15_spill] sm:$0xff] }
 0x2e0   :  { %1745 = vmatpush.bf16.msra.mxu0 %v6519_v43  ;;  %v10837_v43 = vld [vmem:[#allocation16_spill] sm:$0xff] }
 0x2e1   :  { %1758 = vmatpush.bf16.msra.mxu1 %v6532_v51  ;;  %1771 = vmatpush.bf16.msra.mxu2 %v6534_v52  ;;  %v1509_v51 = vpop.f32.mrf.mxu0  ;;  %v10838_v52 = vld [vmem:[#allocation17_spill] sm:$0xff] }
 0x2e2   :  { %1784 = vmatpush.bf16.msra.mxu3 %v6543_v55 }
 0x2e3   :  { %1746 = vmatmul.bf16.vlgmr.msra.gmra.mxu0 %v7572_v46  ;;  %v1522_v55 = vpop.f32.mrf.mxu1 }
 0x2e4   :  { %1790 = vmatpush.bf16.msrb.mxu0 %v10830_v58  ;;  %1772 = vmatmul.bf16.vlgmr.msra.gmra.mxu2 %v7572_v46  ;;  %v7595_v24 = vadd.f32 %v1522_v55, %v1509_v51  ;;  %v5403_v58 = vld [vmem:[%s10300_s3 + $0x380] sm:$0xf] }
 0x2e5   :  { %1803 = vmatpush.bf16.msrb.mxu1 %v10831_v5  ;;  %1816 = vmatpush.bf16.msrb.mxu2 %v10832_v14  ;;  %v6059_v5 = vld [vmem:[%s10300_s3 + $0x38c] sm:$0xf0]  ;;  %v7754_v14 = vor.u32 %v5963_v44, %v5019_v34  ;;  %v5131_v51 = vld [vmem:[%s10300_s3 + $0x160] sm:$0xf] }
 0x2e6   :  { %1829 = vmatpush.bf16.msrb.mxu3 %v10833_v23  ;;  %1759 = vmatmul.bf16.vlgmr.msra.gmra.mxu1 %v7576_v50  ;;  %v7772_v55 = vor.u32 %v6059_v5, %v5403_v58  ;;  %v5983_v44 = vld [vmem:[%s10300_s3 + $0x12c] sm:$0xf0]  ;;  %v10855_v5 = vld [vmem:[#allocation22_spill] sm:$0xff] }
 0x2e7   :  { %1785 = vmatmul.bf16.vlgmr.msra.gmra.mxu3 %v7576_v50  ;;  %v1535_v62 = vpop.f32.mrf.mxu2  ;;  %10842 = vst [vmem:[#allocation18_spill] sm:$0xff] %v7754_v14  ;;  %v6047_v58 = vld [vmem:[%s10300_s3 + $0x32c] sm:$0xf0] }
 0x2e8   :  { %1791 = vmatpush.bf16.msrb.mxu0 %v10757_v13  ;;  %10845 = vst [vmem:[#allocation21_spill] sm:$0xff] %v7772_v55 }
 0x2e9   :  { %1804 = vmatpush.bf16.msrb.mxu1 %v10834_v27  ;;  %1817 = vmatpush.bf16.msrb.mxu2 %v10835_v28  ;;  %v7758_v27 = vor.u32 %v5995_v57, %v5147_v45  ;;  %v5227_v45 = vld [vmem:[%s10300_s3 + $0x220] sm:$0xf]  ;;  %v6015_v57 = vld [vmem:[%s10300_s3 + $0x22c] sm:$0xf0] }
 0x2ea   :  { %1830 = vmatpush.bf16.msrb.mxu3 %v10836_v35  ;;  %v1548_v13 = vpop.f32.mrf.mxu3  ;;  %v5003_v35 = vld [vmem:[%s10300_s3 + $0x60] sm:$0xf] }
 0x2eb   :  { %v7601_v49 = vadd.f32 %v1548_v13, %v1535_v62  ;;  %10843 = vst [vmem:[#allocation19_spill] sm:$0xff] %v7758_v27  ;;  %v5991_v62 = vld [vmem:[%s10300_s3 + $0x16c] sm:$0xf0] }
 0x2ec   :  { %1792 = vmatpush.bf16.msrb.mxu0 %v10837_v43  ;;  %v5959_v43 = vld [vmem:[%s10300_s3 + $0x6c] sm:$0xf0] }
 0x2ed   :  { %1805 = vmatpush.bf16.msrb.mxu1 %v10838_v52  ;;  %1818 = vmatpush.bf16.msrb.mxu2 %v10748_v6  ;;  %v1511_v6 = vpop.f32.mrf.mxu0  ;;  %v6023_v13 = vld [vmem:[%s10300_s3 + $0x26c] sm:$0xf0] }
 0x2ee   :  { %1831 = vmatpush.bf16.msrb.mxu3 %v10749_v54  ;;  %v1524_v54 = vpop.f32.mrf.mxu1 }
 0x2ef   :  { %v5387_v54 = vld [vmem:[%s10300_s3 + $0x360] sm:$0xf] }
 0x2f0   :  { %1793 = vmatpush.bf16.msrb.mxu0 %v10750_v19  ;;  %v1604_v19 = vmax.f32 %v7595_v24, %v7601_v49  ;;  %v4955_v24 = vld [vmem:[%s10300_s3] sm:$0xf]  ;;  %v5947_v49 = vld [vmem:[%s10300_s3 + $0xc] sm:$0xf0] }
 0x2f1   :  { %1806 = vmatpush.bf16.msrb.mxu1 %v10751_v61  ;;  %1819 = vmatpush.bf16.msrb.mxu2 %v10730_v18  ;;  %v1537_v61 = vpop.f32.mrf.mxu2 }
 0x2f2   :  { %1832 = vmatpush.bf16.msrb.mxu3 %v10839_v36  ;;  %v1550_v18 = vpop.f32.mrf.mxu3  ;;  %v5259_v36 = vld [vmem:[%s10300_s3 + $0x260] sm:$0xf]  ;;  %v6055_v61 = vld [vmem:[%s10300_s3 + $0x36c] sm:$0xf0] }
 0x2f3   :  { %v7790_v18 = vor.u32 %v5959_v43, %v5003_v35  ;;  %v7874_v35 = vor.u32 %v5951_v12, %v4971_v8  ;;  %v5069_v8 = vld [vmem:[%s10300_s3 + $0xf0] sm:$0xf0] }
 0x2f4   :  { %1794 = vmatpush.bf16.msrb.mxu0 %v10732_v37  ;;  %v5067_v37 = vld [vmem:[%s10300_s3 + $0xe0] sm:$0xf] }
 0x2f5   :  { %1807 = vmatpush.bf16.msrb.mxu1 %v10733_v40  ;;  %1820 = vmatpush.bf16.msrb.mxu2 %v10734_v41  ;;  %v5975_v40 = vld [vmem:[%s10300_s3 + $0xec] sm:$0xf0]  ;;  %10846 = vst [vmem:[#allocation3_spill] sm:$0xff] %v7790_v18 }
 0x2f6   :  { %1833 = vmatpush.bf16.msrb.mxu3 %v10735_v48  ;;  %v6039_v41 = vld [vmem:[%s10300_s3 + $0x2ec] sm:$0xf0]  ;;  %10856 = vst [vmem:[#allocation14_spill] sm:$0xff] %v7874_v35 }
 0x2f7   :  { %v6071_v48 = vld [vmem:[%s10300_s3 + $0x3ec] sm:$0xf0] }
 0x2f8   :  { %1795 = vmatpush.bf16.msrb.mxu0 %v6737_v63  ;;  %v5195_v63 = vld [vmem:[%s10300_s3 + $0x1e0] sm:$0xf] }
 0x2f9   :  { %1808 = vmatpush.bf16.msrb.mxu1 %v10736_v1  ;;  %1821 = vmatpush.bf16.msrb.mxu2 %v10737_v4  ;;  %v6007_v4 = vld [vmem:[%s10300_s3 + $0x1ec] sm:$0xf0]  ;;  %v7641_v1 = vor.u32 %v5975_v40, %v5067_v37  ;;  %v7794_v37 = vor.u32 %v5991_v62, %v5131_v51  ;;  %v7796_v40 = vor.u32 %v6023_v13, %v5259_v36  ;;  %v5083_v62 = vld [vmem:[%s10300_s3 + $0x100] sm:$0xf] }
 0x2fa   :  { %1834 = vmatpush.bf16.msrb.mxu3 %v10738_v20  ;;  %v5323_v20 = vld [vmem:[%s10300_s3 + $0x2e0] sm:$0xf]  ;;  %v7643_v22 = vor.u32 %v6007_v4, %v5195_v63  ;;  %v7886_v51 = vor.u32 %v5983_v44, %v5099_v16  ;;  %v5979_v36 = vld [vmem:[%s10300_s3 + $0x10c] sm:$0xf0] }
 0x2fb   :  { %v7645_v26 = vor.u32 %v6039_v41, %v5323_v20  ;;  %10847 = vst [vmem:[#allocation4_spill] sm:$0xff] %v7794_v37  ;;  %v4987_v4 = vld [vmem:[%s10300_s3 + $0x40] sm:$0xf]  ;;  %v5955_v20 = vld [vmem:[%s10300_s3 + $0x4c] sm:$0xf0] }
 0x2fc   :  { %1796 = vmatpush.bf16.msrb.mxu0 %v6773_v47  ;;  %v5451_v47 = vld [vmem:[%s10300_s3 + $0x3e0] sm:$0xf]  ;;  %10848 = vst [vmem:[#allocation12_spill] sm:$0xff] %v7796_v40 }
 0x2fd   :  { %1809 = vmatpush.bf16.msrb.mxu1 %v6777_v31  ;;  %1822 = vmatpush.bf16.msrb.mxu2 %v6779_v11  ;;  %v5051_v11 = vld [vmem:[%s10300_s3 + $0xc0] sm:$0xf]  ;;  %v5971_v31 = vld [vmem:[%s10300_s3 + $0xcc] sm:$0xf0]  ;;  %10858 = vst [vmem:[#allocation15_spill] sm:$0xff] %v7886_v51 }
 0x2fe   :  { %1835 = vmatpush.bf16.msrb.mxu3 %v6791_v30  ;;  %v7657_v30 = vor.u32 %v6071_v48, %v5451_v47  ;;  %v7678_v59 = vor.u32 %v5971_v31, %v5051_v11  ;;  %v5115_v41 = vld [vmem:[%s10300_s3 + $0x140] sm:$0xf]  ;;  %v7808_v47 = vor.u32 %v6055_v61, %v5387_v54  ;;  %v5987_v11 = vld [vmem:[%s10300_s3 + $0x14c] sm:$0xf0]  ;;  %v10860_v54 = vld [vmem:[#allocation25_spill] sm:$0xff] }
 0x2ff   :  { %v5243_v31 = vld [vmem:[%s10300_s3 + $0x240] sm:$0xf]  ;;  %v7835_v60 = vor.u32 %v5987_v11, %v5115_v41  ;;  %v6011_v41 = vld [vmem:[%s10300_s3 + $0x20c] sm:$0xf0] }
 0x300   :  { %1797 = vmatpush.bf16.msrb.mxu0 %v6809_v42  ;;  %v5435_v42 = vld [vmem:[%s10300_s3 + $0x3c0] sm:$0xf]  ;;  %v1561_v23 = vpop.f32.mrf.mxu0  ;;  %10849 = vst [vmem:[#allocation2_spill] sm:$0xff] %v7808_v47  ;;  %v6043_v11 = vld [vmem:[%s10300_s3 + $0x30c] sm:$0xf0] }
 0x301   :  { %1810 = vmatpush.bf16.msrb.mxu1 %v6813_v15  ;;  %1823 = vmatpush.bf16.msrb.mxu2 %v6815_v39  ;;  %v7682_v15 = vor.u32 %v6003_v2, %v5179_v9  ;;  %v7684_v39 = vor.u32 %v6035_v38, %v5307_v32  ;;  %v7697_v3 = vor.u32 %v6067_v53, %v5435_v42  ;;  %v6019_v9 = vld [vmem:[%s10300_s3 + $0x24c] sm:$0xf0]  ;;  %v5371_v32 = vld [vmem:[%s10300_s3 + $0x340] sm:$0xf] }
 0x302   :  { %1836 = vmatpush.bf16.msrb.mxu3 %v6818_v0  ;;  %v5967_v0 = vld [vmem:[%s10300_s3 + $0xac] sm:$0xf0]  ;;  %v7828_v42 = vld [vmem:[%s10299_s2] ss:$0 sm:$0xff]  ;;  %v7831_v53 = vor.u32 %v5955_v20, %v4987_v4  ;;  %10851 = vst [vmem:[#allocation9_spill] sm:$0xff] %v7835_v60  ;;  %v7837_v7 = vor.u32 %v6019_v9, %v5243_v31 }
 0x303   :  { %1798 = vmatmul.bf16.vlgmr.msrb.gmra.mxu0 %v7572_v46  ;;  %v7718_v21 = vor.u32 %v5967_v0, %v5035_v10  ;;  %v1574_v52 = vpop.f32.mrf.mxu1  ;;  %v6051_v38 = vld [vmem:[%s10300_s3 + $0x34c] sm:$0xf0]  ;;  %v5211_v13 = vld [vmem:[%s10300_s3 + $0x200] sm:$0xf]  ;;  %v774_v61 = vadd.f32 %v7828_v42, %v10860_v54  ;;  %v5053_v54 = vld [vmem:[%s10300_s3 + $0xd0] sm:$0xf0] }
 0x304   :  { %3000 = vmatpush.bf16.msra.mxu0 %v7641_v1  ;;  %1824 = vmatmul.bf16.vlgmr.msrb.gmra.mxu2 %v7572_v46  ;;  %v5275_v46 = vld [vmem:[%s10300_s3 + $0x280] sm:$0xf]  ;;  %v1575_v6 = vadd.f32 %v1574_v52, %v1561_v23  ;;  %10850 = vst [vmem:[#allocation8_spill] sm:$0xff] %v7831_v53  ;;  %v7849_v34 = vor.u32 %v6051_v38, %v5371_v32 }
 0x305   :  { %3013 = vmatpush.bf16.msra.mxu1 %v7643_v22  ;;  %3026 = vmatpush.bf16.msra.mxu2 %v7645_v26  ;;  %10852 = vst [vmem:[#allocation10_spill] sm:$0xff] %v7837_v7  ;;  %v536_v23 = vadd.f32 %v7828_v42, %v10855_v5  ;;  %v7888_v52 = vor.u32 %v6015_v57, %v5227_v45  ;;  %v5579_v9 = vld [vmem:[%s10300_s3 + $0x4e0] sm:$0xf]  ;;  %v6005_v45 = vld [vmem:[%s10300_s3 + $0x1e4] sm:$0xf] }
 0x306   :  { %3039 = vmatpush.bf16.msra.mxu3 %v7657_v30  ;;  %1811 = vmatmul.bf16.vlgmr.msrb.gmra.mxu1 %v7576_v50  ;;  %10853 = vst [vmem:[#allocation11_spill] sm:$0xff] %v7849_v34  ;;  %v5707_v32 = vld [vmem:[%s10300_s3 + $0x5e0] sm:$0xf]  ;;  %v7925_v38 = vor.u32 %v5947_v49, %v4955_v24  ;;  %v7940_v44 = vor.u32 %v6011_v41, %v5211_v13  ;;  %v5197_v57 = vld [vmem:[%s10300_s3 + $0x1f0] sm:$0xf0] }
 0x307   :  { %1837 = vmatmul.bf16.vlgmr.msrb.gmra.mxu3 %v7576_v50  ;;  %v6027_v50 = vld [vmem:[%s10300_s3 + $0x28c] sm:$0xf0]  ;;  %v1587_v63 = vpop.f32.mrf.mxu2  ;;  %10859 = vst [vmem:[#allocation16_spill] sm:$0xff] %v7888_v52  ;;  %v537_v12 = vmax.f32 %v536_v23, 0.0 }
 0x308   :  { %3001 = vmatpush.bf16.msra.mxu0 %v7678_v59  ;;  %v7760_v28 = vor.u32 %v6027_v50, %v5275_v46  ;;  %v1563_v10 = vpop.f32.mrf.mxu0  ;;  %v5355_v50 = vld [vmem:[%s10300_s3 + $0x320] sm:$0xf]  ;;  %10863 = vst [vmem:[#allocation23_spill] sm:$0xff] %v7925_v38  ;;  %v6131_v13 = vld [vmem:[%s10300_s3 + $0x5cc] sm:$0xf0] }
 0x309   :  { %3014 = vmatpush.bf16.msra.mxu1 %v7682_v15  ;;  %3027 = vmatpush.bf16.msra.mxu2 %v7684_v39  ;;  %v7904_v20 = vor.u32 %v6047_v58, %v5355_v50  ;;  %v6135_v10 = vld [vmem:[%s10300_s3 + $0x5ec] sm:$0xf0]  ;;  %v775_v50 = vmax.f32 %v774_v61, 0.0  ;;  %v6001_v61 = vld [vmem:[%s10300_s3 + $0x1c4] sm:$0xf] }
 0x30a   :  { %3040 = vmatpush.bf16.msra.mxu3 %v7697_v3  ;;  %10844 = vst [vmem:[#allocation20_spill] sm:$0xff] %v7760_v28  ;;  %v1600_v48 = vpop.f32.mrf.mxu3  ;;  %v7953_v24 = vor.u32 %v6135_v10, %v5707_v32  ;;  %v6095_v32 = vld [vmem:[%s10300_s3 + $0x4ac] sm:$0xf0]  ;;  %v5675_v10 = vld [vmem:[%s10300_s3 + $0x5a0] sm:$0xf] }
 0x30b   :  { %v1601_v2 = vadd.f32 %v1600_v48, %v1587_v63  ;;  %v1576_v17 = vpop.f32.mrf.mxu1  ;;  %v10861_v63 = vld [vmem:[#allocation26_spill] sm:$0xff]  ;;  %10862 = vst [vmem:[#allocation17_spill] sm:$0xff] %v7904_v20 }
 0x30c   :  { %3002 = vmatpush.bf16.msra.mxu0 %v7718_v21  ;;  %v893_v4 = vadd.f32 %v7828_v42, %v10861_v63  ;;  %v5339_v48 = vld [vmem:[%s10300_s3 + $0x300] sm:$0xf]  ;;  %v7938_v17 = vor.u32 %v5979_v36, %v5083_v62  ;;  %10868 = vst [vmem:[#allocation31_spill] sm:$0xff] %v7953_v24  ;;  %v7967_v36 = vor.u32 %v6005_v45, %v5197_v57  ;;  %v5181_v63 = vld [vmem:[%s10300_s3 + $0x1d0] sm:$0xf0] }
 0x30d   :  { %3015 = vmatpush.bf16.msra.mxu1 %v7722_v25  ;;  %3028 = vmatpush.bf16.msra.mxu2 %v7724_v29  ;;  %v1605_v0 = vmax.f32 %v1575_v6, %v1601_v2  ;;  %v6103_v2 = vld [vmem:[%s10300_s3 + $0x4ec] sm:$0xf0]  ;;  %v7949_v5 = vor.u32 %v6043_v11, %v5339_v48  ;;  %v5691_v62 = vld [vmem:[%s10300_s3 + $0x5c0] sm:$0xf]  ;;  %v7994_v11 = vpack.c.bf16 %v775_v50, %v775_v50  ;;  %v5037_v45 = vld [vmem:[%s10300_s3 + $0xb0] sm:$0xf0] }
 0x30e   :  { %3041 = vmatpush.bf16.msra.mxu3 %v7736_v56  ;;  %10864 = vst [vmem:[#allocation22_spill] sm:$0xff] %v7938_v17  ;;  %v894_v58 = vmax.f32 %v893_v4, 0.0  ;;  %v7951_v23 = vor.u32 %v6103_v2, %v5579_v9  ;;  %v7986_v4 = vpack.c.bf16 %v537_v12, %v537_v12  ;;  %v5547_v2 = vld [vmem:[%s10300_s3 + $0x4a0] sm:$0xf]  ;;  %v6127_v12 = vld [vmem:[%s10300_s3 + $0x5ac] sm:$0xf0] }
 0x30f   :  { %v7863_v46 = vmax.f32 %v1604_v19, %v1605_v0  ;;  %v10857_v19 = vld [vmem:[#allocation24_spill] sm:$0xff]  ;;  %v1589_v6 = vpop.f32.mrf.mxu2  ;;  %v5973_v0 = vld [vmem:[%s10300_s3 + $0xe4] sm:$0xf]  ;;  %10866 = vst [vmem:[#allocation25_spill] sm:$0xff] %v7949_v5 }
 0x310   :  { %3003 = vmatpush.bf16.msra.mxu0 %v7754_v14  ;;  %v655_v43 = vadd.f32 %v7828_v42, %v10857_v19  ;;  %10865 = vst [vmem:[#allocation24_spill] sm:$0xff] %v7940_v44  ;;  %v7955_v49 = vor.u32 %v5973_v0, %v5069_v8  ;;  %v5563_v19 = vld [vmem:[%s10300_s3 + $0x4c0] sm:$0xf]  ;;  %v5969_v6 = vld [vmem:[%s10300_s3 + $0xc4] sm:$0xf]  ;;  %v8011_v0 = vpack.c.bf16 %v894_v58, %v894_v58 }
 0x311   :  { %3016 = vmatpush.bf16.msra.mxu1 %v7758_v27  ;;  %3029 = vmatpush.bf16.msra.mxu2 %v7760_v28  ;;  %10854 = vst [vmem:[#allocation13_spill] sm:$0xff] %v7863_v46  ;;  %v8000_v9 = vor.u32 %v5969_v6, %v5053_v54  ;;  %v8015_v8 = vor.u32 %v6001_v61, %v5181_v63  ;;  %v5997_v57 = vld [vmem:[%s10300_s3 + $0x1a4] sm:$0xf]  ;;  %v5165_v50 = vld [vmem:[%s10300_s3 + $0x1b0] sm:$0xf0] }
 0x312   :  { %3042 = vmatpush.bf16.msra.mxu3 %v7772_v55  ;;  %v1602_v31 = vpop.f32.mrf.mxu3  ;;  %v656_v16 = vmax.f32 %v655_v43, 0.0  ;;  %10867 = vst [vmem:[#allocation26_spill] sm:$0xff] %v7951_v23  ;;  %v6099_v43 = vld [vmem:[%s10300_s3 + $0x4cc] sm:$0xf0]  ;;  %v8036_v58 = vor.u32 %v6095_v32, %v5547_v2  ;;  %v5659_v6 = vld [vmem:[%s10300_s3 + $0x580] sm:$0xf]  ;;  %v8054_v54 = vor.u32 %v5997_v57, %v5165_v50 }
 0x313   :  { %10869 = vst [vmem:[#allocation32_spill] sm:$0xff] %v7955_v49  ;;  %v7992_v48 = vor.u32 %v6099_v43, %v5563_v19  ;;  %v7998_v31 = vor.u32 %v6131_v13, %v5691_v62  ;;  %v8040_v19 = vor.u32 %v6127_v12, %v5675_v10  ;;  %v5531_v62 = vld [vmem:[%s10300_s3 + $0x480] sm:$0xf]  ;;  %v6091_v13 = vld [vmem:[%s10300_s3 + $0x48c] sm:$0xf0] }
 0x314   :  { %3004 = vmatpush.bf16.msra.mxu0 %v7790_v18  ;;  %10870 = vst [vmem:[#allocation33_spill] sm:$0xff] %v7967_v36  ;;  %v7988_v41 = vpack.c.bf16 %v656_v16, %v656_v16  ;;  %v5965_v16 = vld [vmem:[%s10300_s3 + $0xa4] sm:$0xf]  ;;  %v6123_v61 = vld [vmem:[%s10300_s3 + $0x58c] sm:$0xf0]  ;;  %v8072_v12 = vor.u32 %v6091_v13, %v5531_v62 }
 0x315   :  { %3017 = vmatpush.bf16.msra.mxu1 %v7794_v37  ;;  %3030 = vmatpush.bf16.msra.mxu2 %v7796_v40  ;;  %10871 = vst [vmem:[#allocation34_spill] sm:$0xff] %v7992_v48  ;;  %v8042_v43 = vor.u32 %v5965_v16, %v5037_v45  ;;  %v5961_v63 = vld [vmem:[%s10300_s3 + $0x84] sm:$0xf]  ;;  %v5021_v2 = vld [vmem:[%s10300_s3 + $0x90] sm:$0xf0]  ;;  %v8076_v45 = vor.u32 %v6123_v61, %v5659_v6 }
 0x316   :  { %3043 = vmatpush.bf16.msra.mxu3 %v7808_v47  ;;  %10872 = vst [vmem:[#allocation35_spill] sm:$0xff] %v7998_v31  ;;  %v5993_v32 = vld [vmem:[%s10300_s3 + $0x184] sm:$0xf]  ;;  %v5149_v10 = vld [vmem:[%s10300_s3 + $0x190] sm:$0xf0]  ;;  %v8078_v57 = vor.u32 %v5961_v63, %v5021_v2 }
 0x317   :  { %10873 = vst [vmem:[#allocation36_spill] sm:$0xff] %v8000_v9  ;;  %v5515_v50 = vld [vmem:[%s10300_s3 + $0x460] sm:$0xf]  ;;  %v6087_v46 = vld [vmem:[%s10300_s3 + $0x46c] sm:$0xf0]  ;;  %v8090_v33 = vor.u32 %v5993_v32, %v5149_v10 }
 0x318   :  { %3005 = vmatpush.bf16.msra.mxu0 %v7831_v53  ;;  %10874 = vst [vmem:[#allocation37_spill] sm:$0xff] %v8015_v8  ;;  %v5643_v62 = vld [vmem:[%s10300_s3 + $0x560] sm:$0xf]  ;;  %v6119_v6 = vld [vmem:[%s10300_s3 + $0x56c] sm:$0xf0]  ;;  %v8110_v10 = vor.u32 %v6087_v46, %v5515_v50 }
 0x319   :  { %3018 = vmatpush.bf16.msra.mxu1 %v7835_v60  ;;  %3031 = vmatpush.bf16.msra.mxu2 %v7837_v7  ;;  %10875 = vst [vmem:[#allocation38_spill] sm:$0xff] %v8036_v58  ;;  %v5957_v61 = vld [vmem:[%s10300_s3 + $0x64] sm:$0xf]  ;;  %v5005_v63 = vld [vmem:[%s10300_s3 + $0x70] sm:$0xf0] }
 0x31a   :  { %3044 = vmatpush.bf16.msra.mxu3 %v7849_v34  ;;  %10876 = vst [vmem:[#allocation39_spill] sm:$0xff] %v8040_v19  ;;  %v5133_v32 = vld [vmem:[%s10300_s3 + $0x170] sm:$0xf0]  ;;  %v5627_v46 = vld [vmem:[%s10300_s3 + $0x540] sm:$0xf] }
 0x31b   :  { %10877 = vst [vmem:[#allocation40_spill] sm:$0xff] %v8042_v43 }
 0x31c   :  { %3006 = vmatpush.bf16.msra.mxu0 %v7874_v35  ;;  %10878 = vst [vmem:[#allocation41_spill] sm:$0xff] %v8054_v54 }
 0x31d   :  { %3019 = vmatpush.bf16.msra.mxu1 %v7886_v51  ;;  %3032 = vmatpush.bf16.msra.mxu2 %v7888_v52  ;;  %10879 = vst [vmem:[#allocation42_spill] sm:$0xff] %v8072_v12 }
 0x31e   :  { %3045 = vmatpush.bf16.msra.mxu3 %v7904_v20  ;;  %10880 = vst [vmem:[#allocation43_spill] sm:$0xff] %v8076_v45 }
 0x31f   :  { %10881 = vst [vmem:[#allocation44_spill] sm:$0xff] %v8078_v57 }
 0x320   :  { %3007 = vmatpush.bf16.msra.mxu0 %v7925_v38  ;;  %v1628_v16 = vpop.f32.mrf.mxu0  ;;  %10882 = vst [vmem:[#allocation45_spill] sm:$0xff] %v8090_v33 }
 0x321   :  { %3020 = vmatpush.bf16.msra.mxu1 %v7938_v17  ;;  %3033 = vmatpush.bf16.msra.mxu2 %v7940_v44  ;;  %10883 = vst [vmem:[#allocation46_spill] sm:$0xff] %v8110_v10 }
 0x322   :  { %3046 = vmatpush.bf16.msra.mxu3 %v7949_v5 }
 0x323   :  { %3008 = vmatmul.bf16.vlgmr.msra.gmra.mxu0 %v7986_v4  ;;  %v1641_v13 = vpop.f32.mrf.mxu1 }
 0x324   :  { %3052 = vmatpush.bf16.msrb.mxu0 %v7951_v23  ;;  %3021 = vmatmul.bf16.vlgmr.msra.gmra.mxu1 %v7988_v41  ;;  %v8101_v2 = vadd.f32 %v1641_v13, %v1628_v16  ;;  %v8116_v16 = vor.u32 %v5957_v61, %v5005_v63  ;;  %v5499_v13 = vld [vmem:[%s10300_s3 + $0x440] sm:$0xf]  ;;  %v4989_v61 = vld [vmem:[%s10300_s3 + $0x50] sm:$0xf0] }
 0x325   :  { %3065 = vmatpush.bf16.msrb.mxu1 %v7953_v24  ;;  %3078 = vmatpush.bf16.msrb.mxu2 %v7955_v49 }
 0x326   :  { %3091 = vmatpush.bf16.msrb.mxu3 %v7967_v36  ;;  %3034 = vmatmul.bf16.vlgmr.msra.gmra.mxu2 %v7994_v11  ;;  %10885 = vst [vmem:[#allocation48_spill] sm:$0xff] %v8116_v16 }
 0x327   :  { %3047 = vmatmul.bf16.vlgmr.msra.gmra.mxu3 %v8011_v0  ;;  %v1654_v50 = vpop.f32.mrf.mxu2 }
 0x328   :  { %3053 = vmatpush.bf16.msrb.mxu0 %v7992_v48 }
 0x329   :  { %3066 = vmatpush.bf16.msrb.mxu1 %v7998_v31  ;;  %3079 = vmatpush.bf16.msrb.mxu2 %v8000_v9  ;;  %v5483_v9 = vld [vmem:[%s10300_s3 + $0x420] sm:$0xf]  ;;  %v5581_v31 = vld [vmem:[%s10300_s3 + $0x4f0] sm:$0xf0] }
 0x32a   :  { %3092 = vmatpush.bf16.msrb.mxu3 %v8015_v8  ;;  %v1667_v63 = vpop.f32.mrf.mxu3 }
 0x32c   :  { %3054 = vmatpush.bf16.msrb.mxu0 %v8036_v58 }
 0x32d   :  { %3067 = vmatpush.bf16.msrb.mxu1 %v8040_v19  ;;  %3080 = vmatpush.bf16.msrb.mxu2 %v8042_v43  ;;  %v8114_v43 = vor.u32 %v6119_v6, %v5643_v62  ;;  %v6083_v19 = vld [vmem:[%s10300_s3 + $0x44c] sm:$0xf0]  ;;  %v5953_v6 = vld [vmem:[%s10300_s3 + $0x44] sm:$0xf] }
 0x32e   :  { %3093 = vmatpush.bf16.msrb.mxu3 %v8054_v54  ;;  %v5989_v54 = vld [vmem:[%s10300_s3 + $0x164] sm:$0xf]  ;;  %v6115_v62 = vld [vmem:[%s10300_s3 + $0x54c] sm:$0xf0]  ;;  %v8154_v8 = vor.u32 %v5953_v6, %v4989_v61  ;;  %v4973_v61 = vld [vmem:[%s10300_s3 + $0x30] sm:$0xf0] }
 0x32f   :  { %10884 = vst [vmem:[#allocation47_spill] sm:$0xff] %v8114_v43  ;;  %v8152_v58 = vor.u32 %v6115_v62, %v5627_v46  ;;  %v6111_v62 = vld [vmem:[%s10300_s3 + $0x52c] sm:$0xf0]  ;;  %v5949_v6 = vld [vmem:[%s10300_s3 + $0x24] sm:$0xf] }
 0x330   :  { %3055 = vmatpush.bf16.msrb.mxu0 %v8072_v12  ;;  %v1630_v12 = vpop.f32.mrf.mxu0  ;;  %10889 = vst [vmem:[#allocation52_spill] sm:$0xff] %v8154_v8 }
 0x331   :  { %3068 = vmatpush.bf16.msrb.mxu1 %v8076_v45  ;;  %3081 = vmatpush.bf16.msrb.mxu2 %v8078_v57  ;;  %v8128_v57 = vor.u32 %v5989_v54, %v5133_v32  ;;  %v5985_v45 = vld [vmem:[%s10300_s3 + $0x144] sm:$0xf]  ;;  %v5117_v54 = vld [vmem:[%s10300_s3 + $0x150] sm:$0xf0]  ;;  %v8145_v32 = vadd.f32 %v1667_v63, %v1654_v50  ;;  %10888 = vst [vmem:[#allocation51_spill] sm:$0xff] %v8152_v58 }
 0x332   :  { %3094 = vmatpush.bf16.msrb.mxu3 %v8090_v33  ;;  %v8148_v33 = vor.u32 %v6083_v19, %v5499_v13  ;;  %v6079_v50 = vld [vmem:[%s10300_s3 + $0x42c] sm:$0xf0]  ;;  %v5611_v19 = vld [vmem:[%s10300_s3 + $0x520] sm:$0xf]  ;;  %v1643_v13 = vpop.f32.mrf.mxu1  ;;  %v8168_v46 = vor.u32 %v5985_v45, %v5117_v54  ;;  %v5981_v63 = vld [vmem:[%s10300_s3 + $0x124] sm:$0xf] }
 0x333   :  { %10886 = vst [vmem:[#allocation49_spill] sm:$0xff] %v8128_v57  ;;  %v5101_v45 = vld [vmem:[%s10300_s3 + $0x130] sm:$0xf0]  ;;  %v8186_v54 = vor.u32 %v6079_v50, %v5483_v9  ;;  %v5467_v13 = vld [vmem:[%s10300_s3 + $0x400] sm:$0xf] }
 0x334   :  { %3056 = vmatpush.bf16.msrb.mxu0 %v8110_v10  ;;  %10887 = vst [vmem:[#allocation50_spill] sm:$0xff] %v8148_v33  ;;  %v6075_v12 = vld [vmem:[%s10300_s3 + $0x40c] sm:$0xf0]  ;;  %v5595_v9 = vld [vmem:[%s10300_s3 + $0x500] sm:$0xf] }
 0x335   :  { %3069 = vmatpush.bf16.msrb.mxu1 %v8114_v43  ;;  %3082 = vmatpush.bf16.msrb.mxu2 %v8116_v16  ;;  %10890 = vst [vmem:[#allocation53_spill] sm:$0xff] %v8168_v46  ;;  %v8198_v16 = vor.u32 %v5949_v6, %v4973_v61  ;;  %v6107_v50 = vld [vmem:[%s10300_s3 + $0x50c] sm:$0xf0]  ;;  %v1656_v43 = vpop.f32.mrf.mxu2  ;;  %v8214_v6 = vor.u32 %v5981_v63, %v5101_v45  ;;  %v4957_v61 = vld [vmem:[%s10300_s3 + $0x10] sm:$0xf0] }
 0x336   :  { %3095 = vmatpush.bf16.msrb.mxu3 %v8128_v57  ;;  %10891 = vst [vmem:[#allocation54_spill] sm:$0xff] %v8186_v54  ;;  %v8196_v57 = vor.u32 %v6111_v62, %v5611_v19  ;;  %v10895_v19 = vld [vmem:[#allocation28_spill] sm:$0xff]  ;;  %v5977_v10 = vld [vmem:[%s10300_s3 + $0x104] sm:$0xf]  ;;  %v8248_v48 = vor.u32 %v6107_v50, %v5595_v9 }
 0x337   :  { %10893 = vst [vmem:[#allocation56_spill] sm:$0xff] %v8198_v16  ;;  %v1131_v62 = vadd.f32 %v7828_v42, %v10895_v19  ;;  %v5085_v43 = vld [vmem:[%s10300_s3 + $0x110] sm:$0xf0]  ;;  %v6069_v45 = vld [vmem:[%s10300_s3 + $0x3e4] sm:$0xf]  ;;  %v8235_v19 = vor.u32 %v6075_v12, %v5467_v13 }
 0x338   :  { %3057 = vmatpush.bf16.msrb.mxu0 %v8148_v33  ;;  %10892 = vst [vmem:[#allocation55_spill] sm:$0xff] %v8196_v57  ;;  %v5945_v33 = vld [vmem:[%s10300_s3 + $0x4] sm:$0xf]  ;;  %v5325_v63 = vld [vmem:[%s10300_s3 + $0x2f0] sm:$0xf0]  ;;  %v8259_v24 = vor.u32 %v5977_v10, %v5085_v43 }
 0x339   :  { %3070 = vmatpush.bf16.msrb.mxu1 %v8152_v58  ;;  %3083 = vmatpush.bf16.msrb.mxu2 %v8154_v8  ;;  %v10894_v58 = vld [vmem:[#allocation27_spill] sm:$0xff]  ;;  %10897 = vst [vmem:[#allocation28_spill] sm:$0xff] %v8235_v19  ;;  %v8250_v12 = vor.u32 %v5945_v33, %v4957_v61  ;;  %v6133_v13 = vld [vmem:[%s10300_s3 + $0x5e4] sm:$0xf]  ;;  %v1132_v49 = vmax.f32 %v1131_v62, 0.0 }
 0x33a   :  { %v1012_v8 = vadd.f32 %v7828_v42, %v10894_v58  ;;  %3096 = vmatpush.bf16.msrb.mxu3 %v8168_v46  ;;  %10896 = vst [vmem:[#allocation27_spill] sm:$0xff] %v8214_v6  ;;  %v1669_v58 = vpop.f32.mrf.mxu3  ;;  %v6037_v42 = vld [vmem:[%s10300_s3 + $0x2e4] sm:$0xf]  ;;  %v5309_v61 = vld [vmem:[%s10300_s3 + $0x2d0] sm:$0xf0] }
 0x33b   :  { %v5453_v58 = vld [vmem:[%s10300_s3 + $0x3f0] sm:$0xf0]  ;;  %v6101_v46 = vld [vmem:[%s10300_s3 + $0x4e4] sm:$0xf]  ;;  %10898 = vst [vmem:[#allocation57_spill] sm:$0xff] %v8248_v48 }
 0x33c   :  { %3058 = vmatpush.bf16.msrb.mxu0 %v8186_v54  ;;  %10899 = vst [vmem:[#allocation58_spill] sm:$0xff] %v8250_v12  ;;  %v5709_v54 = vld [vmem:[%s10300_s3 + $0x5f0] sm:$0xf0]  ;;  %v1013_v36 = vmax.f32 %v1012_v8, 0.0  ;;  %v8263_v9 = vor.u32 %v6069_v45, %v5453_v58  ;;  %v8265_v33 = vor.u32 %v6101_v46, %v5581_v31  ;;  %v6033_v50 = vld [vmem:[%s10300_s3 + $0x2c4] sm:$0xf]  ;;  %v8302_v45 = vpack.c.bf16 %v1132_v49, %v1132_v49 }
 0x33d   :  { %3071 = vmatpush.bf16.msrb.mxu1 %v8196_v57  ;;  %3084 = vmatpush.bf16.msrb.mxu2 %v8198_v16  ;;  %10900 = vst [vmem:[#allocation59_spill] sm:$0xff] %v8259_v24  ;;  %v8261_v57 = vor.u32 %v6037_v42, %v5325_v63  ;;  %v6065_v8 = vld [vmem:[%s10300_s3 + $0x3c4] sm:$0xf]  ;;  %v8277_v10 = vor.u32 %v6133_v13, %v5709_v54  ;;  %v5437_v31 = vld [vmem:[%s10300_s3 + $0x3d0] sm:$0xf0] }
 0x33e   :  { %3097 = vmatpush.bf16.msrb.mxu3 %v8214_v6  ;;  %10902 = vst [vmem:[#allocation61_spill] sm:$0xff] %v8263_v9  ;;  %v6097_v46 = vld [vmem:[%s10300_s3 + $0x4c4] sm:$0xf]  ;;  %v5565_v62 = vld [vmem:[%s10300_s3 + $0x4d0] sm:$0xf0]  ;;  %v8296_v42 = vpack.c.bf16 %v1013_v36, %v1013_v36  ;;  %v8300_v63 = vor.u32 %v6033_v50, %v5309_v61  ;;  %v8306_v58 = vor.u32 %v6065_v8, %v5437_v31 }
 0x33f   :  { %10901 = vst [vmem:[#allocation60_spill] sm:$0xff] %v8261_v57  ;;  %v6129_v54 = vld [vmem:[%s10300_s3 + $0x5c4] sm:$0xf]  ;;  %v5693_v43 = vld [vmem:[%s10300_s3 + $0x5d0] sm:$0xf0]  ;;  %v8308_v13 = vor.u32 %v6097_v46, %v5565_v62 }
 0x340   :  { %10903 = vst [vmem:[#allocation62_spill] sm:$0xff] %v8265_v33  ;;  %3059 = vmatpush.bf16.msrb.mxu0 %v8235_v19  ;;  %v6029_v36 = vld [vmem:[%s10300_s3 + $0x2a4] sm:$0xf]  ;;  %v8321_v50 = vor.u32 %v6129_v54, %v5693_v43  ;;  %v5421_v61 = vld [vmem:[%s10300_s3 + $0x3b0] sm:$0xf0] }
 0x341   :  { %10904 = vst [vmem:[#allocation63_spill] sm:$0xff] %v8277_v10  ;;  %3072 = vmatpush.bf16.msrb.mxu1 %v8248_v48  ;;  %3085 = vmatpush.bf16.msrb.mxu2 %v8250_v12  ;;  %v6061_v49 = vld [vmem:[%s10300_s3 + $0x3a4] sm:$0xf]  ;;  %v5549_v31 = vld [vmem:[%s10300_s3 + $0x4b0] sm:$0xf0] }
 0x342   :  { %3098 = vmatpush.bf16.msrb.mxu3 %v8259_v24  ;;  %10905 = vst [vmem:[#allocation64_spill] sm:$0xff] %v8300_v63  ;;  %v6093_v8 = vld [vmem:[%s10300_s3 + $0x4a4] sm:$0xf]  ;;  %v5677_v62 = vld [vmem:[%s10300_s3 + $0x5b0] sm:$0xf0]  ;;  %v8346_v43 = vor.u32 %v6061_v49, %v5421_v61 }
 0x343   :  { %10906 = vst [vmem:[#allocation65_spill] sm:$0xff] %v8306_v58  ;;  %3060 = vmatmul.bf16.vlgmr.msrb.gmra.mxu0 %v8296_v42  ;;  %v6125_v46 = vld [vmem:[%s10300_s3 + $0x5a4] sm:$0xf]  ;;  %v5405_v49 = vld [vmem:[%s10300_s3 + $0x390] sm:$0xf0] }
 0x344   :  { %3104 = vmatpush.bf16.msra.mxu0 %v8261_v57  ;;  %10907 = vst [vmem:[#allocation66_spill] sm:$0xff] %v8308_v13  ;;  %v5293_v57 = vld [vmem:[%s10300_s3 + $0x2b0] sm:$0xf0]  ;;  %3073 = vmatmul.bf16.vlgmr.msrb.gmra.mxu1 %v8302_v45  ;;  %v6089_v61 = vld [vmem:[%s10300_s3 + $0x484] sm:$0xf] }
 0x345   :  { %3117 = vmatpush.bf16.msra.mxu1 %v8263_v9  ;;  %3130 = vmatpush.bf16.msra.mxu2 %v8265_v33  ;;  %10908 = vst [vmem:[#allocation67_spill] sm:$0xff] %v8321_v50  ;;  %v8342_v54 = vor.u32 %v6029_v36, %v5293_v57  ;;  %v6025_v33 = vld [vmem:[%s10300_s3 + $0x284] sm:$0xf]  ;;  %v5277_v9 = vld [vmem:[%s10300_s3 + $0x290] sm:$0xf0]  ;;  %v8360_v36 = vor.u32 %v6125_v46, %v5677_v62 }
 0x346   :  { %3143 = vmatpush.bf16.msra.mxu3 %v8277_v10  ;;  %3086 = vmatmul.bf16.vlgmr.msrb.gmra.mxu2 %v7986_v4  ;;  %10910 = vst [vmem:[#allocation69_spill] sm:$0xff] %v8346_v43  ;;  %v8348_v10 = vor.u32 %v6093_v8, %v5549_v31  ;;  %v6057_v57 = vld [vmem:[%s10300_s3 + $0x384] sm:$0xf]  ;;  %v5533_v8 = vld [vmem:[%s10300_s3 + $0x490] sm:$0xf0]  ;;  %v8378_v62 = vor.u32 %v6025_v33, %v5277_v9  ;;  %v1693_v33 = vpop.f32.mrf.mxu1 }
 0x347   :  { %3099 = vmatmul.bf16.vlgmr.msrb.gmra.mxu3 %v7988_v41  ;;  %10909 = vst [vmem:[#allocation68_spill] sm:$0xff] %v8342_v54  ;;  %v6121_v31 = vld [vmem:[%s10300_s3 + $0x584] sm:$0xf]  ;;  %v5661_v46 = vld [vmem:[%s10300_s3 + $0x590] sm:$0xf0] }
 0x348   :  { %3105 = vmatpush.bf16.msra.mxu0 %v8300_v63  ;;  %10911 = vst [vmem:[#allocation70_spill] sm:$0xff] %v8348_v10  ;;  %v6021_v63 = vld [vmem:[%s10300_s3 + $0x264] sm:$0xf]  ;;  %v5261_v24 = vld [vmem:[%s10300_s3 + $0x270] sm:$0xf0] }
 0x349   :  { %3118 = vmatpush.bf16.msra.mxu1 %v8306_v58  ;;  %3131 = vmatpush.bf16.msra.mxu2 %v8308_v13  ;;  %10912 = vst [vmem:[#allocation71_spill] sm:$0xff] %v8360_v36  ;;  %v8382_v13 = vor.u32 %v6057_v57, %v5405_v49  ;;  %v8384_v58 = vor.u32 %v6089_v61, %v5533_v8  ;;  %v6053_v9 = vld [vmem:[%s10300_s3 + $0x364] sm:$0xf]  ;;  %v5389_v57 = vld [vmem:[%s10300_s3 + $0x370] sm:$0xf0] }
 0x34a   :  { %3144 = vmatpush.bf16.msra.mxu3 %v8321_v50  ;;  %10913 = vst [vmem:[#allocation72_spill] sm:$0xff] %v8378_v62  ;;  %v1680_v50 = vpop.f32.mrf.mxu0  ;;  %v6085_v49 = vld [vmem:[%s10300_s3 + $0x464] sm:$0xf]  ;;  %v5517_v61 = vld [vmem:[%s10300_s3 + $0x470] sm:$0xf0] }
 0x34b   :  { %10914 = vst [vmem:[#allocation73_spill] sm:$0xff] %v8382_v13  ;;  %v1694_v8 = vadd.f32 %v1693_v33, %v1680_v50  ;;  %v1706_v50 = vpop.f32.mrf.mxu2  ;;  %v6017_v33 = vld [vmem:[%s10300_s3 + $0x244] sm:$0xf]  ;;  %v5245_v12 = vld [vmem:[%s10300_s3 + $0x250] sm:$0xf0] }
 0x34c   :  { %3106 = vmatpush.bf16.msra.mxu0 %v8342_v54  ;;  %10915 = vst [vmem:[#allocation74_spill] sm:$0xff] %v8384_v58  ;;  %v8420_v54 = vor.u32 %v6085_v49, %v5517_v61  ;;  %v6081_v49 = vld [vmem:[%s10300_s3 + $0x444] sm:$0xf]  ;;  %v5501_v61 = vld [vmem:[%s10300_s3 + $0x450] sm:$0xf0] }
 0x34d   :  { %3119 = vmatpush.bf16.msra.mxu1 %v8346_v43  ;;  %3132 = vmatpush.bf16.msra.mxu2 %v8348_v10  ;;  %v8396_v10 = vor.u32 %v6121_v31, %v5661_v46  ;;  %v6117_v43 = vld [vmem:[%s10300_s3 + $0x564] sm:$0xf]  ;;  %v5645_v31 = vld [vmem:[%s10300_s3 + $0x570] sm:$0xf0]  ;;  %v8414_v46 = vor.u32 %v6021_v63, %v5261_v24 }
 0x34e   :  { %3145 = vmatpush.bf16.msra.mxu3 %v8360_v36  ;;  %v8418_v36 = vor.u32 %v6053_v9, %v5389_v57  ;;  %10919 = vst [vmem:[#allocation78_spill] sm:$0xff] %v8420_v54  ;;  %v6049_v24 = vld [vmem:[%s10300_s3 + $0x344] sm:$0xf]  ;;  %v8432_v63 = vor.u32 %v6117_v43, %v5645_v31  ;;  %v1719_v9 = vpop.f32.mrf.mxu3  ;;  %v5373_v57 = vld [vmem:[%s10300_s3 + $0x350] sm:$0xf0]  ;;  %v8450_v31 = vor.u32 %v6017_v33, %v5245_v12 }
 0x34f   :  { %10916 = vst [vmem:[#allocation75_spill] sm:$0xff] %v8396_v10  ;;  %v5629_v43 = vld [vmem:[%s10300_s3 + $0x550] sm:$0xf0]  ;;  %v8454_v48 = vor.u32 %v6049_v24, %v5373_v57  ;;  %v6045_v12 = vld [vmem:[%s10300_s3 + $0x324] sm:$0xf]  ;;  %v10925_v57 = vmax.f32 %v8101_v2, %v8145_v32 }
 0x350   :  { %3107 = vmatpush.bf16.msra.mxu0 %v8378_v62  ;;  %10917 = vst [vmem:[#allocation76_spill] sm:$0xff] %v8414_v46  ;;  %v6077_v33 = vld [vmem:[%s10300_s3 + $0x424] sm:$0xf]  ;;  %v5485_v24 = vld [vmem:[%s10300_s3 + $0x430] sm:$0xf0] }
 0x351   :  { %3120 = vmatpush.bf16.msra.mxu1 %v8382_v13  ;;  %3133 = vmatpush.bf16.msra.mxu2 %v8384_v58  ;;  %10918 = vst [vmem:[#allocation77_spill] sm:$0xff] %v8418_v36  ;;  %v1720_v58 = vadd.f32 %v1719_v9, %v1706_v50  ;;  %v8456_v50 = vor.u32 %v6081_v49, %v5501_v61  ;;  %v6013_v9 = vld [vmem:[%s10300_s3 + $0x224] sm:$0xf]  ;;  %v5613_v61 = vld [vmem:[%s10300_s3 + $0x530] sm:$0xf0] }
 0x352   :  { %3146 = vmatpush.bf16.msra.mxu3 %v8396_v10  ;;  %10920 = vst [vmem:[#allocation79_spill] sm:$0xff] %v8432_v63  ;;  %v6113_v10 = vld [vmem:[%s10300_s3 + $0x544] sm:$0xf]  ;;  %v1682_v13 = vpop.f32.mrf.mxu0  ;;  %v5213_v2 = vld [vmem:[%s10300_s3 + $0x210] sm:$0xf0] }
 0x353   :  { %10921 = vst [vmem:[#allocation80_spill] sm:$0xff] %v8450_v31  ;;  %v1724_v62 = vmax.f32 %v1694_v8, %v1720_v58  ;;  %v1695_v13 = vpop.f32.mrf.mxu1  ;;  %v8468_v58 = vor.u32 %v6113_v10, %v5629_v43  ;;  %v5357_v8 = vld [vmem:[%s10300_s3 + $0x330] sm:$0xf0]  ;;  %v6109_v10 = vld [vmem:[%s10300_s3 + $0x524] sm:$0xf] }
 0x354   :  { %3108 = vmatpush.bf16.msra.mxu0 %v8414_v46  ;;  %10922 = vst [vmem:[#allocation81_spill] sm:$0xff] %v8454_v48  ;;  %v5229_v46 = vld [vmem:[%s10300_s3 + $0x230] sm:$0xf0]  ;;  %v6009_v13 = vld [vmem:[%s10300_s3 + $0x204] sm:$0xf]  ;;  %v8501_v32 = vor.u32 %v6045_v12, %v5357_v8 }
 0x355   :  { %3121 = vmatpush.bf16.msra.mxu1 %v8418_v36  ;;  %3134 = vmatpush.bf16.msra.mxu2 %v8420_v54  ;;  %10923 = vst [vmem:[#allocation82_spill] sm:$0xff] %v8456_v50  ;;  %v8482_v49 = vmax.f32 %v10925_v57, %v1724_v62  ;;  %v8491_v43 = vor.u32 %v6013_v9, %v5229_v46  ;;  %v6041_v46 = vld [vmem:[%s10300_s3 + $0x304] sm:$0xf]  ;;  %v5341_v9 = vld [vmem:[%s10300_s3 + $0x310] sm:$0xf0] }
 0x356   :  { %3147 = vmatpush.bf16.msra.mxu3 %v8432_v63  ;;  %10924 = vst [vmem:[#allocation83_spill] sm:$0xff] %v8468_v58  ;;  %v8503_v62 = vor.u32 %v6077_v33, %v5485_v24  ;;  %v6073_v57 = vld [vmem:[%s10300_s3 + $0x404] sm:$0xf]  ;;  %v5469_v12 = vld [vmem:[%s10300_s3 + $0x410] sm:$0xf0]  ;;  %v1721_v24 = vpop.f32.mrf.mxu3  ;;  %v8549_v63 = vor.u32 %v6041_v46, %v5341_v9 }
 0x357   :  { %10926 = vst [vmem:[#allocation84_spill] sm:$0xff] %v8482_v49  ;;  %v1708_v49 = vpop.f32.mrf.mxu2  ;;  %v6105_v8 = vld [vmem:[%s10300_s3 + $0x504] sm:$0xf]  ;;  %v5597_v33 = vld [vmem:[%s10300_s3 + $0x510] sm:$0xf0] }
 0x358   :  { %3109 = vmatpush.bf16.msra.mxu0 %v8450_v31  ;;  %10927 = vst [vmem:[#allocation85_spill] sm:$0xff] %v8491_v43  ;;  %v5075_v49 = vld [vmem:[%s10300_s3 + $0xe8] sm:$0xf]  ;;  %v6008_v24 = vld [vmem:[%s10300_s3 + $0x1f4] sm:$0xf0]  ;;  %v8560_v54 = vor.u32 %v6105_v8, %v5597_v33 }
 0x359   :  { %3122 = vmatpush.bf16.msra.mxu1 %v8454_v48  ;;  %3135 = vmatpush.bf16.msra.mxu2 %v8456_v50  ;;  %10928 = vst [vmem:[#allocation86_spill] sm:$0xff] %v8501_v32  ;;  %v8515_v50 = vor.u32 %v6109_v10, %v5613_v61  ;;  %v5976_v10 = vld [vmem:[%s10300_s3 + $0xf4] sm:$0xf0]  ;;  %v5203_v61 = vld [vmem:[%s10300_s3 + $0x1e8] sm:$0xf] }
 0x35a   :  { %10929 = vst [vmem:[#allocation87_spill] sm:$0xff] %v8503_v62  ;;  %3148 = vmatpush.bf16.msra.mxu3 %v8468_v58  ;;  %v8536_v58 = vor.u32 %v6009_v13, %v5213_v2  ;;  %v5331_v48 = vld [vmem:[%s10300_s3 + $0x2e8] sm:$0xf]  ;;  %v6040_v31 = vld [vmem:[%s10300_s3 + $0x2f4] sm:$0xf0]  ;;  %v8551_v13 = vor.u32 %v6073_v57, %v5469_v12  ;;  %v8562_v36 = vor.u32 %v5976_v10, %v5075_v49 }
 0x35b   :  { %10930 = vst [vmem:[#allocation88_spill] sm:$0xff] %v8515_v50  ;;  %v5459_v2 = vld [vmem:[%s10300_s3 + $0x3e8] sm:$0xf]  ;;  %v8566_v46 = vor.u32 %v6040_v31, %v5331_v48  ;;  %v5972_v57 = vld [vmem:[%s10300_s3 + $0xd4] sm:$0xf0] }
 0x35c   :  { %3110 = vmatpush.bf16.msra.mxu0 %v8491_v43  ;;  %10931 = vst [vmem:[#allocation89_spill] sm:$0xff] %v8536_v58  ;;  %v6072_v43 = vld [vmem:[%s10300_s3 + $0x3f4] sm:$0xf0]  ;;  %v5059_v9 = vld [vmem:[%s10300_s3 + $0xc8] sm:$0xf] }
 0x35d   :  { %3123 = vmatpush.bf16.msra.mxu1 %v8501_v32  ;;  %3136 = vmatpush.bf16.msra.mxu2 %v8503_v62  ;;  %10932 = vst [vmem:[#allocation90_spill] sm:$0xff] %v8549_v63  ;;  %v8564_v32 = vor.u32 %v6008_v24, %v5203_v61  ;;  %v5187_v12 = vld [vmem:[%s10300_s3 + $0x1c8] sm:$0xf]  ;;  %v8578_v8 = vor.u32 %v6072_v43, %v5459_v2  ;;  %v6004_v48 = vld [vmem:[%s10300_s3 + $0x1d4] sm:$0xf0] }
 0x35e   :  { %10933 = vst [vmem:[#allocation91_spill] sm:$0xff] %v8551_v13  ;;  %3149 = vmatpush.bf16.msra.mxu3 %v8515_v50  ;;  %v5315_v31 = vld [vmem:[%s10300_s3 + $0x2c8] sm:$0xf]  ;;  %v6036_v33 = vld [vmem:[%s10300_s3 + $0x2d4] sm:$0xf0]  ;;  %v8599_v10 = vor.u32 %v5972_v57, %v5059_v9  ;;  %v8603_v61 = vor.u32 %v6004_v48, %v5187_v12 }
 0x35f   :  { %10934 = vst [vmem:[#allocation92_spill] sm:$0xff] %v8560_v54  ;;  %v5443_v43 = vld [vmem:[%s10300_s3 + $0x3c8] sm:$0xf]  ;;  %v6068_v49 = vld [vmem:[%s10300_s3 + $0x3d4] sm:$0xf0]  ;;  %v8605_v24 = vor.u32 %v6036_v33, %v5315_v31 }
 0x360   :  { %10935 = vst [vmem:[#allocation93_spill] sm:$0xff] %v8562_v36  ;;  %3111 = vmatpush.bf16.msra.mxu0 %v8536_v58  ;;  %v5043_v2 = vld [vmem:[%s10300_s3 + $0xa8] sm:$0xf]  ;;  %v8618_v57 = vor.u32 %v6068_v49, %v5443_v43  ;;  %v6000_v12 = vld [vmem:[%s10300_s3 + $0x1b4] sm:$0xf0] }
 0x361   :  { %10936 = vst [vmem:[#allocation94_spill] sm:$0xff] %v8564_v32  ;;  %3124 = vmatpush.bf16.msra.mxu1 %v8549_v63  ;;  %3137 = vmatpush.bf16.msra.mxu2 %v8551_v13  ;;  %v5171_v9 = vld [vmem:[%s10300_s3 + $0x1a8] sm:$0xf]  ;;  %v6032_v31 = vld [vmem:[%s10300_s3 + $0x2b4] sm:$0xf0] }
 0x362   :  { %10937 = vst [vmem:[#allocation95_spill] sm:$0xff] %v8566_v46  ;;  %3150 = vmatpush.bf16.msra.mxu3 %v8560_v54  ;;  %v5968_v54 = vld [vmem:[%s10300_s3 + $0xb4] sm:$0xf0]  ;;  %v5299_v48 = vld [vmem:[%s10300_s3 + $0x2a8] sm:$0xf] }
 0x363   :  { %10938 = vst [vmem:[#allocation96_spill] sm:$0xff] %v8578_v8  ;;  %3112 = vmatmul.bf16.vlgmr.msra.gmra.mxu0 %v7994_v11  ;;  %v5427_v33 = vld [vmem:[%s10300_s3 + $0x3a8] sm:$0xf]  ;;  %v6064_v43 = vld [vmem:[%s10300_s3 + $0x3b4] sm:$0xf0]  ;;  %v8639_v49 = vor.u32 %v5968_v54, %v5043_v2 }
 0x364   :  { %3156 = vmatpush.bf16.msrb.mxu0 %v8562_v36  ;;  %10939 = vst [vmem:[#allocation97_spill] sm:$0xff] %v8599_v10  ;;  %3125 = vmatmul.bf16.vlgmr.msra.gmra.mxu1 %v8011_v0  ;;  %v5964_v36 = vld [vmem:[%s10300_s3 + $0x94] sm:$0xf0]  ;;  %v5155_v54 = vld [vmem:[%s10300_s3 + $0x188] sm:$0xf]  ;;  %v8657_v2 = vor.u32 %v6064_v43, %v5427_v33 }
 0x365   :  { %3169 = vmatpush.bf16.msrb.mxu1 %v8564_v32  ;;  %3182 = vmatpush.bf16.msrb.mxu2 %v8566_v46  ;;  %10940 = vst [vmem:[#allocation98_spill] sm:$0xff] %v8603_v61  ;;  %v8645_v46 = vor.u32 %v6032_v31, %v5299_v48  ;;  %v5027_v32 = vld [vmem:[%s10300_s3 + $0x88] sm:$0xf]  ;;  %v6028_v48 = vld [vmem:[%s10300_s3 + $0x294] sm:$0xf0] }
 0x366   :  { %10941 = vst [vmem:[#allocation99_spill] sm:$0xff] %v8605_v24  ;;  %3195 = vmatpush.bf16.msrb.mxu3 %v8578_v8  ;;  %3138 = vmatmul.bf16.vlgmr.msra.gmra.mxu2 %v8296_v42  ;;  %v8643_v8 = vor.u32 %v6000_v12, %v5171_v9  ;;  %v5996_v9 = vld [vmem:[%s10300_s3 + $0x194] sm:$0xf0]  ;;  %v5283_v12 = vld [vmem:[%s10300_s3 + $0x288] sm:$0xf]  ;;  %v8675_v43 = vor.u32 %v5964_v36, %v5027_v32  ;;  %v1760_v32 = vpop.f32.mrf.mxu1 }
 0x367   :  { %10942 = vst [vmem:[#allocation100_spill] sm:$0xff] %v8618_v57  ;;  %3151 = vmatmul.bf16.vlgmr.msra.gmra.mxu3 %v8302_v45  ;;  %v5411_v31 = vld [vmem:[%s10300_s3 + $0x388] sm:$0xf]  ;;  %v6060_v33 = vld [vmem:[%s10300_s3 + $0x394] sm:$0xf0] }
 0x368   :  { %3157 = vmatpush.bf16.msrb.mxu0 %v8599_v10  ;;  %10943 = vst [vmem:[#allocation101_spill] sm:$0xff] %v8639_v49  ;;  %v5011_v10 = vld [vmem:[%s10300_s3 + $0x68] sm:$0xf]  ;;  %v5960_v13 = vld [vmem:[%s10300_s3 + $0x74] sm:$0xf0] }
 0x369   :  { %3170 = vmatpush.bf16.msrb.mxu1 %v8603_v61  ;;  %3183 = vmatpush.bf16.msrb.mxu2 %v8605_v24  ;;  %10944 = vst [vmem:[#allocation102_spill] sm:$0xff] %v8643_v8  ;;  %v8679_v24 = vor.u32 %v5996_v9, %v5155_v54  ;;  %v8681_v61 = vor.u32 %v6028_v48, %v5283_v12  ;;  %v5139_v36 = vld [vmem:[%s10300_s3 + $0x168] sm:$0xf]  ;;  %v5992_v54 = vld [vmem:[%s10300_s3 + $0x174] sm:$0xf0] }
 0x36a   :  { %10945 = vst [vmem:[#allocation103_spill] sm:$0xff] %v8645_v46  ;;  %3196 = vmatpush.bf16.msrb.mxu3 %v8618_v57  ;;  %v1747_v57 = vpop.f32.mrf.mxu0  ;;  %v5267_v9 = vld [vmem:[%s10300_s3 + $0x268] sm:$0xf]  ;;  %v6024_v12 = vld [vmem:[%s10300_s3 + $0x274] sm:$0xf0] }
 0x36b   :  { %10946 = vst [vmem:[#allocation104_spill] sm:$0xff] %v8657_v2  ;;  %v8704_v48 = vadd.f32 %v1760_v32, %v1747_v57  ;;  %v8719_v57 = vor.u32 %v6024_v12, %v5267_v9  ;;  %v4995_v32 = vld [vmem:[%s10300_s3 + $0x48] sm:$0xf]  ;;  %v6020_v9 = vld [vmem:[%s10300_s3 + $0x254] sm:$0xf0]  ;;  %v1786_v12 = vpop.f32.mrf.mxu3 }
 0x36c   :  { %3158 = vmatpush.bf16.msrb.mxu0 %v8639_v49  ;;  %10947 = vst [vmem:[#allocation105_spill] sm:$0xff] %v8675_v43  ;;  %v5956_v49 = vld [vmem:[%s10300_s3 + $0x54] sm:$0xf0]  ;;  %v4979_v50 = vld [vmem:[%s10300_s3 + $0x28] sm:$0xf] }
 0x36d   :  { %3171 = vmatpush.bf16.msrb.mxu1 %v8643_v8  ;;  %3184 = vmatpush.bf16.msrb.mxu2 %v8645_v46  ;;  %10948 = vst [vmem:[#allocation106_spill] sm:$0xff] %v8679_v24  ;;  %v8693_v46 = vor.u32 %v6060_v33, %v5411_v31  ;;  %v6056_v31 = vld [vmem:[%s10300_s3 + $0x374] sm:$0xf0]  ;;  %v8713_v33 = vor.u32 %v5960_v13, %v5011_v10  ;;  %v5123_v13 = vld [vmem:[%s10300_s3 + $0x148] sm:$0xf]  ;;  %v1773_v10 = vpop.f32.mrf.mxu2 }
 0x36e   :  { %10949 = vst [vmem:[#allocation107_spill] sm:$0xff] %v8681_v61  ;;  %3197 = vmatpush.bf16.msrb.mxu3 %v8657_v2  ;;  %v5395_v2 = vld [vmem:[%s10300_s3 + $0x368] sm:$0xf]  ;;  %v8717_v8 = vor.u32 %v5992_v54, %v5139_v36  ;;  %v5988_v36 = vld [vmem:[%s10300_s3 + $0x154] sm:$0xf0] }
 0x36f   :  { %10950 = vst [vmem:[#allocation108_spill] sm:$0xff] %v8693_v46  ;;  %v5251_v54 = vld [vmem:[%s10300_s3 + $0x248] sm:$0xf]  ;;  %v8755_v63 = vor.u32 %v5988_v36, %v5123_v13  ;;  %v5984_v36 = vld [vmem:[%s10300_s3 + $0x134] sm:$0xf0] }
 0x370   :  { %3159 = vmatpush.bf16.msrb.mxu0 %v8675_v43  ;;  %10951 = vst [vmem:[#allocation109_spill] sm:$0xff] %v8713_v33  ;;  %v8757_v58 = vor.u32 %v6020_v9, %v5251_v54  ;;  %v5235_v54 = vld [vmem:[%s10300_s3 + $0x228] sm:$0xf]  ;;  %v6016_v9 = vld [vmem:[%s10300_s3 + $0x234] sm:$0xf0] }
 0x371   :  { %3172 = vmatpush.bf16.msrb.mxu1 %v8679_v24  ;;  %3185 = vmatpush.bf16.msrb.mxu2 %v8681_v61  ;;  %10952 = vst [vmem:[#allocation110_spill] sm:$0xff] %v8717_v8  ;;  %v8731_v61 = vor.u32 %v6056_v31, %v5395_v2  ;;  %v5379_v24 = vld [vmem:[%s10300_s3 + $0x348] sm:$0xf]  ;;  %v6052_v2 = vld [vmem:[%s10300_s3 + $0x354] sm:$0xf0]  ;;  %v8748_v31 = vadd.f32 %v1786_v12, %v1773_v10 }
 0x372   :  { %10953 = vst [vmem:[#allocation111_spill] sm:$0xff] %v8719_v57  ;;  %3198 = vmatpush.bf16.msrb.mxu3 %v8693_v46  ;;  %v8751_v46 = vor.u32 %v5956_v49, %v4995_v32  ;;  %v1749_v43 = vpop.f32.mrf.mxu0  ;;  %v5952_v10 = vld [vmem:[%s10300_s3 + $0x34] sm:$0xf0]  ;;  %v5107_v49 = vld [vmem:[%s10300_s3 + $0x128] sm:$0xf]  ;;  %v1762_v32 = vpop.f32.mrf.mxu1  ;;  %v8771_v13 = vor.u32 %v6052_v2, %v5379_v24 }
 0x373   :  { %10954 = vst [vmem:[#allocation112_spill] sm:$0xff] %v8731_v61  ;;  %v5363_v12 = vld [vmem:[%s10300_s3 + $0x328] sm:$0xf]  ;;  %v6048_v24 = vld [vmem:[%s10300_s3 + $0x334] sm:$0xf0]  ;;  %v8789_v2 = vor.u32 %v5952_v10, %v4979_v50 }
 0x374   :  { %3160 = vmatpush.bf16.msrb.mxu0 %v8713_v33  ;;  %10955 = vst [vmem:[#allocation113_spill] sm:$0xff] %v8751_v46  ;;  %v4963_v32 = vld [vmem:[%s10300_s3 + $0x8] sm:$0xf]  ;;  %v5948_v43 = vld [vmem:[%s10300_s3 + $0x14] sm:$0xf0] }
 0x375   :  { %3173 = vmatpush.bf16.msrb.mxu1 %v8717_v8  ;;  %3186 = vmatpush.bf16.msrb.mxu2 %v8719_v57  ;;  %10956 = vst [vmem:[#allocation114_spill] sm:$0xff] %v8755_v63  ;;  %v8801_v57 = vor.u32 %v6016_v9, %v5235_v54  ;;  %v5091_v50 = vld [vmem:[%s10300_s3 + $0x108] sm:$0xf]  ;;  %v5980_v10 = vld [vmem:[%s10300_s3 + $0x114] sm:$0xf0]  ;;  %v1775_v8 = vpop.f32.mrf.mxu2  ;;  %v1788_v9 = vpop.f32.mrf.mxu3 }
 0x376   :  { %10957 = vst [vmem:[#allocation115_spill] sm:$0xff] %v8757_v58  ;;  %3199 = vmatpush.bf16.msrb.mxu3 %v8731_v61  ;;  %v8799_v61 = vor.u32 %v5984_v36, %v5107_v49  ;;  %v6012_v49 = vld [vmem:[%s10300_s3 + $0x214] sm:$0xf0]  ;;  %v5347_v36 = vld [vmem:[%s10300_s3 + $0x308] sm:$0xf]  ;;  %v8847_v62 = vor.u32 %v5980_v10, %v5091_v50 }
 0x377   :  { %10958 = vst [vmem:[#allocation116_spill] sm:$0xff] %v8771_v13  ;;  %v6044_v54 = vld [vmem:[%s10300_s3 + $0x314] sm:$0xf0]  ;;  %v5587_v8 = vld [vmem:[%s10300_s3 + $0x4e8] sm:$0xf] }
 0x378   :  { %3161 = vmatpush.bf16.msrb.mxu0 %v8751_v46  ;;  %10959 = vst [vmem:[#allocation117_spill] sm:$0xff] %v8789_v2  ;;  %v5219_v46 = vld [vmem:[%s10300_s3 + $0x208] sm:$0xf]  ;;  %v6136_v9 = vld [vmem:[%s10300_s3 + $0x5f4] sm:$0xf0]  ;;  %v8858_v19 = vor.u32 %v6044_v54, %v5347_v36 }
 0x379   :  { %3174 = vmatpush.bf16.msrb.mxu1 %v8755_v63  ;;  %3187 = vmatpush.bf16.msrb.mxu2 %v8757_v58  ;;  %10960 = vst [vmem:[#allocation118_spill] sm:$0xff] %v8799_v61  ;;  %v8813_v58 = vor.u32 %v6048_v24, %v5363_v12  ;;  %v6104_v12 = vld [vmem:[%s10300_s3 + $0x4f4] sm:$0xf0]  ;;  %v5715_v24 = vld [vmem:[%s10300_s3 + $0x5e8] sm:$0xf] }
 0x37a   :  { %10961 = vst [vmem:[#allocation119_spill] sm:$0xff] %v8801_v57  ;;  %3200 = vmatpush.bf16.msrb.mxu3 %v8771_v13  ;;  %v8834_v13 = vor.u32 %v5948_v43, %v4963_v32  ;;  %v5974_v63 = vld [vmem:[%s10300_s3 + $0xec] sm:$0xf]  ;;  %v5077_v33 = vld [vmem:[%s10300_s3 + $0xf8] sm:$0xf0]  ;;  %v8849_v43 = vor.u32 %v6012_v49, %v5219_v46  ;;  %v8860_v6 = vor.u32 %v6104_v12, %v5587_v8 }
 0x37b   :  { %10962 = vst [vmem:[#allocation120_spill] sm:$0xff] %v8813_v58  ;;  %v6006_v32 = vld [vmem:[%s10300_s3 + $0x1ec] sm:$0xf]  ;;  %v8864_v50 = vor.u32 %v5974_v63, %v5077_v33  ;;  %v5571_v46 = vld [vmem:[%s10300_s3 + $0x4c8] sm:$0xf] }
 0x37c   :  { %3162 = vmatpush.bf16.msrb.mxu0 %v8789_v2  ;;  %10963 = vst [vmem:[#allocation121_spill] sm:$0xff] %v8834_v13  ;;  %v5205_v2 = vld [vmem:[%s10300_s3 + $0x1f8] sm:$0xf0]  ;;  %v6100_v10 = vld [vmem:[%s10300_s3 + $0x4d4] sm:$0xf0] }
 0x37d   :  { %3175 = vmatpush.bf16.msrb.mxu1 %v8799_v61  ;;  %3188 = vmatpush.bf16.msrb.mxu2 %v8801_v57  ;;  %10964 = vst [vmem:[#allocation122_spill] sm:$0xff] %v8847_v62  ;;  %v8862_v61 = vor.u32 %v6136_v9, %v5715_v24  ;;  %v5699_v49 = vld [vmem:[%s10300_s3 + $0x5c8] sm:$0xf]  ;;  %v8876_v36 = vor.u32 %v6006_v32, %v5205_v2  ;;  %v6132_v63 = vld [vmem:[%s10300_s3 + $0x5d4] sm:$0xf0] }
 0x37e   :  { %10965 = vst [vmem:[#allocation123_spill] sm:$0xff] %v8849_v43  ;;  %3201 = vmatpush.bf16.msrb.mxu3 %v8813_v58  ;;  %v5970_v33 = vld [vmem:[%s10300_s3 + $0xcc] sm:$0xf]  ;;  %v5061_v54 = vld [vmem:[%s10300_s3 + $0xd8] sm:$0xf0]  ;;  %v8897_v12 = vor.u32 %v6100_v10, %v5571_v46  ;;  %v8901_v24 = vor.u32 %v6132_v63, %v5699_v49 }
 0x37f   :  { %10966 = vst [vmem:[#allocation124_spill] sm:$0xff] %v8858_v19  ;;  %v6002_v2 = vld [vmem:[%s10300_s3 + $0x1cc] sm:$0xf]  ;;  %v5189_v8 = vld [vmem:[%s10300_s3 + $0x1d8] sm:$0xf0]  ;;  %v8903_v9 = vor.u32 %v5970_v33, %v5061_v54 }
 0x380   :  { %10967 = vst [vmem:[#allocation125_spill] sm:$0xff] %v8860_v6  ;;  %3163 = vmatpush.bf16.msrb.mxu0 %v8834_v13  ;;  %v5555_v32 = vld [vmem:[%s10300_s3 + $0x4a8] sm:$0xf]  ;;  %v8916_v10 = vor.u32 %v6002_v2, %v5189_v8  ;;  %v6128_v49 = vld [vmem:[%s10300_s3 + $0x5b4] sm:$0xf0] }
 0x381   :  { %10968 = vst [vmem:[#allocation126_spill] sm:$0xff] %v8862_v61  ;;  %3176 = vmatpush.bf16.msrb.mxu1 %v8847_v62  ;;  %3189 = vmatpush.bf16.msrb.mxu2 %v8849_v43  ;;  %v5683_v46 = vld [vmem:[%s10300_s3 + $0x5a8] sm:$0xf]  ;;  %v5966_v63 = vld [vmem:[%s10300_s3 + $0xac] sm:$0xf] }
 0x382   :  { %10969 = vst [vmem:[#allocation127_spill] sm:$0xff] %v8864_v50  ;;  %3202 = vmatpush.bf16.msrb.mxu3 %v8858_v19  ;;  %v6096_v19 = vld [vmem:[%s10300_s3 + $0x4b4] sm:$0xf0]  ;;  %v5045_v33 = vld [vmem:[%s10300_s3 + $0xb8] sm:$0xf0] }
 0x383   :  { %10970 = vst [vmem:[#allocation128_spill] sm:$0xff] %v8876_v36  ;;  %3164 = vmatmul.bf16.vlgmr.msrb.gmra.mxu0 %v7986_v4  ;;  %v5998_v54 = vld [vmem:[%s10300_s3 + $0x1ac] sm:$0xf]  ;;  %v5173_v2 = vld [vmem:[%s10300_s3 + $0x1b8] sm:$0xf0]  ;;  %v8937_v8 = vor.u32 %v6096_v19, %v5555_v32 }
 0x384   :  { %3208 = vmatpush.bf16.msra.mxu0 %v8860_v6  ;;  %10971 = vst [vmem:[#allocation129_spill] sm:$0xff] %v8897_v12  ;;  %3177 = vmatmul.bf16.vlgmr.msrb.gmra.mxu1 %v7988_v41  ;;  %v6092_v6 = vld [vmem:[%s10300_s3 + $0x494] sm:$0xf0]  ;;  %v5667_v19 = vld [vmem:[%s10300_s3 + $0x588] sm:$0xf]  ;;  %v8955_v32 = vor.u32 %v5998_v54, %v5173_v2 }
 0x385   :  { %3221 = vmatpush.bf16.msra.mxu1 %v8862_v61  ;;  %3234 = vmatpush.bf16.msra.mxu2 %v8864_v50  ;;  %10972 = vst [vmem:[#allocation130_spill] sm:$0xff] %v8901_v24  ;;  %v8943_v50 = vor.u32 %v5966_v63, %v5045_v33  ;;  %v5539_v61 = vld [vmem:[%s10300_s3 + $0x488] sm:$0xf]  ;;  %v5029_v63 = vld [vmem:[%s10300_s3 + $0x98] sm:$0xf0] }
 0x386   :  { %10973 = vst [vmem:[#allocation131_spill] sm:$0xff] %v8903_v9  ;;  %3247 = vmatpush.bf16.msra.mxu3 %v8876_v36  ;;  %3190 = vmatmul.bf16.vlgmr.msrb.gmra.mxu2 %v7994_v11  ;;  %v8941_v36 = vor.u32 %v6128_v49, %v5683_v46  ;;  %v6124_v46 = vld [vmem:[%s10300_s3 + $0x594] sm:$0xf0]  ;;  %v5962_v49 = vld [vmem:[%s10300_s3 + $0x8c] sm:$0xf]  ;;  %v8973_v2 = vor.u32 %v6092_v6, %v5539_v61  ;;  %v1812_v61 = vpop.f32.mrf.mxu1 }
 0x387   :  { %10974 = vst [vmem:[#allocation132_spill] sm:$0xff] %v8916_v10  ;;  %3203 = vmatmul.bf16.vlgmr.msrb.gmra.mxu3 %v8011_v0  ;;  %v5994_v33 = vld [vmem:[%s10300_s3 + $0x18c] sm:$0xf]  ;;  %v5157_v54 = vld [vmem:[%s10300_s3 + $0x198] sm:$0xf0] }
 0x388   :  { %3209 = vmatpush.bf16.msra.mxu0 %v8897_v12  ;;  %10975 = vst [vmem:[#allocation133_spill] sm:$0xff] %v8937_v8  ;;  %v5523_v12 = vld [vmem:[%s10300_s3 + $0x468] sm:$0xf]  ;;  %v6088_v43 = vld [vmem:[%s10300_s3 + $0x474] sm:$0xf0] }
 0x389   :  { %3222 = vmatpush.bf16.msra.mxu1 %v8901_v24  ;;  %3235 = vmatpush.bf16.msra.mxu2 %v8903_v9  ;;  %10976 = vst [vmem:[#allocation134_spill] sm:$0xff] %v8941_v36  ;;  %v8977_v9 = vor.u32 %v6124_v46, %v5667_v19  ;;  %v8979_v24 = vor.u32 %v5962_v49, %v5029_v63  ;;  %v5651_v6 = vld [vmem:[%s10300_s3 + $0x568] sm:$0xf]  ;;  %v6120_v19 = vld [vmem:[%s10300_s3 + $0x574] sm:$0xf0] }
 0x38a   :  { %10977 = vst [vmem:[#allocation135_spill] sm:$0xff] %v8943_v50  ;;  %3248 = vmatpush.bf16.msra.mxu3 %v8916_v10  ;;  %v1799_v10 = vpop.f32.mrf.mxu0  ;;  %v5958_v46 = vld [vmem:[%s10300_s3 + $0x6c] sm:$0xf]  ;;  %v5013_v49 = vld [vmem:[%s10300_s3 + $0x78] sm:$0xf0] }
 0x38b   :  { %10978 = vst [vmem:[#allocation136_spill] sm:$0xff] %v8955_v32  ;;  %v1813_v63 = vadd.f32 %v1812_v61, %v1799_v10  ;;  %v1825_v10 = vpop.f32.mrf.mxu2  ;;  %v5507_v61 = vld [vmem:[%s10300_s3 + $0x448] sm:$0xf]  ;;  %v6084_v62 = vld [vmem:[%s10300_s3 + $0x454] sm:$0xf0] }
 0x38c   :  { %3210 = vmatpush.bf16.msra.mxu0 %v8937_v8  ;;  %10979 = vst [vmem:[#allocation137_spill] sm:$0xff] %v8973_v2  ;;  %v9015_v8 = vor.u32 %v5958_v46, %v5013_v49  ;;  %v5954_v46 = vld [vmem:[%s10300_s3 + $0x4c] sm:$0xf]  ;;  %v4997_v49 = vld [vmem:[%s10300_s3 + $0x58] sm:$0xf0] }
 0x38d   :  { %3223 = vmatpush.bf16.msra.mxu1 %v8941_v36  ;;  %3236 = vmatpush.bf16.msra.mxu2 %v8943_v50  ;;  %10980 = vst [vmem:[#allocation138_spill] sm:$0xff] %v8977_v9  ;;  %v8991_v50 = vor.u32 %v5994_v33, %v5157_v54  ;;  %v5990_v36 = vld [vmem:[%s10300_s3 + $0x16c] sm:$0xf]  ;;  %v5141_v33 = vld [vmem:[%s10300_s3 + $0x178] sm:$0xf0]  ;;  %v9009_v54 = vor.u32 %v6088_v43, %v5523_v12 }
 0x38e   :  { %10981 = vst [vmem:[#allocation139_spill] sm:$0xff] %v8979_v24  ;;  %3249 = vmatpush.bf16.msra.mxu3 %v8955_v32  ;;  %v9013_v32 = vor.u32 %v6120_v19, %v5651_v6  ;;  %v5635_v43 = vld [vmem:[%s10300_s3 + $0x548] sm:$0xf]  ;;  %v9027_v12 = vor.u32 %v5990_v36, %v5141_v33  ;;  %v1838_v6 = vpop.f32.mrf.mxu3  ;;  %v6116_v19 = vld [vmem:[%s10300_s3 + $0x554] sm:$0xf0]  ;;  %v9045_v33 = vor.u32 %v6084_v62, %v5507_v61 }
 0x38f   :  { %10982 = vst [vmem:[#allocation140_spill] sm:$0xff] %v8991_v50  ;;  %v5125_v36 = vld [vmem:[%s10300_s3 + $0x158] sm:$0xf0]  ;;  %v9049_v13 = vor.u32 %v6116_v19, %v5635_v43  ;;  %v5619_v62 = vld [vmem:[%s10300_s3 + $0x528] sm:$0xf]  ;;  %v10991_v19 = vmax.f32 %v8704_v48, %v8748_v31 }
 0x390   :  { %3211 = vmatpush.bf16.msra.mxu0 %v8973_v2  ;;  %10983 = vst [vmem:[#allocation141_spill] sm:$0xff] %v9009_v54  ;;  %v5950_v61 = vld [vmem:[%s10300_s3 + $0x2c] sm:$0xf]  ;;  %v4981_v43 = vld [vmem:[%s10300_s3 + $0x38] sm:$0xf0] }
 0x391   :  { %3224 = vmatpush.bf16.msra.mxu1 %v8977_v9  ;;  %3237 = vmatpush.bf16.msra.mxu2 %v8979_v24  ;;  %10984 = vst [vmem:[#allocation142_spill] sm:$0xff] %v9013_v32  ;;  %v1839_v24 = vadd.f32 %v1838_v6, %v1825_v10  ;;  %v9051_v10 = vor.u32 %v5954_v46, %v4997_v49  ;;  %v5491_v6 = vld [vmem:[%s10300_s3 + $0x428] sm:$0xf]  ;;  %v5109_v49 = vld [vmem:[%s10300_s3 + $0x138] sm:$0xf0] }
 0x392   :  { %10985 = vst [vmem:[#allocation143_spill] sm:$0xff] %v9015_v8  ;;  %3250 = vmatpush.bf16.msra.mxu3 %v8991_v50  ;;  %v5986_v50 = vld [vmem:[%s10300_s3 + $0x14c] sm:$0xf]  ;;  %v1801_v9 = vpop.f32.mrf.mxu0  ;;  %v6076_v48 = vld [vmem:[%s10300_s3 + $0x414] sm:$0xf0] }
 0x393   :  { %10986 = vst [vmem:[#allocation144_spill] sm:$0xff] %v9027_v12  ;;  %v1843_v2 = vmax.f32 %v1813_v63, %v1839_v24  ;;  %v1814_v9 = vpop.f32.mrf.mxu1  ;;  %v9063_v24 = vor.u32 %v5986_v50, %v5125_v36  ;;  %v6112_v63 = vld [vmem:[%s10300_s3 + $0x534] sm:$0xf0]  ;;  %v5982_v50 = vld [vmem:[%s10300_s3 + $0x12c] sm:$0xf] }
 0x394   :  { %3212 = vmatpush.bf16.msra.mxu0 %v9009_v54  ;;  %10987 = vst [vmem:[#allocation145_spill] sm:$0xff] %v9045_v33  ;;  %v6080_v54 = vld [vmem:[%s10300_s3 + $0x434] sm:$0xf0]  ;;  %v5475_v9 = vld [vmem:[%s10300_s3 + $0x408] sm:$0xf]  ;;  %v9096_v31 = vor.u32 %v6112_v63, %v5619_v62 }
 0x395   :  { %3225 = vmatpush.bf16.msra.mxu1 %v9013_v32  ;;  %3238 = vmatpush.bf16.msra.mxu2 %v9015_v8  ;;  %10988 = vst [vmem:[#allocation146_spill] sm:$0xff] %v9049_v13  ;;  %v9077_v46 = vmax.f32 %v10991_v19, %v1843_v2  ;;  %v9086_v36 = vor.u32 %v6080_v54, %v5491_v6  ;;  %v5603_v54 = vld [vmem:[%s10300_s3 + $0x508] sm:$0xf]  ;;  %v6108_v6 = vld [vmem:[%s10300_s3 + $0x514] sm:$0xf0] }
 0x396   :  { %10989 = vst [vmem:[#allocation147_spill] sm:$0xff] %v9051_v10  ;;  %3251 = vmatpush.bf16.msra.mxu3 %v9027_v12  ;;  %v9098_v2 = vor.u32 %v5950_v61, %v4981_v43  ;;  %v5946_v19 = vld [vmem:[%s10300_s3 + $0xc] sm:$0xf]  ;;  %v4965_v62 = vld [vmem:[%s10300_s3 + $0x18] sm:$0xf0]  ;;  %v1840_v43 = vpop.f32.mrf.mxu3  ;;  %v9144_v12 = vor.u32 %v6108_v6, %v5603_v54 }
 0x397   :  { %10990 = vst [vmem:[#allocation148_spill] sm:$0xff] %v9063_v24  ;;  %v5978_v63 = vld [vmem:[%s10300_s3 + $0x10c] sm:$0xf]  ;;  %v5093_v61 = vld [vmem:[%s10300_s3 + $0x118] sm:$0xf0] }
 0x398   :  { %10992 = vst [vmem:[#allocation149_spill] sm:$0xff] %v9077_v46  ;;  %3213 = vmatpush.bf16.msra.mxu0 %v9045_v33  ;;  %v1827_v46 = vpop.f32.mrf.mxu2  ;;  %v5461_v43 = vld [vmem:[%s10300_s3 + $0x3f8] sm:$0xf0]  ;;  %v9155_v8 = vor.u32 %v5978_v63, %v5093_v61  ;;  %v6034_v6 = vld [vmem:[%s10300_s3 + $0x2cc] sm:$0xf] }
 0x399   :  { %10993 = vst [vmem:[#allocation150_spill] sm:$0xff] %v9086_v36  ;;  %3226 = vmatpush.bf16.msra.mxu1 %v9049_v13  ;;  %3239 = vmatpush.bf16.msra.mxu2 %v9051_v10  ;;  %v9110_v10 = vor.u32 %v5982_v50, %v5109_v49  ;;  %v6038_v46 = vld [vmem:[%s10300_s3 + $0x2ec] sm:$0xf]  ;;  %v5333_v50 = vld [vmem:[%s10300_s3 + $0x2f8] sm:$0xf0] }
 0x39a   :  { %10994 = vst [vmem:[#allocation151_spill] sm:$0xff] %v9096_v31  ;;  %3252 = vmatpush.bf16.msra.mxu3 %v9063_v24  ;;  %v6070_v49 = vld [vmem:[%s10300_s3 + $0x3ec] sm:$0xf]  ;;  %v9131_v24 = vor.u32 %v6076_v48, %v5475_v9  ;;  %v5589_v33 = vld [vmem:[%s10300_s3 + $0x4f8] sm:$0xf0]  ;;  %v9146_v9 = vor.u32 %v5946_v19, %v4965_v62  ;;  %v9157_v32 = vor.u32 %v6038_v46, %v5333_v50 }
 0x39b   :  { %10995 = vst [vmem:[#allocation152_spill] sm:$0xff] %v9098_v2  ;;  %v6102_v13 = vld [vmem:[%s10300_s3 + $0x4ec] sm:$0xf]  ;;  %v5317_v19 = vld [vmem:[%s10300_s3 + $0x2d8] sm:$0xf0] }
 0x39c   :  { %10996 = vst [vmem:[#allocation153_spill] sm:$0xff] %v9110_v10  ;;  %3214 = vmatpush.bf16.msra.mxu0 %v9086_v36  ;;  %v6134_v48 = vld [vmem:[%s10300_s3 + $0x5ec] sm:$0xf]  ;;  %v5717_v36 = vld [vmem:[%s10300_s3 + $0x5f8] sm:$0xf0]  ;;  %v9161_v54 = vor.u32 %v6102_v13, %v5589_v33  ;;  %v9194_v50 = vor.u32 %v6034_v6, %v5317_v19 }
 0x39d   :  { %10997 = vst [vmem:[#allocation154_spill] sm:$0xff] %v9131_v24  ;;  %3227 = vmatpush.bf16.msra.mxu1 %v9096_v31  ;;  %3240 = vmatpush.bf16.msra.mxu2 %v9098_v2  ;;  %v9159_v31 = vor.u32 %v6070_v49, %v5461_v43  ;;  %v6066_v62 = vld [vmem:[%s10300_s3 + $0x3cc] sm:$0xf]  ;;  %v9173_v63 = vor.u32 %v6134_v48, %v5717_v36  ;;  %v5445_v13 = vld [vmem:[%s10300_s3 + $0x3d8] sm:$0xf0] }
 0x39e   :  { %10998 = vst [vmem:[#allocation155_spill] sm:$0xff] %v9144_v12  ;;  %3253 = vmatpush.bf16.msra.mxu3 %v9110_v10  ;;  %v6098_v33 = vld [vmem:[%s10300_s3 + $0x4cc] sm:$0xf]  ;;  %v5573_v61 = vld [vmem:[%s10300_s3 + $0x4d8] sm:$0xf0]  ;;  %v9198_v49 = vor.u32 %v6066_v62, %v5445_v13 }
 0x39f   :  { %10999 = vst [vmem:[#allocation156_spill] sm:$0xff] %v9146_v9  ;;  %v6130_v36 = vld [vmem:[%s10300_s3 + $0x5cc] sm:$0xf]  ;;  %v5701_v46 = vld [vmem:[%s10300_s3 + $0x5d8] sm:$0xf0]  ;;  %v9200_v43 = vor.u32 %v6098_v33, %v5573_v61 }
 0x3a0   :  { %11000 = vst [vmem:[#allocation157_spill] sm:$0xff] %v9155_v8  ;;  %3215 = vmatpush.bf16.msra.mxu0 %v9131_v24  ;;  %v6030_v48 = vld [vmem:[%s10300_s3 + $0x2ac] sm:$0xf]  ;;  %v9213_v19 = vor.u32 %v6130_v36, %v5701_v46  ;;  %v5429_v62 = vld [vmem:[%s10300_s3 + $0x3b8] sm:$0xf0] }
 0x3a1   :  { %11001 = vst [vmem:[#allocation158_spill] sm:$0xff] %v9157_v32  ;;  %3228 = vmatpush.bf16.msra.mxu1 %v9144_v12  ;;  %3241 = vmatpush.bf16.msra.mxu2 %v9146_v9  ;;  %v6062_v6 = vld [vmem:[%s10300_s3 + $0x3ac] sm:$0xf]  ;;  %v5557_v33 = vld [vmem:[%s10300_s3 + $0x4b8] sm:$0xf0] }
 0x3a2   :  { %11002 = vst [vmem:[#allocation159_spill] sm:$0xff] %v9159_v31  ;;  %3254 = vmatpush.bf16.msra.mxu3 %v9155_v8  ;;  %v5301_v8 = vld [vmem:[%s10300_s3 + $0x2b8] sm:$0xf0]  ;;  %v6094_v13 = vld [vmem:[%s10300_s3 + $0x4ac] sm:$0xf] }
 0x3a3   :  { %11003 = vst [vmem:[#allocation160_spill] sm:$0xff] %v9161_v54  ;;  %3216 = vmatmul.bf16.vlgmr.msra.gmra.mxu0 %v8296_v42  ;;  %v6126_v61 = vld [vmem:[%s10300_s3 + $0x5ac] sm:$0xf]  ;;  %v5685_v36 = vld [vmem:[%s10300_s3 + $0x5b8] sm:$0xf0]  ;;  %v9234_v46 = vor.u32 %v6030_v48, %v5301_v8 }
 0x3a4   :  { %11004 = vst [vmem:[#allocation161_spill] sm:$0xff] %v9173_v63  ;;  %3260 = vmatpush.bf16.msrb.mxu0 %v9157_v32  ;;  %3229 = vmatmul.bf16.vlgmr.msra.gmra.mxu1 %v8302_v45  ;;  %v6058_v8 = vld [vmem:[%s10300_s3 + $0x38c] sm:$0xf]  ;;  %v9252_v48 = vor.u32 %v6126_v61, %v5685_v36  ;;  %v5669_v61 = vld [vmem:[%s10300_s3 + $0x598] sm:$0xf0]  ;;  %v3022_v36 = vpop.f32.mrf.mxu1 }
 0x3a5   :  { %11005 = vst [vmem:[#allocation162_spill] sm:$0xff] %v9194_v50  ;;  %3273 = vmatpush.bf16.msrb.mxu1 %v9159_v31  ;;  %3286 = vmatpush.bf16.msrb.mxu2 %v9161_v54  ;;  %v6026_v54 = vld [vmem:[%s10300_s3 + $0x28c] sm:$0xf] }
 0x3a6   :  { %11006 = vst [vmem:[#allocation163_spill] sm:$0xff] %v9198_v49  ;;  %3299 = vmatpush.bf16.msrb.mxu3 %v9173_v63  ;;  %3242 = vmatmul.bf16.vlgmr.msra.gmra.mxu2 %v7986_v4  ;;  %v9238_v63 = vor.u32 %v6062_v6, %v5429_v62  ;;  %v9240_v4 = vor.u32 %v6094_v13, %v5557_v33  ;;  %v5413_v6 = vld [vmem:[%s10300_s3 + $0x398] sm:$0xf0]  ;;  %v6090_v62 = vld [vmem:[%s10300_s3 + $0x48c] sm:$0xf]  ;;  %v3009_v33 = vpop.f32.mrf.mxu0 }
 0x3a7   :  { %11007 = vst [vmem:[#allocation164_spill] sm:$0xff] %v9200_v43  ;;  %3255 = vmatmul.bf16.vlgmr.msra.gmra.mxu3 %v7988_v41  ;;  %v5285_v41 = vld [vmem:[%s10300_s3 + $0x298] sm:$0xf0]  ;;  %v6022_v32 = vld [vmem:[%s10300_s3 + $0x26c] sm:$0xf] }
 0x3a8   :  { %11008 = vst [vmem:[#allocation165_spill] sm:$0xff] %v9213_v19  ;;  %3261 = vmatpush.bf16.msrb.mxu0 %v9194_v50  ;;  %v5541_v13 = vld [vmem:[%s10300_s3 + $0x498] sm:$0xf0]  ;;  %v9274_v50 = vor.u32 %v6058_v8, %v5413_v6  ;;  %v6086_v6 = vld [vmem:[%s10300_s3 + $0x46c] sm:$0xf] }
 0x3a9   :  { %11009 = vst [vmem:[#allocation166_spill] sm:$0xff] %v9234_v46  ;;  %3274 = vmatpush.bf16.msrb.mxu1 %v9198_v49  ;;  %3287 = vmatpush.bf16.msrb.mxu2 %v9200_v43  ;;  %v6122_v43 = vld [vmem:[%s10300_s3 + $0x58c] sm:$0xf]  ;;  %v3023_v49 = vadd.f32 %v3022_v36, %v3009_v33  ;;  %v9276_v31 = vor.u32 %v6090_v62, %v5541_v13  ;;  %v5397_v8 = vld [vmem:[%s10300_s3 + $0x378] sm:$0xf0] }
 0x3aa   :  { %11010 = vst [vmem:[#allocation167_spill] sm:$0xff] %v9238_v63  ;;  %3300 = vmatpush.bf16.msrb.mxu3 %v9213_v19  ;;  %v9270_v19 = vor.u32 %v6026_v54, %v5285_v41  ;;  %v6054_v54 = vld [vmem:[%s10300_s3 + $0x36c] sm:$0xf]  ;;  %v9288_v41 = vor.u32 %v6122_v43, %v5669_v61  ;;  %v5525_v62 = vld [vmem:[%s10300_s3 + $0x478] sm:$0xf0] }
 0x3ab   :  { %11011 = vst [vmem:[#allocation168_spill] sm:$0xff] %v9240_v4  ;;  %v6118_v13 = vld [vmem:[%s10300_s3 + $0x56c] sm:$0xf]  ;;  %v5653_v43 = vld [vmem:[%s10300_s3 + $0x578] sm:$0xf0]  ;;  %v9310_v61 = vor.u32 %v6054_v54, %v5397_v8  ;;  %v9312_v36 = vor.u32 %v6086_v6, %v5525_v62  ;;  %v3035_v54 = vpop.f32.mrf.mxu2 }
 0x3ac   :  { %11012 = vst [vmem:[#allocation169_spill] sm:$0xff] %v9252_v48  ;;  %3262 = vmatpush.bf16.msrb.mxu0 %v9234_v46  ;;  %v5269_v46 = vld [vmem:[%s10300_s3 + $0x278] sm:$0xf0]  ;;  %v6082_v6 = vld [vmem:[%s10300_s3 + $0x44c] sm:$0xf] }
 0x3ad   :  { %11013 = vst [vmem:[#allocation170_spill] sm:$0xff] %v9270_v19  ;;  %3275 = vmatpush.bf16.msrb.mxu1 %v9238_v63  ;;  %3288 = vmatpush.bf16.msrb.mxu2 %v9240_v4  ;;  %v9306_v33 = vor.u32 %v6022_v32, %v5269_v46  ;;  %v5253_v4 = vld [vmem:[%s10300_s3 + $0x258] sm:$0xf0]  ;;  %v6050_v32 = vld [vmem:[%s10300_s3 + $0x34c] sm:$0xf]  ;;  %v9324_v46 = vor.u32 %v6118_v13, %v5653_v43 }
 0x3ae   :  { %11014 = vst [vmem:[#allocation171_spill] sm:$0xff] %v9274_v50  ;;  %3301 = vmatpush.bf16.msrb.mxu3 %v9252_v48  ;;  %v6018_v48 = vld [vmem:[%s10300_s3 + $0x24c] sm:$0xf]  ;;  %v5381_v8 = vld [vmem:[%s10300_s3 + $0x358] sm:$0xf0] }
 0x3af   :  { %11015 = vst [vmem:[#allocation172_spill] sm:$0xff] %v9276_v31  ;;  %v5509_v62 = vld [vmem:[%s10300_s3 + $0x458] sm:$0xf0]  ;;  %v6114_v13 = vld [vmem:[%s10300_s3 + $0x54c] sm:$0xf]  ;;  %v9342_v63 = vor.u32 %v6018_v48, %v5253_v4 }
 0x3b0   :  { %11016 = vst [vmem:[#allocation173_spill] sm:$0xff] %v9288_v41  ;;  %3263 = vmatpush.bf16.msrb.mxu0 %v9270_v19  ;;  %v3011_v19 = vpop.f32.mrf.mxu0  ;;  %v5637_v43 = vld [vmem:[%s10300_s3 + $0x558] sm:$0xf0]  ;;  %v6014_v9 = vld [vmem:[%s10300_s3 + $0x22c] sm:$0xf] }
 0x3b1   :  { %11017 = vst [vmem:[#allocation174_spill] sm:$0xff] %v9306_v33  ;;  %3276 = vmatpush.bf16.msrb.mxu1 %v9274_v50  ;;  %3289 = vmatpush.bf16.msrb.mxu2 %v9276_v31  ;;  %v3036_v31 = vadd.f32 %v3035_v54, %v3023_v49  ;;  %v3048_v50 = vpop.f32.mrf.mxu3  ;;  %v9346_v54 = vor.u32 %v6050_v32, %v5381_v8  ;;  %v6046_v4 = vld [vmem:[%s10300_s3 + $0x32c] sm:$0xf]  ;;  %v5621_v8 = vld [vmem:[%s10300_s3 + $0x538] sm:$0xf0] }
 0x3b2   :  { %3302 = vmatpush.bf16.msrb.mxu3 %v9288_v41  ;;  %11018 = vst [vmem:[#allocation175_spill] sm:$0xff] %v9324_v46  ;;  %v3024_v41 = vpop.f32.mrf.mxu1  ;;  %v9348_v19 = vor.u32 %v6082_v6, %v5509_v62  ;;  %v9360_v48 = vor.u32 %v6114_v13, %v5637_v43  ;;  %v6110_v32 = vld [vmem:[%s10300_s3 + $0x52c] sm:$0xf] }
 0x3b3   :  { %v3049_v49 = vadd.f32 %v3048_v50, %v3036_v31  ;;  %11019 = vst [vmem:[#allocation176_spill] sm:$0xff] %v9346_v54  ;;  %v5365_v31 = vld [vmem:[%s10300_s3 + $0x338] sm:$0xf0]  ;;  %v6078_v50 = vld [vmem:[%s10300_s3 + $0x42c] sm:$0xf] }
 0x3b4   :  { %3264 = vmatpush.bf16.msrb.mxu0 %v9306_v33  ;;  %11020 = vst [vmem:[#allocation177_spill] sm:$0xff] %v9348_v19  ;;  %v5237_v33 = vld [vmem:[%s10300_s3 + $0x238] sm:$0xf0]  ;;  %v9382_v62 = vor.u32 %v6046_v4, %v5365_v31  ;;  %v6010_v43 = vld [vmem:[%s10300_s3 + $0x20c] sm:$0xf]  ;;  %v3037_v4 = vpop.f32.mrf.mxu2 }
 0x3b5   :  { %3277 = vmatpush.bf16.msrb.mxu1 %v9310_v61  ;;  %3290 = vmatpush.bf16.msrb.mxu2 %v9312_v36  ;;  %11021 = vst [vmem:[#allocation178_spill] sm:$0xff] %v9360_v48  ;;  %v5493_v41 = vld [vmem:[%s10300_s3 + $0x438] sm:$0xf0]  ;;  %v9378_v6 = vor.u32 %v6014_v9, %v5237_v33  ;;  %v6042_v9 = vld [vmem:[%s10300_s3 + $0x30c] sm:$0xf]  ;;  %v9396_v33 = vor.u32 %v6110_v32, %v5621_v8 }
 0x3b6   :  { %3303 = vmatpush.bf16.msrb.mxu3 %v9324_v46  ;;  %v9384_v13 = vor.u32 %v6078_v50, %v5493_v41  ;;  %v5221_v46 = vld [vmem:[%s10300_s3 + $0x218] sm:$0xf0]  ;;  %v6074_v50 = vld [vmem:[%s10300_s3 + $0x40c] sm:$0xf] }
 0x3b7   :  { %v5349_v31 = vld [vmem:[%s10300_s3 + $0x318] sm:$0xf0]  ;;  %v9414_v8 = vor.u32 %v6010_v43, %v5221_v46 }
 0x3b8   :  { %3265 = vmatpush.bf16.msrb.mxu0 %v9342_v63  ;;  %v5477_v41 = vld [vmem:[%s10300_s3 + $0x418] sm:$0xf0]  ;;  %v9418_v4 = vor.u32 %v6042_v9, %v5349_v31 }
 0x3b9   :  { %3278 = vmatpush.bf16.msrb.mxu1 %v9346_v54  ;;  %3291 = vmatpush.bf16.msrb.mxu2 %v9348_v19  ;;  %v3050_v19 = vpop.f32.mrf.mxu3  ;;  %v5605_v32 = vld [vmem:[%s10300_s3 + $0x518] sm:$0xf0]  ;;  %v9420_v54 = vor.u32 %v6074_v50, %v5477_v41 }
 0x3ba   :  { %3304 = vmatpush.bf16.msrb.mxu3 %v9360_v48  ;;  %v6106_v48 = vld [vmem:[%s10300_s3 + $0x50c] sm:$0xf] }
 0x3bb   :  { %v9423_v19 = vor.u32 %v6106_v48, %v5605_v32 }
 0x3bc   :  { %3266 = vmatpush.bf16.msrb.mxu0 %v9378_v6 }
 0x3bd   :  { %3279 = vmatpush.bf16.msrb.mxu1 %v9382_v62  ;;  %3292 = vmatpush.bf16.msrb.mxu2 %v9384_v13  ;;  %11022 = vst [vmem:[#allocation179_spill] sm:$0xff] %v9423_v19 }
 0x3be   :  { %3305 = vmatpush.bf16.msrb.mxu3 %v9396_v33 }
 0x3c0   :  { %3267 = vmatpush.bf16.msrb.mxu0 %v9414_v8  ;;  %v3061_v46 = vpop.f32.mrf.mxu0 }
 0x3c1   :  { %3280 = vmatpush.bf16.msrb.mxu1 %v9418_v4  ;;  %3293 = vmatpush.bf16.msrb.mxu2 %v9420_v54  ;;  %v3062_v48 = vadd.f32 %v3061_v46, %v3049_v49  ;;  %v3074_v43 = vpop.f32.mrf.mxu1 }
 0x3c2   :  { %3306 = vmatpush.bf16.msrb.mxu3 %v9423_v19 }
 0x3c3   :  { %3268 = vmatmul.bf16.vlgmr.msrb.gmra.mxu0 %v7994_v11  ;;  %v9445_v9 = vadd.f32 %v3074_v43, %v3062_v48  ;;  %v11023_v43 = vld [vmem:[#allocation31_spill] sm:$0xff] }
 0x3c4   :  { %3321 = vmatpush.bf16.msra.mxu0 %v7641_v1  ;;  %3281 = vmatmul.bf16.vlgmr.msrb.gmra.mxu1 %v8011_v0 }
 0x3c5   :  { %3334 = vmatpush.bf16.msra.mxu1 %v7643_v22  ;;  %3347 = vmatpush.bf16.msra.mxu2 %v7645_v26 }
 0x3c6   :  { %3360 = vmatpush.bf16.msra.mxu3 %v7657_v30  ;;  %3294 = vmatmul.bf16.vlgmr.msrb.gmra.mxu2 %v8296_v42 }
 0x3c7   :  { %3307 = vmatmul.bf16.vlgmr.msrb.gmra.mxu3 %v8302_v45 }
 0x3c8   :  { %3322 = vmatpush.bf16.msra.mxu0 %v7678_v59  ;;  %v3063_v49 = vpop.f32.mrf.mxu0 }
 0x3c9   :  { %3335 = vmatpush.bf16.msra.mxu1 %v7682_v15  ;;  %3348 = vmatpush.bf16.msra.mxu2 %v7684_v39  ;;  %v3087_v31 = vpop.f32.mrf.mxu2  ;;  %v3076_v32 = vpop.f32.mrf.mxu1  ;;  %v11026_v49 = vld [vmem:[#allocation34_spill] sm:$0xff] }
 0x3ca   :  { %3361 = vmatpush.bf16.msra.mxu3 %v7697_v3  ;;  %v3100_v50 = vpop.f32.mrf.mxu3  ;;  %v11027_v32 = vld [vmem:[#allocation35_spill] sm:$0xff] }
 0x3cb   :  { %v3101_v41 = vadd.f32 %v3100_v50, %v3087_v31  ;;  %v11024_v31 = vld [vmem:[#allocation32_spill] sm:$0xff]  ;;  %v11025_v50 = vld [vmem:[#allocation33_spill] sm:$0xff] }
 0x3cc   :  { %3323 = vmatpush.bf16.msra.mxu0 %v7718_v21 }
 0x3cd   :  { %3336 = vmatpush.bf16.msra.mxu1 %v7722_v25  ;;  %3349 = vmatpush.bf16.msra.mxu2 %v7724_v29 }
 0x3ce   :  { %3362 = vmatpush.bf16.msra.mxu3 %v7736_v56 }
 0x3d0   :  { %3324 = vmatpush.bf16.msra.mxu0 %v7754_v14 }
 0x3d1   :  { %3337 = vmatpush.bf16.msra.mxu1 %v7758_v27  ;;  %3350 = vmatpush.bf16.msra.mxu2 %v7760_v28  ;;  %v3089_v46 = vpop.f32.mrf.mxu2 }
 0x3d2   :  { %3363 = vmatpush.bf16.msra.mxu3 %v7772_v55  ;;  %v3102_v48 = vpop.f32.mrf.mxu3  ;;  %v11028_v46 = vld [vmem:[#allocation36_spill] sm:$0xff] }
 0x3d3   :  { %v11029_v48 = vld [vmem:[#allocation37_spill] sm:$0xff] }
 0x3d4   :  { %3325 = vmatpush.bf16.msra.mxu0 %v7790_v18 }
 0x3d5   :  { %3338 = vmatpush.bf16.msra.mxu1 %v7794_v37  ;;  %3351 = vmatpush.bf16.msra.mxu2 %v7796_v40 }
 0x3d6   :  { %3364 = vmatpush.bf16.msra.mxu3 %v7808_v47 }
 0x3d8   :  { %3326 = vmatpush.bf16.msra.mxu0 %v7831_v53 }
 0x3d9   :  { %3339 = vmatpush.bf16.msra.mxu1 %v7835_v60  ;;  %3352 = vmatpush.bf16.msra.mxu2 %v7837_v7 }
 0x3da   :  { %3365 = vmatpush.bf16.msra.mxu3 %v7849_v34  ;;  %v11073_v34 = vld [vmem:[#allocation77_spill] sm:$0xff] }
 0x3dc   :  { %3327 = vmatpush.bf16.msra.mxu0 %v7874_v35  ;;  %v11072_v35 = vld [vmem:[#allocation76_spill] sm:$0xff] }
 0x3dd   :  { %3340 = vmatpush.bf16.msra.mxu1 %v7886_v51  ;;  %3353 = vmatpush.bf16.msra.mxu2 %v7888_v52  ;;  %v11039_v51 = vld [vmem:[#allocation47_spill] sm:$0xff] }
 0x3de   :  { %3366 = vmatpush.bf16.msra.mxu3 %v7904_v20  ;;  %v11034_v20 = vld [vmem:[#allocation42_spill] sm:$0xff] }
 0x3e0   :  { %3328 = vmatpush.bf16.msra.mxu0 %v7925_v38 }
 0x3e1   :  { %3341 = vmatpush.bf16.msra.mxu1 %v7938_v17  ;;  %3354 = vmatpush.bf16.msra.mxu2 %v7940_v44  ;;  %v11032_v44 = vld [vmem:[#allocation40_spill] sm:$0xff]  ;;  %v11033_v17 = vld [vmem:[#allocation41_spill] sm:$0xff] }
 0x3e2   :  { %3367 = vmatpush.bf16.msra.mxu3 %v7949_v5  ;;  %v11031_v5 = vld [vmem:[#allocation39_spill] sm:$0xff] }
 0x3e3   :  { %3329 = vmatmul.bf16.vlgmr.msra.gmra.mxu0 %v7994_v11 }
 0x3e4   :  { %3373 = vmatpush.bf16.msrb.mxu0 %v7951_v23  ;;  %3342 = vmatmul.bf16.vlgmr.msra.gmra.mxu1 %v8011_v0  ;;  %v3126_v23 = vpop.f32.mrf.mxu1 }
 0x3e5   :  { %3386 = vmatpush.bf16.msrb.mxu1 %v11023_v43  ;;  %3399 = vmatpush.bf16.msrb.mxu2 %v11024_v31  ;;  %v3113_v43 = vpop.f32.mrf.mxu0  ;;  %v11030_v31 = vld [vmem:[#allocation38_spill] sm:$0xff] }
 0x3e6   :  { %3412 = vmatpush.bf16.msrb.mxu3 %v11025_v50  ;;  %3355 = vmatmul.bf16.vlgmr.msra.gmra.mxu2 %v8296_v42  ;;  %v3114_v50 = vadd.f32 %v3113_v43, %v3101_v41  ;;  %v11038_v43 = vld [vmem:[#allocation46_spill] sm:$0xff] }
 0x3e7   :  { %3368 = vmatmul.bf16.vlgmr.msra.gmra.mxu3 %v8302_v45 }
 0x3e8   :  { %3374 = vmatpush.bf16.msrb.mxu0 %v11026_v49  ;;  %v3127_v38 = vadd.f32 %v3126_v23, %v3114_v50  ;;  %v11035_v49 = vld [vmem:[#allocation43_spill] sm:$0xff]  ;;  %v11041_v50 = vld [vmem:[#allocation49_spill] sm:$0xff] }
 0x3e9   :  { %3387 = vmatpush.bf16.msrb.mxu1 %v11027_v32  ;;  %3400 = vmatpush.bf16.msrb.mxu2 %v11028_v46  ;;  %v11036_v32 = vld [vmem:[#allocation44_spill] sm:$0xff]  ;;  %v11037_v46 = vld [vmem:[#allocation45_spill] sm:$0xff] }
 0x3ea   :  { %3413 = vmatpush.bf16.msrb.mxu3 %v11029_v48  ;;  %v3139_v48 = vpop.f32.mrf.mxu2 }
 0x3eb   :  { %v3140_v52 = vadd.f32 %v3139_v48, %v3127_v38  ;;  %v11044_v38 = vld [vmem:[#allocation52_spill] sm:$0xff]  ;;  %v11046_v48 = vld [vmem:[#allocation29_spill] sm:$0xff] }
 0x3ec   :  { %3375 = vmatpush.bf16.msrb.mxu0 %v11030_v31  ;;  %v3152_v31 = vpop.f32.mrf.mxu3 }
 0x3ed   :  { %3388 = vmatpush.bf16.msrb.mxu1 %v11031_v5  ;;  %3401 = vmatpush.bf16.msrb.mxu2 %v11032_v44  ;;  %v3115_v41 = vpop.f32.mrf.mxu0  ;;  %v3128_v5 = vpop.f32.mrf.mxu1  ;;  %v11040_v44 = vld [vmem:[#allocation48_spill] sm:$0xff]  ;;  %v9490_v23 = vadd.f32 %v3152_v31, %v3140_v52  ;;  %v11047_v31 = vld [vmem:[#allocation53_spill] sm:$0xff] }
 0x3ee   :  { %3414 = vmatpush.bf16.msrb.mxu3 %v11033_v17  ;;  %v9501_v5 = vld [vmem:[%s10299_s2] ss:$0 sm:$0xff] }
 0x3ef   :  { %11045 = vst [vmem:[#allocation180_spill] sm:$0xff] %v9501_v5  ;;  %v1250_v52 = vadd.f32 %v9501_v5, %v11046_v48  ;;  %v11053_v48 = vld [vmem:[#allocation57_spill] sm:$0xff] }
 0x3f0   :  { %3376 = vmatpush.bf16.msrb.mxu0 %v11034_v20  ;;  %v11052_v20 = vld [vmem:[#allocation28_spill] sm:$0xff] }
 0x3f1   :  { %3389 = vmatpush.bf16.msrb.mxu1 %v11035_v49  ;;  %3402 = vmatpush.bf16.msrb.mxu2 %v11036_v32  ;;  %v11042_v49 = vld [vmem:[#allocation50_spill] sm:$0xff] }
 0x3f2   :  { %3415 = vmatpush.bf16.msrb.mxu3 %v11037_v46  ;;  %v11043_v46 = vld [vmem:[#allocation51_spill] sm:$0xff]  ;;  %v3141_v41 = vpop.f32.mrf.mxu2 }
 0x3f4   :  { %3377 = vmatpush.bf16.msrb.mxu0 %v11038_v43 }
 0x3f5   :  { %3390 = vmatpush.bf16.msrb.mxu1 %v11039_v51  ;;  %3403 = vmatpush.bf16.msrb.mxu2 %v11040_v44  ;;  %v3154_v44 = vpop.f32.mrf.mxu3  ;;  %v11051_v51 = vld [vmem:[#allocation27_spill] sm:$0xff] }
 0x3f6   :  { %3416 = vmatpush.bf16.msrb.mxu3 %v11041_v50  ;;  %v11048_v50 = vld [vmem:[#allocation30_spill] sm:$0xff]  ;;  %v11056_v44 = vld [vmem:[#allocation60_spill] sm:$0xff] }
 0x3f7   :  { %v1369_v32 = vadd.f32 %v9501_v5, %v11048_v50  ;;  %v11055_v50 = vld [vmem:[#allocation59_spill] sm:$0xff] }
 0x3f8   :  { %3378 = vmatpush.bf16.msrb.mxu0 %v11042_v49  ;;  %v11049_v49 = vld [vmem:[#allocation54_spill] sm:$0xff] }
 0x3f9   :  { %3391 = vmatpush.bf16.msrb.mxu1 %v11043_v46  ;;  %3404 = vmatpush.bf16.msrb.mxu2 %v11044_v38  ;;  %v11050_v46 = vld [vmem:[#allocation55_spill] sm:$0xff]  ;;  %v1251_v38 = vmax.f32 %v1250_v52, 0.0  ;;  %v1370_v43 = vmax.f32 %v1369_v32, 0.0  ;;  %v11058_v52 = vld [vmem:[#allocation62_spill] sm:$0xff]  ;;  %v11060_v32 = vld [vmem:[#allocation64_spill] sm:$0xff] }
 0x3fa   :  { %3417 = vmatpush.bf16.msrb.mxu3 %v11047_v31  ;;  %v11054_v31 = vld [vmem:[#allocation58_spill] sm:$0xff] }
 0x3fb   :  { %v9515_v41 = vpack.c.bf16 %v1251_v38, %v1251_v38  ;;  %v11061_v38 = vld [vmem:[#allocation65_spill] sm:$0xff] }
 0x3fc   :  { %3379 = vmatpush.bf16.msrb.mxu0 %v11049_v49  ;;  %v9519_v49 = vpack.c.bf16 %v1370_v43, %v1370_v43  ;;  %v11062_v43 = vld [vmem:[#allocation66_spill] sm:$0xff] }
 0x3fd   :  { %3392 = vmatpush.bf16.msrb.mxu1 %v11050_v46  ;;  %3405 = vmatpush.bf16.msrb.mxu2 %v8198_v16  ;;  %v11057_v46 = vld [vmem:[#allocation61_spill] sm:$0xff]  ;;  %v11068_v16 = vld [vmem:[#allocation72_spill] sm:$0xff] }
 0x3fe   :  { %3418 = vmatpush.bf16.msrb.mxu3 %v11051_v51  ;;  %v11059_v51 = vld [vmem:[#allocation63_spill] sm:$0xff] }
 0x400   :  { %3380 = vmatpush.bf16.msrb.mxu0 %v11052_v20  ;;  %v11067_v20 = vld [vmem:[#allocation71_spill] sm:$0xff] }
 0x401   :  { %3393 = vmatpush.bf16.msrb.mxu1 %v11053_v48  ;;  %3406 = vmatpush.bf16.msrb.mxu2 %v11054_v31  ;;  %v11066_v31 = vld [vmem:[#allocation70_spill] sm:$0xff] }
 0x402   :  { %3419 = vmatpush.bf16.msrb.mxu3 %v11055_v50  ;;  %v11065_v50 = vld [vmem:[#allocation69_spill] sm:$0xff] }
 0x403   :  { %3381 = vmatmul.bf16.vlgmr.msrb.gmra.mxu0 %v9515_v41 }
 0x404   :  { %3425 = vmatpush.bf16.msra.mxu0 %v11056_v44  ;;  %3394 = vmatmul.bf16.vlgmr.msrb.gmra.mxu1 %v9519_v49  ;;  %v11063_v44 = vld [vmem:[#allocation67_spill] sm:$0xff] }
 0x405   :  { %3438 = vmatpush.bf16.msra.mxu1 %v11057_v46  ;;  %3451 = vmatpush.bf16.msra.mxu2 %v11058_v52  ;;  %v3165_v46 = vpop.f32.mrf.mxu0  ;;  %v11064_v52 = vld [vmem:[#allocation68_spill] sm:$0xff] }
 0x406   :  { %3464 = vmatpush.bf16.msra.mxu3 %v11059_v51  ;;  %3407 = vmatmul.bf16.vlgmr.msrb.gmra.mxu2 %v7994_v11  ;;  %v3178_v51 = vpop.f32.mrf.mxu1 }
 0x407   :  { %3420 = vmatmul.bf16.vlgmr.msrb.gmra.mxu3 %v8011_v0  ;;  %v3179_v48 = vadd.f32 %v3178_v51, %v3165_v46  ;;  %v11074_v51 = vld [vmem:[#allocation78_spill] sm:$0xff] }
 0x408   :  { %3426 = vmatpush.bf16.msra.mxu0 %v11060_v32  ;;  %v11069_v32 = vld [vmem:[#allocation73_spill] sm:$0xff] }
 0x409   :  { %3439 = vmatpush.bf16.msra.mxu1 %v11061_v38  ;;  %3452 = vmatpush.bf16.msra.mxu2 %v11062_v43  ;;  %v11070_v38 = vld [vmem:[#allocation74_spill] sm:$0xff]  ;;  %v11071_v43 = vld [vmem:[#allocation75_spill] sm:$0xff] }
 0x40a   :  { %3465 = vmatpush.bf16.msra.mxu3 %v11063_v44  ;;  %v3191_v44 = vpop.f32.mrf.mxu2  ;;  %v3204_v17 = vpop.f32.mrf.mxu3 }
 0x40b   :  { %v3192_v5 = vadd.f32 %v3191_v44, %v3179_v48 }
 0x40c   :  { %3427 = vmatpush.bf16.msra.mxu0 %v11064_v52 }
 0x40d   :  { %3440 = vmatpush.bf16.msra.mxu1 %v11065_v50  ;;  %3453 = vmatpush.bf16.msra.mxu2 %v11066_v31  ;;  %v3167_v52 = vpop.f32.mrf.mxu0  ;;  %v3205_v46 = vadd.f32 %v3204_v17, %v3192_v5  ;;  %v11084_v17 = vld [vmem:[#allocation89_spill] sm:$0xff]  ;;  %v11085_v5 = vld [vmem:[#allocation90_spill] sm:$0xff] }
 0x40e   :  { %3466 = vmatpush.bf16.msra.mxu3 %v11067_v20  ;;  %v3180_v50 = vpop.f32.mrf.mxu1  ;;  %v11075_v20 = vld [vmem:[#allocation79_spill] sm:$0xff]  ;;  %v11080_v52 = vld [vmem:[#allocation85_spill] sm:$0xff] }
 0x40f   :  { %v11081_v50 = vld [vmem:[#allocation86_spill] sm:$0xff]  ;;  %v11112_v31 = vld [vmem:[#allocation117_spill] sm:$0xff] }
 0x410   :  { %3428 = vmatpush.bf16.msra.mxu0 %v11068_v16  ;;  %v11076_v16 = vld [vmem:[#allocation80_spill] sm:$0xff] }
 0x411   :  { %3441 = vmatpush.bf16.msra.mxu1 %v11069_v32  ;;  %3454 = vmatpush.bf16.msra.mxu2 %v11070_v38  ;;  %v11077_v32 = vld [vmem:[#allocation81_spill] sm:$0xff]  ;;  %v11078_v38 = vld [vmem:[#allocation82_spill] sm:$0xff] }
 0x412   :  { %3467 = vmatpush.bf16.msra.mxu3 %v11071_v43  ;;  %v11079_v43 = vld [vmem:[#allocation83_spill] sm:$0xff]  ;;  %v3193_v48 = vpop.f32.mrf.mxu2  ;;  %v3206_v44 = vpop.f32.mrf.mxu3 }
 0x413   :  { %v11089_v48 = vld [vmem:[#allocation94_spill] sm:$0xff]  ;;  %v11090_v44 = vld [vmem:[#allocation95_spill] sm:$0xff] }
 0x414   :  { %3429 = vmatpush.bf16.msra.mxu0 %v11072_v35 }
 0x415   :  { %3442 = vmatpush.bf16.msra.mxu1 %v11073_v34  ;;  %3455 = vmatpush.bf16.msra.mxu2 %v11074_v51  ;;  %v11082_v34 = vld [vmem:[#allocation87_spill] sm:$0xff]  ;;  %v11083_v51 = vld [vmem:[#allocation88_spill] sm:$0xff] }
 0x416   :  { %3468 = vmatpush.bf16.msra.mxu3 %v11075_v20 }
 0x418   :  { %3430 = vmatpush.bf16.msra.mxu0 %v11076_v16  ;;  %v11086_v16 = vld [vmem:[#allocation91_spill] sm:$0xff] }
 0x419   :  { %3443 = vmatpush.bf16.msra.mxu1 %v11077_v32  ;;  %3456 = vmatpush.bf16.msra.mxu2 %v11078_v38  ;;  %v11087_v32 = vld [vmem:[#allocation92_spill] sm:$0xff]  ;;  %v11088_v38 = vld [vmem:[#allocation93_spill] sm:$0xff] }
 0x41a   :  { %3469 = vmatpush.bf16.msra.mxu3 %v11079_v43 }
 0x41c   :  { %3431 = vmatpush.bf16.msra.mxu0 %v11080_v52  ;;  %v11091_v52 = vld [vmem:[#allocation96_spill] sm:$0xff] }
 0x41d   :  { %3444 = vmatpush.bf16.msra.mxu1 %v11081_v50  ;;  %3457 = vmatpush.bf16.msra.mxu2 %v11082_v34  ;;  %v11098_v34 = vld [vmem:[#allocation103_spill] sm:$0xff]  ;;  %v11099_v50 = vld [vmem:[#allocation104_spill] sm:$0xff] }
 0x41e   :  { %3470 = vmatpush.bf16.msra.mxu3 %v11083_v51  ;;  %v11097_v51 = vld [vmem:[#allocation102_spill] sm:$0xff] }
 0x420   :  { %3432 = vmatpush.bf16.msra.mxu0 %v11084_v17 }
 0x421   :  { %3445 = vmatpush.bf16.msra.mxu1 %v11085_v5  ;;  %3458 = vmatpush.bf16.msra.mxu2 %v11086_v16  ;;  %v11092_v5 = vld [vmem:[#allocation97_spill] sm:$0xff]  ;;  %v11093_v16 = vld [vmem:[#allocation98_spill] sm:$0xff]  ;;  %v3230_v17 = vpop.f32.mrf.mxu1 }
 0x422   :  { %3471 = vmatpush.bf16.msra.mxu3 %v11087_v32  ;;  %v11094_v32 = vld [vmem:[#allocation99_spill] sm:$0xff] }
 0x423   :  { %3433 = vmatmul.bf16.vlgmr.msra.gmra.mxu0 %v8296_v42 }
 0x424   :  { %3477 = vmatpush.bf16.msrb.mxu0 %v11088_v38  ;;  %3446 = vmatmul.bf16.vlgmr.msra.gmra.mxu1 %v8302_v45  ;;  %v11095_v38 = vld [vmem:[#allocation100_spill] sm:$0xff] }
 0x425   :  { %3490 = vmatpush.bf16.msrb.mxu1 %v11089_v48  ;;  %3503 = vmatpush.bf16.msrb.mxu2 %v11090_v44  ;;  %v3217_v48 = vpop.f32.mrf.mxu0  ;;  %v11096_v44 = vld [vmem:[#allocation101_spill] sm:$0xff] }
 0x426   :  { %3516 = vmatpush.bf16.msrb.mxu3 %v11091_v52  ;;  %3459 = vmatmul.bf16.vlgmr.msra.gmra.mxu2 %v9515_v41  ;;  %v3218_v52 = vadd.f32 %v3217_v48, %v3205_v46  ;;  %v11104_v48 = vld [vmem:[#allocation109_spill] sm:$0xff] }
 0x427   :  { %3472 = vmatmul.bf16.vlgmr.msra.gmra.mxu3 %v9519_v49 }
 0x428   :  { %3478 = vmatpush.bf16.msrb.mxu0 %v11092_v5  ;;  %v9572_v43 = vadd.f32 %v3230_v17, %v3218_v52  ;;  %v11100_v5 = vld [vmem:[#allocation105_spill] sm:$0xff]  ;;  %v11107_v52 = vld [vmem:[#allocation112_spill] sm:$0xff] }
 0x429   :  { %3491 = vmatpush.bf16.msrb.mxu1 %v11093_v16  ;;  %3504 = vmatpush.bf16.msrb.mxu2 %v11094_v32  ;;  %v11101_v16 = vld [vmem:[#allocation106_spill] sm:$0xff]  ;;  %v11102_v32 = vld [vmem:[#allocation107_spill] sm:$0xff]  ;;  %v3243_v20 = vpop.f32.mrf.mxu2  ;;  %v3232_v35 = vpop.f32.mrf.mxu1  ;;  %v11108_v17 = vld [vmem:[#allocation113_spill] sm:$0xff] }
 0x42a   :  { %3517 = vmatpush.bf16.msrb.mxu3 %v11095_v38  ;;  %v11103_v38 = vld [vmem:[#allocation108_spill] sm:$0xff]  ;;  %v11114_v35 = vld [vmem:[#allocation121_spill] sm:$0xff] }
 0x42c   :  { %3479 = vmatpush.bf16.msrb.mxu0 %v11096_v44  ;;  %v3256_v44 = vpop.f32.mrf.mxu3 }
 0x42d   :  { %3492 = vmatpush.bf16.msrb.mxu1 %v11097_v51  ;;  %3505 = vmatpush.bf16.msrb.mxu2 %v11098_v34  ;;  %v3219_v46 = vpop.f32.mrf.mxu0  ;;  %v3257_v51 = vadd.f32 %v3256_v44, %v3243_v20  ;;  %v11105_v34 = vld [vmem:[#allocation110_spill] sm:$0xff] }
 0x42e   :  { %3518 = vmatpush.bf16.msrb.mxu3 %v11099_v50  ;;  %v11106_v50 = vld [vmem:[#allocation111_spill] sm:$0xff]  ;;  %v11113_v20 = vld [vmem:[#allocation118_spill] sm:$0xff] }
 0x42f   :  { %v11115_v44 = vld [vmem:[#allocation122_spill] sm:$0xff] }
 0x430   :  { %3480 = vmatpush.bf16.msrb.mxu0 %v11100_v5 }
 0x431   :  { %3493 = vmatpush.bf16.msrb.mxu1 %v11101_v16  ;;  %3506 = vmatpush.bf16.msrb.mxu2 %v11102_v32  ;;  %v11109_v16 = vld [vmem:[#allocation114_spill] sm:$0xff]  ;;  %v11110_v32 = vld [vmem:[#allocation115_spill] sm:$0xff]  ;;  %v3245_v5 = vpop.f32.mrf.mxu2 }
 0x432   :  { %3519 = vmatpush.bf16.msrb.mxu3 %v11103_v38  ;;  %v11111_v38 = vld [vmem:[#allocation116_spill] sm:$0xff]  ;;  %v11119_v5 = vld [vmem:[#allocation126_spill] sm:$0xff] }
 0x434   :  { %3481 = vmatpush.bf16.msrb.mxu0 %v11104_v48  ;;  %v3258_v46 = vpop.f32.mrf.mxu3 }
 0x435   :  { %3494 = vmatpush.bf16.msrb.mxu1 %v11105_v34  ;;  %3507 = vmatpush.bf16.msrb.mxu2 %v11106_v50  ;;  %v11120_v46 = vld [vmem:[#allocation127_spill] sm:$0xff]  ;;  %v11135_v34 = vld [vmem:[#allocation142_spill] sm:$0xff] }
 0x436   :  { %3520 = vmatpush.bf16.msrb.mxu3 %v11107_v52  ;;  %v11130_v52 = vld [vmem:[#allocation137_spill] sm:$0xff] }
 0x438   :  { %3482 = vmatpush.bf16.msrb.mxu0 %v11108_v17  ;;  %v11116_v17 = vld [vmem:[#allocation123_spill] sm:$0xff] }
 0x439   :  { %3495 = vmatpush.bf16.msrb.mxu1 %v11109_v16  ;;  %3508 = vmatpush.bf16.msrb.mxu2 %v11110_v32  ;;  %v11117_v16 = vld [vmem:[#allocation124_spill] sm:$0xff]  ;;  %v11118_v32 = vld [vmem:[#allocation125_spill] sm:$0xff] }
 0x43a   :  { %3521 = vmatpush.bf16.msrb.mxu3 %v11111_v38 }
 0x43c   :  { %3483 = vmatpush.bf16.msrb.mxu0 %v11112_v31  ;;  %v11121_v31 = vld [vmem:[#allocation128_spill] sm:$0xff] }
 0x43d   :  { %3496 = vmatpush.bf16.msrb.mxu1 %v11113_v20  ;;  %3509 = vmatpush.bf16.msrb.mxu2 %v8801_v57  ;;  %v11128_v57 = vld [vmem:[#allocation135_spill] sm:$0xff]  ;;  %v11129_v20 = vld [vmem:[#allocation136_spill] sm:$0xff] }
 0x43e   :  { %3522 = vmatpush.bf16.msrb.mxu3 %v8813_v58  ;;  %v11127_v58 = vld [vmem:[#allocation134_spill] sm:$0xff] }
 0x440   :  { %3484 = vmatpush.bf16.msrb.mxu0 %v11114_v35 }
 0x441   :  { %3497 = vmatpush.bf16.msrb.mxu1 %v11115_v44  ;;  %3510 = vmatpush.bf16.msrb.mxu2 %v11116_v17  ;;  %v11122_v44 = vld [vmem:[#allocation129_spill] sm:$0xff]  ;;  %v11123_v17 = vld [vmem:[#allocation130_spill] sm:$0xff]  ;;  %v3282_v35 = vpop.f32.mrf.mxu1 }
 0x442   :  { %3523 = vmatpush.bf16.msrb.mxu3 %v11117_v16  ;;  %v11124_v16 = vld [vmem:[#allocation131_spill] sm:$0xff] }
 0x443   :  { %3485 = vmatmul.bf16.vlgmr.msrb.gmra.mxu0 %v7994_v11 }
 0x444   :  { %3529 = vmatpush.bf16.msra.mxu0 %v11118_v32  ;;  %3498 = vmatmul.bf16.vlgmr.msrb.gmra.mxu1 %v8011_v0  ;;  %v11125_v32 = vld [vmem:[#allocation132_spill] sm:$0xff] }
 0x445   :  { %3542 = vmatpush.bf16.msra.mxu1 %v11119_v5  ;;  %3555 = vmatpush.bf16.msra.mxu2 %v11120_v46  ;;  %v3269_v5 = vpop.f32.mrf.mxu0  ;;  %v11126_v46 = vld [vmem:[#allocation133_spill] sm:$0xff] }
 0x446   :  { %3568 = vmatpush.bf16.msra.mxu3 %v11121_v31  ;;  %3511 = vmatmul.bf16.vlgmr.msrb.gmra.mxu2 %v8296_v42  ;;  %v3270_v31 = vadd.f32 %v3269_v5, %v3257_v51  ;;  %v11134_v5 = vld [vmem:[#allocation141_spill] sm:$0xff] }
 0x447   :  { %3524 = vmatmul.bf16.vlgmr.msrb.gmra.mxu3 %v8302_v45 }
 0x448   :  { %3530 = vmatpush.bf16.msra.mxu0 %v11122_v44  ;;  %v3283_v38 = vadd.f32 %v3282_v35, %v3270_v31  ;;  %v11131_v44 = vld [vmem:[#allocation138_spill] sm:$0xff]  ;;  %v11137_v35 = vld [vmem:[#allocation144_spill] sm:$0xff] }
 0x449   :  { %3543 = vmatpush.bf16.msra.mxu1 %v11123_v17  ;;  %3556 = vmatpush.bf16.msra.mxu2 %v11124_v16  ;;  %v11132_v17 = vld [vmem:[#allocation139_spill] sm:$0xff]  ;;  %v11133_v16 = vld [vmem:[#allocation140_spill] sm:$0xff] }
 0x44a   :  { %3569 = vmatpush.bf16.msra.mxu3 %v11125_v32  ;;  %v3295_v32 = vpop.f32.mrf.mxu2 }
 0x44b   :  { %v3296_v50 = vadd.f32 %v3295_v32, %v3283_v38  ;;  %v11141_v38 = vld [vmem:[#allocation146_spill] sm:$0xff] }
 0x44c   :  { %3531 = vmatpush.bf16.msra.mxu0 %v11126_v46  ;;  %v3308_v46 = vpop.f32.mrf.mxu3 }
 0x44d   :  { %3544 = vmatpush.bf16.msra.mxu1 %v11127_v58  ;;  %3557 = vmatpush.bf16.msra.mxu2 %v11128_v57  ;;  %v3271_v51 = vpop.f32.mrf.mxu0  ;;  %v3284_v58 = vpop.f32.mrf.mxu1  ;;  %v11136_v57 = vld [vmem:[#allocation143_spill] sm:$0xff]  ;;  %v3309_v31 = vadd.f32 %v3308_v46, %v3296_v50  ;;  %v11144_v50 = vld [vmem:[#allocation150_spill] sm:$0xff] }
 0x44e   :  { %3570 = vmatpush.bf16.msra.mxu3 %v11129_v20  ;;  %v11142_v51 = vld [vmem:[#allocation147_spill] sm:$0xff]  ;;  %v11143_v58 = vld [vmem:[#allocation148_spill] sm:$0xff] }
 0x44f   :  { %v11145_v46 = vld [vmem:[#allocation151_spill] sm:$0xff] }
 0x450   :  { %3532 = vmatpush.bf16.msra.mxu0 %v11130_v52  ;;  %v11138_v52 = vld [vmem:[#allocation145_spill] sm:$0xff] }
 0x451   :  { %3545 = vmatpush.bf16.msra.mxu1 %v11131_v44  ;;  %3558 = vmatpush.bf16.msra.mxu2 %v11132_v17  ;;  %v3313_v44 = vmax.f32 %v9572_v43, %v3309_v31  ;;  %v11151_v43 = vld [vmem:[#allocation161_spill] sm:$0xff]  ;;  %v11153_v31 = vld [vmem:[#allocation163_spill] sm:$0xff] }
 0x452   :  { %3571 = vmatpush.bf16.msra.mxu3 %v11133_v16  ;;  %v11139_v16 = vmax.f32 %v9445_v9, %v9490_v23  ;;  %v11147_v9 = vld [vmem:[#allocation157_spill] sm:$0xff]  ;;  %v11148_v23 = vld [vmem:[#allocation158_spill] sm:$0xff] }
 0x454   :  { %3533 = vmatpush.bf16.msra.mxu0 %v11134_v5  ;;  %v9623_v32 = vmax.f32 %v11139_v16, %v3313_v44  ;;  %v11146_v16 = vld [vmem:[#allocation156_spill] sm:$0xff]  ;;  %v11152_v44 = vld [vmem:[#allocation162_spill] sm:$0xff] }
 0x455   :  { %3546 = vmatpush.bf16.msra.mxu1 %v11135_v34  ;;  %3559 = vmatpush.bf16.msra.mxu2 %v11136_v57  ;;  %v3297_v34 = vpop.f32.mrf.mxu2  ;;  %v3310_v57 = vpop.f32.mrf.mxu3 }
 0x456   :  { %3572 = vmatpush.bf16.msra.mxu3 %v11137_v35  ;;  %11140 = vst [vmem:[#allocation29_spill] sm:$0xff] %v9623_v32  ;;  %v11149_v34 = vld [vmem:[#allocation159_spill] sm:$0xff]  ;;  %v11150_v57 = vld [vmem:[#allocation160_spill] sm:$0xff] }
 0x457   :  { %v11154_v32 = vld [vmem:[#allocation164_spill] sm:$0xff] }
 0x458   :  { %3534 = vmatpush.bf16.msra.mxu0 %v11138_v52 }
 0x459   :  { %3547 = vmatpush.bf16.msra.mxu1 %v11141_v38  ;;  %3560 = vmatpush.bf16.msra.mxu2 %v11142_v51 }
 0x45a   :  { %3573 = vmatpush.bf16.msra.mxu3 %v11143_v58 }
 0x45c   :  { %3535 = vmatpush.bf16.msra.mxu0 %v11144_v50 }
 0x45d   :  { %3548 = vmatpush.bf16.msra.mxu1 %v11145_v46  ;;  %3561 = vmatpush.bf16.msra.mxu2 %v9098_v2  ;;  %v11164_v2 = vld [vmem:[#allocation174_spill] sm:$0xff] }
 0x45e   :  { %3574 = vmatpush.bf16.msra.mxu3 %v9110_v10 }
 0x460   :  { %3536 = vmatpush.bf16.msra.mxu0 %v9131_v24 }
 0x461   :  { %3549 = vmatpush.bf16.msra.mxu1 %v9144_v12  ;;  %3562 = vmatpush.bf16.msra.mxu2 %v11146_v16  ;;  %v11158_v16 = vld [vmem:[#allocation168_spill] sm:$0xff] }
 0x462   :  { %3575 = vmatpush.bf16.msra.mxu3 %v11147_v9  ;;  %v11157_v9 = vld [vmem:[#allocation167_spill] sm:$0xff] }
 0x463   :  { %3537 = vmatmul.bf16.vlgmr.msra.gmra.mxu0 %v9515_v41 }
 0x464   :  { %3581 = vmatpush.bf16.msrb.mxu0 %v11148_v23  ;;  %3550 = vmatmul.bf16.vlgmr.msra.gmra.mxu1 %v9519_v49  ;;  %v11155_v23 = vld [vmem:[#allocation165_spill] sm:$0xff] }
 0x465   :  { %3594 = vmatpush.bf16.msrb.mxu1 %v11149_v34  ;;  %3607 = vmatpush.bf16.msrb.mxu2 %v11150_v57  ;;  %v3330_v34 = vpop.f32.mrf.mxu0  ;;  %v11156_v57 = vld [vmem:[#allocation166_spill] sm:$0xff] }
 0x466   :  { %3620 = vmatpush.bf16.msrb.mxu3 %v11151_v43  ;;  %3563 = vmatmul.bf16.vlgmr.msra.gmra.mxu2 %v7994_v11  ;;  %v3343_v43 = vpop.f32.mrf.mxu1  ;;  %v11159_v11 = vld [vmem:[#allocation169_spill] sm:$0xff] }
 0x467   :  { %3576 = vmatmul.bf16.vlgmr.msra.gmra.mxu3 %v8011_v0  ;;  %v3344_v12 = vadd.f32 %v3343_v43, %v3330_v34  ;;  %v11160_v0 = vld [vmem:[#allocation170_spill] sm:$0xff]  ;;  %v11165_v43 = vld [vmem:[#allocation175_spill] sm:$0xff] }
 0x468   :  { %3582 = vmatpush.bf16.msrb.mxu0 %v11152_v44  ;;  %v11161_v44 = vld [vmem:[#allocation171_spill] sm:$0xff] }
 0x469   :  { %3595 = vmatpush.bf16.msrb.mxu1 %v11153_v31  ;;  %3608 = vmatpush.bf16.msrb.mxu2 %v11154_v32  ;;  %v11162_v31 = vld [vmem:[#allocation172_spill] sm:$0xff]  ;;  %v11163_v32 = vld [vmem:[#allocation173_spill] sm:$0xff] }
 0x46a   :  { %3621 = vmatpush.bf16.msrb.mxu3 %v11155_v23  ;;  %v3356_v23 = vpop.f32.mrf.mxu2  ;;  %v3369_v10 = vpop.f32.mrf.mxu3 }
 0x46b   :  { %v3357_v24 = vadd.f32 %v3356_v23, %v3344_v12 }
 0x46c   :  { %3583 = vmatpush.bf16.msrb.mxu0 %v11156_v57 }
 0x46d   :  { %3596 = vmatpush.bf16.msrb.mxu1 %v11157_v9  ;;  %3609 = vmatpush.bf16.msrb.mxu2 %v11158_v16  ;;  %v3332_v57 = vpop.f32.mrf.mxu0  ;;  %v3370_v34 = vadd.f32 %v3369_v10, %v3357_v24 }
 0x46e   :  { %3622 = vmatpush.bf16.msrb.mxu3 %v11159_v11  ;;  %v3345_v9 = vpop.f32.mrf.mxu1 }
 0x470   :  { %3584 = vmatpush.bf16.msrb.mxu0 %v11160_v0 }
 0x471   :  { %3597 = vmatpush.bf16.msrb.mxu1 %v11161_v44  ;;  %3610 = vmatpush.bf16.msrb.mxu2 %v11162_v31  ;;  %v11166_v44 = vld [vmem:[#allocation176_spill] sm:$0xff]  ;;  %v11167_v31 = vld [vmem:[#allocation177_spill] sm:$0xff] }
 0x472   :  { %3623 = vmatpush.bf16.msrb.mxu3 %v11163_v32  ;;  %v11168_v32 = vld [vmem:[#allocation178_spill] sm:$0xff]  ;;  %v3358_v12 = vpop.f32.mrf.mxu2  ;;  %v3371_v23 = vpop.f32.mrf.mxu3 }
 0x474   :  { %3585 = vmatpush.bf16.msrb.mxu0 %v11164_v2 }
 0x475   :  { %3598 = vmatpush.bf16.msrb.mxu1 %v9310_v61  ;;  %3611 = vmatpush.bf16.msrb.mxu2 %v9312_v36 }
 0x476   :  { %3624 = vmatpush.bf16.msrb.mxu3 %v11165_v43 }
 0x478   :  { %3586 = vmatpush.bf16.msrb.mxu0 %v9342_v63 }
 0x479   :  { %3599 = vmatpush.bf16.msrb.mxu1 %v11166_v44  ;;  %3612 = vmatpush.bf16.msrb.mxu2 %v11167_v31 }
 0x47a   :  { %3625 = vmatpush.bf16.msrb.mxu3 %v11168_v32 }
 0x47c   :  { %3587 = vmatpush.bf16.msrb.mxu0 %v9378_v6 }
 0x47d   :  { %3600 = vmatpush.bf16.msrb.mxu1 %v9382_v62  ;;  %3613 = vmatpush.bf16.msrb.mxu2 %v9384_v13 }
 0x47e   :  { %3626 = vmatpush.bf16.msrb.mxu3 %v9396_v33 }
 0x480   :  { %3588 = vmatpush.bf16.msrb.mxu0 %v9414_v8  ;;  %v3382_v10 = vpop.f32.mrf.mxu0 }
 0x481   :  { %3601 = vmatpush.bf16.msrb.mxu1 %v9418_v4  ;;  %3614 = vmatpush.bf16.msrb.mxu2 %v9420_v54  ;;  %v3383_v24 = vadd.f32 %v3382_v10, %v3370_v34  ;;  %v3395_v9 = vpop.f32.mrf.mxu1 }
 0x482   :  { %3627 = vmatpush.bf16.msrb.mxu3 %v9423_v19 }
 0x483   :  { %3589 = vmatmul.bf16.vlgmr.msrb.gmra.mxu0 %v8296_v42  ;;  %v9688_v57 = vadd.f32 %v3395_v9, %v3383_v24  ;;  %v11169_v24 = vld [vmem:[#allocation11_spill] sm:$0xff] }
 0x484   :  { %3639 = vmatpush.bf16.msra.mxu0 %v7641_v1  ;;  %3602 = vmatmul.bf16.vlgmr.msrb.gmra.mxu1 %v8302_v45 }
 0x485   :  { %3652 = vmatpush.bf16.msra.mxu1 %v7643_v22  ;;  %3665 = vmatpush.bf16.msra.mxu2 %v7645_v26 }
 0x486   :  { %3678 = vmatpush.bf16.msra.mxu3 %v7657_v30  ;;  %3615 = vmatmul.bf16.vlgmr.msrb.gmra.mxu2 %v9515_v41 }
 0x487   :  { %3628 = vmatmul.bf16.vlgmr.msrb.gmra.mxu3 %v9519_v49 }
 0x488   :  { %3640 = vmatpush.bf16.msra.mxu0 %v7678_v59  ;;  %v3384_v34 = vpop.f32.mrf.mxu0 }
 0x489   :  { %3653 = vmatpush.bf16.msra.mxu1 %v7682_v15  ;;  %3666 = vmatpush.bf16.msra.mxu2 %v7684_v39  ;;  %v3408_v12 = vpop.f32.mrf.mxu2 }
 0x48a   :  { %3679 = vmatpush.bf16.msra.mxu3 %v7697_v3  ;;  %v3421_v23 = vpop.f32.mrf.mxu3 }
 0x48b   :  { %v3422_v10 = vadd.f32 %v3421_v23, %v3408_v12  ;;  %v11171_v12 = vld [vmem:[#allocation15_spill] sm:$0xff]  ;;  %v11173_v23 = vld [vmem:[#allocation17_spill] sm:$0xff] }
 0x48c   :  { %3641 = vmatpush.bf16.msra.mxu0 %v7718_v21 }
 0x48d   :  { %3654 = vmatpush.bf16.msra.mxu1 %v7722_v25  ;;  %3667 = vmatpush.bf16.msra.mxu2 %v7724_v29  ;;  %v3397_v25 = vpop.f32.mrf.mxu1 }
 0x48e   :  { %3680 = vmatpush.bf16.msra.mxu3 %v7736_v56  ;;  %v11172_v25 = vld [vmem:[#allocation16_spill] sm:$0xff]  ;;  %v11230_v56 = vld [vmem:[#allocation77_spill] sm:$0xff] }
 0x490   :  { %3642 = vmatpush.bf16.msra.mxu0 %v7754_v14  ;;  %v11229_v14 = vld [vmem:[#allocation76_spill] sm:$0xff] }
 0x491   :  { %3655 = vmatpush.bf16.msra.mxu1 %v7758_v27  ;;  %3668 = vmatpush.bf16.msra.mxu2 %v7760_v28  ;;  %v3410_v9 = vpop.f32.mrf.mxu2  ;;  %v11195_v28 = vld [vmem:[#allocation47_spill] sm:$0xff] }
 0x492   :  { %3681 = vmatpush.bf16.msra.mxu3 %v7772_v55  ;;  %v3423_v34 = vpop.f32.mrf.mxu3  ;;  %v11170_v55 = vld [vmem:[#allocation14_spill] sm:$0xff]  ;;  %v11179_v9 = vld [vmem:[#allocation31_spill] sm:$0xff] }
 0x493   :  { %v11180_v34 = vld [vmem:[#allocation32_spill] sm:$0xff] }
 0x494   :  { %3643 = vmatpush.bf16.msra.mxu0 %v7790_v18 }
 0x495   :  { %3656 = vmatpush.bf16.msra.mxu1 %v7794_v37  ;;  %3669 = vmatpush.bf16.msra.mxu2 %v7796_v40  ;;  %v11174_v40 = vld [vmem:[#allocation23_spill] sm:$0xff]  ;;  %v11190_v37 = vld [vmem:[#allocation42_spill] sm:$0xff] }
 0x496   :  { %3682 = vmatpush.bf16.msra.mxu3 %v7808_v47  ;;  %v11175_v47 = vld [vmem:[#allocation22_spill] sm:$0xff] }
 0x498   :  { %3644 = vmatpush.bf16.msra.mxu0 %v7831_v53  ;;  %v11176_v53 = vld [vmem:[#allocation24_spill] sm:$0xff] }
 0x499   :  { %3657 = vmatpush.bf16.msra.mxu1 %v7835_v60  ;;  %3670 = vmatpush.bf16.msra.mxu2 %v7837_v7  ;;  %v11177_v60 = vld [vmem:[#allocation25_spill] sm:$0xff]  ;;  %v11178_v7 = vld [vmem:[#allocation26_spill] sm:$0xff] }
 0x49a   :  { %3683 = vmatpush.bf16.msra.mxu3 %v11169_v24 }
 0x49c   :  { %3645 = vmatpush.bf16.msra.mxu0 %v11170_v55  ;;  %v11181_v55 = vld [vmem:[#allocation33_spill] sm:$0xff] }
 0x49d   :  { %3658 = vmatpush.bf16.msra.mxu1 %v11171_v12  ;;  %3671 = vmatpush.bf16.msra.mxu2 %v11172_v25  ;;  %v11188_v25 = vld [vmem:[#allocation40_spill] sm:$0xff]  ;;  %v11189_v12 = vld [vmem:[#allocation41_spill] sm:$0xff] }
 0x49e   :  { %3684 = vmatpush.bf16.msra.mxu3 %v11173_v23  ;;  %v11187_v23 = vld [vmem:[#allocation39_spill] sm:$0xff] }
 0x4a0   :  { %3646 = vmatpush.bf16.msra.mxu0 %v11174_v40 }
 0x4a1   :  { %3659 = vmatpush.bf16.msra.mxu1 %v11175_v47  ;;  %3672 = vmatpush.bf16.msra.mxu2 %v11176_v53  ;;  %v11182_v47 = vld [vmem:[#allocation34_spill] sm:$0xff]  ;;  %v11183_v53 = vld [vmem:[#allocation35_spill] sm:$0xff]  ;;  %v3447_v40 = vpop.f32.mrf.mxu1 }
 0x4a2   :  { %3685 = vmatpush.bf16.msra.mxu3 %v11177_v60  ;;  %v11184_v60 = vld [vmem:[#allocation36_spill] sm:$0xff] }
 0x4a3   :  { %3647 = vmatmul.bf16.vlgmr.msra.gmra.mxu0 %v8296_v42 }
 0x4a4   :  { %3691 = vmatpush.bf16.msrb.mxu0 %v11178_v7  ;;  %3660 = vmatmul.bf16.vlgmr.msra.gmra.mxu1 %v8302_v45  ;;  %v11185_v7 = vld [vmem:[#allocation37_spill] sm:$0xff] }
 0x4a5   :  { %3704 = vmatpush.bf16.msrb.mxu1 %v11179_v9  ;;  %3717 = vmatpush.bf16.msrb.mxu2 %v11180_v34  ;;  %v3434_v9 = vpop.f32.mrf.mxu0  ;;  %v11186_v34 = vld [vmem:[#allocation38_spill] sm:$0xff] }
 0x4a6   :  { %3730 = vmatpush.bf16.msrb.mxu3 %v11181_v55  ;;  %3673 = vmatmul.bf16.vlgmr.msra.gmra.mxu2 %v9515_v41  ;;  %v3435_v55 = vadd.f32 %v3434_v9, %v3422_v10  ;;  %v11194_v9 = vld [vmem:[#allocation46_spill] sm:$0xff] }
 0x4a7   :  { %3686 = vmatmul.bf16.vlgmr.msra.gmra.mxu3 %v9519_v49 }
 0x4a8   :  { %3692 = vmatpush.bf16.msrb.mxu0 %v11182_v47  ;;  %v3448_v24 = vadd.f32 %v3447_v40, %v3435_v55  ;;  %v11191_v47 = vld [vmem:[#allocation43_spill] sm:$0xff]  ;;  %v11197_v40 = vld [vmem:[#allocation49_spill] sm:$0xff] }
 0x4a9   :  { %3705 = vmatpush.bf16.msrb.mxu1 %v11183_v53  ;;  %3718 = vmatpush.bf16.msrb.mxu2 %v11184_v60  ;;  %v11192_v53 = vld [vmem:[#allocation44_spill] sm:$0xff]  ;;  %v11193_v60 = vld [vmem:[#allocation45_spill] sm:$0xff] }
 0x4aa   :  { %3731 = vmatpush.bf16.msrb.mxu3 %v11185_v7  ;;  %v3460_v7 = vpop.f32.mrf.mxu2 }
 0x4ab   :  { %v3461_v18 = vadd.f32 %v3460_v7, %v3448_v24  ;;  %v11200_v7 = vld [vmem:[#allocation52_spill] sm:$0xff]  ;;  %v11201_v24 = vld [vmem:[#allocation5_spill] sm:$0xff] }
 0x4ac   :  { %3693 = vmatpush.bf16.msrb.mxu0 %v11186_v34  ;;  %v3473_v34 = vpop.f32.mrf.mxu3 }
 0x4ad   :  { %3706 = vmatpush.bf16.msrb.mxu1 %v11187_v23  ;;  %3719 = vmatpush.bf16.msrb.mxu2 %v11188_v25  ;;  %v3436_v10 = vpop.f32.mrf.mxu0  ;;  %v3449_v23 = vpop.f32.mrf.mxu1  ;;  %v11196_v25 = vld [vmem:[#allocation48_spill] sm:$0xff]  ;;  %v9733_v55 = vadd.f32 %v3473_v34, %v3461_v18 }
 0x4ae   :  { %3732 = vmatpush.bf16.msrb.mxu3 %v11189_v12  ;;  %v11202_v10 = vld [vmem:[#allocation180_spill] sm:$0xff] }
 0x4af   :  { %v1488_v23 = vadd.f32 %v11202_v10, %v11201_v24  ;;  %v11209_v12 = vld [vmem:[#allocation28_spill] sm:$0xff]  ;;  %v11210_v24 = vld [vmem:[#allocation57_spill] sm:$0xff] }
 0x4b0   :  { %3694 = vmatpush.bf16.msrb.mxu0 %v11190_v37  ;;  %v11206_v37 = vld [vmem:[#allocation55_spill] sm:$0xff] }
 0x4b1   :  { %3707 = vmatpush.bf16.msrb.mxu1 %v11191_v47  ;;  %3720 = vmatpush.bf16.msrb.mxu2 %v11192_v53  ;;  %v11198_v47 = vld [vmem:[#allocation50_spill] sm:$0xff]  ;;  %v11207_v53 = vld [vmem:[#allocation56_spill] sm:$0xff] }
 0x4b2   :  { %3733 = vmatpush.bf16.msrb.mxu3 %v11193_v60  ;;  %v11199_v60 = vld [vmem:[#allocation51_spill] sm:$0xff] }
 0x4b4   :  { %3695 = vmatpush.bf16.msrb.mxu0 %v11194_v9  ;;  %v11203_v9 = vld [vmem:[#allocation53_spill] sm:$0xff]  ;;  %v3475_v34 = vpop.f32.mrf.mxu3 }
 0x4b5   :  { %3708 = vmatpush.bf16.msrb.mxu1 %v11195_v28  ;;  %3721 = vmatpush.bf16.msrb.mxu2 %v11196_v25  ;;  %v3462_v28 = vpop.f32.mrf.mxu2  ;;  %v11204_v25 = vld [vmem:[#allocation13_spill] sm:$0xff] }
 0x4b6   :  { %3734 = vmatpush.bf16.msrb.mxu3 %v11197_v40  ;;  %v1607_v18 = vadd.f32 %v11202_v10, %v11204_v25  ;;  %v11205_v40 = vld [vmem:[#allocation54_spill] sm:$0xff]  ;;  %v11212_v25 = vld [vmem:[#allocation59_spill] sm:$0xff]  ;;  %v11213_v10 = vld [vmem:[#allocation60_spill] sm:$0xff] }
 0x4b8   :  { %3696 = vmatpush.bf16.msrb.mxu0 %v11198_v47  ;;  %v1489_v47 = vmax.f32 %v1488_v23, 0.0  ;;  %v11215_v23 = vld [vmem:[#allocation62_spill] sm:$0xff] }
 0x4b9   :  { %3709 = vmatpush.bf16.msrb.mxu1 %v11199_v60  ;;  %3722 = vmatpush.bf16.msrb.mxu2 %v11200_v7  ;;  %v11208_v60 = vld [vmem:[#allocation27_spill] sm:$0xff]  ;;  %v1608_v7 = vmax.f32 %v1607_v18, 0.0  ;;  %v11218_v18 = vld [vmem:[#allocation65_spill] sm:$0xff] }
 0x4ba   :  { %3735 = vmatpush.bf16.msrb.mxu3 %v11203_v9  ;;  %v11211_v9 = vld [vmem:[#allocation58_spill] sm:$0xff]  ;;  %v9753_v28 = vpack.c.bf16 %v1489_v47, %v1489_v47  ;;  %v11217_v47 = vld [vmem:[#allocation64_spill] sm:$0xff] }
 0x4bb   :  { %v9757_v34 = vpack.c.bf16 %v1608_v7, %v1608_v7  ;;  %v11219_v7 = vld [vmem:[#allocation66_spill] sm:$0xff] }
 0x4bc   :  { %3697 = vmatpush.bf16.msrb.mxu0 %v11205_v40 }
 0x4bd   :  { %3710 = vmatpush.bf16.msrb.mxu1 %v11206_v37  ;;  %3723 = vmatpush.bf16.msrb.mxu2 %v11207_v53  ;;  %v11214_v37 = vld [vmem:[#allocation61_spill] sm:$0xff]  ;;  %v11225_v53 = vld [vmem:[#allocation72_spill] sm:$0xff] }
 0x4be   :  { %3736 = vmatpush.bf16.msrb.mxu3 %v11208_v60  ;;  %v11216_v60 = vld [vmem:[#allocation63_spill] sm:$0xff] }
 0x4c0   :  { %3698 = vmatpush.bf16.msrb.mxu0 %v11209_v12  ;;  %v11224_v12 = vld [vmem:[#allocation71_spill] sm:$0xff] }
 0x4c1   :  { %3711 = vmatpush.bf16.msrb.mxu1 %v11210_v24  ;;  %3724 = vmatpush.bf16.msrb.mxu2 %v11211_v9  ;;  %v11223_v9 = vld [vmem:[#allocation70_spill] sm:$0xff] }
 0x4c2   :  { %3737 = vmatpush.bf16.msrb.mxu3 %v11212_v25  ;;  %v11222_v25 = vld [vmem:[#allocation69_spill] sm:$0xff] }
 0x4c3   :  { %3699 = vmatmul.bf16.vlgmr.msrb.gmra.mxu0 %v9753_v28 }
 0x4c4   :  { %3743 = vmatpush.bf16.msra.mxu0 %v11213_v10  ;;  %3712 = vmatmul.bf16.vlgmr.msrb.gmra.mxu1 %v9757_v34  ;;  %v11220_v10 = vld [vmem:[#allocation67_spill] sm:$0xff] }
 0x4c5   :  { %3756 = vmatpush.bf16.msra.mxu1 %v11214_v37  ;;  %3769 = vmatpush.bf16.msra.mxu2 %v11215_v23  ;;  %v3486_v37 = vpop.f32.mrf.mxu0  ;;  %v11221_v23 = vld [vmem:[#allocation68_spill] sm:$0xff] }
 0x4c6   :  { %3782 = vmatpush.bf16.msra.mxu3 %v11216_v60  ;;  %3725 = vmatmul.bf16.vlgmr.msrb.gmra.mxu2 %v8296_v42  ;;  %v3499_v60 = vpop.f32.mrf.mxu1 }
 0x4c7   :  { %3738 = vmatmul.bf16.vlgmr.msrb.gmra.mxu3 %v8302_v45  ;;  %v3500_v24 = vadd.f32 %v3499_v60, %v3486_v37  ;;  %v11231_v37 = vld [vmem:[#allocation78_spill] sm:$0xff] }
 0x4c8   :  { %3744 = vmatpush.bf16.msra.mxu0 %v11217_v47  ;;  %v11226_v47 = vld [vmem:[#allocation73_spill] sm:$0xff] }
 0x4c9   :  { %3757 = vmatpush.bf16.msra.mxu1 %v11218_v18  ;;  %3770 = vmatpush.bf16.msra.mxu2 %v11219_v7  ;;  %v11227_v18 = vld [vmem:[#allocation74_spill] sm:$0xff]  ;;  %v11228_v7 = vld [vmem:[#allocation75_spill] sm:$0xff] }
 0x4ca   :  { %3783 = vmatpush.bf16.msra.mxu3 %v11220_v10  ;;  %v3512_v10 = vpop.f32.mrf.mxu2  ;;  %v3525_v27 = vpop.f32.mrf.mxu3 }
 0x4cb   :  { %v3513_v40 = vadd.f32 %v3512_v10, %v3500_v24 }
 0x4cc   :  { %3745 = vmatpush.bf16.msra.mxu0 %v11221_v23 }
 0x4cd   :  { %3758 = vmatpush.bf16.msra.mxu1 %v11222_v25  ;;  %3771 = vmatpush.bf16.msra.mxu2 %v11223_v9  ;;  %v3488_v23 = vpop.f32.mrf.mxu0  ;;  %v3526_v60 = vadd.f32 %v3525_v27, %v3513_v40  ;;  %v11241_v27 = vld [vmem:[#allocation89_spill] sm:$0xff]  ;;  %v11242_v40 = vld [vmem:[#allocation90_spill] sm:$0xff] }
 0x4ce   :  { %3784 = vmatpush.bf16.msra.mxu3 %v11224_v12  ;;  %v3501_v25 = vpop.f32.mrf.mxu1  ;;  %v11232_v12 = vld [vmem:[#allocation79_spill] sm:$0xff]  ;;  %v11237_v23 = vld [vmem:[#allocation85_spill] sm:$0xff] }
 0x4cf   :  { %v11238_v25 = vld [vmem:[#allocation86_spill] sm:$0xff] }
 0x4d0   :  { %3746 = vmatpush.bf16.msra.mxu0 %v11225_v53  ;;  %v11233_v53 = vld [vmem:[#allocation80_spill] sm:$0xff] }
 0x4d1   :  { %3759 = vmatpush.bf16.msra.mxu1 %v11226_v47  ;;  %3772 = vmatpush.bf16.msra.mxu2 %v11227_v18  ;;  %v11234_v47 = vld [vmem:[#allocation81_spill] sm:$0xff]  ;;  %v11235_v18 = vld [vmem:[#allocation82_spill] sm:$0xff] }
 0x4d2   :  { %3785 = vmatpush.bf16.msra.mxu3 %v11228_v7  ;;  %v11236_v7 = vld [vmem:[#allocation83_spill] sm:$0xff]  ;;  %v3514_v24 = vpop.f32.mrf.mxu2  ;;  %v3527_v10 = vpop.f32.mrf.mxu3 }
 0x4d3   :  { %v11246_v24 = vld [vmem:[#allocation94_spill] sm:$0xff]  ;;  %v11247_v10 = vld [vmem:[#allocation95_spill] sm:$0xff] }
 0x4d4   :  { %3747 = vmatpush.bf16.msra.mxu0 %v11229_v14  ;;  %v11268_v14 = vld [vmem:[#allocation117_spill] sm:$0xff] }
 0x4d5   :  { %3760 = vmatpush.bf16.msra.mxu1 %v11230_v56  ;;  %3773 = vmatpush.bf16.msra.mxu2 %v11231_v37  ;;  %v11239_v56 = vld [vmem:[#allocation87_spill] sm:$0xff]  ;;  %v11240_v37 = vld [vmem:[#allocation88_spill] sm:$0xff] }
 0x4d6   :  { %3786 = vmatpush.bf16.msra.mxu3 %v11232_v12 }
 0x4d8   :  { %3748 = vmatpush.bf16.msra.mxu0 %v11233_v53  ;;  %v11243_v53 = vld [vmem:[#allocation91_spill] sm:$0xff] }
 0x4d9   :  { %3761 = vmatpush.bf16.msra.mxu1 %v11234_v47  ;;  %3774 = vmatpush.bf16.msra.mxu2 %v11235_v18  ;;  %v11244_v47 = vld [vmem:[#allocation92_spill] sm:$0xff]  ;;  %v11245_v18 = vld [vmem:[#allocation93_spill] sm:$0xff] }
 0x4da   :  { %3787 = vmatpush.bf16.msra.mxu3 %v11236_v7 }
 0x4dc   :  { %3749 = vmatpush.bf16.msra.mxu0 %v11237_v23  ;;  %v11248_v23 = vld [vmem:[#allocation96_spill] sm:$0xff] }
 0x4dd   :  { %3762 = vmatpush.bf16.msra.mxu1 %v11238_v25  ;;  %3775 = vmatpush.bf16.msra.mxu2 %v11239_v56  ;;  %v11255_v56 = vld [vmem:[#allocation103_spill] sm:$0xff]  ;;  %v11256_v25 = vld [vmem:[#allocation104_spill] sm:$0xff] }
 0x4de   :  { %3788 = vmatpush.bf16.msra.mxu3 %v11240_v37  ;;  %v11254_v37 = vld [vmem:[#allocation102_spill] sm:$0xff] }
 0x4e0   :  { %3750 = vmatpush.bf16.msra.mxu0 %v11241_v27 }
 0x4e1   :  { %3763 = vmatpush.bf16.msra.mxu1 %v11242_v40  ;;  %3776 = vmatpush.bf16.msra.mxu2 %v11243_v53  ;;  %v11249_v40 = vld [vmem:[#allocation97_spill] sm:$0xff]  ;;  %v11250_v53 = vld [vmem:[#allocation98_spill] sm:$0xff]  ;;  %v3551_v27 = vpop.f32.mrf.mxu1 }
 0x4e2   :  { %3789 = vmatpush.bf16.msra.mxu3 %v11244_v47  ;;  %v11251_v47 = vld [vmem:[#allocation99_spill] sm:$0xff] }
 0x4e3   :  { %3751 = vmatmul.bf16.vlgmr.msra.gmra.mxu0 %v9515_v41 }
 0x4e4   :  { %3795 = vmatpush.bf16.msrb.mxu0 %v11245_v18  ;;  %3764 = vmatmul.bf16.vlgmr.msra.gmra.mxu1 %v9519_v49  ;;  %v11252_v18 = vld [vmem:[#allocation100_spill] sm:$0xff] }
 0x4e5   :  { %3808 = vmatpush.bf16.msrb.mxu1 %v11246_v24  ;;  %3821 = vmatpush.bf16.msrb.mxu2 %v11247_v10  ;;  %v3538_v24 = vpop.f32.mrf.mxu0  ;;  %v11253_v10 = vld [vmem:[#allocation101_spill] sm:$0xff] }
 0x4e6   :  { %3834 = vmatpush.bf16.msrb.mxu3 %v11248_v23  ;;  %3777 = vmatmul.bf16.vlgmr.msra.gmra.mxu2 %v9753_v28  ;;  %v3539_v23 = vadd.f32 %v3538_v24, %v3526_v60 }
 0x4e7   :  { %3790 = vmatmul.bf16.vlgmr.msra.gmra.mxu3 %v9757_v34 }
 0x4e8   :  { %3796 = vmatpush.bf16.msrb.mxu0 %v11249_v40  ;;  %v9810_v7 = vadd.f32 %v3551_v27, %v3539_v23  ;;  %v11257_v40 = vld [vmem:[#allocation105_spill] sm:$0xff]  ;;  %v11263_v23 = vld [vmem:[#allocation112_spill] sm:$0xff] }
 0x4e9   :  { %3809 = vmatpush.bf16.msrb.mxu1 %v11250_v53  ;;  %3822 = vmatpush.bf16.msrb.mxu2 %v11251_v47  ;;  %v11258_v53 = vld [vmem:[#allocation106_spill] sm:$0xff]  ;;  %v11259_v47 = vld [vmem:[#allocation107_spill] sm:$0xff]  ;;  %v3564_v12 = vpop.f32.mrf.mxu2  ;;  %v11264_v27 = vld [vmem:[#allocation113_spill] sm:$0xff] }
 0x4ea   :  { %3835 = vmatpush.bf16.msrb.mxu3 %v11252_v18  ;;  %v11260_v18 = vld [vmem:[#allocation108_spill] sm:$0xff] }
 0x4ec   :  { %3797 = vmatpush.bf16.msrb.mxu0 %v11253_v10  ;;  %v3577_v10 = vpop.f32.mrf.mxu3 }
 0x4ed   :  { %3810 = vmatpush.bf16.msrb.mxu1 %v11254_v37  ;;  %3823 = vmatpush.bf16.msrb.mxu2 %v11255_v56  ;;  %v3540_v60 = vpop.f32.mrf.mxu0  ;;  %v3578_v24 = vadd.f32 %v3577_v10, %v3564_v12  ;;  %v3553_v37 = vpop.f32.mrf.mxu1  ;;  %v11261_v56 = vld [vmem:[#allocation110_spill] sm:$0xff]  ;;  %v11271_v10 = vld [vmem:[#allocation120_spill] sm:$0xff] }
 0x4ee   :  { %3836 = vmatpush.bf16.msrb.mxu3 %v11256_v25  ;;  %v11262_v25 = vld [vmem:[#allocation111_spill] sm:$0xff]  ;;  %v11269_v12 = vld [vmem:[#allocation118_spill] sm:$0xff] }
 0x4ef   :  { %v11270_v37 = vld [vmem:[#allocation119_spill] sm:$0xff] }
 0x4f0   :  { %3798 = vmatpush.bf16.msrb.mxu0 %v11257_v40 }
 0x4f1   :  { %3811 = vmatpush.bf16.msrb.mxu1 %v11258_v53  ;;  %3824 = vmatpush.bf16.msrb.mxu2 %v11259_v47  ;;  %v11265_v53 = vld [vmem:[#allocation114_spill] sm:$0xff]  ;;  %v11266_v47 = vld [vmem:[#allocation115_spill] sm:$0xff]  ;;  %v3566_v40 = vpop.f32.mrf.mxu2 }
 0x4f2   :  { %3837 = vmatpush.bf16.msrb.mxu3 %v11260_v18  ;;  %v11267_v18 = vld [vmem:[#allocation116_spill] sm:$0xff]  ;;  %v11277_v40 = vld [vmem:[#allocation126_spill] sm:$0xff] }
 0x4f4   :  { %3799 = vmatpush.bf16.msrb.mxu0 %v11104_v48  ;;  %v3579_v60 = vpop.f32.mrf.mxu3 }
 0x4f5   :  { %3812 = vmatpush.bf16.msrb.mxu1 %v11261_v56  ;;  %3825 = vmatpush.bf16.msrb.mxu2 %v11262_v25  ;;  %v11272_v25 = vld [vmem:[#allocation121_spill] sm:$0xff]  ;;  %v11278_v60 = vld [vmem:[#allocation127_spill] sm:$0xff] }
 0x4f6   :  { %3838 = vmatpush.bf16.msrb.mxu3 %v11263_v23  ;;  %v11273_v23 = vld [vmem:[#allocation122_spill] sm:$0xff] }
 0x4f8   :  { %3800 = vmatpush.bf16.msrb.mxu0 %v11264_v27  ;;  %v11274_v27 = vld [vmem:[#allocation123_spill] sm:$0xff] }
 0x4f9   :  { %3813 = vmatpush.bf16.msrb.mxu1 %v11265_v53  ;;  %3826 = vmatpush.bf16.msrb.mxu2 %v11266_v47  ;;  %v11275_v53 = vld [vmem:[#allocation124_spill] sm:$0xff]  ;;  %v11276_v47 = vld [vmem:[#allocation125_spill] sm:$0xff] }
 0x4fa   :  { %3839 = vmatpush.bf16.msrb.mxu3 %v11267_v18  ;;  %v11287_v18 = vld [vmem:[#allocation137_spill] sm:$0xff] }
 0x4fc   :  { %3801 = vmatpush.bf16.msrb.mxu0 %v11268_v14  ;;  %v11279_v14 = vld [vmem:[#allocation128_spill] sm:$0xff] }
 0x4fd   :  { %3814 = vmatpush.bf16.msrb.mxu1 %v11269_v12  ;;  %3827 = vmatpush.bf16.msrb.mxu2 %v11270_v37  ;;  %v11286_v37 = vld [vmem:[#allocation135_spill] sm:$0xff] }
 0x4fe   :  { %3840 = vmatpush.bf16.msrb.mxu3 %v11271_v10  ;;  %v11285_v10 = vld [vmem:[#allocation134_spill] sm:$0xff] }
 0x500   :  { %3802 = vmatpush.bf16.msrb.mxu0 %v11272_v25 }
 0x501   :  { %3815 = vmatpush.bf16.msrb.mxu1 %v11273_v23  ;;  %3828 = vmatpush.bf16.msrb.mxu2 %v11274_v27  ;;  %v11280_v23 = vld [vmem:[#allocation129_spill] sm:$0xff]  ;;  %v11281_v27 = vld [vmem:[#allocation130_spill] sm:$0xff]  ;;  %v3603_v25 = vpop.f32.mrf.mxu1 }
 0x502   :  { %3841 = vmatpush.bf16.msrb.mxu3 %v11275_v53  ;;  %v11282_v53 = vld [vmem:[#allocation131_spill] sm:$0xff] }
 0x503   :  { %3803 = vmatmul.bf16.vlgmr.msrb.gmra.mxu0 %v8296_v42 }
 0x504   :  { %3847 = vmatpush.bf16.msra.mxu0 %v11276_v47  ;;  %3816 = vmatmul.bf16.vlgmr.msrb.gmra.mxu1 %v8302_v45  ;;  %v11283_v47 = vld [vmem:[#allocation132_spill] sm:$0xff] }
 0x505   :  { %3860 = vmatpush.bf16.msra.mxu1 %v11277_v40  ;;  %3873 = vmatpush.bf16.msra.mxu2 %v11278_v60  ;;  %v3590_v40 = vpop.f32.mrf.mxu0  ;;  %v11284_v60 = vld [vmem:[#allocation133_spill] sm:$0xff] }
 0x506   :  { %3886 = vmatpush.bf16.msra.mxu3 %v11279_v14  ;;  %3829 = vmatmul.bf16.vlgmr.msrb.gmra.mxu2 %v9515_v41  ;;  %v3591_v14 = vadd.f32 %v3590_v40, %v3578_v24 }
 0x507   :  { %3842 = vmatmul.bf16.vlgmr.msrb.gmra.mxu3 %v9519_v49 }
 0x508   :  { %3848 = vmatpush.bf16.msra.mxu0 %v11280_v23  ;;  %v3604_v12 = vadd.f32 %v3603_v25, %v3591_v14  ;;  %v11288_v23 = vld [vmem:[#allocation138_spill] sm:$0xff] }
 0x509   :  { %3861 = vmatpush.bf16.msra.mxu1 %v11281_v27  ;;  %3874 = vmatpush.bf16.msra.mxu2 %v11282_v53  ;;  %v11289_v53 = vld [vmem:[#allocation140_spill] sm:$0xff]  ;;  %v3605_v40 = vpop.f32.mrf.mxu1 }
 0x50a   :  { %3887 = vmatpush.bf16.msra.mxu3 %v11283_v47  ;;  %v3616_v47 = vpop.f32.mrf.mxu2  ;;  %v11300_v40 = vld [vmem:[#allocation158_spill] sm:$0xff] }
 0x50b   :  { %v3617_v27 = vadd.f32 %v3616_v47, %v3604_v12 }
 0x50c   :  { %3849 = vmatpush.bf16.msra.mxu0 %v11284_v60  ;;  %v3629_v60 = vpop.f32.mrf.mxu3 }
 0x50d   :  { %3862 = vmatpush.bf16.msra.mxu1 %v11285_v10  ;;  %3875 = vmatpush.bf16.msra.mxu2 %v11286_v37  ;;  %v3592_v24 = vpop.f32.mrf.mxu0  ;;  %v11290_v10 = vld [vmem:[#allocation142_spill] sm:$0xff]  ;;  %v11291_v37 = vld [vmem:[#allocation143_spill] sm:$0xff]  ;;  %v3630_v14 = vadd.f32 %v3629_v60, %v3617_v27  ;;  %v11295_v27 = vld [vmem:[#allocation153_spill] sm:$0xff] }
 0x50e   :  { %3888 = vmatpush.bf16.msra.mxu3 %v11129_v20  ;;  %v11296_v60 = vld [vmem:[#allocation154_spill] sm:$0xff] }
 0x50f   :  { %v3634_v25 = vmax.f32 %v9810_v7, %v3630_v14  ;;  %v11294_v7 = vld [vmem:[#allocation152_spill] sm:$0xff]  ;;  %v11301_v14 = vld [vmem:[#allocation159_spill] sm:$0xff] }
 0x510   :  { %3850 = vmatpush.bf16.msra.mxu0 %v11287_v18 }
 0x511   :  { %3863 = vmatpush.bf16.msra.mxu1 %v11288_v23  ;;  %3876 = vmatpush.bf16.msra.mxu2 %v11132_v17 }
 0x512   :  { %3889 = vmatpush.bf16.msra.mxu3 %v11289_v53  ;;  %v11292_v53 = vmax.f32 %v9688_v57, %v9733_v55  ;;  %v3618_v12 = vpop.f32.mrf.mxu2  ;;  %v11298_v57 = vld [vmem:[#allocation156_spill] sm:$0xff]  ;;  %v11299_v55 = vld [vmem:[#allocation157_spill] sm:$0xff] }
 0x513   :  { %v11303_v12 = vld [vmem:[#allocation161_spill] sm:$0xff] }
 0x514   :  { %3851 = vmatpush.bf16.msra.mxu0 %v11134_v5  ;;  %v9861_v47 = vmax.f32 %v11292_v53, %v3634_v25  ;;  %v3631_v24 = vpop.f32.mrf.mxu3  ;;  %v11297_v53 = vld [vmem:[#allocation155_spill] sm:$0xff]  ;;  %v11302_v25 = vld [vmem:[#allocation160_spill] sm:$0xff] }
 0x515   :  { %3864 = vmatpush.bf16.msra.mxu1 %v11290_v10  ;;  %3877 = vmatpush.bf16.msra.mxu2 %v11291_v37  ;;  %v11304_v24 = vld [vmem:[#allocation162_spill] sm:$0xff] }
 0x516   :  { %3890 = vmatpush.bf16.msra.mxu3 %v11137_v35  ;;  %11293 = vst [vmem:[#allocation30_spill] sm:$0xff] %v9861_v47  ;;  %v11305_v47 = vld [vmem:[#allocation163_spill] sm:$0xff] }
 0x518   :  { %3852 = vmatpush.bf16.msra.mxu0 %v11138_v52 }
 0x519   :  { %3865 = vmatpush.bf16.msra.mxu1 %v11141_v38  ;;  %3878 = vmatpush.bf16.msra.mxu2 %v11142_v51 }
 0x51a   :  { %3891 = vmatpush.bf16.msra.mxu3 %v11143_v58 }
 0x51c   :  { %3853 = vmatpush.bf16.msra.mxu0 %v11144_v50 }
 0x51d   :  { %3866 = vmatpush.bf16.msra.mxu1 %v11145_v46  ;;  %3879 = vmatpush.bf16.msra.mxu2 %v11294_v7 }
 0x51e   :  { %3892 = vmatpush.bf16.msra.mxu3 %v11295_v27 }
 0x520   :  { %3854 = vmatpush.bf16.msra.mxu0 %v11296_v60 }
 0x521   :  { %3867 = vmatpush.bf16.msra.mxu1 %v11297_v53  ;;  %3880 = vmatpush.bf16.msra.mxu2 %v11298_v57  ;;  %v11309_v57 = vld [vmem:[#allocation167_spill] sm:$0xff] }
 0x522   :  { %3893 = vmatpush.bf16.msra.mxu3 %v11299_v55  ;;  %v11306_v55 = vld [vmem:[#allocation164_spill] sm:$0xff] }
 0x523   :  { %3855 = vmatmul.bf16.vlgmr.msra.gmra.mxu0 %v9753_v28 }
 0x524   :  { %3899 = vmatpush.bf16.msrb.mxu0 %v11300_v40  ;;  %3868 = vmatmul.bf16.vlgmr.msra.gmra.mxu1 %v9757_v34  ;;  %v11307_v40 = vld [vmem:[#allocation165_spill] sm:$0xff] }
 0x525   :  { %3912 = vmatpush.bf16.msrb.mxu1 %v11301_v14  ;;  %3925 = vmatpush.bf16.msrb.mxu2 %v11302_v25  ;;  %v3648_v14 = vpop.f32.mrf.mxu0  ;;  %v11308_v25 = vld [vmem:[#allocation166_spill] sm:$0xff] }
 0x526   :  { %3938 = vmatpush.bf16.msrb.mxu3 %v11303_v12  ;;  %3881 = vmatmul.bf16.vlgmr.msra.gmra.mxu2 %v8296_v42  ;;  %v3661_v12 = vpop.f32.mrf.mxu1  ;;  %v11310_v42 = vld [vmem:[#allocation171_spill] sm:$0xff] }
 0x527   :  { %3894 = vmatmul.bf16.vlgmr.msra.gmra.mxu3 %v8302_v45  ;;  %v3662_v53 = vadd.f32 %v3661_v12, %v3648_v14  ;;  %v11311_v45 = vld [vmem:[#allocation172_spill] sm:$0xff] }
 0x528   :  { %3900 = vmatpush.bf16.msrb.mxu0 %v11304_v24 }
 0x529   :  { %3913 = vmatpush.bf16.msrb.mxu1 %v11305_v47  ;;  %3926 = vmatpush.bf16.msrb.mxu2 %v11306_v55  ;;  %v11312_v55 = vld [vmem:[#allocation173_spill] sm:$0xff] }
 0x52a   :  { %3939 = vmatpush.bf16.msrb.mxu3 %v11307_v40  ;;  %v3674_v40 = vpop.f32.mrf.mxu2  ;;  %v3687_v24 = vpop.f32.mrf.mxu3 }
 0x52b   :  { %v3675_v47 = vadd.f32 %v3674_v40, %v3662_v53 }
 0x52c   :  { %3901 = vmatpush.bf16.msrb.mxu0 %v11308_v25 }
 0x52d   :  { %3914 = vmatpush.bf16.msrb.mxu1 %v11309_v57  ;;  %3927 = vmatpush.bf16.msrb.mxu2 %v11158_v16  ;;  %v3650_v25 = vpop.f32.mrf.mxu0  ;;  %v3688_v14 = vadd.f32 %v3687_v24, %v3675_v47  ;;  %v11314_v47 = vld [vmem:[#allocation7_spill] sm:$0xff] }
 0x52e   :  { %3940 = vmatpush.bf16.msrb.mxu3 %v11159_v11  ;;  %v3663_v57 = vpop.f32.mrf.mxu1  ;;  %v11319_v24 = vld [vmem:[#allocation3_spill] sm:$0xff] }
 0x530   :  { %3902 = vmatpush.bf16.msrb.mxu0 %v11160_v0 }
 0x531   :  { %3915 = vmatpush.bf16.msrb.mxu1 %v11310_v42  ;;  %3928 = vmatpush.bf16.msrb.mxu2 %v11311_v45 }
 0x532   :  { %3941 = vmatpush.bf16.msrb.mxu3 %v11312_v55  ;;  %v3676_v53 = vpop.f32.mrf.mxu2  ;;  %v3689_v40 = vpop.f32.mrf.mxu3 }
 0x533   :  { %v11321_v40 = vld [vmem:[#allocation12_spill] sm:$0xff] }
 0x534   :  { %3903 = vmatpush.bf16.msrb.mxu0 %v11164_v2 }
 0x535   :  { %3916 = vmatpush.bf16.msrb.mxu1 %v9310_v61  ;;  %3929 = vmatpush.bf16.msrb.mxu2 %v9312_v36 }
 0x536   :  { %3942 = vmatpush.bf16.msrb.mxu3 %v11165_v43 }
 0x538   :  { %3904 = vmatpush.bf16.msrb.mxu0 %v9342_v63 }
 0x539   :  { %3917 = vmatpush.bf16.msrb.mxu1 %v11166_v44  ;;  %3930 = vmatpush.bf16.msrb.mxu2 %v11167_v31 }
 0x53a   :  { %3943 = vmatpush.bf16.msrb.mxu3 %v11168_v32 }
 0x53c   :  { %3905 = vmatpush.bf16.msrb.mxu0 %v9378_v6 }
 0x53d   :  { %3918 = vmatpush.bf16.msrb.mxu1 %v9382_v62  ;;  %3931 = vmatpush.bf16.msrb.mxu2 %v9384_v13 }
 0x53e   :  { %3944 = vmatpush.bf16.msrb.mxu3 %v9396_v33 }
 0x540   :  { %3906 = vmatpush.bf16.msrb.mxu0 %v9414_v8 }
 0x541   :  { %3919 = vmatpush.bf16.msrb.mxu1 %v9418_v4  ;;  %3932 = vmatpush.bf16.msrb.mxu2 %v9420_v54 }
 0x542   :  { %3945 = vmatpush.bf16.msrb.mxu3 %v9423_v19  ;;  %v11385_v19 = vld [vmem:[#allocation77_spill] sm:$0xff] }
 0x543   :  { %3907 = vmatmul.bf16.vlgmr.msrb.gmra.mxu0 %v9515_v41 }
 0x544   :  { %3957 = vmatpush.bf16.msra.mxu0 %v7641_v1  ;;  %3920 = vmatmul.bf16.vlgmr.msrb.gmra.mxu1 %v9519_v49  ;;  %v3700_v1 = vpop.f32.mrf.mxu0 }
 0x545   :  { %3970 = vmatpush.bf16.msra.mxu1 %v7643_v22  ;;  %3983 = vmatpush.bf16.msra.mxu2 %v7645_v26  ;;  %v3701_v22 = vadd.f32 %v3700_v1, %v3688_v14  ;;  %v3713_v26 = vpop.f32.mrf.mxu1  ;;  %v11322_v1 = vld [vmem:[#allocation2_spill] sm:$0xff] }
 0x546   :  { %3996 = vmatpush.bf16.msra.mxu3 %v7657_v30  ;;  %3933 = vmatmul.bf16.vlgmr.msrb.gmra.mxu2 %v9753_v28  ;;  %v11313_v30 = vld [vmem:[#allocation6_spill] sm:$0xff] }
 0x547   :  { %3946 = vmatmul.bf16.vlgmr.msrb.gmra.mxu3 %v9757_v34  ;;  %v9926_v57 = vadd.f32 %v3713_v26, %v3701_v22  ;;  %v11323_v22 = vld [vmem:[#allocation8_spill] sm:$0xff]  ;;  %v11324_v26 = vld [vmem:[#allocation9_spill] sm:$0xff] }
 0x548   :  { %3958 = vmatpush.bf16.msra.mxu0 %v7678_v59  ;;  %v11315_v59 = vld [vmem:[#allocation18_spill] sm:$0xff] }
 0x549   :  { %3971 = vmatpush.bf16.msra.mxu1 %v7682_v15  ;;  %3984 = vmatpush.bf16.msra.mxu2 %v7684_v39  ;;  %v11316_v15 = vld [vmem:[#allocation19_spill] sm:$0xff]  ;;  %v11317_v39 = vld [vmem:[#allocation20_spill] sm:$0xff]  ;;  %v3726_v25 = vpop.f32.mrf.mxu2 }
 0x54a   :  { %3997 = vmatpush.bf16.msra.mxu3 %v7697_v3  ;;  %v11318_v3 = vld [vmem:[#allocation21_spill] sm:$0xff] }
 0x54c   :  { %3959 = vmatpush.bf16.msra.mxu0 %v7718_v21  ;;  %v3739_v21 = vpop.f32.mrf.mxu3  ;;  %v3702_v12 = vpop.f32.mrf.mxu0 }
 0x54d   :  { %3972 = vmatpush.bf16.msra.mxu1 %v11313_v30  ;;  %3985 = vmatpush.bf16.msra.mxu2 %v7724_v29  ;;  %v3740_v14 = vadd.f32 %v3739_v21, %v3726_v25  ;;  %v3715_v53 = vpop.f32.mrf.mxu1  ;;  %v11320_v29 = vld [vmem:[#allocation4_spill] sm:$0xff]  ;;  %v11325_v30 = vld [vmem:[#allocation10_spill] sm:$0xff]  ;;  %v11330_v21 = vld [vmem:[#allocation17_spill] sm:$0xff] }
 0x54e   :  { %3998 = vmatpush.bf16.msra.mxu3 %v11314_v47  ;;  %v11326_v47 = vld [vmem:[#allocation11_spill] sm:$0xff]  ;;  %v11329_v25 = vld [vmem:[#allocation16_spill] sm:$0xff] }
 0x54f   :  { %v11331_v12 = vld [vmem:[#allocation23_spill] sm:$0xff]  ;;  %v11333_v53 = vld [vmem:[#allocation24_spill] sm:$0xff] }
 0x550   :  { %3960 = vmatpush.bf16.msra.mxu0 %v11315_v59 }
 0x551   :  { %3973 = vmatpush.bf16.msra.mxu1 %v11316_v15  ;;  %3986 = vmatpush.bf16.msra.mxu2 %v11317_v39  ;;  %v3728_v59 = vpop.f32.mrf.mxu2  ;;  %v11327_v39 = vld [vmem:[#allocation14_spill] sm:$0xff] }
 0x552   :  { %3999 = vmatpush.bf16.msra.mxu3 %v11318_v3  ;;  %v11328_v3 = vld [vmem:[#allocation15_spill] sm:$0xff]  ;;  %v11341_v59 = vld [vmem:[#allocation36_spill] sm:$0xff] }
 0x554   :  { %3961 = vmatpush.bf16.msra.mxu0 %v11319_v24  ;;  %v3741_v15 = vpop.f32.mrf.mxu3  ;;  %v11332_v24 = vld [vmem:[#allocation22_spill] sm:$0xff] }
 0x555   :  { %3974 = vmatpush.bf16.msra.mxu1 %v11320_v29  ;;  %3987 = vmatpush.bf16.msra.mxu2 %v11321_v40  ;;  %v11334_v29 = vld [vmem:[#allocation25_spill] sm:$0xff]  ;;  %v11335_v40 = vld [vmem:[#allocation26_spill] sm:$0xff] }
 0x556   :  { %4000 = vmatpush.bf16.msra.mxu3 %v11322_v1  ;;  %v11336_v1 = vld [vmem:[#allocation31_spill] sm:$0xff]  ;;  %v11342_v15 = vld [vmem:[#allocation37_spill] sm:$0xff] }
 0x558   :  { %3962 = vmatpush.bf16.msra.mxu0 %v11323_v22  ;;  %v11337_v22 = vld [vmem:[#allocation32_spill] sm:$0xff] }
 0x559   :  { %3975 = vmatpush.bf16.msra.mxu1 %v11324_v26  ;;  %3988 = vmatpush.bf16.msra.mxu2 %v11325_v30  ;;  %v11338_v26 = vld [vmem:[#allocation33_spill] sm:$0xff]  ;;  %v11339_v30 = vld [vmem:[#allocation34_spill] sm:$0xff] }
 0x55a   :  { %4001 = vmatpush.bf16.msra.mxu3 %v11326_v47  ;;  %v11340_v47 = vld [vmem:[#allocation35_spill] sm:$0xff] }
 0x55c   :  { %3963 = vmatpush.bf16.msra.mxu0 %v11327_v39 }
 0x55d   :  { %3976 = vmatpush.bf16.msra.mxu1 %v11328_v3  ;;  %3989 = vmatpush.bf16.msra.mxu2 %v11329_v25  ;;  %v11343_v3 = vld [vmem:[#allocation38_spill] sm:$0xff] }
 0x55e   :  { %4002 = vmatpush.bf16.msra.mxu3 %v11330_v21 }
 0x560   :  { %3964 = vmatpush.bf16.msra.mxu0 %v11331_v12  ;;  %v3752_v39 = vpop.f32.mrf.mxu0  ;;  %v11344_v12 = vld [vmem:[#allocation39_spill] sm:$0xff] }
 0x561   :  { %3977 = vmatpush.bf16.msra.mxu1 %v11332_v24  ;;  %3990 = vmatpush.bf16.msra.mxu2 %v11333_v53  ;;  %v3753_v25 = vadd.f32 %v3752_v39, %v3740_v14  ;;  %v3765_v21 = vpop.f32.mrf.mxu1  ;;  %v11345_v24 = vld [vmem:[#allocation40_spill] sm:$0xff]  ;;  %v11346_v53 = vld [vmem:[#allocation41_spill] sm:$0xff] }
 0x562   :  { %4003 = vmatpush.bf16.msra.mxu3 %v11334_v29 }
 0x563   :  { %3965 = vmatmul.bf16.vlgmr.msra.gmra.mxu0 %v9515_v41  ;;  %v3766_v29 = vadd.f32 %v3765_v21, %v3753_v25  ;;  %v11354_v21 = vld [vmem:[#allocation49_spill] sm:$0xff] }
 0x564   :  { %4009 = vmatpush.bf16.msrb.mxu0 %v11335_v40  ;;  %3978 = vmatmul.bf16.vlgmr.msra.gmra.mxu1 %v9519_v49  ;;  %v11347_v40 = vld [vmem:[#allocation42_spill] sm:$0xff] }
 0x565   :  { %4022 = vmatpush.bf16.msrb.mxu1 %v11336_v1  ;;  %4035 = vmatpush.bf16.msrb.mxu2 %v11337_v22  ;;  %v11348_v1 = vld [vmem:[#allocation43_spill] sm:$0xff]  ;;  %v11349_v22 = vld [vmem:[#allocation44_spill] sm:$0xff] }
 0x566   :  { %4048 = vmatpush.bf16.msrb.mxu3 %v11338_v26  ;;  %3991 = vmatmul.bf16.vlgmr.msra.gmra.mxu2 %v9753_v28  ;;  %v11350_v26 = vld [vmem:[#allocation45_spill] sm:$0xff] }
 0x567   :  { %4004 = vmatmul.bf16.vlgmr.msra.gmra.mxu3 %v9757_v34 }
 0x568   :  { %4010 = vmatpush.bf16.msrb.mxu0 %v11339_v30  ;;  %v3754_v14 = vpop.f32.mrf.mxu0 }
 0x569   :  { %4023 = vmatpush.bf16.msrb.mxu1 %v11340_v47  ;;  %4036 = vmatpush.bf16.msrb.mxu2 %v11341_v59  ;;  %v3778_v30 = vpop.f32.mrf.mxu2  ;;  %v3767_v39 = vpop.f32.mrf.mxu1 }
 0x56a   :  { %4049 = vmatpush.bf16.msrb.mxu3 %v11342_v15  ;;  %v3779_v47 = vadd.f32 %v3778_v30, %v3766_v29  ;;  %v3791_v59 = vpop.f32.mrf.mxu3  ;;  %v11351_v15 = vld [vmem:[#allocation46_spill] sm:$0xff]  ;;  %v11357_v29 = vld [vmem:[#allocation52_spill] sm:$0xff]  ;;  %v11359_v30 = vld [vmem:[#allocation53_spill] sm:$0xff] }
 0x56b   :  { %v11361_v39 = vld [vmem:[#allocation54_spill] sm:$0xff] }
 0x56c   :  { %4011 = vmatpush.bf16.msrb.mxu0 %v11343_v3  ;;  %v11352_v3 = vld [vmem:[#allocation47_spill] sm:$0xff]  ;;  %v9971_v25 = vadd.f32 %v3791_v59, %v3779_v47  ;;  %v11360_v59 = vld [vmem:[#allocation149_spill] sm:$0xff] }
 0x56d   :  { %4024 = vmatpush.bf16.msrb.mxu1 %v11344_v12  ;;  %4037 = vmatpush.bf16.msrb.mxu2 %v11345_v24  ;;  %v11353_v12 = vld [vmem:[#allocation48_spill] sm:$0xff]  ;;  %v11366_v24 = vld [vmem:[#allocation57_spill] sm:$0xff] }
 0x56e   :  { %4050 = vmatpush.bf16.msrb.mxu3 %v11346_v53  ;;  %v11355_v53 = vld [vmem:[#allocation50_spill] sm:$0xff] }
 0x570   :  { %4012 = vmatpush.bf16.msrb.mxu0 %v11347_v40  ;;  %v11356_v40 = vld [vmem:[#allocation51_spill] sm:$0xff] }
 0x571   :  { %4025 = vmatpush.bf16.msrb.mxu1 %v11348_v1  ;;  %4038 = vmatpush.bf16.msrb.mxu2 %v11349_v22  ;;  %v6186_v1 = vld [vmem:[%s10299_s2] ss:$0 sm:$0xff]  ;;  %v11358_v22 = vld [vmem:[#allocation84_spill] sm:$0xff]  ;;  %v3780_v47 = vpop.f32.mrf.mxu2 }
 0x572   :  { %4051 = vmatpush.bf16.msrb.mxu3 %v11350_v26  ;;  %v1726_v26 = vadd.f32 %v6186_v1, %v11358_v22  ;;  %v1845_v14 = vadd.f32 %v6186_v1, %v11360_v59  ;;  %v11367_v22 = vld [vmem:[#allocation58_spill] sm:$0xff]  ;;  %v11368_v1 = vld [vmem:[#allocation59_spill] sm:$0xff]  ;;  %v11369_v47 = vld [vmem:[#allocation60_spill] sm:$0xff] }
 0x574   :  { %4013 = vmatpush.bf16.msrb.mxu0 %v11351_v15  ;;  %v3793_v15 = vpop.f32.mrf.mxu3 }
 0x575   :  { %4026 = vmatpush.bf16.msrb.mxu1 %v11352_v3  ;;  %4039 = vmatpush.bf16.msrb.mxu2 %v11353_v12  ;;  %v11362_v3 = vld [vmem:[#allocation55_spill] sm:$0xff]  ;;  %v11363_v12 = vld [vmem:[#allocation56_spill] sm:$0xff]  ;;  %v11370_v15 = vld [vmem:[#allocation61_spill] sm:$0xff] }
 0x576   :  { %4052 = vmatpush.bf16.msrb.mxu3 %v11354_v21  ;;  %v1727_v21 = vmax.f32 %v1726_v26, 0.0  ;;  %v11371_v26 = vld [vmem:[#allocation62_spill] sm:$0xff] }
 0x578   :  { %4014 = vmatpush.bf16.msrb.mxu0 %v11355_v53  ;;  %v11364_v53 = vld [vmem:[#allocation27_spill] sm:$0xff] }
 0x579   :  { %4027 = vmatpush.bf16.msrb.mxu1 %v11356_v40  ;;  %4040 = vmatpush.bf16.msrb.mxu2 %v11357_v29  ;;  %v1846_v40 = vmax.f32 %v1845_v14, 0.0  ;;  %v11365_v29 = vld [vmem:[#allocation28_spill] sm:$0xff]  ;;  %v11374_v14 = vld [vmem:[#allocation65_spill] sm:$0xff] }
 0x57a   :  { %4053 = vmatpush.bf16.msrb.mxu3 %v11359_v30  ;;  %v9992_v30 = vpack.c.bf16 %v1727_v21, %v1727_v21 }
 0x57b   :  { %v9996_v59 = vpack.c.bf16 %v1846_v40, %v1846_v40 }
 0x57c   :  { %4015 = vmatpush.bf16.msrb.mxu0 %v11361_v39  ;;  %v11372_v39 = vld [vmem:[#allocation63_spill] sm:$0xff] }
 0x57d   :  { %4028 = vmatpush.bf16.msrb.mxu1 %v11362_v3  ;;  %4041 = vmatpush.bf16.msrb.mxu2 %v11363_v12  ;;  %v11375_v3 = vld [vmem:[#allocation66_spill] sm:$0xff]  ;;  %v11376_v12 = vld [vmem:[#allocation67_spill] sm:$0xff] }
 0x57e   :  { %4054 = vmatpush.bf16.msrb.mxu3 %v11364_v53  ;;  %v11377_v53 = vld [vmem:[#allocation68_spill] sm:$0xff] }
 0x580   :  { %4016 = vmatpush.bf16.msrb.mxu0 %v11365_v29  ;;  %v3804_v21 = vpop.f32.mrf.mxu0  ;;  %v11378_v29 = vld [vmem:[#allocation69_spill] sm:$0xff] }
 0x581   :  { %4029 = vmatpush.bf16.msrb.mxu1 %v11366_v24  ;;  %4042 = vmatpush.bf16.msrb.mxu2 %v11367_v22  ;;  %v11373_v24 = vld [vmem:[#allocation64_spill] sm:$0xff]  ;;  %v3817_v40 = vpop.f32.mrf.mxu1 }
 0x582   :  { %4055 = vmatpush.bf16.msrb.mxu3 %v11368_v1  ;;  %v3818_v22 = vadd.f32 %v3817_v40, %v3804_v21  ;;  %v11379_v1 = vld [vmem:[#allocation71_spill] sm:$0xff] }
 0x583   :  { %4017 = vmatmul.bf16.vlgmr.msrb.gmra.mxu0 %v9992_v30  ;;  %v11387_v40 = vld [vmem:[#allocation79_spill] sm:$0xff] }
 0x584   :  { %4061 = vmatpush.bf16.msra.mxu0 %v11369_v47  ;;  %4030 = vmatmul.bf16.vlgmr.msrb.gmra.mxu1 %v9996_v59  ;;  %v11380_v47 = vld [vmem:[#allocation72_spill] sm:$0xff] }
 0x585   :  { %4074 = vmatpush.bf16.msra.mxu1 %v11370_v15  ;;  %4087 = vmatpush.bf16.msra.mxu2 %v11371_v26  ;;  %v11381_v15 = vld [vmem:[#allocation73_spill] sm:$0xff]  ;;  %v11382_v26 = vld [vmem:[#allocation74_spill] sm:$0xff] }
 0x586   :  { %4100 = vmatpush.bf16.msra.mxu3 %v11372_v39  ;;  %4043 = vmatmul.bf16.vlgmr.msrb.gmra.mxu2 %v9515_v41  ;;  %v11383_v39 = vld [vmem:[#allocation75_spill] sm:$0xff] }
 0x587   :  { %4056 = vmatmul.bf16.vlgmr.msrb.gmra.mxu3 %v9519_v49 }
 0x588   :  { %4062 = vmatpush.bf16.msra.mxu0 %v11373_v24 }
 0x589   :  { %4075 = vmatpush.bf16.msra.mxu1 %v11374_v14  ;;  %4088 = vmatpush.bf16.msra.mxu2 %v11375_v3  ;;  %v3830_v24 = vpop.f32.mrf.mxu2 }
 0x58a   :  { %4101 = vmatpush.bf16.msra.mxu3 %v11376_v12  ;;  %v3831_v14 = vadd.f32 %v3830_v24, %v3818_v22  ;;  %v3843_v3 = vpop.f32.mrf.mxu3  ;;  %v3806_v12 = vpop.f32.mrf.mxu0  ;;  %v11392_v24 = vld [vmem:[#allocation85_spill] sm:$0xff] }
 0x58b   :  { %v11393_v12 = vld [vmem:[#allocation86_spill] sm:$0xff] }
 0x58c   :  { %4063 = vmatpush.bf16.msra.mxu0 %v11377_v53  ;;  %v11384_v53 = vld [vmem:[#allocation76_spill] sm:$0xff]  ;;  %v3844_v21 = vadd.f32 %v3843_v3, %v3831_v14  ;;  %v11396_v14 = vld [vmem:[#allocation89_spill] sm:$0xff]  ;;  %v11397_v3 = vld [vmem:[#allocation90_spill] sm:$0xff] }
 0x58d   :  { %4076 = vmatpush.bf16.msra.mxu1 %v11378_v29  ;;  %4089 = vmatpush.bf16.msra.mxu2 %v11223_v9  ;;  %v3819_v29 = vpop.f32.mrf.mxu1  ;;  %v11386_v9 = vld [vmem:[#allocation78_spill] sm:$0xff] }
 0x58e   :  { %4102 = vmatpush.bf16.msra.mxu3 %v11379_v1  ;;  %v11388_v1 = vld [vmem:[#allocation80_spill] sm:$0xff]  ;;  %v11398_v29 = vld [vmem:[#allocation91_spill] sm:$0xff] }
 0x590   :  { %4064 = vmatpush.bf16.msra.mxu0 %v11380_v47  ;;  %v11389_v47 = vld [vmem:[#allocation81_spill] sm:$0xff] }
 0x591   :  { %4077 = vmatpush.bf16.msra.mxu1 %v11381_v15  ;;  %4090 = vmatpush.bf16.msra.mxu2 %v11382_v26  ;;  %v11390_v15 = vld [vmem:[#allocation82_spill] sm:$0xff]  ;;  %v11391_v26 = vld [vmem:[#allocation83_spill] sm:$0xff]  ;;  %v3832_v22 = vpop.f32.mrf.mxu2 }
 0x592   :  { %4103 = vmatpush.bf16.msra.mxu3 %v11383_v39  ;;  %v3845_v39 = vpop.f32.mrf.mxu3  ;;  %v11405_v22 = vld [vmem:[#allocation98_spill] sm:$0xff] }
 0x593   :  { %v11406_v39 = vld [vmem:[#allocation99_spill] sm:$0xff] }
 0x594   :  { %4065 = vmatpush.bf16.msra.mxu0 %v11384_v53  ;;  %v11395_v53 = vld [vmem:[#allocation88_spill] sm:$0xff] }
 0x595   :  { %4078 = vmatpush.bf16.msra.mxu1 %v11385_v19  ;;  %4091 = vmatpush.bf16.msra.mxu2 %v11386_v9  ;;  %v11394_v19 = vld [vmem:[#allocation87_spill] sm:$0xff]  ;;  %v11399_v9 = vld [vmem:[#allocation92_spill] sm:$0xff] }
 0x596   :  { %4104 = vmatpush.bf16.msra.mxu3 %v11387_v40  ;;  %v11400_v40 = vld [vmem:[#allocation93_spill] sm:$0xff] }
 0x598   :  { %4066 = vmatpush.bf16.msra.mxu0 %v11388_v1  ;;  %v11401_v1 = vld [vmem:[#allocation94_spill] sm:$0xff] }
 0x599   :  { %4079 = vmatpush.bf16.msra.mxu1 %v11389_v47  ;;  %4092 = vmatpush.bf16.msra.mxu2 %v11390_v15  ;;  %v11402_v47 = vld [vmem:[#allocation95_spill] sm:$0xff]  ;;  %v11403_v15 = vld [vmem:[#allocation96_spill] sm:$0xff] }
 0x59a   :  { %4105 = vmatpush.bf16.msra.mxu3 %v11391_v26  ;;  %v11404_v26 = vld [vmem:[#allocation97_spill] sm:$0xff] }
 0x59c   :  { %4067 = vmatpush.bf16.msra.mxu0 %v11392_v24  ;;  %v11407_v24 = vld [vmem:[#allocation100_spill] sm:$0xff] }
 0x59d   :  { %4080 = vmatpush.bf16.msra.mxu1 %v11393_v12  ;;  %4093 = vmatpush.bf16.msra.mxu2 %v11394_v19  ;;  %v11408_v19 = vld [vmem:[#allocation101_spill] sm:$0xff] }
 0x59e   :  { %4106 = vmatpush.bf16.msra.mxu3 %v11395_v53 }
 0x5a0   :  { %4068 = vmatpush.bf16.msra.mxu0 %v11396_v14  ;;  %v3856_v12 = vpop.f32.mrf.mxu0 }
 0x5a1   :  { %4081 = vmatpush.bf16.msra.mxu1 %v11397_v3  ;;  %4094 = vmatpush.bf16.msra.mxu2 %v11398_v29  ;;  %v3857_v53 = vadd.f32 %v3856_v12, %v3844_v21  ;;  %v3869_v14 = vpop.f32.mrf.mxu1  ;;  %v11409_v3 = vld [vmem:[#allocation102_spill] sm:$0xff]  ;;  %v11410_v29 = vld [vmem:[#allocation103_spill] sm:$0xff] }
 0x5a2   :  { %4107 = vmatpush.bf16.msra.mxu3 %v11399_v9  ;;  %v11411_v9 = vld [vmem:[#allocation104_spill] sm:$0xff] }
 0x5a3   :  { %4069 = vmatmul.bf16.vlgmr.msra.gmra.mxu0 %v9753_v28 }
 0x5a4   :  { %4113 = vmatpush.bf16.msrb.mxu0 %v11400_v40  ;;  %4082 = vmatmul.bf16.vlgmr.msra.gmra.mxu1 %v9757_v34  ;;  %v10049_v40 = vadd.f32 %v3869_v14, %v3857_v53  ;;  %v11417_v53 = vld [vmem:[#allocation112_spill] sm:$0xff]  ;;  %v11418_v14 = vld [vmem:[#allocation113_spill] sm:$0xff] }
 0x5a5   :  { %4126 = vmatpush.bf16.msrb.mxu1 %v11401_v1  ;;  %4139 = vmatpush.bf16.msrb.mxu2 %v11402_v47  ;;  %v11412_v1 = vld [vmem:[#allocation105_spill] sm:$0xff]  ;;  %v11413_v47 = vld [vmem:[#allocation106_spill] sm:$0xff] }
 0x5a6   :  { %4152 = vmatpush.bf16.msrb.mxu3 %v11403_v15  ;;  %4095 = vmatmul.bf16.vlgmr.msra.gmra.mxu2 %v9992_v30  ;;  %v11414_v15 = vld [vmem:[#allocation107_spill] sm:$0xff] }
 0x5a7   :  { %4108 = vmatmul.bf16.vlgmr.msra.gmra.mxu3 %v9996_v59 }
 0x5a8   :  { %4114 = vmatpush.bf16.msrb.mxu0 %v11404_v26  ;;  %v11415_v26 = vld [vmem:[#allocation108_spill] sm:$0xff]  ;;  %v3858_v21 = vpop.f32.mrf.mxu0 }
 0x5a9   :  { %4127 = vmatpush.bf16.msrb.mxu1 %v11405_v22  ;;  %4140 = vmatpush.bf16.msrb.mxu2 %v11406_v39  ;;  %v3882_v22 = vpop.f32.mrf.mxu2  ;;  %v3871_v12 = vpop.f32.mrf.mxu1  ;;  %v11428_v21 = vld [vmem:[#allocation123_spill] sm:$0xff] }
 0x5aa   :  { %4153 = vmatpush.bf16.msrb.mxu3 %v11407_v24  ;;  %v3895_v39 = vpop.f32.mrf.mxu3  ;;  %v11429_v12 = vld [vmem:[#allocation124_spill] sm:$0xff] }
 0x5ab   :  { %v3896_v24 = vadd.f32 %v3895_v39, %v3882_v22  ;;  %v11426_v22 = vld [vmem:[#allocation121_spill] sm:$0xff]  ;;  %v11427_v39 = vld [vmem:[#allocation122_spill] sm:$0xff] }
 0x5ac   :  { %4115 = vmatpush.bf16.msrb.mxu0 %v11408_v19  ;;  %v11416_v19 = vld [vmem:[#allocation111_spill] sm:$0xff] }
 0x5ad   :  { %4128 = vmatpush.bf16.msrb.mxu1 %v11409_v3  ;;  %4141 = vmatpush.bf16.msrb.mxu2 %v11410_v29  ;;  %v11419_v3 = vld [vmem:[#allocation114_spill] sm:$0xff]  ;;  %v11420_v29 = vld [vmem:[#allocation115_spill] sm:$0xff] }
 0x5ae   :  { %4154 = vmatpush.bf16.msrb.mxu3 %v11411_v9  ;;  %v11421_v9 = vld [vmem:[#allocation116_spill] sm:$0xff] }
 0x5b0   :  { %4116 = vmatpush.bf16.msrb.mxu0 %v11412_v1 }
 0x5b1   :  { %4129 = vmatpush.bf16.msrb.mxu1 %v11413_v47  ;;  %4142 = vmatpush.bf16.msrb.mxu2 %v11414_v15  ;;  %v3884_v1 = vpop.f32.mrf.mxu2  ;;  %v11422_v15 = vld [vmem:[#allocation117_spill] sm:$0xff] }
 0x5b2   :  { %4155 = vmatpush.bf16.msrb.mxu3 %v11415_v26  ;;  %v3897_v47 = vpop.f32.mrf.mxu3  ;;  %v11424_v26 = vld [vmem:[#allocation119_spill] sm:$0xff] }
 0x5b3   :  { %v11436_v1 = vld [vmem:[#allocation131_spill] sm:$0xff]  ;;  %v11437_v47 = vld [vmem:[#allocation132_spill] sm:$0xff] }
 0x5b4   :  { %4117 = vmatpush.bf16.msrb.mxu0 %v11104_v48  ;;  %v11423_v48 = vld [vmem:[#allocation118_spill] sm:$0xff] }
 0x5b5   :  { %4130 = vmatpush.bf16.msrb.mxu1 %v11261_v56  ;;  %4143 = vmatpush.bf16.msrb.mxu2 %v11416_v19  ;;  %v11425_v56 = vld [vmem:[#allocation120_spill] sm:$0xff]  ;;  %v11430_v19 = vld [vmem:[#allocation125_spill] sm:$0xff] }
 0x5b6   :  { %4156 = vmatpush.bf16.msrb.mxu3 %v11417_v53  ;;  %v11431_v53 = vld [vmem:[#allocation126_spill] sm:$0xff] }
 0x5b8   :  { %4118 = vmatpush.bf16.msrb.mxu0 %v11418_v14  ;;  %v11432_v14 = vld [vmem:[#allocation127_spill] sm:$0xff] }
 0x5b9   :  { %4131 = vmatpush.bf16.msrb.mxu1 %v11419_v3  ;;  %4144 = vmatpush.bf16.msrb.mxu2 %v11420_v29  ;;  %v11433_v3 = vld [vmem:[#allocation128_spill] sm:$0xff]  ;;  %v11434_v29 = vld [vmem:[#allocation129_spill] sm:$0xff] }
 0x5ba   :  { %4157 = vmatpush.bf16.msrb.mxu3 %v11421_v9  ;;  %v11435_v9 = vld [vmem:[#allocation130_spill] sm:$0xff] }
 0x5bc   :  { %4119 = vmatpush.bf16.msrb.mxu0 %v11422_v15 }
 0x5bd   :  { %4132 = vmatpush.bf16.msrb.mxu1 %v11423_v48  ;;  %4145 = vmatpush.bf16.msrb.mxu2 %v11424_v26  ;;  %v11438_v48 = vld [vmem:[#allocation133_spill] sm:$0xff] }
 0x5be   :  { %4158 = vmatpush.bf16.msrb.mxu3 %v11425_v56 }
 0x5c0   :  { %4120 = vmatpush.bf16.msrb.mxu0 %v11426_v22  ;;  %v3908_v15 = vpop.f32.mrf.mxu0  ;;  %v11439_v22 = vld [vmem:[#allocation134_spill] sm:$0xff] }
 0x5c1   :  { %4133 = vmatpush.bf16.msrb.mxu1 %v11427_v39  ;;  %4146 = vmatpush.bf16.msrb.mxu2 %v11428_v21  ;;  %v3909_v26 = vadd.f32 %v3908_v15, %v3896_v24  ;;  %v3921_v56 = vpop.f32.mrf.mxu1  ;;  %v11440_v39 = vld [vmem:[#allocation135_spill] sm:$0xff] }
 0x5c2   :  { %4159 = vmatpush.bf16.msrb.mxu3 %v11429_v12  ;;  %v11441_v12 = vld [vmem:[#allocation140_spill] sm:$0xff] }
 0x5c3   :  { %4121 = vmatmul.bf16.vlgmr.msrb.gmra.mxu0 %v9515_v41  ;;  %v3922_v21 = vadd.f32 %v3921_v56, %v3909_v26 }
 0x5c4   :  { %4165 = vmatpush.bf16.msra.mxu0 %v11430_v19  ;;  %4134 = vmatmul.bf16.vlgmr.msrb.gmra.mxu1 %v9519_v49 }
 0x5c5   :  { %4178 = vmatpush.bf16.msra.mxu1 %v11431_v53  ;;  %4191 = vmatpush.bf16.msra.mxu2 %v11432_v14 }
 0x5c6   :  { %4204 = vmatpush.bf16.msra.mxu3 %v11433_v3  ;;  %4147 = vmatmul.bf16.vlgmr.msrb.gmra.mxu2 %v9753_v28 }
 0x5c7   :  { %4160 = vmatmul.bf16.vlgmr.msrb.gmra.mxu3 %v9757_v34 }
 0x5c8   :  { %4166 = vmatpush.bf16.msra.mxu0 %v11434_v29  ;;  %v3910_v24 = vpop.f32.mrf.mxu0  ;;  %v11455_v29 = vld [vmem:[#allocation167_spill] sm:$0xff] }
 0x5c9   :  { %4179 = vmatpush.bf16.msra.mxu1 %v11435_v9  ;;  %4192 = vmatpush.bf16.msra.mxu2 %v11436_v1  ;;  %v3934_v19 = vpop.f32.mrf.mxu2  ;;  %v3923_v3 = vpop.f32.mrf.mxu1  ;;  %v6146_v24 = vld [vmem:[%s10302_s5 + $0x48] sm:$0xff] }
 0x5ca   :  { %4205 = vmatpush.bf16.msra.mxu3 %v11437_v47  ;;  %v3935_v53 = vadd.f32 %v3934_v19, %v3922_v21  ;;  %v3947_v14 = vpop.f32.mrf.mxu3  ;;  %v6147_v21 = vld [vmem:[%s10302_s5 + $0x50] sm:$0xff]  ;;  %v6138_v19 = vld [vmem:[%s10302_s5 + $0x8] sm:$0xff] }
 0x5cb   :  { %v6154_v3 = vld [vmem:[%s10302_s5 + $0x88] sm:$0xff] }
 0x5cc   :  { %4167 = vmatpush.bf16.msra.mxu0 %v11438_v48 }
 0x5cd   :  { %4180 = vmatpush.bf16.msra.mxu1 %v11439_v22  ;;  %4193 = vmatpush.bf16.msra.mxu2 %v11440_v39  ;;  %v6139_v22 = vld [vmem:[%s10302_s5 + $0x10] sm:$0xff]  ;;  %v10206_v39 = vld [vmem:[%s10301_s4] ss:$0 sm:$0xff] }
 0x5ce   :  { %4206 = vmatpush.bf16.msra.mxu3 %v11129_v20  ;;  %v3948_v20 = vadd.f32 %v3947_v14, %v3935_v53  ;;  %v11457_v53 = vld [vmem:[#allocation29_spill] sm:$0xff] }
 0x5cf   :  { %v3318_v14 = vadd.f32 %v10206_v39, %v11457_v53 }
 0x5d0   :  { %4168 = vmatpush.bf16.msra.mxu0 %v11287_v18  ;;  %v3952_v18 = vmax.f32 %v10049_v40, %v3948_v20  ;;  %v11458_v20 = vld [vmem:[#allocation30_spill] sm:$0xff] }
 0x5d1   :  { %4181 = vmatpush.bf16.msra.mxu1 %v11288_v23  ;;  %4194 = vmatpush.bf16.msra.mxu2 %v11132_v17  ;;  %v11442_v17 = vmax.f32 %v9926_v57, %v9971_v25  ;;  %v11454_v25 = vld [vmem:[#allocation166_spill] sm:$0xff] }
 0x5d2   :  { %4207 = vmatpush.bf16.msra.mxu3 %v11441_v12  ;;  %v6155_v12 = vld [vmem:[%s10302_s5 + $0x90] sm:$0xff] }
 0x5d3   :  { %v10100_v23 = vmax.f32 %v11442_v17, %v3952_v18  ;;  %v3636_v18 = vadd.f32 %v10206_v39, %v11458_v20 }
 0x5d4   :  { %4169 = vmatpush.bf16.msra.mxu0 %v11134_v5  ;;  %v3936_v5 = vpop.f32.mrf.mxu2 }
 0x5d5   :  { %4182 = vmatpush.bf16.msra.mxu1 %v11290_v10  ;;  %4195 = vmatpush.bf16.msra.mxu2 %v11291_v37  ;;  %v3949_v37 = vpop.f32.mrf.mxu3  ;;  %v11448_v10 = vld [vmem:[#allocation160_spill] sm:$0xff]  ;;  %v3954_v17 = vadd.f32 %v10206_v39, %v10100_v23 }
 0x5d6   :  { %4208 = vmatpush.bf16.msra.mxu3 %v11137_v35  ;;  %v11444_v35 = vld [vmem:[#allocation156_spill] sm:$0xff] }
 0x5d7   :  { %v3955_v23 = vmax.f32 %v3954_v17, 0.0 }
 0x5d8   :  { %4170 = vmatpush.bf16.msra.mxu0 %v11138_v52  ;;  %v11443_v52 = vld [vmem:[#allocation155_spill] sm:$0xff] }
 0x5d9   :  { %4183 = vmatpush.bf16.msra.mxu1 %v11141_v38  ;;  %4196 = vmatpush.bf16.msra.mxu2 %v11142_v51  ;;  %v11445_v38 = vld [vmem:[#allocation157_spill] sm:$0xff]  ;;  %v11446_v51 = vld [vmem:[#allocation158_spill] sm:$0xff] }
 0x5da   :  { %4209 = vmatpush.bf16.msra.mxu3 %v11143_v58  ;;  %v11447_v58 = vld [vmem:[#allocation159_spill] sm:$0xff] }
 0x5dc   :  { %4171 = vmatpush.bf16.msra.mxu0 %v11144_v50  ;;  %v11449_v50 = vld [vmem:[#allocation161_spill] sm:$0xff] }
 0x5dd   :  { %4184 = vmatpush.bf16.msra.mxu1 %v11145_v46  ;;  %4197 = vmatpush.bf16.msra.mxu2 %v11294_v7  ;;  %v11450_v46 = vld [vmem:[#allocation162_spill] sm:$0xff]  ;;  %v11451_v7 = vld [vmem:[#allocation163_spill] sm:$0xff] }
 0x5de   :  { %4210 = vmatpush.bf16.msra.mxu3 %v11295_v27  ;;  %v11452_v27 = vld [vmem:[#allocation164_spill] sm:$0xff] }
 0x5e0   :  { %4172 = vmatpush.bf16.msra.mxu0 %v11296_v60  ;;  %v11453_v60 = vld [vmem:[#allocation165_spill] sm:$0xff]  ;;  %v3966_v57 = vpop.f32.mrf.mxu0 }
 0x5e1   :  { %4185 = vmatpush.bf16.msra.mxu1 %v11443_v52  ;;  %4198 = vmatpush.bf16.msra.mxu2 %v11444_v35  ;;  %v3979_v40 = vpop.f32.mrf.mxu1  ;;  %v6137_v52 = vld [vmem:[%s10302_s5] sm:$0xff]  ;;  %v3319_v35 = vmax.f32 %v3318_v14, 0.0 }
 0x5e2   :  { %4211 = vmatpush.bf16.msra.mxu3 %v11445_v38  ;;  %v3980_v9 = vadd.f32 %v3979_v40, %v3966_v57  ;;  %v6145_v38 = vld [vmem:[%s10302_s5 + $0x40] sm:$0xff] }
 0x5e3   :  { %4173 = vmatmul.bf16.vlgmr.msra.gmra.mxu0 %v9992_v30 }
 0x5e4   :  { %4217 = vmatpush.bf16.msrb.mxu0 %v11446_v51  ;;  %4186 = vmatmul.bf16.vlgmr.msra.gmra.mxu1 %v9996_v59  ;;  %v6153_v51 = vld [vmem:[%s10302_s5 + $0x80] sm:$0xff] }
 0x5e5   :  { %4230 = vmatpush.bf16.msrb.mxu1 %v11447_v58  ;;  %4243 = vmatpush.bf16.msrb.mxu2 %v11448_v10  ;;  %v3637_v58 = vmax.f32 %v3636_v18, 0.0  ;;  %v3320_v10 = vpack.c.bf16 %v3319_v35, %v3319_v35 }
 0x5e6   :  { %4256 = vmatpush.bf16.msrb.mxu3 %v11449_v50  ;;  %4199 = vmatmul.bf16.vlgmr.msra.gmra.mxu2 %v9515_v41 }
 0x5e7   :  { %4212 = vmatmul.bf16.vlgmr.msra.gmra.mxu3 %v9519_v49  ;;  %v3638_v50 = vpack.c.bf16 %v3637_v58, %v3637_v58 }
 0x5e8   :  { %4218 = vmatpush.bf16.msrb.mxu0 %v11450_v46  ;;  %v3968_v47 = vpop.f32.mrf.mxu0  ;;  %v3956_v46 = vpack.c.bf16 %v3955_v23, %v3955_v23 }
 0x5e9   :  { %4231 = vmatpush.bf16.msrb.mxu1 %v11451_v7  ;;  %4244 = vmatpush.bf16.msrb.mxu2 %v11452_v27  ;;  %v3992_v49 = vpop.f32.mrf.mxu2  ;;  %v3981_v15 = vpop.f32.mrf.mxu1 }
 0x5ea   :  { %4257 = vmatpush.bf16.msrb.mxu3 %v11453_v60  ;;  %v3993_v41 = vadd.f32 %v3992_v49, %v3980_v9  ;;  %v4005_v1 = vpop.f32.mrf.mxu3 }
 0x5ec   :  { %4219 = vmatpush.bf16.msrb.mxu0 %v11454_v25 }
 0x5ed   :  { %4232 = vmatpush.bf16.msrb.mxu1 %v11455_v29  ;;  %4245 = vmatpush.bf16.msrb.mxu2 %v11158_v16  ;;  %v4006_v16 = vadd.f32 %v4005_v1, %v3993_v41 }
 0x5ee   :  { %4258 = vmatpush.bf16.msrb.mxu3 %v11159_v11 }
 0x5f0   :  { %4220 = vmatpush.bf16.msrb.mxu0 %v11160_v0 }
 0x5f1   :  { %4233 = vmatpush.bf16.msrb.mxu1 %v11310_v42  ;;  %4246 = vmatpush.bf16.msrb.mxu2 %v11311_v45  ;;  %v3994_v11 = vpop.f32.mrf.mxu2  ;;  %v6148_v42 = vld [vmem:[%s10302_s5 + $0x58] sm:$0xff] }
 0x5f2   :  { %4259 = vmatpush.bf16.msrb.mxu3 %v11312_v55  ;;  %v4007_v0 = vpop.f32.mrf.mxu3  ;;  %v6140_v55 = vld [vmem:[%s10302_s5 + $0x18] sm:$0xff] }
 0x5f3   :  { %v6156_v45 = vld [vmem:[%s10302_s5 + $0x98] sm:$0xff] }
 0x5f4   :  { %4221 = vmatpush.bf16.msrb.mxu0 %v11164_v2  ;;  %v6144_v2 = vld [vmem:[%s10302_s5 + $0x38] sm:$0xff] }
 0x5f5   :  { %4234 = vmatpush.bf16.msrb.mxu1 %v9310_v61  ;;  %4247 = vmatpush.bf16.msrb.mxu2 %v9312_v36  ;;  %v6160_v61 = vld [vmem:[%s10302_s5 + $0xb8] sm:$0xff]  ;;  %v11456_v36 = vld [vmem:[#allocation179_spill] sm:$0xff] }
 0x5f6   :  { %4260 = vmatpush.bf16.msrb.mxu3 %v11165_v43  ;;  %v6149_v43 = vld [vmem:[%s10302_s5 + $0x60] sm:$0xff] }
 0x5f8   :  { %4222 = vmatpush.bf16.msrb.mxu0 %v9342_v63  ;;  %v6152_v63 = vld [vmem:[%s10302_s5 + $0x78] sm:$0xff] }
 0x5f9   :  { %4235 = vmatpush.bf16.msrb.mxu1 %v11166_v44  ;;  %4248 = vmatpush.bf16.msrb.mxu2 %v11167_v31  ;;  %v6141_v31 = vld [vmem:[%s10302_s5 + $0x20] sm:$0xff] }
 0x5fa   :  { %4261 = vmatpush.bf16.msrb.mxu3 %v11168_v32 }
 0x5fc   :  { %4223 = vmatpush.bf16.msrb.mxu0 %v9378_v6  ;;  %v6143_v6 = vld [vmem:[%s10302_s5 + $0x30] sm:$0xff] }
 0x5fd   :  { %4236 = vmatpush.bf16.msrb.mxu1 %v9382_v62  ;;  %4249 = vmatpush.bf16.msrb.mxu2 %v9384_v13  ;;  %v6151_v62 = vld [vmem:[%s10302_s5 + $0x70] sm:$0xff] }
 0x5fe   :  { %4262 = vmatpush.bf16.msrb.mxu3 %v9396_v33  ;;  %v6159_v13 = vld [vmem:[%s10302_s5 + $0xb0] sm:$0xff]  ;;  %v6150_v33 = vld [vmem:[%s10302_s5 + $0x68] sm:$0xff] }
 0x600   :  { %4224 = vmatpush.bf16.msrb.mxu0 %v9414_v8  ;;  %v6158_v8 = vld [vmem:[%s10302_s5 + $0xa8] sm:$0xff] }
 0x601   :  { %4237 = vmatpush.bf16.msrb.mxu1 %v9418_v4  ;;  %4250 = vmatpush.bf16.msrb.mxu2 %v9420_v54  ;;  %v6142_v54 = vld [vmem:[%s10302_s5 + $0x28] sm:$0xff]  ;;  %v4018_v4 = vpop.f32.mrf.mxu0  ;;  %v4031_v44 = vpop.f32.mrf.mxu1 }
 0x602   :  { %4263 = vmatpush.bf16.msrb.mxu3 %v11456_v36  ;;  %v4019_v32 = vadd.f32 %v4018_v4, %v4006_v16  ;;  %v6168_v36 = vld [vmem:[%s10302_s5 + $0xf8] sm:$0xff] }
 0x603   :  { %4225 = vmatmul.bf16.vlgmr.msrb.gmra.mxu0 %v9753_v28  ;;  %v6157_v28 = vld [vmem:[%s10302_s5 + $0xa0] sm:$0xff] }
 0x604   :  { %4535 = vmatpush.bf16.msra.mxu0 %v6144_v2  ;;  %4238 = vmatmul.bf16.vlgmr.msrb.gmra.mxu1 %v9757_v34  ;;  %v10189_v34 = vadd.f32 %v4031_v44, %v4019_v32  ;;  %v6164_v32 = vld [vmem:[%s10302_s5 + $0xd8] sm:$0xff] }
 0x605   :  { %4548 = vmatpush.bf16.msra.mxu1 %v6152_v63  ;;  %4561 = vmatpush.bf16.msra.mxu2 %v6160_v61 }
 0x606   :  { %4251 = vmatmul.bf16.vlgmr.msrb.gmra.mxu2 %v9992_v30  ;;  %4264 = vmatmul.bf16.vlgmr.msrb.gmra.mxu3 %v9996_v59 }
 0x607   :  { %4574 = vmatpush.bf16.msra.mxu3 %v6168_v36  ;;  %v6180_v36 = vld [vmem:[%s10305_s8] ss:$0 sm:$0xff] }
 0x608   :  { %4536 = vmatpush.bf16.msra.mxu0 %v6143_v6 }
 0x609   :  { %4549 = vmatpush.bf16.msra.mxu1 %v6151_v62  ;;  %4562 = vmatpush.bf16.msra.mxu2 %v6159_v13  ;;  %v4044_v30 = vpop.f32.mrf.mxu2  ;;  %v4020_v48 = vpop.f32.mrf.mxu0  ;;  %v6167_v13 = vld [vmem:[%s10302_s5 + $0xf0] sm:$0xff] }
 0x60a   :  { %v4057_v59 = vpop.f32.mrf.mxu3  ;;  %v4033_v56 = vpop.f32.mrf.mxu1 }
 0x60b   :  { %v4058_v26 = vadd.f32 %v4057_v59, %v4044_v30  ;;  %4575 = vmatpush.bf16.msra.mxu3 %v6167_v13 }
 0x60c   :  { %4537 = vmatpush.bf16.msra.mxu0 %v6142_v54  ;;  %v6166_v54 = vld [vmem:[%s10302_s5 + $0xe8] sm:$0xff] }
 0x60d   :  { %4550 = vmatpush.bf16.msra.mxu1 %v6150_v33  ;;  %4563 = vmatpush.bf16.msra.mxu2 %v6158_v8  ;;  %v6165_v33 = vld [vmem:[%s10302_s5 + $0xe0] sm:$0xff] }
 0x60f   :  { %4576 = vmatpush.bf16.msra.mxu3 %v6166_v54 }
 0x610   :  { %4538 = vmatpush.bf16.msra.mxu0 %v6141_v31  ;;  %v6163_v31 = vld [vmem:[%s10302_s5 + $0xd0] sm:$0xff] }
 0x611   :  { %4551 = vmatpush.bf16.msra.mxu1 %v6149_v43  ;;  %4564 = vmatpush.bf16.msra.mxu2 %v6157_v28  ;;  %v4046_v5 = vpop.f32.mrf.mxu2 }
 0x612   :  { %v4059_v37 = vpop.f32.mrf.mxu3 }
 0x613   :  { %4577 = vmatpush.bf16.msra.mxu3 %v6165_v33 }
 0x614   :  { %4539 = vmatpush.bf16.msra.mxu0 %v6140_v55  ;;  %v6162_v55 = vld [vmem:[%s10302_s5 + $0xc8] sm:$0xff] }
 0x615   :  { %4552 = vmatpush.bf16.msra.mxu1 %v6148_v42  ;;  %4565 = vmatpush.bf16.msra.mxu2 %v6156_v45  ;;  %v6161_v45 = vld [vmem:[%s10302_s5 + $0xc0] sm:$0xff] }
 0x617   :  { %4578 = vmatpush.bf16.msra.mxu3 %v6164_v32 }
 0x618   :  { %4540 = vmatpush.bf16.msra.mxu0 %v6139_v22 }
 0x619   :  { %4553 = vmatpush.bf16.msra.mxu1 %v6147_v21  ;;  %4566 = vmatpush.bf16.msra.mxu2 %v6155_v12 }
 0x61b   :  { %4579 = vmatpush.bf16.msra.mxu3 %v6163_v31 }
 0x61c   :  { %4541 = vmatpush.bf16.msra.mxu0 %v6138_v19 }
 0x61d   :  { %4554 = vmatpush.bf16.msra.mxu1 %v6146_v24  ;;  %4567 = vmatpush.bf16.msra.mxu2 %v6154_v3 }
 0x61f   :  { %4580 = vmatpush.bf16.msra.mxu3 %v6162_v55 }
 0x620   :  { %4542 = vmatpush.bf16.msra.mxu0 %v6137_v52  ;;  %v4070_v7 = vpop.f32.mrf.mxu0  ;;  %v6176_v52 = vld [vmem:[%s10304_s7 + $0x38] sm:$0xff] }
 0x621   :  { %4555 = vmatpush.bf16.msra.mxu1 %v6145_v38  ;;  %4568 = vmatpush.bf16.msra.mxu2 %v6153_v51  ;;  %v4071_v27 = vadd.f32 %v4070_v7, %v4058_v26  ;;  %v4083_v60 = vpop.f32.mrf.mxu1  ;;  %v6175_v38 = vld [vmem:[%s10304_s7 + $0x30] sm:$0xff]  ;;  %v6173_v7 = vld [vmem:[%s10304_s7 + $0x20] sm:$0xff] }
 0x623   :  { %4543 = vmatmul.bf16.vlgmr.msra.gmra.mxu0 %v3320_v10  ;;  %v4084_v57 = vadd.f32 %v4083_v60, %v4071_v27  ;;  %4581 = vmatpush.bf16.msra.mxu3 %v6161_v45  ;;  %v6179_v27 = vld [vmem:[%s10303_s6] ss:$0 sm:$0xff] }
 0x624   :  { %4556 = vmatmul.bf16.vlgmr.msra.gmra.mxu1 %v3638_v50  ;;  %4569 = vmatmul.bf16.vlgmr.msra.gmra.mxu2 %v3956_v46  ;;  %v6174_v50 = vld [vmem:[%s10304_s7 + $0x28] sm:$0xff] }
 0x625   :  { %4657 = vmatpush.bf16.msrb.mxu0 %v6176_v52 }
 0x628   :  { %v4072_v9 = vpop.f32.mrf.mxu0 }
 0x629   :  { %v4096_v25 = vpop.f32.mrf.mxu2  ;;  %v4085_v49 = vpop.f32.mrf.mxu1  ;;  %4658 = vmatpush.bf16.msrb.mxu0 %v6175_v38 }
 0x62a   :  { %v4097_v40 = vadd.f32 %v4096_v25, %v4084_v57  ;;  %v4109_v29 = vpop.f32.mrf.mxu3 }
 0x62c   :  { %v4110_v41 = vadd.f32 %v4109_v29, %v4097_v40  ;;  %v6171_v40 = vld [vmem:[%s10304_s7 + $0x10] sm:$0xff] }
 0x62d   :  { %4659 = vmatpush.bf16.msrb.mxu0 %v6174_v50 }
 0x62e   :  { %v4269_v1 = vmax.f32 %v10189_v34, %v4110_v41 }
 0x631   :  { %v4098_v47 = vpop.f32.mrf.mxu2  ;;  %4660 = vmatpush.bf16.msrb.mxu0 %v6173_v7 }
 0x632   :  { %v4111_v15 = vpop.f32.mrf.mxu3 }
 0x633   :  { %v6170_v15 = vld [vmem:[%s10304_s7 + $0x8] sm:$0xff] }
 0x640   :  { %v4122_v16 = vpop.f32.mrf.mxu0 }
 0x641   :  { %v4135_v11 = vpop.f32.mrf.mxu1 }
 0x642   :  { %v4136_v59 = vadd.f32 %v4135_v11, %v4122_v16  ;;  %v6169_v16 = vld [vmem:[%s10304_s7] sm:$0xff] }
 0x648   :  { %v4124_v63 = vpop.f32.mrf.mxu0 }
 0x649   :  { %v4148_v0 = vpop.f32.mrf.mxu2  ;;  %v4137_v61 = vpop.f32.mrf.mxu1 }
 0x64a   :  { %v4161_v2 = vpop.f32.mrf.mxu3  ;;  %v4149_v48 = vadd.f32 %v4148_v0, %v4136_v59 }
 0x64c   :  { %v4162_v12 = vadd.f32 %v4161_v2, %v4149_v48 }
 0x651   :  { %v4150_v6 = vpop.f32.mrf.mxu2 }
 0x652   :  { %v4163_v62 = vpop.f32.mrf.mxu3 }
 0x660   :  { %v4174_v8 = vpop.f32.mrf.mxu0 }
 0x661   :  { %v4187_v4 = vpop.f32.mrf.mxu1  ;;  %v4175_v19 = vadd.f32 %v4174_v8, %v4162_v12 }
 0x663   :  { %v4188_v17 = vadd.f32 %v4187_v4, %v4175_v19 }
 0x668   :  { %v4176_v28 = vpop.f32.mrf.mxu0 }
 0x669   :  { %v4200_v44 = vpop.f32.mrf.mxu2  ;;  %v4189_v34 = vpop.f32.mrf.mxu1 }
 0x66a   :  { %v4213_v43 = vpop.f32.mrf.mxu3 }
 0x66b   :  { %v4214_v26 = vadd.f32 %v4213_v43, %v4200_v44 }
 0x671   :  { %v4202_v42 = vpop.f32.mrf.mxu2 }
 0x672   :  { %v4215_v30 = vpop.f32.mrf.mxu3 }
 0x680   :  { %v4226_v56 = vpop.f32.mrf.mxu0 }
 0x681   :  { %v4239_v22 = vpop.f32.mrf.mxu1  ;;  %v4227_v21 = vadd.f32 %v4226_v56, %v4214_v26 }
 0x683   :  { %v4240_v53 = vadd.f32 %v4239_v22, %v4227_v21 }
 0x688   :  { %v4228_v20 = vpop.f32.mrf.mxu0 }
 0x689   :  { %v4252_v14 = vpop.f32.mrf.mxu2  ;;  %v4265_v24 = vpop.f32.mrf.mxu3 }
 0x68a   :  { %v4253_v3 = vadd.f32 %v4252_v14, %v4240_v53  ;;  %v4241_v18 = vpop.f32.mrf.mxu1 }
 0x68c   :  { %v4266_v5 = vadd.f32 %v4265_v24, %v4253_v3 }
 0x68e   :  { %v4270_v37 = vmax.f32 %v4188_v17, %v4266_v5 }
 0x690   :  { %v4271_v35 = vmax.f32 %v4269_v1, %v4270_v37 }
 0x691   :  { %v4254_v51 = vpop.f32.mrf.mxu2  ;;  %v4267_v58 = vpop.f32.mrf.mxu3 }
 0x692   :  { %v4272_v23 = vadd.f32 %v10206_v39, %v4271_v35  ;;  %v6172_v39 = vld [vmem:[%s10304_s7 + $0x18] sm:$0xff] }
 0x693   :  { %4661 = vmatpush.bf16.msrb.mxu0 %v6172_v39 }
 0x694   :  { %v4273_v10 = vmax.f32 %v4272_v23, 0.0 }
 0x696   :  { %v4274_v46 = vpack.c.bf16 %v4273_v10, %v4273_v10 }
 0x697   :  { %4662 = vmatpush.bf16.msrb.mxu0 %v6171_v40 }
 0x698   :  { %4582 = vmatmul.bf16.vlgmr.msra.gmra.mxu3 %v4274_v46 }
 0x69b   :  { %4663 = vmatpush.bf16.msrb.mxu0 %v6170_v15 }
 0x69f   :  { %4664 = vmatpush.bf16.msrb.mxu0 %v6169_v16 }
 0x6a0   :  { %v4544_v60 = vpop.f32.mrf.mxu0 }
 0x6a1   :  { %v4545_v57 = vadd.f32 %v6179_v27, %v4544_v60  ;;  %v4557_v25 = vpop.f32.mrf.mxu1 }
 0x6a3   :  { %v4558_v29 = vadd.f32 %v4557_v25, %v4545_v57 }
 0x6a7   :  { %v4570_v9 = vpop.f32.mrf.mxu2 }
 0x6a8   :  { %v4571_v49 = vadd.f32 %v4570_v9, %v4558_v29  ;;  %v4546_v41 = vpop.f32.mrf.mxu0 }
 0x6a9   :  { %v4559_v1 = vpop.f32.mrf.mxu1 }
 0x6af   :  { %v4572_v47 = vpop.f32.mrf.mxu2 }
 0x71b   :  { %v4583_v11 = vpop.f32.mrf.mxu3 }
 0x71c   :  { %v4584_v0 = vadd.f32 %v4583_v11, %v4571_v49 }
 0x71e   :  { %v4587_v2 = vmax.f32 %v4584_v0, 0.0 }
 0x720   :  { %v4588_v63 = vpack.c.bf16 %v4587_v2, %v4587_v2 }
 0x722   :  { %4665 = vmatmul.bf16.vlgmr.msrb.gmra.mxu0 %v4588_v63 }
 0x723   :  { %v4585_v61 = vpop.f32.mrf.mxu3 }
 0x79f   :  { %v4666_v6 = vpop.f32.mrf.mxu0 }
 0x7a0   :  { %v4667_v62 = vadd.f32 %v6180_v36, %v4666_v6 }
 0x7a2   :  { %4670 = vmax.xlane.f32.xlu0 %v4667_v62 }
 0x7a7   :  { %v4668_v13 = vpop.f32.mrf.mxu0 }
 0x815   :  { %v4671_v54 = vpop.xlane.xlu0 %4670 }
 0x816   :  { %v4672_v33 = vsub.f32 %v4667_v62, %v4671_v54 }
 0x818   :  { %v4673_v8 = vmul.f32 1.442695, %v4672_v33 }
 0x81a   :  { %6181 = vpow2.f32 %v4673_v8 }
 0x820   :  { %v6182_v4 = vpop.eup %6181 }
 0x821   :  { %4675 = vadd.xlane.f32.xlu0 %v6182_v4 }
 0x894   :  { %v4676_v32 = vpop.xlane.xlu0 %4675 }
 0x895   :  { %6183 = vlog2.f32 %v4676_v32 }
 0x89b   :  { %v6184_v44 = vpop.eup %6183 }
 0x89c   :  { %v4678_v31 = vmul.f32 0.6931472, %v6184_v44 }
 0x89e   :  { %v4679_v43 = vadd.f32 %v4678_v31, %v4671_v54 }
 0x8a0   :  { %v4680_v28 = vsub.f32 %v4667_v62, %v4679_v43 }
 0x8a2   :  { %4681 = vst [vmem:[%s10306_s9] sm:$0xff] %v4680_v28 }

</bundles_post_ra>
